<compile_context>
chip_gen: v5e
topology: v5e:2x2
jax: 0.10.0
libtpu: 0.0.40
codegen_flags: <defaults>
</compile_context>

<pallas_src>
import functools

import jax
import jax.numpy as jnp
from jax.experimental import pallas as pl
from jax.experimental.pallas import tpu as pltpu


def _round_up(v, m):
    return (v + m - 1) // m * m


def _pick_tile_rows(H, Wp, Cpad, budget_bytes=6 * 1024 * 1024):
    """Output rows per grid step.  Prefer the whole image (no halo duplication
    in HBM); otherwise the largest 8-aligned divisor of H whose bf16 halo slab
    fits the budget."""
    def slab_bytes(th):
        return (th + 4) * Wp * Cpad * 2            # bf16 slab
    if slab_bytes(H) <= budget_bytes:
        return H
    cands = [t for t in range(8, H, 8)
             if H % t == 0 and slab_bytes(t) <= budget_bytes]
    if cands:
        return max(cands)
    # TODO(synk): ragged row tiling for huge images whose H has no suitable
    #             8-aligned divisor; fall back to a single (large) tile.
    return H


def basic_block_kernel(x_ref, w1_ref, s1_ref, b1_ref, w2_ref, s2_ref, b2_ref,
                       out_ref, acc1_ref, acc2_ref, *, Wp, M2p, M3, TH, H, W):
    # x_ref   : (M1, Cpad)   bf16 flattened (rows, cols) halo slab of this tile
    #                        (pre-ReLU; spatial/channel padding is zero)
    # w*_ref  : (9, Cpad, Cpad) bf16 3x3 taps as channel matmuls
    # s*, b*  : (1, Cpad)    f32 folded BN scale / bias
    # out_ref : (M3, Cpad)   bf16 flattened (TH, Wp) output rows of this tile
    # acc*_ref: f32 VMEM accumulators for conv1 / conv2

    x = jnp.maximum(x_ref[...], 0.0)                      # ReLU (stays bf16)

    # Hoist the kx (column) shifts out of the tap loops; the remaining in-loop
    # offsets are ky*Wp, which are sublane-aligned (Wp is a multiple of 8).
    span1 = 2 * Wp + M2p
    xs = (x[0:span1, :], x[1:1 + span1, :], x[2:2 + span1, :])

    # ---- conv1 on the extended window: 9 (M,Cpad)x(Cpad,Cpad) MXU matmuls ---
    for ky in range(3):
        base = ky * Wp
        for kx in range(3):
            c = jnp.dot(xs[kx][base:base + M2p, :], w1_ref[3 * ky + kx],
                        preferred_element_type=jnp.float32)
            if ky == 0 and kx == 0:
                acc1_ref[...] = c
            else:
                acc1_ref[...] += c

    # bn1 + relu (f32), then re-create conv2's zero padding with an in-kernel
    # mask (no mask DMA).  The mask also zeros the rounded overhang rows.
    y = jnp.maximum(acc1_ref[...] * s1_ref[...] + b1_ref[...], 0.0)

    r = pl.program_id(1)
    idx = jax.lax.broadcasted_iota(jnp.int32, (M2p, 1), 0).astype(jnp.float32)
    a = jnp.floor((idx + 0.5) * (1.0 / Wp))      # extended-row index  i // Wp
    b = idx - a * Wp                             # column index        i %  Wp
    g = a + (r * TH - 1).astype(jnp.float32)     # global conv1 output row
    valid = ((g >= 0.0) & (g < H) & (b >= 0.5) & (b <= W + 0.5) &
             (a < TH + 1.5))

    yb16 = y.astype(jnp.bfloat16)                # mask applied on packed bf16
    yb = jnp.where(valid, yb16, jnp.zeros_like(yb16))

    # ---- conv2 --------------------------------------------------------------
    span2 = 2 * Wp + M3
    ys = (yb[0:span2, :], yb[1:1 + span2, :], yb[2:2 + span2, :])
    for ky in range(3):
        base = ky * Wp
        for kx in range(3):
            c = jnp.dot(ys[kx][base:base + M3, :], w2_ref[3 * ky + kx],
                        preferred_element_type=jnp.float32)
            if ky == 0 and kx == 0:
                acc2_ref[...] = c
            else:
                acc2_ref[...] += c

    out = acc2_ref[...] * s2_ref[...] + b2_ref[...]       # bn2 (se = Identity)

    # residual: identity = relu(x) at the output pixel positions; f32 add,
    # bf16 store (halves HBM writeback).
    identity = x[2 * Wp + 2: 2 * Wp + 2 + M3, :].astype(jnp.float32)
    out_ref[...] = (out + identity).astype(jnp.bfloat16)


def basic_block_pallas(x_nchw, w1_oihw, bn1, w2_oihw, bn2, eps=1e-5):
    """x_nchw: (N, C, H, W) float32 -> (N, C, H, W) float32."""
    N, C, H, W = x_nchw.shape
    Cout = w1_oihw.shape[0]
    assert Cout == C, "BasicBlock with downsample=None requires inplanes == planes"

    Cpad = _round_up(max(C, 128), 128)          # lane-dense channels
    Wp = _round_up(W + 4, 8)                    # padded row width (sublane aligned)
    TH = _pick_tile_rows(H, Wp, Cpad)           # output rows per grid step
    R = max(H // TH, 1)
    M3 = TH * Wp                                # flattened output rows / tile
    M2p = _round_up((TH + 2) * Wp + 2, 16)      # conv1 extended rows (+ overhang)
    M1 = _round_up(max(2 * Wp + 2 + M2p, (TH + 4) * Wp), 16)   # slab rows / tile

    # NCHW -> NHWC bf16, pad: 2 rows top/bottom, 2 (+align) cols, channels to Cpad.
    x_nhwc = jnp.transpose(x_nchw, (0, 2, 3, 1)).astype(jnp.bfloat16)
    x_p = jnp.pad(x_nhwc, ((0, 0), (2, 2), (2, Wp - W - 2), (0, Cpad - C)))

    if R == 1:
        # Whole image per step: no overlapping-window duplication in HBM.
        x_flat = x_p.reshape(N, 1, (H + 4) * Wp, Cpad)
    else:
        # Fallback for very large images: overlapping row-tile halo slabs.
        tiles = jnp.stack([x_p[:, r * TH:r * TH + TH + 4] for r in range(R)],
                          axis=1)
        x_flat = tiles.reshape(N, R, (TH + 4) * Wp, Cpad)
    x_flat = jnp.pad(x_flat, ((0, 0), (0, 0), (0, M1 - (TH + 4) * Wp), (0, 0)))

    # Conv weights OIHW -> (ky*3+kx, Cin_pad, Cout_pad), bf16.
    def prep_w(w):
        t = jnp.transpose(w, (2, 3, 1, 0)).reshape(9, w.shape[1], w.shape[0])
        t = jnp.pad(t, ((0, 0), (0, Cpad - w.shape[1]), (0, Cpad - w.shape[0])))
        return t.astype(jnp.bfloat16)

    w1 = prep_w(w1_oihw)
    w2 = prep_w(w2_oihw)

    # Fold inference BN to scale/bias; padded channels get scale=1, bias=0.
    def fold(bn):
        gamma, beta, mean, var = bn
        scale = gamma / jnp.sqrt(var + eps)
        bias = beta - mean * scale
        scale = jnp.pad(scale.astype(jnp.float32), (0, Cpad - C),
                        constant_values=1.0)
        bias = jnp.pad(bias.astype(jnp.float32), (0, Cpad - C))
        return scale.reshape(1, Cpad), bias.reshape(1, Cpad)

    s1, b1 = fold(bn1)
    s2, b2 = fold(bn2)

    kernel = functools.partial(basic_block_kernel,
                               Wp=Wp, M2p=M2p, M3=M3, TH=TH, H=H, W=W)

    # Grid-invariant operands: one VMEM copy instead of double buffering.
    w_spec = pl.BlockSpec((9, Cpad, Cpad), lambda n, r: (0, 0, 0),
                          pipeline_mode=pl.Buffered(1))
    v_spec = pl.BlockSpec((1, Cpad), lambda n, r: (0, 0),
                          pipeline_mode=pl.Buffered(1))

    out_flat = pl.pallas_call(
        kernel,
        out_shape=jax.ShapeDtypeStruct((N, R, M3, Cpad), jnp.bfloat16),
        grid_spec=pltpu.PrefetchScalarGridSpec(
            num_scalar_prefetch=0,
            grid=(N, R),                      # N*R >= 2 keeps both v7x TCs busy
            in_specs=[
                pl.BlockSpec((None, None, M1, Cpad), lambda n, r: (n, r, 0, 0)),
                w_spec, v_spec, v_spec, w_spec, v_spec, v_spec,
            ],
            out_specs=pl.BlockSpec((None, None, M3, Cpad),
                                   lambda n, r: (n, r, 0, 0)),
            scratch_shapes=[pltpu.VMEM((M2p, Cpad), jnp.float32),
                            pltpu.VMEM((M3, Cpad), jnp.float32)],
        ),
        compiler_params=pltpu.CompilerParams(
            dimension_semantics=("parallel", "parallel"),
            # Budgeted for v7x's 64 MiB physical VMEM as well as v5e/v6e.
            vmem_limit_bytes=32 * 1024 * 1024),
    )(x_flat, w1, s1, b1, w2, s2, b2)

    # (N, R, TH*Wp, Cpad) bf16 -> (N, H, W, C) f32 -> NCHW
    out = out_flat.reshape(N, R, TH, Wp, Cpad)[:, :, :, :W, :C]
    out = out.reshape(N, H, W, C).astype(jnp.float32)
    return jnp.transpose(out, (0, 3, 1, 2))


def _bn_apply(v, p, eps):
    gamma, beta, mean, var = p
    return (v - mean) / jnp.sqrt(var + eps) * gamma + beta


def basic_block_reference_f32(x_nchw, w1_oihw, bn1, w2_oihw, bn2, eps=1e-5):
    """Pure-f32 reference of the PyTorch module (NHWC convs)."""
    x = jnp.transpose(x_nchw, (0, 2, 3, 1))
    x = jnp.maximum(x, 0.0)
    identity = x

    def conv(v, w_oihw):
        w_hwio = jnp.transpose(w_oihw, (2, 3, 1, 0))
        return jax.lax.conv_general_dilated(
            v, w_hwio, window_strides=(1, 1), padding="SAME",
            dimension_numbers=("NHWC", "HWIO", "NHWC"))

    out = jnp.maximum(_bn_apply(conv(x, w1_oihw), bn1, eps), 0.0)
    out = _bn_apply(conv(out, w2_oihw), bn2, eps)
    out = out + identity
    return jnp.transpose(out, (0, 3, 1, 2))


def basic_block_reference_bf16(x_nchw, w1_oihw, bn1, w2_oihw, bn2, eps=1e-5):
    """Precision-matched reference: bf16 conv operands + bf16 output store,
    f32 accumulation / BN, mirroring the Pallas kernel's numerics."""
    x = jnp.transpose(x_nchw, (0, 2, 3, 1)).astype(jnp.bfloat16)
    x = jnp.maximum(x, 0).astype(jnp.float32)
    identity = x

    def conv(v, w_oihw):
        w_hwio = jnp.transpose(w_oihw, (2, 3, 1, 0)).astype(jnp.bfloat16)
        return jax.lax.conv_general_dilated(
            v.astype(jnp.bfloat16), w_hwio, window_strides=(1, 1),
            padding="SAME", dimension_numbers=("NHWC", "HWIO", "NHWC"),
            preferred_element_type=jnp.float32)

    out = jnp.maximum(_bn_apply(conv(x, w1_oihw), bn1, eps), 0.0)
    out = _bn_apply(conv(out, w2_oihw), bn2, eps)
    out = (out + identity).astype(jnp.bfloat16).astype(jnp.float32)
    return jnp.transpose(out, (0, 3, 1, 2))


if __name__ == "__main__":
    N, C, H, W = 2, 4, 16, 16        # inplanes = planes = 4, stride = 1
    key = jax.random.PRNGKey(0)
    ks = jax.random.split(key, 11)

    x = jax.random.normal(ks[0], (N, C, H, W), jnp.float32)
    w1 = jax.random.normal(ks[1], (C, C, 3, 3), jnp.float32) * 0.2
    w2 = jax.random.normal(ks[2], (C, C, 3, 3), jnp.float32) * 0.2

    bn1 = (jax.random.uniform(ks[3], (C,), minval=0.5, maxval=1.5),   # gamma
           jax.random.normal(ks[4], (C,)) * 0.1,                      # beta
           jax.random.normal(ks[5], (C,)) * 0.1,                      # running_mean
           jax.random.uniform(ks[6], (C,), minval=0.5, maxval=1.5))   # running_var
    bn2 = (jax.random.uniform(ks[7], (C,), minval=0.5, maxval=1.5),
           jax.random.normal(ks[8], (C,)) * 0.1,
           jax.random.normal(ks[9], (C,)) * 0.1,
           jax.random.uniform(ks[10], (C,), minval=0.5, maxval=1.5))

    out = basic_block_pallas(x, w1, bn1, w2, bn2)
    out = jax.block_until_ready(out)
    assert out.shape == (N, C, H, W)

    # Check vs precision-matched (bf16 operands + bf16 store, f32 accum) reference.
    ref_b = basic_block_reference_bf16(x, w1, bn1, w2, bn2)
    assert jnp.allclose(out, ref_b, atol=5e-2, rtol=2e-2), "mismatch vs bf16 reference"

    # Loose sanity check vs the pure-f32 module (bf16 MXU / store lose precision).
    ref_f = basic_block_reference_f32(x, w1, bn1, w2, bn2)
    assert jnp.allclose(out, ref_f, atol=2.5e-1, rtol=1e-1), "mismatch vs f32 reference"

    print("KERNEL_OK")
</pallas_src>

<mosaic_0001>
module attributes {stable_mosaic.version = 11 : i64} {
  func.func @basic_block_kernel(%arg0: i32, %arg1: i32, %arg2: memref<1x1x512x128xbf16, #tpu.memory_space<vmem>>, %arg3: memref<9x128x128xbf16, #tpu.memory_space<vmem>>, %arg4: memref<1x128xf32, #tpu.memory_space<vmem>>, %arg5: memref<1x128xf32, #tpu.memory_space<vmem>>, %arg6: memref<9x128x128xbf16, #tpu.memory_space<vmem>>, %arg7: memref<1x128xf32, #tpu.memory_space<vmem>>, %arg8: memref<1x128xf32, #tpu.memory_space<vmem>>, %arg9: memref<1x1x384x128xbf16, #tpu.memory_space<vmem>>, %arg10: memref<448x128xf32, #tpu.memory_space<vmem>>, %arg11: memref<384x128xf32, #tpu.memory_space<vmem>>) attributes {dimension_semantics = [#tpu.dimension_semantics<parallel>, #tpu.dimension_semantics<parallel>], iteration_bounds = array<i64: 2, 1>, scalar_prefetch = 0 : i64, scratch_operands = 2 : i64, tpu.core_type = #tpu.core_type<tc>, window_params = [{transform_indices = @transform_0, window_bounds = array<i64: 1, 1, 512, 128>}, {pipeline_mode = #tpu.pipeline_mode<synchronous>, transform_indices = @transform_1, window_bounds = array<i64: 9, 128, 128>}, {pipeline_mode = #tpu.pipeline_mode<synchronous>, transform_indices = @transform_2, window_bounds = array<i64: 1, 128>}, {pipeline_mode = #tpu.pipeline_mode<synchronous>, transform_indices = @transform_3, window_bounds = array<i64: 1, 128>}, {pipeline_mode = #tpu.pipeline_mode<synchronous>, transform_indices = @transform_4, window_bounds = array<i64: 9, 128, 128>}, {pipeline_mode = #tpu.pipeline_mode<synchronous>, transform_indices = @transform_5, window_bounds = array<i64: 1, 128>}, {pipeline_mode = #tpu.pipeline_mode<synchronous>, transform_indices = @transform_6, window_bounds = array<i64: 1, 128>}, {transform_indices = @transform_7, window_bounds = array<i64: 1, 1, 384, 128>}]} {
    %c0 = arith.constant 0 : index
    %c0_0 = arith.constant 0 : index
    %c0_1 = arith.constant 0 : index
    %c0_2 = arith.constant 0 : index
    %0 = vector.load %arg2[%c0, %c0_0, %c0_1, %c0_2] : memref<1x1x512x128xbf16, #tpu.memory_space<vmem>>, vector<1x1x512x128xbf16>
    %1 = vector.shape_cast %0 : vector<1x1x512x128xbf16> to vector<512x128xbf16>
    %cst = arith.constant 0.000000e+00 : bf16
    %2 = vector.broadcast %cst : bf16 to vector<512x128xbf16>
    %3 = arith.maximumf %1, %2 : vector<512x128xbf16>
    %4 = vector.extract_strided_slice %3 {offsets = [0, 0], sizes = [496, 128], strides = [1, 1]} : vector<512x128xbf16> to vector<496x128xbf16>
    %5 = vector.extract_strided_slice %3 {offsets = [1, 0], sizes = [496, 128], strides = [1, 1]} : vector<512x128xbf16> to vector<496x128xbf16>
    %6 = vector.extract_strided_slice %3 {offsets = [2, 0], sizes = [496, 128], strides = [1, 1]} : vector<512x128xbf16> to vector<496x128xbf16>
    %7 = vector.extract_strided_slice %4 {offsets = [0, 0], sizes = [448, 128], strides = [1, 1]} : vector<496x128xbf16> to vector<448x128xbf16>
    %c0_3 = arith.constant 0 : index
    %c0_4 = arith.constant 0 : index
    %c0_5 = arith.constant 0 : index
    %8 = vector.load %arg3[%c0_3, %c0_4, %c0_5] : memref<9x128x128xbf16, #tpu.memory_space<vmem>>, vector<1x128x128xbf16>
    %9 = vector.shape_cast %8 : vector<1x128x128xbf16> to vector<128x128xbf16>
    %cst_6 = arith.constant dense<0.000000e+00> : vector<448x128xf32>
    %10 = tpu.matmul %7, %9, %cst_6 {dimension_numbers = #tpu.dot_dimension_numbers<[1], [0], [0], [1], [0, 0, 1, 1], [], []>} : vector<448x128xbf16>, vector<128x128xbf16>, vector<448x128xf32> -> vector<448x128xf32>
    %c0_7 = arith.constant 0 : index
    %c0_8 = arith.constant 0 : index
    %11 = vector.load %arg10[%c0_7, %c0_8] : memref<448x128xf32, #tpu.memory_space<vmem>>, vector<448x128xf32>
    tpu.vector_store %arg10[%c0_7, %c0_8], %10 {strides = array<i32>} : memref<448x128xf32, #tpu.memory_space<vmem>>, vector<448x128xf32>,
    %12 = vector.extract_strided_slice %5 {offsets = [0, 0], sizes = [448, 128], strides = [1, 1]} : vector<496x128xbf16> to vector<448x128xbf16>
    %c1 = arith.constant 1 : index
    %c0_9 = arith.constant 0 : index
    %c0_10 = arith.constant 0 : index
    %13 = vector.load %arg3[%c1, %c0_9, %c0_10] : memref<9x128x128xbf16, #tpu.memory_space<vmem>>, vector<1x128x128xbf16>
    %14 = vector.shape_cast %13 : vector<1x128x128xbf16> to vector<128x128xbf16>
    %cst_11 = arith.constant dense<0.000000e+00> : vector<448x128xf32>
    %15 = tpu.matmul %12, %14, %cst_11 {dimension_numbers = #tpu.dot_dimension_numbers<[1], [0], [0], [1], [0, 0, 1, 1], [], []>} : vector<448x128xbf16>, vector<128x128xbf16>, vector<448x128xf32> -> vector<448x128xf32>
    %c0_12 = arith.constant 0 : index
    %c0_13 = arith.constant 0 : index
    %16 = vector.load %arg10[%c0_12, %c0_13] : memref<448x128xf32, #tpu.memory_space<vmem>>, vector<448x128xf32>
    %17 = arith.addf %16, %15 : vector<448x128xf32>
    %c0_14 = arith.constant 0 : index
    %c0_15 = arith.constant 0 : index
    %18 = vector.load %arg10[%c0_14, %c0_15] : memref<448x128xf32, #tpu.memory_space<vmem>>, vector<448x128xf32>
    tpu.vector_store %arg10[%c0_14, %c0_15], %17 {strides = array<i32>} : memref<448x128xf32, #tpu.memory_space<vmem>>, vector<448x128xf32>,
    %19 = vector.extract_strided_slice %6 {offsets = [0, 0], sizes = [448, 128], strides = [1, 1]} : vector<496x128xbf16> to vector<448x128xbf16>
    %c2 = arith.constant 2 : index
    %c0_16 = arith.constant 0 : index
    %c0_17 = arith.constant 0 : index
    %20 = vector.load %arg3[%c2, %c0_16, %c0_17] : memref<9x128x128xbf16, #tpu.memory_space<vmem>>, vector<1x128x128xbf16>
    %21 = vector.shape_cast %20 : vector<1x128x128xbf16> to vector<128x128xbf16>
    %cst_18 = arith.constant dense<0.000000e+00> : vector<448x128xf32>
    %22 = tpu.matmul %19, %21, %cst_18 {dimension_numbers = #tpu.dot_dimension_numbers<[1], [0], [0], [1], [0, 0, 1, 1], [], []>} : vector<448x128xbf16>, vector<128x128xbf16>, vector<448x128xf32> -> vector<448x128xf32>
    %c0_19 = arith.constant 0 : index
    %c0_20 = arith.constant 0 : index
    %23 = vector.load %arg10[%c0_19, %c0_20] : memref<448x128xf32, #tpu.memory_space<vmem>>, vector<448x128xf32>
    %24 = arith.addf %23, %22 : vector<448x128xf32>
    %c0_21 = arith.constant 0 : index
    %c0_22 = arith.constant 0 : index
    %25 = vector.load %arg10[%c0_21, %c0_22] : memref<448x128xf32, #tpu.memory_space<vmem>>, vector<448x128xf32>
    tpu.vector_store %arg10[%c0_21, %c0_22], %24 {strides = array<i32>} : memref<448x128xf32, #tpu.memory_space<vmem>>, vector<448x128xf32>,
    %26 = vector.extract_strided_slice %4 {offsets = [24, 0], sizes = [448, 128], strides = [1, 1]} : vector<496x128xbf16> to vector<448x128xbf16>
    %c3 = arith.constant 3 : index
    %c0_23 = arith.constant 0 : index
    %c0_24 = arith.constant 0 : index
    %27 = vector.load %arg3[%c3, %c0_23, %c0_24] : memref<9x128x128xbf16, #tpu.memory_space<vmem>>, vector<1x128x128xbf16>
    %28 = vector.shape_cast %27 : vector<1x128x128xbf16> to vector<128x128xbf16>
    %cst_25 = arith.constant dense<0.000000e+00> : vector<448x128xf32>
    %29 = tpu.matmul %26, %28, %cst_25 {dimension_numbers = #tpu.dot_dimension_numbers<[1], [0], [0], [1], [0, 0, 1, 1], [], []>} : vector<448x128xbf16>, vector<128x128xbf16>, vector<448x128xf32> -> vector<448x128xf32>
    %c0_26 = arith.constant 0 : index
    %c0_27 = arith.constant 0 : index
    %30 = vector.load %arg10[%c0_26, %c0_27] : memref<448x128xf32, #tpu.memory_space<vmem>>, vector<448x128xf32>
    %31 = arith.addf %30, %29 : vector<448x128xf32>
    %c0_28 = arith.constant 0 : index
    %c0_29 = arith.constant 0 : index
    %32 = vector.load %arg10[%c0_28, %c0_29] : memref<448x128xf32, #tpu.memory_space<vmem>>, vector<448x128xf32>
    tpu.vector_store %arg10[%c0_28, %c0_29], %31 {strides = array<i32>} : memref<448x128xf32, #tpu.memory_space<vmem>>, vector<448x128xf32>,
    %33 = vector.extract_strided_slice %5 {offsets = [24, 0], sizes = [448, 128], strides = [1, 1]} : vector<496x128xbf16> to vector<448x128xbf16>
    %c4 = arith.constant 4 : index
    %c0_30 = arith.constant 0 : index
    %c0_31 = arith.constant 0 : index
    %34 = vector.load %arg3[%c4, %c0_30, %c0_31] : memref<9x128x128xbf16, #tpu.memory_space<vmem>>, vector<1x128x128xbf16>
    %35 = vector.shape_cast %34 : vector<1x128x128xbf16> to vector<128x128xbf16>
    %cst_32 = arith.constant dense<0.000000e+00> : vector<448x128xf32>
    %36 = tpu.matmul %33, %35, %cst_32 {dimension_numbers = #tpu.dot_dimension_numbers<[1], [0], [0], [1], [0, 0, 1, 1], [], []>} : vector<448x128xbf16>, vector<128x128xbf16>, vector<448x128xf32> -> vector<448x128xf32>
    %c0_33 = arith.constant 0 : index
    %c0_34 = arith.constant 0 : index
    %37 = vector.load %arg10[%c0_33, %c0_34] : memref<448x128xf32, #tpu.memory_space<vmem>>, vector<448x128xf32>
    %38 = arith.addf %37, %36 : vector<448x128xf32>
    %c0_35 = arith.constant 0 : index
    %c0_36 = arith.constant 0 : index
    %39 = vector.load %arg10[%c0_35, %c0_36] : memref<448x128xf32, #tpu.memory_space<vmem>>, vector<448x128xf32>
    tpu.vector_store %arg10[%c0_35, %c0_36], %38 {strides = array<i32>} : memref<448x128xf32, #tpu.memory_space<vmem>>, vector<448x128xf32>,
    %40 = vector.extract_strided_slice %6 {offsets = [24, 0], sizes = [448, 128], strides = [1, 1]} : vector<496x128xbf16> to vector<448x128xbf16>
    %c5 = arith.constant 5 : index
    %c0_37 = arith.constant 0 : index
    %c0_38 = arith.constant 0 : index
    %41 = vector.load %arg3[%c5, %c0_37, %c0_38] : memref<9x128x128xbf16, #tpu.memory_space<vmem>>, vector<1x128x128xbf16>
    %42 = vector.shape_cast %41 : vector<1x128x128xbf16> to vector<128x128xbf16>
    %cst_39 = arith.constant dense<0.000000e+00> : vector<448x128xf32>
    %43 = tpu.matmul %40, %42, %cst_39 {dimension_numbers = #tpu.dot_dimension_numbers<[1], [0], [0], [1], [0, 0, 1, 1], [], []>} : vector<448x128xbf16>, vector<128x128xbf16>, vector<448x128xf32> -> vector<448x128xf32>
    %c0_40 = arith.constant 0 : index
    %c0_41 = arith.constant 0 : index
    %44 = vector.load %arg10[%c0_40, %c0_41] : memref<448x128xf32, #tpu.memory_space<vmem>>, vector<448x128xf32>
    %45 = arith.addf %44, %43 : vector<448x128xf32>
    %c0_42 = arith.constant 0 : index
    %c0_43 = arith.constant 0 : index
    %46 = vector.load %arg10[%c0_42, %c0_43] : memref<448x128xf32, #tpu.memory_space<vmem>>, vector<448x128xf32>
    tpu.vector_store %arg10[%c0_42, %c0_43], %45 {strides = array<i32>} : memref<448x128xf32, #tpu.memory_space<vmem>>, vector<448x128xf32>,
    %47 = vector.extract_strided_slice %4 {offsets = [48, 0], sizes = [448, 128], strides = [1, 1]} : vector<496x128xbf16> to vector<448x128xbf16>
    %c6 = arith.constant 6 : index
    %c0_44 = arith.constant 0 : index
    %c0_45 = arith.constant 0 : index
    %48 = vector.load %arg3[%c6, %c0_44, %c0_45] : memref<9x128x128xbf16, #tpu.memory_space<vmem>>, vector<1x128x128xbf16>
    %49 = vector.shape_cast %48 : vector<1x128x128xbf16> to vector<128x128xbf16>
    %cst_46 = arith.constant dense<0.000000e+00> : vector<448x128xf32>
    %50 = tpu.matmul %47, %49, %cst_46 {dimension_numbers = #tpu.dot_dimension_numbers<[1], [0], [0], [1], [0, 0, 1, 1], [], []>} : vector<448x128xbf16>, vector<128x128xbf16>, vector<448x128xf32> -> vector<448x128xf32>
    %c0_47 = arith.constant 0 : index
    %c0_48 = arith.constant 0 : index
    %51 = vector.load %arg10[%c0_47, %c0_48] : memref<448x128xf32, #tpu.memory_space<vmem>>, vector<448x128xf32>
    %52 = arith.addf %51, %50 : vector<448x128xf32>
    %c0_49 = arith.constant 0 : index
    %c0_50 = arith.constant 0 : index
    %53 = vector.load %arg10[%c0_49, %c0_50] : memref<448x128xf32, #tpu.memory_space<vmem>>, vector<448x128xf32>
    tpu.vector_store %arg10[%c0_49, %c0_50], %52 {strides = array<i32>} : memref<448x128xf32, #tpu.memory_space<vmem>>, vector<448x128xf32>,
    %54 = vector.extract_strided_slice %5 {offsets = [48, 0], sizes = [448, 128], strides = [1, 1]} : vector<496x128xbf16> to vector<448x128xbf16>
    %c7 = arith.constant 7 : index
    %c0_51 = arith.constant 0 : index
    %c0_52 = arith.constant 0 : index
    %55 = vector.load %arg3[%c7, %c0_51, %c0_52] : memref<9x128x128xbf16, #tpu.memory_space<vmem>>, vector<1x128x128xbf16>
    %56 = vector.shape_cast %55 : vector<1x128x128xbf16> to vector<128x128xbf16>
    %cst_53 = arith.constant dense<0.000000e+00> : vector<448x128xf32>
    %57 = tpu.matmul %54, %56, %cst_53 {dimension_numbers = #tpu.dot_dimension_numbers<[1], [0], [0], [1], [0, 0, 1, 1], [], []>} : vector<448x128xbf16>, vector<128x128xbf16>, vector<448x128xf32> -> vector<448x128xf32>
    %c0_54 = arith.constant 0 : index
    %c0_55 = arith.constant 0 : index
    %58 = vector.load %arg10[%c0_54, %c0_55] : memref<448x128xf32, #tpu.memory_space<vmem>>, vector<448x128xf32>
    %59 = arith.addf %58, %57 : vector<448x128xf32>
    %c0_56 = arith.constant 0 : index
    %c0_57 = arith.constant 0 : index
    %60 = vector.load %arg10[%c0_56, %c0_57] : memref<448x128xf32, #tpu.memory_space<vmem>>, vector<448x128xf32>
    tpu.vector_store %arg10[%c0_56, %c0_57], %59 {strides = array<i32>} : memref<448x128xf32, #tpu.memory_space<vmem>>, vector<448x128xf32>,
    %61 = vector.extract_strided_slice %6 {offsets = [48, 0], sizes = [448, 128], strides = [1, 1]} : vector<496x128xbf16> to vector<448x128xbf16>
    %c8 = arith.constant 8 : index
    %c0_58 = arith.constant 0 : index
    %c0_59 = arith.constant 0 : index
    %62 = vector.load %arg3[%c8, %c0_58, %c0_59] : memref<9x128x128xbf16, #tpu.memory_space<vmem>>, vector<1x128x128xbf16>
    %63 = vector.shape_cast %62 : vector<1x128x128xbf16> to vector<128x128xbf16>
    %cst_60 = arith.constant dense<0.000000e+00> : vector<448x128xf32>
    %64 = tpu.matmul %61, %63, %cst_60 {dimension_numbers = #tpu.dot_dimension_numbers<[1], [0], [0], [1], [0, 0, 1, 1], [], []>} : vector<448x128xbf16>, vector<128x128xbf16>, vector<448x128xf32> -> vector<448x128xf32>
    %c0_61 = arith.constant 0 : index
    %c0_62 = arith.constant 0 : index
    %65 = vector.load %arg10[%c0_61, %c0_62] : memref<448x128xf32, #tpu.memory_space<vmem>>, vector<448x128xf32>
    %66 = arith.addf %65, %64 : vector<448x128xf32>
    %c0_63 = arith.constant 0 : index
    %c0_64 = arith.constant 0 : index
    %67 = vector.load %arg10[%c0_63, %c0_64] : memref<448x128xf32, #tpu.memory_space<vmem>>, vector<448x128xf32>
    tpu.vector_store %arg10[%c0_63, %c0_64], %66 {strides = array<i32>} : memref<448x128xf32, #tpu.memory_space<vmem>>, vector<448x128xf32>,
    %c0_65 = arith.constant 0 : index
    %c0_66 = arith.constant 0 : index
    %68 = vector.load %arg10[%c0_65, %c0_66] : memref<448x128xf32, #tpu.memory_space<vmem>>, vector<448x128xf32>
    %c0_67 = arith.constant 0 : index
    %c0_68 = arith.constant 0 : index
    %69 = vector.load %arg4[%c0_67, %c0_68] : memref<1x128xf32, #tpu.memory_space<vmem>>, vector<1x128xf32>
    %70 = vector.broadcast %69 : vector<1x128xf32> to vector<448x128xf32>
    %71 = arith.mulf %68, %70 : vector<448x128xf32>
    %c0_69 = arith.constant 0 : index
    %c0_70 = arith.constant 0 : index
    %72 = vector.load %arg5[%c0_69, %c0_70] : memref<1x128xf32, #tpu.memory_space<vmem>>, vector<1x128xf32>
    %73 = vector.broadcast %72 : vector<1x128xf32> to vector<448x128xf32>
    %74 = arith.addf %71, %73 : vector<448x128xf32>
    %cst_71 = arith.constant 0.000000e+00 : f32
    %75 = vector.broadcast %cst_71 : f32 to vector<448x128xf32>
    %76 = arith.maximumf %74, %75 : vector<448x128xf32>
    %77 = tpu.iota {dimensions = array<i32: 0>} : vector<448x1xi32>
    %78 = arith.sitofp %77 : vector<448x1xi32> to vector<448x1xf32>
    %cst_72 = arith.constant 5.000000e-01 : f32
    %79 = vector.broadcast %cst_72 : f32 to vector<448x1xf32>
    %80 = arith.addf %78, %79 : vector<448x1xf32>
    %cst_73 = arith.constant 0.0416666679 : f32
    %81 = vector.broadcast %cst_73 : f32 to vector<448x1xf32>
    %82 = arith.mulf %80, %81 : vector<448x1xf32>
    %83 = math.floor %82 : vector<448x1xf32>
    %cst_74 = arith.constant 2.400000e+01 : f32
    %84 = vector.broadcast %cst_74 : f32 to vector<448x1xf32>
    %85 = arith.mulf %83, %84 : vector<448x1xf32>
    %86 = arith.subf %78, %85 : vector<448x1xf32>
    %c16_i32 = arith.constant 16 : i32
    %87 = arith.muli %arg1, %c16_i32 : i32
    %c1_i32 = arith.constant 1 : i32
    %88 = arith.subi %87, %c1_i32 : i32
    %89 = arith.sitofp %88 : i32 to f32
    %90 = vector.broadcast %89 : f32 to vector<448x1xf32>
    %91 = arith.addf %83, %90 : vector<448x1xf32>
    %cst_75 = arith.constant 0.000000e+00 : f32
    %92 = vector.broadcast %cst_75 : f32 to vector<448x1xf32>
    %93 = arith.cmpf oge, %91, %92 : vector<448x1xf32>
    %cst_76 = arith.constant 1.600000e+01 : f32
    %94 = vector.broadcast %cst_76 : f32 to vector<448x1xf32>
    %95 = arith.cmpf olt, %91, %94 : vector<448x1xf32>
    %96 = arith.andi %93, %95 : vector<448x1xi1>
    %cst_77 = arith.constant 5.000000e-01 : f32
    %97 = vector.broadcast %cst_77 : f32 to vector<448x1xf32>
    %98 = arith.cmpf oge, %86, %97 : vector<448x1xf32>
    %99 = arith.andi %96, %98 : vector<448x1xi1>
    %cst_78 = arith.constant 1.650000e+01 : f32
    %100 = vector.broadcast %cst_78 : f32 to vector<448x1xf32>
    %101 = arith.cmpf ole, %86, %100 : vector<448x1xf32>
    %102 = arith.andi %99, %101 : vector<448x1xi1>
    %cst_79 = arith.constant 1.750000e+01 : f32
    %103 = vector.broadcast %cst_79 : f32 to vector<448x1xf32>
    %104 = arith.cmpf olt, %83, %103 : vector<448x1xf32>
    %105 = arith.andi %102, %104 : vector<448x1xi1>
    %106 = arith.truncf %76 : vector<448x128xf32> to vector<448x128xbf16>
    %cst_80 = arith.constant 0.000000e+00 : bf16
    %107 = vector.broadcast %cst_80 : bf16 to vector<448x128xbf16>
    %108 = vector.shape_cast %105 : vector<448x1xi1> to vector<448x1xi1>
    %109 = vector.broadcast %108 : vector<448x1xi1> to vector<448x128xi1>
    %110 = arith.select %109, %106, %107 : vector<448x128xi1>, vector<448x128xbf16>
    %111 = vector.extract_strided_slice %110 {offsets = [0, 0], sizes = [432, 128], strides = [1, 1]} : vector<448x128xbf16> to vector<432x128xbf16>
    %112 = vector.extract_strided_slice %110 {offsets = [1, 0], sizes = [432, 128], strides = [1, 1]} : vector<448x128xbf16> to vector<432x128xbf16>
    %113 = vector.extract_strided_slice %110 {offsets = [2, 0], sizes = [432, 128], strides = [1, 1]} : vector<448x128xbf16> to vector<432x128xbf16>
    %114 = vector.extract_strided_slice %111 {offsets = [0, 0], sizes = [384, 128], strides = [1, 1]} : vector<432x128xbf16> to vector<384x128xbf16>
    %c0_81 = arith.constant 0 : index
    %c0_82 = arith.constant 0 : index
    %c0_83 = arith.constant 0 : index
    %115 = vector.load %arg6[%c0_81, %c0_82, %c0_83] : memref<9x128x128xbf16, #tpu.memory_space<vmem>>, vector<1x128x128xbf16>
    %116 = vector.shape_cast %115 : vector<1x128x128xbf16> to vector<128x128xbf16>
    %cst_84 = arith.constant dense<0.000000e+00> : vector<384x128xf32>
    %117 = tpu.matmul %114, %116, %cst_84 {dimension_numbers = #tpu.dot_dimension_numbers<[1], [0], [0], [1], [0, 0, 1, 1], [], []>} : vector<384x128xbf16>, vector<128x128xbf16>, vector<384x128xf32> -> vector<384x128xf32>
    %c0_85 = arith.constant 0 : index
    %c0_86 = arith.constant 0 : index
    %118 = vector.load %arg11[%c0_85, %c0_86] : memref<384x128xf32, #tpu.memory_space<vmem>>, vector<384x128xf32>
    tpu.vector_store %arg11[%c0_85, %c0_86], %117 {strides = array<i32>} : memref<384x128xf32, #tpu.memory_space<vmem>>, vector<384x128xf32>,
    %119 = vector.extract_strided_slice %112 {offsets = [0, 0], sizes = [384, 128], strides = [1, 1]} : vector<432x128xbf16> to vector<384x128xbf16>
    %c1_87 = arith.constant 1 : index
    %c0_88 = arith.constant 0 : index
    %c0_89 = arith.constant 0 : index
    %120 = vector.load %arg6[%c1_87, %c0_88, %c0_89] : memref<9x128x128xbf16, #tpu.memory_space<vmem>>, vector<1x128x128xbf16>
    %121 = vector.shape_cast %120 : vector<1x128x128xbf16> to vector<128x128xbf16>
    %cst_90 = arith.constant dense<0.000000e+00> : vector<384x128xf32>
    %122 = tpu.matmul %119, %121, %cst_90 {dimension_numbers = #tpu.dot_dimension_numbers<[1], [0], [0], [1], [0, 0, 1, 1], [], []>} : vector<384x128xbf16>, vector<128x128xbf16>, vector<384x128xf32> -> vector<384x128xf32>
    %c0_91 = arith.constant 0 : index
    %c0_92 = arith.constant 0 : index
    %123 = vector.load %arg11[%c0_91, %c0_92] : memref<384x128xf32, #tpu.memory_space<vmem>>, vector<384x128xf32>
    %124 = arith.addf %123, %122 : vector<384x128xf32>
    %c0_93 = arith.constant 0 : index
    %c0_94 = arith.constant 0 : index
    %125 = vector.load %arg11[%c0_93, %c0_94] : memref<384x128xf32, #tpu.memory_space<vmem>>, vector<384x128xf32>
    tpu.vector_store %arg11[%c0_93, %c0_94], %124 {strides = array<i32>} : memref<384x128xf32, #tpu.memory_space<vmem>>, vector<384x128xf32>,
    %126 = vector.extract_strided_slice %113 {offsets = [0, 0], sizes = [384, 128], strides = [1, 1]} : vector<432x128xbf16> to vector<384x128xbf16>
    %c2_95 = arith.constant 2 : index
    %c0_96 = arith.constant 0 : index
    %c0_97 = arith.constant 0 : index
    %127 = vector.load %arg6[%c2_95, %c0_96, %c0_97] : memref<9x128x128xbf16, #tpu.memory_space<vmem>>, vector<1x128x128xbf16>
    %128 = vector.shape_cast %127 : vector<1x128x128xbf16> to vector<128x128xbf16>
    %cst_98 = arith.constant dense<0.000000e+00> : vector<384x128xf32>
    %129 = tpu.matmul %126, %128, %cst_98 {dimension_numbers = #tpu.dot_dimension_numbers<[1], [0], [0], [1], [0, 0, 1, 1], [], []>} : vector<384x128xbf16>, vector<128x128xbf16>, vector<384x128xf32> -> vector<384x128xf32>
    %c0_99 = arith.constant 0 : index
    %c0_100 = arith.constant 0 : index
    %130 = vector.load %arg11[%c0_99, %c0_100] : memref<384x128xf32, #tpu.memory_space<vmem>>, vector<384x128xf32>
    %131 = arith.addf %130, %129 : vector<384x128xf32>
    %c0_101 = arith.constant 0 : index
    %c0_102 = arith.constant 0 : index
    %132 = vector.load %arg11[%c0_101, %c0_102] : memref<384x128xf32, #tpu.memory_space<vmem>>, vector<384x128xf32>
    tpu.vector_store %arg11[%c0_101, %c0_102], %131 {strides = array<i32>} : memref<384x128xf32, #tpu.memory_space<vmem>>, vector<384x128xf32>,
    %133 = vector.extract_strided_slice %111 {offsets = [24, 0], sizes = [384, 128], strides = [1, 1]} : vector<432x128xbf16> to vector<384x128xbf16>
    %c3_103 = arith.constant 3 : index
    %c0_104 = arith.constant 0 : index
    %c0_105 = arith.constant 0 : index
    %134 = vector.load %arg6[%c3_103, %c0_104, %c0_105] : memref<9x128x128xbf16, #tpu.memory_space<vmem>>, vector<1x128x128xbf16>
    %135 = vector.shape_cast %134 : vector<1x128x128xbf16> to vector<128x128xbf16>
    %cst_106 = arith.constant dense<0.000000e+00> : vector<384x128xf32>
    %136 = tpu.matmul %133, %135, %cst_106 {dimension_numbers = #tpu.dot_dimension_numbers<[1], [0], [0], [1], [0, 0, 1, 1], [], []>} : vector<384x128xbf16>, vector<128x128xbf16>, vector<384x128xf32> -> vector<384x128xf32>
    %c0_107 = arith.constant 0 : index
    %c0_108 = arith.constant 0 : index
    %137 = vector.load %arg11[%c0_107, %c0_108] : memref<384x128xf32, #tpu.memory_space<vmem>>, vector<384x128xf32>
    %138 = arith.addf %137, %136 : vector<384x128xf32>
    %c0_109 = arith.constant 0 : index
    %c0_110 = arith.constant 0 : index
    %139 = vector.load %arg11[%c0_109, %c0_110] : memref<384x128xf32, #tpu.memory_space<vmem>>, vector<384x128xf32>
    tpu.vector_store %arg11[%c0_109, %c0_110], %138 {strides = array<i32>} : memref<384x128xf32, #tpu.memory_space<vmem>>, vector<384x128xf32>,
    %140 = vector.extract_strided_slice %112 {offsets = [24, 0], sizes = [384, 128], strides = [1, 1]} : vector<432x128xbf16> to vector<384x128xbf16>
    %c4_111 = arith.constant 4 : index
    %c0_112 = arith.constant 0 : index
    %c0_113 = arith.constant 0 : index
    %141 = vector.load %arg6[%c4_111, %c0_112, %c0_113] : memref<9x128x128xbf16, #tpu.memory_space<vmem>>, vector<1x128x128xbf16>
    %142 = vector.shape_cast %141 : vector<1x128x128xbf16> to vector<128x128xbf16>
    %cst_114 = arith.constant dense<0.000000e+00> : vector<384x128xf32>
    %143 = tpu.matmul %140, %142, %cst_114 {dimension_numbers = #tpu.dot_dimension_numbers<[1], [0], [0], [1], [0, 0, 1, 1], [], []>} : vector<384x128xbf16>, vector<128x128xbf16>, vector<384x128xf32> -> vector<384x128xf32>
    %c0_115 = arith.constant 0 : index
    %c0_116 = arith.constant 0 : index
    %144 = vector.load %arg11[%c0_115, %c0_116] : memref<384x128xf32, #tpu.memory_space<vmem>>, vector<384x128xf32>
    %145 = arith.addf %144, %143 : vector<384x128xf32>
    %c0_117 = arith.constant 0 : index
    %c0_118 = arith.constant 0 : index
    %146 = vector.load %arg11[%c0_117, %c0_118] : memref<384x128xf32, #tpu.memory_space<vmem>>, vector<384x128xf32>
    tpu.vector_store %arg11[%c0_117, %c0_118], %145 {strides = array<i32>} : memref<384x128xf32, #tpu.memory_space<vmem>>, vector<384x128xf32>,
    %147 = vector.extract_strided_slice %113 {offsets = [24, 0], sizes = [384, 128], strides = [1, 1]} : vector<432x128xbf16> to vector<384x128xbf16>
    %c5_119 = arith.constant 5 : index
    %c0_120 = arith.constant 0 : index
    %c0_121 = arith.constant 0 : index
    %148 = vector.load %arg6[%c5_119, %c0_120, %c0_121] : memref<9x128x128xbf16, #tpu.memory_space<vmem>>, vector<1x128x128xbf16>
    %149 = vector.shape_cast %148 : vector<1x128x128xbf16> to vector<128x128xbf16>
    %cst_122 = arith.constant dense<0.000000e+00> : vector<384x128xf32>
    %150 = tpu.matmul %147, %149, %cst_122 {dimension_numbers = #tpu.dot_dimension_numbers<[1], [0], [0], [1], [0, 0, 1, 1], [], []>} : vector<384x128xbf16>, vector<128x128xbf16>, vector<384x128xf32> -> vector<384x128xf32>
    %c0_123 = arith.constant 0 : index
    %c0_124 = arith.constant 0 : index
    %151 = vector.load %arg11[%c0_123, %c0_124] : memref<384x128xf32, #tpu.memory_space<vmem>>, vector<384x128xf32>
    %152 = arith.addf %151, %150 : vector<384x128xf32>
    %c0_125 = arith.constant 0 : index
    %c0_126 = arith.constant 0 : index
    %153 = vector.load %arg11[%c0_125, %c0_126] : memref<384x128xf32, #tpu.memory_space<vmem>>, vector<384x128xf32>
    tpu.vector_store %arg11[%c0_125, %c0_126], %152 {strides = array<i32>} : memref<384x128xf32, #tpu.memory_space<vmem>>, vector<384x128xf32>,
    %154 = vector.extract_strided_slice %111 {offsets = [48, 0], sizes = [384, 128], strides = [1, 1]} : vector<432x128xbf16> to vector<384x128xbf16>
    %c6_127 = arith.constant 6 : index
    %c0_128 = arith.constant 0 : index
    %c0_129 = arith.constant 0 : index
    %155 = vector.load %arg6[%c6_127, %c0_128, %c0_129] : memref<9x128x128xbf16, #tpu.memory_space<vmem>>, vector<1x128x128xbf16>
    %156 = vector.shape_cast %155 : vector<1x128x128xbf16> to vector<128x128xbf16>
    %cst_130 = arith.constant dense<0.000000e+00> : vector<384x128xf32>
    %157 = tpu.matmul %154, %156, %cst_130 {dimension_numbers = #tpu.dot_dimension_numbers<[1], [0], [0], [1], [0, 0, 1, 1], [], []>} : vector<384x128xbf16>, vector<128x128xbf16>, vector<384x128xf32> -> vector<384x128xf32>
    %c0_131 = arith.constant 0 : index
    %c0_132 = arith.constant 0 : index
    %158 = vector.load %arg11[%c0_131, %c0_132] : memref<384x128xf32, #tpu.memory_space<vmem>>, vector<384x128xf32>
    %159 = arith.addf %158, %157 : vector<384x128xf32>
    %c0_133 = arith.constant 0 : index
    %c0_134 = arith.constant 0 : index
    %160 = vector.load %arg11[%c0_133, %c0_134] : memref<384x128xf32, #tpu.memory_space<vmem>>, vector<384x128xf32>
    tpu.vector_store %arg11[%c0_133, %c0_134], %159 {strides = array<i32>} : memref<384x128xf32, #tpu.memory_space<vmem>>, vector<384x128xf32>,
    %161 = vector.extract_strided_slice %112 {offsets = [48, 0], sizes = [384, 128], strides = [1, 1]} : vector<432x128xbf16> to vector<384x128xbf16>
    %c7_135 = arith.constant 7 : index
    %c0_136 = arith.constant 0 : index
    %c0_137 = arith.constant 0 : index
    %162 = vector.load %arg6[%c7_135, %c0_136, %c0_137] : memref<9x128x128xbf16, #tpu.memory_space<vmem>>, vector<1x128x128xbf16>
    %163 = vector.shape_cast %162 : vector<1x128x128xbf16> to vector<128x128xbf16>
    %cst_138 = arith.constant dense<0.000000e+00> : vector<384x128xf32>
    %164 = tpu.matmul %161, %163, %cst_138 {dimension_numbers = #tpu.dot_dimension_numbers<[1], [0], [0], [1], [0, 0, 1, 1], [], []>} : vector<384x128xbf16>, vector<128x128xbf16>, vector<384x128xf32> -> vector<384x128xf32>
    %c0_139 = arith.constant 0 : index
    %c0_140 = arith.constant 0 : index
    %165 = vector.load %arg11[%c0_139, %c0_140] : memref<384x128xf32, #tpu.memory_space<vmem>>, vector<384x128xf32>
    %166 = arith.addf %165, %164 : vector<384x128xf32>
    %c0_141 = arith.constant 0 : index
    %c0_142 = arith.constant 0 : index
    %167 = vector.load %arg11[%c0_141, %c0_142] : memref<384x128xf32, #tpu.memory_space<vmem>>, vector<384x128xf32>
    tpu.vector_store %arg11[%c0_141, %c0_142], %166 {strides = array<i32>} : memref<384x128xf32, #tpu.memory_space<vmem>>, vector<384x128xf32>,
    %168 = vector.extract_strided_slice %113 {offsets = [48, 0], sizes = [384, 128], strides = [1, 1]} : vector<432x128xbf16> to vector<384x128xbf16>
    %c8_143 = arith.constant 8 : index
    %c0_144 = arith.constant 0 : index
    %c0_145 = arith.constant 0 : index
    %169 = vector.load %arg6[%c8_143, %c0_144, %c0_145] : memref<9x128x128xbf16, #tpu.memory_space<vmem>>, vector<1x128x128xbf16>
    %170 = vector.shape_cast %169 : vector<1x128x128xbf16> to vector<128x128xbf16>
    %cst_146 = arith.constant dense<0.000000e+00> : vector<384x128xf32>
    %171 = tpu.matmul %168, %170, %cst_146 {dimension_numbers = #tpu.dot_dimension_numbers<[1], [0], [0], [1], [0, 0, 1, 1], [], []>} : vector<384x128xbf16>, vector<128x128xbf16>, vector<384x128xf32> -> vector<384x128xf32>
    %c0_147 = arith.constant 0 : index
    %c0_148 = arith.constant 0 : index
    %172 = vector.load %arg11[%c0_147, %c0_148] : memref<384x128xf32, #tpu.memory_space<vmem>>, vector<384x128xf32>
    %173 = arith.addf %172, %171 : vector<384x128xf32>
    %c0_149 = arith.constant 0 : index
    %c0_150 = arith.constant 0 : index
    %174 = vector.load %arg11[%c0_149, %c0_150] : memref<384x128xf32, #tpu.memory_space<vmem>>, vector<384x128xf32>
    tpu.vector_store %arg11[%c0_149, %c0_150], %173 {strides = array<i32>} : memref<384x128xf32, #tpu.memory_space<vmem>>, vector<384x128xf32>,
    %c0_151 = arith.constant 0 : index
    %c0_152 = arith.constant 0 : index
    %175 = vector.load %arg11[%c0_151, %c0_152] : memref<384x128xf32, #tpu.memory_space<vmem>>, vector<384x128xf32>
    %c0_153 = arith.constant 0 : index
    %c0_154 = arith.constant 0 : index
    %176 = vector.load %arg7[%c0_153, %c0_154] : memref<1x128xf32, #tpu.memory_space<vmem>>, vector<1x128xf32>
    %177 = vector.broadcast %176 : vector<1x128xf32> to vector<384x128xf32>
    %178 = arith.mulf %175, %177 : vector<384x128xf32>
    %c0_155 = arith.constant 0 : index
    %c0_156 = arith.constant 0 : index
    %179 = vector.load %arg8[%c0_155, %c0_156] : memref<1x128xf32, #tpu.memory_space<vmem>>, vector<1x128xf32>
    %180 = vector.broadcast %179 : vector<1x128xf32> to vector<384x128xf32>
    %181 = arith.addf %178, %180 : vector<384x128xf32>
    %182 = vector.extract_strided_slice %3 {offsets = [50, 0], sizes = [384, 128], strides = [1, 1]} : vector<512x128xbf16> to vector<384x128xbf16>
    %183 = arith.extf %182 : vector<384x128xbf16> to vector<384x128xf32>
    %184 = arith.addf %181, %183 : vector<384x128xf32>
    %185 = arith.truncf %184 : vector<384x128xf32> to vector<384x128xbf16>
    %c0_157 = arith.constant 0 : index
    %c0_158 = arith.constant 0 : index
    %c0_159 = arith.constant 0 : index
    %c0_160 = arith.constant 0 : index
    %186 = vector.load %arg9[%c0_157, %c0_158, %c0_159, %c0_160] : memref<1x1x384x128xbf16, #tpu.memory_space<vmem>>, vector<1x1x384x128xbf16>
    %187 = vector.shape_cast %186 : vector<1x1x384x128xbf16> to vector<384x128xbf16>
    %188 = vector.shape_cast %185 : vector<384x128xbf16> to vector<1x1x384x128xbf16>
    tpu.vector_store %arg9[%c0_157, %c0_158, %c0_159, %c0_160], %188 {strides = array<i32>} : memref<1x1x384x128xbf16, #tpu.memory_space<vmem>>, vector<1x1x384x128xbf16>,
    return
  }
  func.func @transform_0(%arg0: i32, %arg1: i32) -> (i32, i32, i32, i32) {
    %c0_i32 = arith.constant 0 : i32
    %c0_i32_0 = arith.constant 0 : i32
    %c0_i32_1 = arith.constant 0 : i32
    return %arg0, %arg1, %c0_i32, %c0_i32_0 : i32, i32, i32, i32
  }
  func.func @transform_1(%arg0: i32, %arg1: i32) -> (i32, i32, i32) {
    %c0_i32 = arith.constant 0 : i32
    %c0_i32_0 = arith.constant 0 : i32
    %c0_i32_1 = arith.constant 0 : i32
    %c0_i32_2 = arith.constant 0 : i32
    return %c0_i32, %c0_i32_0, %c0_i32_1 : i32, i32, i32
  }
  func.func @transform_2(%arg0: i32, %arg1: i32) -> (i32, i32) {
    %c0_i32 = arith.constant 0 : i32
    %c0_i32_0 = arith.constant 0 : i32
    %c0_i32_1 = arith.constant 0 : i32
    return %c0_i32, %c0_i32_0 : i32, i32
  }
  func.func @transform_3(%arg0: i32, %arg1: i32) -> (i32, i32) {
    %c0_i32 = arith.constant 0 : i32
    %c0_i32_0 = arith.constant 0 : i32
    %c0_i32_1 = arith.constant 0 : i32
    return %c0_i32, %c0_i32_0 : i32, i32
  }
  func.func @transform_4(%arg0: i32, %arg1: i32) -> (i32, i32, i32) {
    %c0_i32 = arith.constant 0 : i32
    %c0_i32_0 = arith.constant 0 : i32
    %c0_i32_1 = arith.constant 0 : i32
    %c0_i32_2 = arith.constant 0 : i32
    return %c0_i32, %c0_i32_0, %c0_i32_1 : i32, i32, i32
  }
  func.func @transform_5(%arg0: i32, %arg1: i32) -> (i32, i32) {
    %c0_i32 = arith.constant 0 : i32
    %c0_i32_0 = arith.constant 0 : i32
    %c0_i32_1 = arith.constant 0 : i32
    return %c0_i32, %c0_i32_0 : i32, i32
  }
  func.func @transform_6(%arg0: i32, %arg1: i32) -> (i32, i32) {
    %c0_i32 = arith.constant 0 : i32
    %c0_i32_0 = arith.constant 0 : i32
    %c0_i32_1 = arith.constant 0 : i32
    return %c0_i32, %c0_i32_0 : i32, i32
  }
  func.func @transform_7(%arg0: i32, %arg1: i32) -> (i32, i32, i32, i32) {
    %c0_i32 = arith.constant 0 : i32
    %c0_i32_0 = arith.constant 0 : i32
    %c0_i32_1 = arith.constant 0 : i32
    return %arg0, %arg1, %c0_i32, %c0_i32_0 : i32, i32, i32, i32
  }
}

</mosaic_0001>

<bundles_post_ra>
// kernel: tpu_custom_call.1
= control target key start
LH: loop header
LB: loop body
LE: loop exit
PB: predicated region body
PF: predicated region fallthrough
CT: control target
= control target key end

     0   :  { %s19074_s0 = inlined_call_operand.hbm [shape: bf16[2,1,512,128], index: 0, kind: input, shape index: {}]   ;;  %s19075_s1 = inlined_call_operand.hbm [shape: bf16[9,128,128], index: 1, kind: input, shape index: {}]   ;;  %s19076_s2 = inlined_call_operand.vmem [shape: f32[1,128], index: 2, kind: input, shape index: {}]   ;;  %s19077_s3 = inlined_call_operand.vmem [shape: f32[1,128], index: 3, kind: input, shape index: {}]   ;;  %s19078_s4 = inlined_call_operand.hbm [shape: bf16[9,128,128], index: 4, kind: input, shape index: {}]   ;;  %s19079_s5 = inlined_call_operand.vmem [shape: f32[1,128], index: 5, kind: input, shape index: {}]   ;;  %s19080_s6 = inlined_call_operand.vmem [shape: f32[1,128], index: 6, kind: input, shape index: {}]   ;;  %s19081_s7 = inlined_call_operand.hbm [shape: bf16[2,1,384,128], index: 7, kind: output, shape index: {}]  }
   0x1   :  { %19497 = sst [smem:[#allocation249_spill]] %s19075_s1 }
   0x2   :  { %19498 = sst [smem:[#allocation250_spill]] %s19078_s4 }
   0x3   :  { %12 = vsyncpa [#allocation5], 0 }
   0x4   :  { %14 = vsyncpa [#allocation5 + $0x1], 0 }
   0x5   :  { %15 = vsyncpa [#allocation8], 0 }
   0x6   :  { %16 = vsyncpa [#allocation6], 0 }
   0x7   :  { %18 = vsyncpa [#allocation6 + $0x1], 0  ;;  %s12193_s24 = smov 0   ;;  %s12195_s25 = smov 0  }
   0x8   :  { %s12197_s26 = smov 0   ;;  %s12199_s27 = smov 0  }
   0x9   :  { %s12201_s28 = smov 0   ;;  %s12203_s29 = smov 0  }
   0xa LB: > { %s10802_s30 = sadd.s32 4294967295, %s12144_s29   ;;  %s10803_s8 = sadd.s32 4294967294, %s12144_s29   ;;  %s12144_s29 = sphi %s12203_s29, %s24_s29   ;;  %s12140_s28 = sphi %s12201_s28, %s21088_s28   ;;  %s12136_s27 = sphi %s12199_s27, %s21087_s27   ;;  %s12132_s26 = sphi %s12197_s26, %s21086_s26   ;;  %s12128_s25 = sphi %s12195_s25, %s21085_s25   ;;  %s12124_s24 = sphi %s12193_s24, %s21084_s24  }
   0xb   : > { %p58_p0 = scmp.ne.s32.totalorder %s12128_s25, %s12124_s24  ;;  %p12229_p1 = scmp.eq.s32.totalorder %s10802_s30, 0 }
   0xc   : > { %p216_p2 = scmp.eq.s32.totalorder %s10803_s8, 1  ;;  %p10804_p4 = scmp.ge.s32.totalorder %s12144_s29, 1 }
   0xd   : > { %p12235_p3 = por %p12229_p1, %p58_p0  ;;  %p223_p6 = scmp.lt.s32.totalorder %s12144_s29, 3 }
   0xe   : > { %p12240_p5 = por %p216_p2, %p58_p0  ;;  %s19503_s1 = sld [smem:[#allocation249_spill]] }
   0xf   : > { %p12248_p7 = pnand %p10804_p4, %p223_p6  ;;  %s12146_s16 = smov [#allocation7]  }
  0x10   : > { %s19501_s11 = scalar_select %p12240_p5, 1, 0 }
  0x11   : > { %p11874_p8 = pneg %p12248_p7  ;;  %s236_s17 = sshll.u32 %s12146_s16, 4  ;;  %s237_s17 = int_to_ptr.vmem [resolvable:$true] %s236_s17 }
  0x12   : > { %19502 = sst [smem:[#allocation14_spill]] %s19501_s11  ;;  %p10807_p10 = scmp.ge.s32.totalorder %s12144_s29, 2 }
  0x13   : > { %p11875_p9 = pnand %p11874_p8, %p12229_p1  ;;  %s19505_s4 = sld [smem:[#allocation250_spill]] }
  0x14   : > { %s234_s14 = sshll.u32 %s19503_s1, 4  ;;  %s19082_s21 = smov 64   ;;  %s235_s14 = int_to_ptr.hbm [resolvable:$true] %s234_s14 }
  0x15   : > { %s19083_s22 = smov 4   ;;  %s12149_s23 = smov [#allocation9]  }
  0x16   : > { %11877 = dma.hbm_to_vmem [thread:$0]  (!%p11875_p9), %s235_s14, 9216, %s237_s17, [#allocation8], %s19082_s21, %s19082_s21, %s19083_s22  }
  0x17   : > { %s256_s8 = sshll.u32 %s12149_s23, 4  ;;  %p210_p11 = scmp.eq.s32.totalorder %s10802_s30, 1  ;;  %s257_s8 = int_to_ptr.vmem [resolvable:$true] %s256_s8 }
  0x18   : > { %s36_s12 = sadd.s32 1, %s12140_s28  ;;  %s45_s13 = sadd.s32 1, %s12132_s26 }
  0x19   : > { %s254_s20 = sshll.u32 %s19505_s4, 4  ;;  %p38_p12 = scmp.ge.s32.totalorder %s36_s12, 2  ;;  %s255_s20 = int_to_ptr.hbm [resolvable:$true] %s254_s20 }
  0x1a   : > { %11880 = dma.hbm_to_vmem [thread:$0]  (!%p11875_p9), %s255_s20, 9216, %s257_s8, [#allocation8], %s19082_s21, %s19082_s21, %s19083_s22  }
  0x1b   : > { %p52_p13 = scmp.ne.s32.totalorder %s12132_s26, %s12128_s25  ;;  %p53_p0 = scmp.eq.s32.totalorder %s12144_s29, 0 }
  0x1c   : > { %s21090_s12 = smov (%p38_p12, %s36_s12), 0  ;;  %p11891_p4 = scmp.lt.s32.totalorder %s12144_s29, 2 }
  0x1d   : > { %19506 = sst [smem:[#allocation15_spill]] %s21090_s12  ;;  %p12275_p2 = por %p210_p11, %p52_p13 }
  0x1e   : > { %s40_s16 = ssub.s32 %s12140_s28, %s21090_s12  ;;  %s276_s17 = sand.u32 1, %s12132_s26  }
  0x1f   : > { %p43_p6 = scmp.eq.s32.totalorder %s40_s16, 0  ;;  %p54_p8 = por %p53_p0, %p52_p13 }
  0x20   : > { %s10808_s18 = sshll.u32 %s276_s17, 8  ;;  %s11394_s30 = sshll.u32 %s12140_s28, 8 }
  0x21   : > { %s12285_s19 = scalar_select %p43_p6, %s12132_s26, %s45_s13  }
  0x22   : > { %s287_s8 = scalar_lea.hbm %s19074_s0, %s11394_s30  ;;  %s280_s22 = scalar_lea.vmem [#allocation4], %s10808_s18 }
  0x23   : > { %s288_s21 = sshll.u32 %s287_s8, 4  ;;  %s290_s1 = sshll.u32 %s280_s22, 4  ;;  %s289_s21 = int_to_ptr.hbm [resolvable:$true] %s288_s21  ;;  %s291_s1 = int_to_ptr.vmem [resolvable:$true] %s290_s1 }
  0x24   : > { %p11882_p9 = pnand %p11891_p4, %p54_p8  ;;  %s277_s4 = scalar_lea.sflag [#allocation5], %s276_s17 }
  0x25   : > { %s19508_s12 = smov 4   ;;  %s19509_s11 = smov 64  }
  0x26   : > { %11884 = dma.hbm_to_vmem [thread:$0]  (!%p11882_p9), %s289_s21, 4096, %s291_s1, %s277_s4, %s19509_s11, %s19509_s11, %s19508_s12  }
  0x27   : > { %302 = sbr.rel (%p12248_p7) target bundleno = 2597 (0xa25), region = 48 }
  0x2c   : > { %s12298_s13 = sand.u32 1, %s12128_s25  }
  0x2d   : > { %s10812_s16 = sshll.u32 %s12298_s13, 8  ;;  %s305_s22 = scalar_lea.sflag [#allocation5], %s12298_s13 }
  0x2e   : > { %s12302_s18 = scalar_lea.vmem [#allocation4], %s10812_s16 }
  0x2f   : > { %12111 = dma.done.wait (%p12235_p3), %s305_s22, 4096  }
  0x30   : > { %12113 = vsyncadd (%p12235_p3), %s305_s22, 4294963200 }
  0x31   : > { %12115 = dma.done.wait (%p12229_p1), [#allocation8], 18432  }
  0x32   : > { %12117 = vsyncadd (%p12229_p1), [#allocation8], 4294948864  ;;  %v11402_v0 = vld [vmem:[#allocation7 + $0x38] sm:$0xff]  ;;  %v11401_v2 = vld [vmem:[#allocation7 + $0x30] sm:$0xff]  ;;  %vm1060_vm0 = vsmask.f32 7424 }
  0x33   : > { %v12312_v1 = vld [vmem:[#allocation7 + $0x78] sm:$0xff]  ;;  %835 = vmatpush.bf16.msra.mxu0 %v11402_v0  ;;  %11836 = vmatpush.bf16.msra.mxu3 %v11402_v0  ;;  %v12315_v3 = vld [vmem:[#allocation7 + $0x70] sm:$0xff]  ;;  %v11540_v4 = vld [vmem:[%s12302_s18] sm:$0xff]   ;;  %vm1699_vm1 = vcmask 1046528   ;;  %s11860_s17 = smul.u32 192, %s12298_s13  ;;  %s10679_s12 = scalar_lea.sflag [#allocation6], %s12298_s13 }
  0x34   : > { %1365 = vmatpush.bf16.msra.mxu1 %v12312_v1  ;;  %v11400_v5 = vld [vmem:[#allocation7 + $0x28] sm:$0xff]  ;;  %v11541_v6 = vunpack.c.l.bf16 %v11540_v4  ;;  %v11542_v7 = vunpack.c.h.bf16 %v11540_v4  ;;  %v12319_v9 = vld [vmem:[#allocation7 + $0xb8] sm:$0xff]  ;;  %v11399_v17 = vld [vmem:[#allocation7 + $0x20] sm:$0xff]  ;;  %s11861_s9 = smul.u32 192, %s12136_s27  ;;  %s12078_s16 = scalar_lea.hbm %s19081_s7, 384 }
  0x35   : > { %v11783_v8 = vld [vmem:[%s12302_s18 + $0x8] sm:$0xff]   ;;  %11852 = vmatpush.bf16.msra.mxu2 %v12319_v9  ;;  %v11808_v20 = vld [vmem:[%s12302_s18 + $0xd0] sm:$0xff]   ;;  %v12327_v21 = vld [vmem:[#allocation7 + $0x60] sm:$0xff]  ;;  %s18623_s30 = scalar_lea.vmem [#allocation10], %s11860_s17 }
  0x36   : > { %v12322_v10 = vld [vmem:[#allocation7 + $0x68] sm:$0xff]  ;;  %v11545_v11 = vunpack.c.l.bf16 %v11783_v8  ;;  %v11546_v12 = vunpack.c.h.bf16 %v11783_v8  ;;  %v477_v13 = vmax.f32 %v11541_v6, 0.0  ;;  %v478_v14 = vmax.f32 %v11542_v7, 0.0  ;;  %v11398_v28 = vld [vmem:[#allocation7 + $0x18] sm:$0xff]  ;;  %v11784_v33 = vld [vmem:[%s12302_s18 + $0x10] sm:$0xff]   ;;  %s10692_s15 = scalar_lea.hbm %s19081_s7, %s11861_s9  ;;  %s10693_s27 = sshll.u32 %s18623_s30, 4  ;;  %s10694_s27 = int_to_ptr.vmem [resolvable:$true] %s10693_s27 }
  0x37   : > { %836 = vmatpush.bf16.msra.mxu0 %v11401_v2  ;;  %11837 = vmatpush.bf16.msra.mxu3 %v11401_v2  ;;  %v11645_v26 = vunpack.c.l.bf16 %v11808_v20  ;;  %v11646_v27 = vunpack.c.h.bf16 %v11808_v20  ;;  %v12330_v29 = vld [vmem:[#allocation7 + $0x58] sm:$0xff]  ;;  %v11397_v36 = vld [vmem:[#allocation7 + $0x10] sm:$0xff]  ;;  %v11549_v37 = vunpack.c.l.bf16 %v11784_v33  ;;  %v11550_v41 = vunpack.c.h.bf16 %v11784_v33  ;;  %v11396_v44 = vld [vmem:[#allocation7 + $0x8] sm:$0xff]  ;;  %s10695_s21 = sshll.u32 %s10692_s15, 4  ;;  %s10696_s21 = int_to_ptr.hbm [resolvable:$true] %s10695_s21 }
  0x38   : > { %1366 = vmatpush.bf16.msra.mxu1 %v12315_v3  ;;  %v479_v15 = vmax.f32 %v11545_v11, 0.0  ;;  %v480_v16 = vmax.f32 %v11546_v12, 0.0  ;;  %v540_v18 = vpack.c.bf16 %v477_v13, %v477_v13  ;;  %v541_v19 = vpack.c.bf16 %v478_v14, %v478_v14  ;;  %v12338_v38 = vld [vmem:[#allocation7 + $0x50] sm:$0xff]  ;;  %v12349_v46 = vld [vmem:[#allocation7 + $0x48] sm:$0xff]  ;;  %v11395_v53 = vld [vmem:[#allocation7] sm:$0xff]  ;;  %s12072_s17 = sshra.s32 %s10696_s21, 4  ;;  %s12073_s17 = int_to_ptr.hbm [resolvable:$true] %s12072_s17 }
  0x39   : > { %v529_v34 = vmax.f32 %v11645_v26, 0.0  ;;  %v530_v35 = vmax.f32 %v11646_v27, 0.0  ;;  %v481_v45 = vmax.f32 %v11549_v37, 0.0  ;;  %v482_v50 = vmax.f32 %v11550_v41, 0.0  ;;  %v11809_v54 = vld [vmem:[%s12302_s18 + $0xd8] sm:$0xff]   ;;  %v12357_v55 = vld [vmem:[#allocation7 + $0x40] sm:$0xff]  ;;  %p12079_p11 = scmp.lt.s32.totalorder %s12073_s17, %s19081_s7 }
  0x3a   : > { %v542_v22 = vpack.c.bf16 %v479_v15, %v479_v15  ;;  %v543_v23 = vpack.c.bf16 %v480_v16, %v480_v16  ;;  %v675_v24 = vunpack.c.l.b16 %v540_v18  ;;  %v676_v25 = vunpack.c.l.b16 %v541_v19  ;;  %v11799_v60 = vld [vmem:[%s12302_s18 + $0x88] sm:$0xff]   ;;  %v11800_v7 = vld [vmem:[%s12302_s18 + $0x90] sm:$0xff]   ;;  %v11785_v8 = vld [vmem:[%s12302_s18 + $0x18] sm:$0xff]   ;;  %s12074_s20 = scalar_lea.hbm %s12073_s17, 192 }
  0x3b   : > { %837 = vmatpush.bf16.msra.mxu0 %v11400_v5  ;;  %11838 = vmatpush.bf16.msra.mxu3 %v11400_v5  ;;  %v12344_v42 = vpack.c.bf16 %v529_v34, %v529_v34  ;;  %v12346_v43 = vpack.c.bf16 %v530_v35, %v530_v35  ;;  %v544_v58 = vpack.c.bf16 %v481_v45, %v481_v45  ;;  %v11649_v62 = vunpack.c.l.bf16 %v11809_v54  ;;  %p12075_p1 = scmp.ne.s32.totalorder %s12073_s17, %s12074_s20  ;;  %p12080_p12 = scmp.lt.s32.totalorder %s12078_s16, %s12074_s20 }
  0x3c   : > { %1367 = vmatpush.bf16.msra.mxu1 %v12322_v10  ;;  %v12332_v30 = vpack.c.b16 %v676_v25, %v675_v24  ;;  %v677_v31 = vunpack.c.l.b16 %v542_v22  ;;  %v12334_v32 = vunpack.c.l.b16 %v543_v23  ;;  %v545_v59 = vpack.c.bf16 %v482_v50, %v482_v50 }
  0x3d   : > { %19512 = vst [vmem:[#allocation18_spill] sm:$0xff] %v12344_v42  ;;  %v19088_v51 = vunpack.c.l.b16 %v12344_v42  ;;  %v19087_v52 = vunpack.c.l.b16 %v12346_v43  ;;  %v11650_v63 = vunpack.c.h.bf16 %v11809_v54  ;;  %v11609_v0 = vunpack.c.l.bf16 %v11799_v60  ;;  %v11786_v54 = vld [vmem:[%s12302_s18 + $0x20] sm:$0xff]   ;;  %p12076_p3 = pnand %p12075_p1, %p12275_p2  ;;  %p12081_p13 = por %p12080_p12, %p12079_p11 }
  0x3e   : > { %19510 = vst [vmem:[#allocation16_spill] sm:$0xff] %v12332_v30  ;;  %v12341_v39 = vpack.c.b16 %v12334_v32, %v677_v31  ;;  %v1064_v40 = vshll.u32 %v12332_v30, 16  ;;  %v1062_v47 = vshrl.u32 %v12332_v30, 16  ;;  %v11610_v2 = vunpack.c.h.bf16 %v11799_v60  ;;  %v11417_v60 = vld [vmem:[#allocation7 + $0xb0] sm:$0xff] }
  0x3f   : > { %838 = vmatpush.bf16.msra.mxu0 %v11399_v17  ;;  %11839 = vmatpush.bf16.msra.mxu3 %v11399_v17  ;;  %19513 = vst [vmem:[#allocation19_spill] sm:$0xff] %v12346_v43  ;;  %v12364_v61 = vpack.c.b16 %v19087_v52, %v19088_v51  ;;  %v12369_v5 = vunpack.c.l.b16 %v544_v58  ;;  %v12371_v6 = vunpack.c.l.b16 %v545_v59  ;;  %v531_v11 = vmax.f32 %v11649_v62, 0.0  ;;  %p12077_p7 = pneg %p12076_p3 }
  0x40   : > { %1368 = vmatpush.bf16.msra.mxu1 %v12327_v21  ;;  %19511 = vst [vmem:[#allocation17_spill] sm:$0xff] %v12341_v39  ;;  %v1066_v48 = vrot.slane %v1064_v40, 1  ;;  %v1069_v49 = vshll.u32 %v12341_v39, 16  ;;  %v532_v12 = vmax.f32 %v11650_v63, 0.0  ;;  %v11613_v13 = vunpack.c.l.bf16 %v11800_v7  ;;  %11853 = vmatpush.bf16.msra.mxu2 %v11417_v60 }
  0x41   : > { %19514 = vst [vmem:[#allocation20_spill] sm:$0xff] %v12364_v61  ;;  %v11614_v14 = vunpack.c.h.bf16 %v11800_v7  ;;  %v511_v15 = vmax.f32 %v11609_v0, 0.0  ;;  %v512_v16 = vmax.f32 %v11610_v2, 0.0  ;;  %v11553_v17 = vunpack.c.l.bf16 %v11785_v8  ;;  %p12082_p0 = pnand %p12081_p13, %p12077_p7 }
  0x42   : > { %v1067_v56 = vor.u32 %v1066_v48, %v1062_v47  ;;  %v1071_v57 = vrot.slane %v1069_v49, 1  ;;  %v11554_v18 = vunpack.c.h.bf16 %v11785_v8  ;;  %v595_v19 = vpack.c.bf16 %v532_v12, %v532_v12 }
  0x43   : > { %839 = vmatpush.bf16.msra.mxu0 %v11398_v28  ;;  %11840 = vmatpush.bf16.msra.mxu3 %v11398_v28  ;;  %v513_v20 = vmax.f32 %v11613_v13, 0.0  ;;  %v514_v22 = vmax.f32 %v11614_v14, 0.0  ;;  %v12385_v23 = vpack.c.bf16 %v511_v15, %v511_v15  ;;  %v12387_v24 = vpack.c.bf16 %v512_v16, %v512_v16 }
  0x44   : > { %1369 = vmatpush.bf16.msra.mxu1 %v12330_v29  ;;  %v1072_v4 = vsel %vm1060_vm0, %v1067_v56, %v1071_v57  ;;  %v1073_v25 = vshrl.u32 %v12341_v39, 16  ;;  %v483_v27 = vmax.f32 %v11553_v17, 0.0  ;;  %v484_v28 = vmax.f32 %v11554_v18, 0.0 }
  0x45   : > { %19517 = vst [vmem:[#allocation23_spill] sm:$0xff] %v12385_v23  ;;  %v12395_v33 = vpack.c.bf16 %v513_v20, %v513_v20  ;;  %v12397_v34 = vpack.c.bf16 %v514_v22, %v514_v22  ;;  %v19096_v35 = vunpack.c.l.b16 %v12385_v23  ;;  %v11557_v62 = vunpack.c.l.bf16 %v11786_v54 }
  0x46   : > { %19518 = vst [vmem:[#allocation24_spill] sm:$0xff] %v12387_v24  ;;  %v1075_v37 = vor.u32 %v1073_v25, %v1071_v57  ;;  %v12401_v41 = vpack.c.bf16 %v483_v27, %v483_v27  ;;  %v11558_v63 = vunpack.c.h.bf16 %v11786_v54 }
  0x47   : > { %840 = vmatpush.bf16.msra.mxu0 %v11397_v36  ;;  %11841 = vmatpush.bf16.msra.mxu3 %v11397_v36  ;;  %19520 = vst [vmem:[#allocation26_spill] sm:$0xff] %v12395_v33  ;;  %v19095_v36 = vunpack.c.l.b16 %v12387_v24  ;;  %v19094_v45 = vunpack.c.l.b16 %v12395_v33  ;;  %v19093_v47 = vunpack.c.l.b16 %v12397_v34  ;;  %v485_v13 = vmax.f32 %v11557_v62, 0.0 }
  0x48   : > { %1370 = vmatpush.bf16.msra.mxu1 %v12338_v38  ;;  %19521 = vst [vmem:[#allocation27_spill] sm:$0xff] %v12397_v34  ;;  %v19104_v50 = vunpack.c.l.b16 %v12401_v41  ;;  %v486_v14 = vmax.f32 %v11558_v63, 0.0 }
  0x49   : > { %19522 = vst [vmem:[#allocation28_spill] sm:$0xff] %v12401_v41  ;;  %v12417_v48 = vpack.c.b16 %v19095_v36, %v19096_v35  ;;  %v12431_v56 = vpack.c.b16 %v19093_v47, %v19094_v45  ;;  %v12453_v20 = vpack.c.bf16 %v485_v13, %v485_v13 }
  0x4a   : > { %v12455_v22 = vpack.c.bf16 %v486_v14, %v486_v14 }
  0x4b   : > { %841 = vmatpush.bf16.msra.mxu0 %v11396_v44  ;;  %11842 = vmatpush.bf16.msra.mxu3 %v11396_v44  ;;  %v12403_v44 = vpack.c.bf16 %v484_v28, %v484_v28  ;;  %19525 = vst [vmem:[#allocation31_spill] sm:$0xff] %v12417_v48  ;;  %v1197_v57 = vshll.u32 %v12417_v48, 16  ;;  %v1201_v0 = vshrl.u32 %v12417_v48, 16  ;;  %v19100_v28 = vunpack.c.l.b16 %v12453_v20 }
  0x4c   : > { %1371 = vmatpush.bf16.msra.mxu1 %v12349_v46  ;;  %19526 = vst [vmem:[#allocation32_spill] sm:$0xff] %v12431_v56 }
  0x4d   : > { %19523 = vst [vmem:[#allocation29_spill] sm:$0xff] %v12403_v44  ;;  %v12442_v2 = vrot.slane %v1197_v57, 1 }
  0x4e   : > { %19530 = vst [vmem:[#allocation36_spill] sm:$0xff] %v12453_v20 }
  0x4f   : > { %842 = vmatpush.bf16.msra.mxu0 %v11395_v53  ;;  %11843 = vmatpush.bf16.msra.mxu3 %v11395_v53  ;;  %v11801_v53 = vld [vmem:[%s12302_s18 + $0x98] sm:$0xff]   ;;  %19531 = vst [vmem:[#allocation37_spill] sm:$0xff] %v12455_v22 }
  0x50   : > { %1372 = vmatpush.bf16.msra.mxu1 %v12357_v55  ;;  %v11617_v58 = vunpack.c.l.bf16 %v11801_v53  ;;  %v11618_v59 = vunpack.c.h.bf16 %v11801_v53 }
  0x52   : > { %843 = vmatmul.bf16.vlgmr.msra.gmra.mxu0 %v12332_v30  ;;  %973 = vmatmul.bf16.vlgmr.msra.gmra.mxu3 %v12364_v61  ;;  %v515_v7 = vmax.f32 %v11617_v58, 0.0  ;;  %v516_v8 = vmax.f32 %v11618_v59, 0.0 }
  0x53   : > { %1833 = vmatpush.bf16.msrb.mxu0 %v12319_v9  ;;  %11844 = vmatpush.bf16.msrb.mxu3 %v12312_v1  ;;  %v12380_v9 = vpack.c.b16 %v12371_v6, %v12369_v5  ;;  %v12383_v1 = vpack.c.bf16 %v531_v11, %v531_v11 }
  0x54   : > { %1373 = vmatmul.bf16.vlgmr.msra.gmra.mxu1 %v1072_v4  ;;  %v1205_v4 = vshll.u32 %v12431_v56, 16  ;;  %v12449_v16 = vpack.c.bf16 %v515_v7, %v515_v7  ;;  %v12451_v17 = vpack.c.bf16 %v516_v8, %v516_v8 }
  0x55   : > { %19515 = vst [vmem:[#allocation21_spill] sm:$0xff] %v12380_v9  ;;  %v1077_v26 = vshll.u32 %v12380_v9, 16  ;;  %v19086_v31 = vunpack.c.l.b16 %v12383_v1  ;;  %v1081_v11 = vshrl.u32 %v12380_v9, 16 }
  0x56   : > { %19516 = vst [vmem:[#allocation22_spill] sm:$0xff] %v12383_v1  ;;  %v1207_v15 = vrot.slane %v1205_v4, 1 }
  0x57   : > { %11845 = vmatpush.bf16.msrb.mxu3 %v12315_v3  ;;  %v12393_v3 = vunpack.c.l.b16 %v595_v19  ;;  %v1079_v40 = vrot.slane %v1077_v26, 1  ;;  %1834 = vmatpush.bf16.msrb.mxu0 %v11417_v60  ;;  %19528 = vst [vmem:[#allocation34_spill] sm:$0xff] %v12449_v16  ;;  %v19091_v26 = vunpack.c.l.b16 %v12451_v17  ;;  %v1209_v60 = vshrl.u32 %v12431_v56, 16 }
  0x58   : > { %19529 = vst [vmem:[#allocation35_spill] sm:$0xff] %v12451_v17  ;;  %v11795_v17 = vld [vmem:[%s12302_s18 + $0x68] sm:$0xff]  }
  0x59   : > { %19519 = vst [vmem:[#allocation25_spill] sm:$0xff] %v12393_v3  ;;  %v1080_v49 = vsel %vm1060_vm0, %v1075_v37, %v1079_v40  ;;  %v1083_v18 = vor.u32 %v1081_v11, %v1079_v40  ;;  %v19099_v37 = vunpack.c.l.b16 %v12455_v22  ;;  %v11802_v40 = vld [vmem:[%s12302_s18 + $0xa0] sm:$0xff]  }
  0x5a   : > { %v11621_v53 = vunpack.c.l.bf16 %v11802_v40  ;;  %v11622_v54 = vunpack.c.h.bf16 %v11802_v40 }
  0x5b   : > { %11846 = vmatpush.bf16.msrb.mxu3 %v12322_v10  ;;  %v12409_v10 = vpack.c.b16 %v12393_v3, %v19086_v31  ;;  %v12480_v57 = vpack.c.b16 %v19099_v37, %v19100_v28  ;;  %v11794_v3 = vld [vmem:[%s12302_s18 + $0x60] sm:$0xff]  }
  0x5c   : > { %v517_v63 = vmax.f32 %v11621_v53, 0.0  ;;  %v11589_v43 = vunpack.c.l.bf16 %v11794_v3  ;;  %v11590_v42 = vunpack.c.h.bf16 %v11794_v3 }
  0x5d   : > { %19524 = vst [vmem:[#allocation30_spill] sm:$0xff] %v12409_v10  ;;  %v1093_v7 = vshll.u32 %v12480_v57, 16  ;;  %v1097_v51 = vshrl.u32 %v12480_v57, 16 }
  0x5e   : > { %19534 = vst [vmem:[#allocation40_spill] sm:$0xff] %v12480_v57  ;;  %v12486_v14 = vpack.c.bf16 %v517_v63, %v517_v63 }
  0x5f   : > { %11847 = vmatpush.bf16.msrb.mxu3 %v12327_v21  ;;  %v19103_v21 = vunpack.c.l.b16 %v12403_v44 }
  0x60   : > { %19535 = vst [vmem:[#allocation41_spill] sm:$0xff] %v12486_v14 }
  0x62   : > { %848 = vmatmul.bf16.gmra.mxu0 %v12341_v39  ;;  %978 = vmatmul.bf16.gmra.mxu3 %v12409_v10 }
  0x63   : > { %11848 = vmatpush.bf16.msrb.mxu3 %v12330_v29  ;;  %v12438_v29 = vpack.c.b16 %v19103_v21, %v19104_v50 }
  0x64   : > { %1378 = vmatmul.bf16.gmra.mxu1 %v1080_v49  ;;  %v11787_v49 = vld [vmem:[%s12302_s18 + $0x28] sm:$0xff]  }
  0x65   : > { %19527 = vst [vmem:[#allocation33_spill] sm:$0xff] %v12438_v29  ;;  %v1085_v12 = vshll.u32 %v12438_v29, 16  ;;  %v11561_v58 = vunpack.c.l.bf16 %v11787_v49  ;;  %v11562_v59 = vunpack.c.h.bf16 %v11787_v49  ;;  %v1089_v4 = vshrl.u32 %v12438_v29, 16 }
  0x67   : > { %11849 = vmatpush.bf16.msrb.mxu3 %v12338_v38  ;;  %v1203_v38 = vor.u32 %v1201_v0, %v12442_v2  ;;  %v1087_v19 = vrot.slane %v1085_v12, 1  ;;  %v518_v0 = vmax.f32 %v11622_v54, 0.0  ;;  %v487_v8 = vmax.f32 %v11561_v58, 0.0 }
  0x68   : > { %v488_v11 = vmax.f32 %v11562_v59, 0.0  ;;  %v1211_v12 = vor.u32 %v1209_v60, %v1207_v15  ;;  %v19090_v54 = vunpack.c.l.b16 %v12486_v14 }
  0x69   : > { %v12459_v25 = vsel %vm1060_vm0, %v1203_v38, %v1207_v15  ;;  %v1088_v27 = vsel %vm1060_vm0, %v1083_v18, %v1087_v19  ;;  %v12488_v38 = vpack.c.bf16 %v518_v0, %v518_v0  ;;  %v1091_v18 = vor.u32 %v1089_v4, %v1087_v19  ;;  %v11803_v19 = vld [vmem:[%s12302_s18 + $0xa8] sm:$0xff]  }
  0x6a   : > { %19532 = vst [vmem:[#allocation38_spill] sm:$0xff] %v12459_v25  ;;  %v12490_v40 = vpack.c.bf16 %v487_v8, %v487_v8  ;;  %v12492_v49 = vpack.c.bf16 %v488_v11, %v488_v11  ;;  %v11625_v0 = vunpack.c.l.bf16 %v11803_v19  ;;  %v11626_v4 = vunpack.c.h.bf16 %v11803_v19 }
  0x6b   : > { %11850 = vmatpush.bf16.msrb.mxu3 %v12349_v46  ;;  %v19092_v46 = vunpack.c.l.b16 %v12449_v16  ;;  %19536 = vst [vmem:[#allocation42_spill] sm:$0xff] %v12488_v38  ;;  %v19089_v58 = vunpack.c.l.b16 %v12488_v38  ;;  %v501_v38 = vmax.f32 %v11589_v43, 0.0 }
  0x6c   : > { %19537 = vst [vmem:[#allocation43_spill] sm:$0xff] %v12490_v40  ;;  %v19098_v59 = vunpack.c.l.b16 %v12490_v40  ;;  %v19097_v60 = vunpack.c.l.b16 %v12492_v49  ;;  %v519_v31 = vmax.f32 %v11625_v0, 0.0  ;;  %v520_v52 = vmax.f32 %v11626_v4, 0.0  ;;  %v11789_v0 = vld [vmem:[%s12302_s18 + $0x38] sm:$0xff]  }
  0x6d   : > { %19538 = vst [vmem:[#allocation44_spill] sm:$0xff] %v12492_v49  ;;  %v12513_v63 = vpack.c.b16 %v19089_v58, %v19090_v54 }
  0x6e   : > { %v12525_v47 = vpack.c.bf16 %v519_v31, %v519_v31  ;;  %v12527_v45 = vpack.c.bf16 %v520_v52, %v520_v52  ;;  %v11804_v31 = vld [vmem:[%s12302_s18 + $0xb0] sm:$0xff]  }
  0x6f   : > { %11851 = vmatpush.bf16.msrb.mxu3 %v12357_v55  ;;  %v12474_v55 = vpack.c.b16 %v19091_v26, %v19092_v46  ;;  %19541 = vst [vmem:[#allocation47_spill] sm:$0xff] %v12513_v63  ;;  %v1225_v37 = vshrl.u32 %v12513_v63, 16 }
  0x70   : > { %19543 = vst [vmem:[#allocation49_spill] sm:$0xff] %v12525_v47 }
  0x71   : > { %19533 = vst [vmem:[#allocation39_spill] sm:$0xff] %v12474_v55  ;;  %v1213_v62 = vshll.u32 %v12474_v55, 16 }
  0x72   : > { %853 = vmatmul.bf16.gmra.mxu0 %v12380_v9  ;;  %1458 = vmatmul.bf16.vlgmr.msrb.gmra.mxu3 %v12459_v25  ;;  %19544 = vst [vmem:[#allocation50_spill] sm:$0xff] %v12527_v45  ;;  %v11805_v25 = vld [vmem:[%s12302_s18 + $0xb8] sm:$0xff]  }
  0x73   : > { %v1215_v13 = vrot.slane %v1213_v62, 1  ;;  %v11788_v62 = vld [vmem:[%s12302_s18 + $0x30] sm:$0xff]  }
  0x74   : > { %1383 = vmatmul.bf16.gmra.mxu1 %v1088_v27  ;;  %v1095_v27 = vrot.slane %v1093_v7, 1  ;;  %v12519_v7 = vpack.c.b16 %v19097_v60, %v19098_v59  ;;  %v11565_v8 = vunpack.c.l.bf16 %v11788_v62  ;;  %v11566_v11 = vunpack.c.h.bf16 %v11788_v62  ;;  %v11415_v59 = vld [vmem:[#allocation7 + $0xa0] sm:$0xff] }
  0x75   : > { %v12495_v53 = vsel %vm1060_vm0, %v1211_v12, %v1215_v13  ;;  %v1217_v12 = vshrl.u32 %v12474_v55, 16 }
  0x76   : > { %19539 = vst [vmem:[#allocation45_spill] sm:$0xff] %v12495_v53  ;;  %v12500_v15 = vsel %vm1060_vm0, %v1091_v18, %v1095_v27  ;;  %v1221_v18 = vshll.u32 %v12513_v63, 16  ;;  %v1101_v58 = vshll.u32 %v12519_v7, 16  ;;  %v489_v19 = vmax.f32 %v11565_v8, 0.0 }
  0x77   : > { %19540 = vst [vmem:[#allocation46_spill] sm:$0xff] %v12500_v15  ;;  %v490_v54 = vmax.f32 %v11566_v11, 0.0  ;;  %v1219_v26 = vor.u32 %v1217_v12, %v1215_v13  ;;  %v1099_v62 = vor.u32 %v1097_v51, %v1095_v27  ;;  %v19102_v8 = vunpack.c.l.b16 %v12525_v47 }
  0x78   : > { %19542 = vst [vmem:[#allocation48_spill] sm:$0xff] %v12519_v7  ;;  %v1223_v46 = vrot.slane %v1221_v18, 1  ;;  %v1103_v36 = vrot.slane %v1101_v58, 1  ;;  %v12529_v35 = vpack.c.bf16 %v489_v19, %v489_v19  ;;  %v19101_v11 = vunpack.c.l.b16 %v12527_v45  ;;  %v11416_v18 = vld [vmem:[#allocation7 + $0xa8] sm:$0xff] }
  0x79   : > { %v12531_v60 = vpack.c.bf16 %v490_v54, %v490_v54  ;;  %v11569_v27 = vunpack.c.l.bf16 %v11789_v0  ;;  %v11570_v58 = vunpack.c.h.bf16 %v11789_v0  ;;  %v11629_v54 = vunpack.c.l.bf16 %v11804_v31  ;;  %1835 = vmatpush.bf16.msrb.mxu0 %v11416_v18  ;;  %11854 = vmatpush.bf16.msra.mxu2 %v11416_v18 }
  0x7a   : > { %19545 = vst [vmem:[#allocation51_spill] sm:$0xff] %v12529_v35  ;;  %v12535_v4 = vsel %vm1060_vm0, %v1219_v26, %v1223_v46  ;;  %v12540_v13 = vsel %vm1060_vm0, %v1099_v62, %v1103_v36  ;;  %v19106_v52 = vunpack.c.l.b16 %v12529_v35  ;;  %v12552_v26 = vpack.c.b16 %v19101_v11, %v19102_v8 }
  0x7b   : > { %19546 = vst [vmem:[#allocation52_spill] sm:$0xff] %v12531_v60  ;;  %v19105_v51 = vunpack.c.l.b16 %v12531_v60  ;;  %v11630_v12 = vunpack.c.h.bf16 %v11804_v31  ;;  %v491_v62 = vmax.f32 %v11569_v27, 0.0  ;;  %v492_v0 = vmax.f32 %v11570_v58, 0.0 }
  0x7c   : > { %19547 = vst [vmem:[#allocation53_spill] sm:$0xff] %v12535_v4  ;;  %v1229_v28 = vshll.u32 %v12552_v26, 16  ;;  %v521_v11 = vmax.f32 %v11629_v54, 0.0  ;;  %v1105_v31 = vshrl.u32 %v12519_v7, 16  ;;  %v1227_v27 = vor.u32 %v1225_v37, %v1223_v46 }
  0x7d   : > { %19548 = vst [vmem:[#allocation54_spill] sm:$0xff] %v12540_v13  ;;  %v12558_v19 = vpack.c.b16 %v19105_v51, %v19106_v52  ;;  %v522_v8 = vmax.f32 %v11630_v12, 0.0  ;;  %v12564_v50 = vpack.c.bf16 %v491_v62, %v491_v62  ;;  %v12566_v51 = vpack.c.bf16 %v492_v0, %v492_v0  ;;  %11855 = vmatpush.bf16.msra.mxu2 %v11415_v59 }
  0x7e   : > { %19549 = vst [vmem:[#allocation55_spill] sm:$0xff] %v12552_v26  ;;  %1836 = vmatpush.bf16.msrb.mxu0 %v11415_v59  ;;  %v1231_v58 = vrot.slane %v1229_v28, 1  ;;  %v12568_v18 = vpack.c.bf16 %v521_v11, %v521_v11  ;;  %v1107_v54 = vor.u32 %v1105_v31, %v1103_v36  ;;  %v11790_v28 = vld [vmem:[%s12302_s18 + $0x40] sm:$0xff]   ;;  %v11634_v37 = vunpack.c.h.bf16 %v11805_v25 }
  0x7f   : > { %19550 = vst [vmem:[#allocation56_spill] sm:$0xff] %v12558_v19  ;;  %v1109_v21 = vshll.u32 %v12558_v19, 16  ;;  %v12570_v52 = vpack.c.bf16 %v522_v8, %v522_v8  ;;  %v19111_v12 = vunpack.c.l.b16 %v12564_v50  ;;  %v11573_v11 = vunpack.c.l.bf16 %v11790_v28 }
  0x80   : > { %19551 = vst [vmem:[#allocation57_spill] sm:$0xff] %v12564_v50  ;;  %v12576_v62 = vsel %vm1060_vm0, %v1227_v27, %v1231_v58  ;;  %v19117_v0 = vunpack.c.l.b16 %v12568_v18  ;;  %v11574_v31 = vunpack.c.h.bf16 %v11790_v28  ;;  %v11414_v27 = vld [vmem:[#allocation7 + $0x98] sm:$0xff] }
  0x81   : > { %19552 = vst [vmem:[#allocation58_spill] sm:$0xff] %v12566_v51  ;;  %v19116_v59 = vunpack.c.l.b16 %v12570_v52  ;;  %11856 = vmatpush.bf16.msra.mxu2 %v11414_v27 }
  0x82   : > { %858 = vmatmul.bf16.gmra.mxu0 %v12438_v29  ;;  %1463 = vmatmul.bf16.gmra.mxu3 %v12495_v53  ;;  %19553 = vst [vmem:[#allocation59_spill] sm:$0xff] %v12568_v18  ;;  %v19110_v53 = vunpack.c.l.b16 %v12566_v51 }
  0x83   : > { %19554 = vst [vmem:[#allocation60_spill] sm:$0xff] %v12570_v52  ;;  %v12597_v8 = vpack.c.b16 %v19116_v59, %v19117_v0  ;;  %1837 = vmatpush.bf16.msrb.mxu0 %v11414_v27  ;;  %v494_v59 = vmax.f32 %v11574_v31, 0.0  ;;  %v11793_v0 = vld [vmem:[%s12302_s18 + $0x58] sm:$0xff]   ;;  %v11412_v27 = vld [vmem:[#allocation7 + $0x88] sm:$0xff] }
  0x84   : > { %1388 = vmatmul.bf16.gmra.mxu1 %v12500_v15  ;;  %19555 = vst [vmem:[#allocation61_spill] sm:$0xff] %v12576_v62  ;;  %v12588_v36 = vpack.c.b16 %v19110_v53, %v19111_v12  ;;  %v524_v12 = vmax.f32 %v11634_v37, 0.0  ;;  %v493_v15 = vmax.f32 %v11573_v11, 0.0  ;;  %v11585_v1 = vunpack.c.l.bf16 %v11793_v0 }
  0x85   : > { %19558 = vst [vmem:[#allocation64_spill] sm:$0xff] %v12597_v8  ;;  %v11586_v28 = vunpack.c.h.bf16 %v11793_v0  ;;  %v502_v11 = vmax.f32 %v11590_v42, 0.0  ;;  %v12613_v3 = vpack.c.bf16 %v494_v59, %v494_v59 }
  0x86   : > { %19557 = vst [vmem:[#allocation63_spill] sm:$0xff] %v12588_v36  ;;  %v12609_v37 = vpack.c.bf16 %v524_v12, %v524_v12  ;;  %v499_v45 = vmax.f32 %v11585_v1, 0.0  ;;  %v12611_v0 = vpack.c.bf16 %v493_v15, %v493_v15  ;;  %v12619_v12 = vpack.c.bf16 %v501_v38, %v501_v38 }
  0x87   : > { %v500_v47 = vmax.f32 %v11586_v28, 0.0  ;;  %19562 = vst [vmem:[#allocation68_spill] sm:$0xff] %v12613_v3  ;;  %v19151_v59 = vunpack.c.l.b16 %v12613_v3 }
  0x88   : > { %19560 = vst [vmem:[#allocation66_spill] sm:$0xff] %v12609_v37  ;;  %v19142_v43 = vunpack.c.l.b16 %v12609_v37  ;;  %v19139_v38 = vunpack.c.l.b16 %v12619_v12 }
  0x89   : > { %19561 = vst [vmem:[#allocation67_spill] sm:$0xff] %v12611_v0 }
  0x8a   : > { %19565 = vst [vmem:[#allocation71_spill] sm:$0xff] %v12619_v12  ;;  %v11423_v12 = vld [vmem:[#allocation7 + $0xe0] sm:$0xff] }
  0x92   : > { %863 = vmatmul.bf16.gmra.mxu0 %v12480_v57  ;;  %1468 = vmatmul.bf16.gmra.mxu3 %v12535_v4  ;;  %v1111_v4 = vrot.slane %v1109_v21, 1  ;;  %v11633_v21 = vunpack.c.l.bf16 %v11805_v25  ;;  %v1117_v25 = vshll.u32 %v12588_v36, 16 }
  0x94   : > { %1393 = vmatmul.bf16.gmra.mxu1 %v12540_v13  ;;  %v12581_v46 = vsel %vm1060_vm0, %v1107_v54, %v1111_v4  ;;  %v1113_v54 = vshrl.u32 %v12558_v19, 16  ;;  %v523_v53 = vmax.f32 %v11633_v21, 0.0  ;;  %v1237_v13 = vshll.u32 %v12597_v8, 16 }
  0x95   : > { %19556 = vst [vmem:[#allocation62_spill] sm:$0xff] %v12581_v46  ;;  %v12605_v18 = vrot.slane %v1117_v25, 1  ;;  %v11791_v25 = vld [vmem:[%s12302_s18 + $0x48] sm:$0xff]  }
  0x96   : > { %v1115_v52 = vor.u32 %v1113_v54, %v1111_v4  ;;  %v12607_v21 = vpack.c.bf16 %v523_v53, %v523_v53  ;;  %v1239_v14 = vrot.slane %v1237_v13, 1  ;;  %v12615_v4 = vpack.c.bf16 %v499_v45, %v499_v45 }
  0x97   : > { %v12617_v53 = vpack.c.bf16 %v500_v47, %v500_v47  ;;  %v12621_v54 = vpack.c.bf16 %v502_v11, %v502_v11  ;;  %v11806_v47 = vld [vmem:[%s12302_s18 + $0xc0] sm:$0xff]  }
  0x98   : > { %19559 = vst [vmem:[#allocation65_spill] sm:$0xff] %v12607_v21  ;;  %v19143_v42 = vunpack.c.l.b16 %v12607_v21  ;;  %v19140_v1 = vunpack.c.l.b16 %v12615_v4  ;;  %v11637_v11 = vunpack.c.l.bf16 %v11806_v47 }
  0x99   : > { %19563 = vst [vmem:[#allocation69_spill] sm:$0xff] %v12615_v4  ;;  %v19137_v15 = vunpack.c.l.b16 %v12617_v53  ;;  %v19138_v13 = vunpack.c.l.b16 %v12621_v54 }
  0x9a   : > { %19564 = vst [vmem:[#allocation70_spill] sm:$0xff] %v12617_v53 }
  0x9b   : > { %19566 = vst [vmem:[#allocation72_spill] sm:$0xff] %v12621_v54  ;;  %v12644_v28 = vpack.c.b16 %v19137_v15, %v19140_v1 }
  0x9d   : > { %v19157_v15 = vrot.slane %v12644_v28, 1 }
  0xa2   : > { %868 = vmatmul.bf16.gmra.mxu0 %v12519_v7  ;;  %1473 = vmatmul.bf16.gmra.mxu3 %v12576_v62  ;;  %v11413_v62 = vld [vmem:[#allocation7 + $0x90] sm:$0xff] }
  0xa3   : > { %11857 = vmatpush.bf16.msra.mxu2 %v11413_v62  ;;  %1838 = vmatpush.bf16.msrb.mxu0 %v11413_v62  ;;  %v19152_v62 = vunpack.c.l.b16 %v12611_v0 }
  0xa4   : > { %1398 = vmatmul.bf16.gmra.mxu1 %v12581_v46  ;;  %v1233_v46 = vshrl.u32 %v12552_v26, 16 }
  0xa6   : > { %v1235_v31 = vor.u32 %v1233_v46, %v1231_v58  ;;  %v12635_v58 = vsel %vm1060_vm0, %v1115_v52, %v12605_v18  ;;  %v11411_v46 = vld [vmem:[#allocation7 + $0x80] sm:$0xff]  ;;  %v12658_v52 = vpack.c.b16 %v19142_v43, %v19143_v42  ;;  %v1241_v43 = vshrl.u32 %v12597_v8, 16 }
  0xa7   : > { %11858 = vmatpush.bf16.msra.mxu2 %v11412_v27  ;;  %1839 = vmatpush.bf16.msrb.mxu0 %v11412_v27  ;;  %19568 = vst [vmem:[#allocation74_spill] sm:$0xff] %v12635_v58  ;;  %v12650_v27 = vpack.c.b16 %v19138_v13, %v19139_v38  ;;  %v11577_v13 = vunpack.c.l.bf16 %v11791_v25  ;;  %v11578_v38 = vunpack.c.h.bf16 %v11791_v25  ;;  %v525_v25 = vmax.f32 %v11637_v11, 0.0 }
  0xa8   : > { %v12628_v45 = vsel %vm1060_vm0, %v1235_v31, %v1239_v14  ;;  %19570 = vst [vmem:[#allocation76_spill] sm:$0xff] %v12658_v52  ;;  %v11638_v31 = vunpack.c.h.bf16 %v11806_v47  ;;  %v1245_v42 = vshll.u32 %v12658_v52, 16  ;;  %v1243_v16 = vor.u32 %v1241_v43, %v1239_v14 }
  0xa9   : > { %19567 = vst [vmem:[#allocation73_spill] sm:$0xff] %v12628_v45  ;;  %v1723_v1 = vrot.slane %v12650_v27, 1  ;;  %v495_v37 = vmax.f32 %v11577_v13, 0.0  ;;  %v496_v21 = vmax.f32 %v11578_v38, 0.0  ;;  %v12680_v34 = vpack.c.bf16 %v525_v25, %v525_v25 }
  0xaa   : > { %19569 = vst [vmem:[#allocation75_spill] sm:$0xff] %v12650_v27 }
  0xab   : > { %11859 = vmatpush.bf16.msra.mxu2 %v11411_v46  ;;  %1840 = vmatpush.bf16.msrb.mxu0 %v11411_v46  ;;  %v12672_v47 = vsel %vm1699_vm1, %v19157_v15, %v1723_v1  ;;  %v1247_v15 = vrot.slane %v1245_v42, 1  ;;  %19573 = vst [vmem:[#allocation79_spill] sm:$0xff] %v12680_v34  ;;  %v12684_v33 = vpack.c.bf16 %v495_v37, %v495_v37  ;;  %v19171_v42 = vunpack.c.l.b16 %v12680_v34 }
  0xac   : > { %19572 = vst [vmem:[#allocation78_spill] sm:$0xff] %v12672_v47  ;;  %v12686_v11 = vpack.c.bf16 %v496_v21, %v496_v21 }
  0xad   : > { %19575 = vst [vmem:[#allocation81_spill] sm:$0xff] %v12684_v33  ;;  %v12694_v14 = vsel %vm1060_vm0, %v1243_v16, %v1247_v15  ;;  %v19174_v21 = vunpack.c.l.b16 %v12684_v33 }
  0xae   : > { %1896 = vmatmul.bf16.vlgmr.msra.gmra.mxu2 %v12672_v47  ;;  %19576 = vst [vmem:[#allocation82_spill] sm:$0xff] %v12686_v11  ;;  %v19173_v43 = vunpack.c.l.b16 %v12686_v11 }
  0xaf   : > { %19579 = vst [vmem:[#allocation85_spill] sm:$0xff] %v12694_v14 }
  0xb2   : > { %873 = vmatmul.bf16.gmra.mxu0 %v12558_v19  ;;  %1478 = vmatmul.bf16.gmra.mxu3 %v12628_v45  ;;  %v12667_v45 = vpack.c.b16 %v19151_v59, %v19152_v62  ;;  %v1121_v59 = vshrl.u32 %v12588_v36, 16  ;;  %v11593_v62 = vunpack.c.l.bf16 %v11795_v17  ;;  %v11594_v19 = vunpack.c.h.bf16 %v11795_v17 }
  0xb4   : > { %1403 = vmatmul.bf16.gmra.mxu1 %v12635_v58  ;;  %19571 = vst [vmem:[#allocation77_spill] sm:$0xff] %v12667_v45  ;;  %v526_v58 = vmax.f32 %v11638_v31, 0.0  ;;  %v1125_v46 = vshll.u32 %v12667_v45, 16  ;;  %v503_v38 = vmax.f32 %v11593_v62, 0.0  ;;  %v504_v13 = vmax.f32 %v11594_v19, 0.0  ;;  %v11807_v62 = vld [vmem:[%s12302_s18 + $0xc8] sm:$0xff]  }
  0xb5   : > { %v1123_v31 = vor.u32 %v1121_v59, %v12605_v18  ;;  %v11792_v59 = vld [vmem:[%s12302_s18 + $0x50] sm:$0xff]  }
  0xb6   : > { %v12682_v7 = vpack.c.bf16 %v526_v58, %v526_v58  ;;  %v1127_v47 = vrot.slane %v1125_v46, 1  ;;  %v12689_v24 = vpack.c.bf16 %v503_v38, %v503_v38  ;;  %v12691_v17 = vpack.c.bf16 %v504_v13, %v504_v13 }
  0xb7   : > { %v12726_v46 = vpack.c.b16 %v19173_v43, %v19174_v21  ;;  %v11641_v38 = vunpack.c.l.bf16 %v11807_v62  ;;  %v11642_v13 = vunpack.c.h.bf16 %v11807_v62  ;;  %v11796_v62 = vld [vmem:[%s12302_s18 + $0x70] sm:$0xff]  }
  0xb8   : > { %19574 = vst [vmem:[#allocation80_spill] sm:$0xff] %v12682_v7  ;;  %v19170_v37 = vunpack.c.l.b16 %v12682_v7  ;;  %v19168_v19 = vunpack.c.l.b16 %v12689_v24  ;;  %v19167_v18 = vunpack.c.l.b16 %v12691_v17  ;;  %v12703_v58 = vsel %vm1060_vm0, %v1123_v31, %v1127_v47 }
  0xb9   : > { %19577 = vst [vmem:[#allocation83_spill] sm:$0xff] %v12689_v24  ;;  %v1133_v43 = vshll.u32 %v12726_v46, 16  ;;  %v527_v21 = vmax.f32 %v11641_v38, 0.0  ;;  %v528_v7 = vmax.f32 %v11642_v13, 0.0  ;;  %v11597_v57 = vunpack.c.l.bf16 %v11796_v62 }
  0xba   : > { %19578 = vst [vmem:[#allocation84_spill] sm:$0xff] %v12691_v17  ;;  %v12711_v16 = vpack.c.b16 %v19167_v18, %v19168_v19  ;;  %v12719_v25 = vpack.c.b16 %v19170_v37, %v19171_v42  ;;  %v11581_v18 = vunpack.c.l.bf16 %v11792_v59  ;;  %v11582_v19 = vunpack.c.h.bf16 %v11792_v59 }
  0xbb   : > { %19580 = vst [vmem:[#allocation86_spill] sm:$0xff] %v12703_v58  ;;  %v1249_v37 = vshrl.u32 %v12658_v52, 16  ;;  %v11598_v59 = vunpack.c.h.bf16 %v11796_v62  ;;  %v505_v29 = vmax.f32 %v11597_v57, 0.0  ;;  %v1135_v30 = vrot.slane %v1133_v43, 1 }
  0xbc   : > { %19581 = vst [vmem:[#allocation87_spill] sm:$0xff] %v12711_v16  ;;  %v1725_v31 = vrot.slane %v12711_v16, 1  ;;  %v1253_v42 = vshll.u32 %v12719_v25, 16  ;;  %v497_v34 = vmax.f32 %v11581_v18, 0.0  ;;  %v12738_v17 = vpack.c.bf16 %v527_v21, %v527_v21 }
  0xbd   : > { %19582 = vst [vmem:[#allocation88_spill] sm:$0xff] %v12719_v25  ;;  %v1251_v23 = vor.u32 %v1249_v37, %v1247_v15  ;;  %v506_v9 = vmax.f32 %v11598_v59, 0.0  ;;  %v12746_v38 = vpack.c.bf16 %v505_v29, %v505_v29  ;;  %v1257_v59 = vshrl.u32 %v12719_v25, 16 }
  0xbe   : > { %19583 = vst [vmem:[#allocation89_spill] sm:$0xff] %v12726_v46  ;;  %v12742_v24 = vpack.c.bf16 %v497_v34, %v497_v34  ;;  %v19198_v57 = vunpack.c.l.b16 %v12738_v17 }
  0xbf   : > { %19585 = vst [vmem:[#allocation91_spill] sm:$0xff] %v12738_v17  ;;  %v12748_v18 = vpack.c.bf16 %v506_v9, %v506_v9 }
  0xc0   : > { %19587 = vst [vmem:[#allocation93_spill] sm:$0xff] %v12742_v24  ;;  %v19202_v29 = vunpack.c.l.b16 %v12742_v24 }
  0xc1   : > { %19589 = vst [vmem:[#allocation95_spill] sm:$0xff] %v12746_v38 }
  0xc2   : > { %878 = vmatmul.bf16.gmra.mxu0 %v12588_v36  ;;  %1483 = vmatmul.bf16.gmra.mxu3 %v12694_v14  ;;  %v12730_v14 = vsel %vm1699_vm1, %v1723_v1, %v1725_v31  ;;  %v498_v36 = vmax.f32 %v11582_v19, 0.0  ;;  %v1255_v1 = vrot.slane %v1253_v42, 1  ;;  %19590 = vst [vmem:[#allocation96_spill] sm:$0xff] %v12748_v18  ;;  %v19200_v42 = vunpack.c.l.b16 %v12746_v38 }
  0xc3   : > { %19584 = vst [vmem:[#allocation90_spill] sm:$0xff] %v12730_v14  ;;  %1901 = vmatmul.bf16.gmra.mxu2 %v12730_v14  ;;  %v12740_v14 = vpack.c.bf16 %v528_v7, %v528_v7  ;;  %v19199_v7 = vunpack.c.l.b16 %v12748_v18 }
  0xc4   : > { %1408 = vmatmul.bf16.gmra.mxu1 %v12703_v58  ;;  %v1129_v58 = vshrl.u32 %v12667_v45, 16  ;;  %v12744_v54 = vpack.c.bf16 %v498_v36, %v498_v36  ;;  %v12751_v19 = vsel %vm1060_vm0, %v1251_v23, %v1255_v1 }
  0xc5   : > { %19586 = vst [vmem:[#allocation92_spill] sm:$0xff] %v12740_v14  ;;  %v12768_v37 = vpack.c.b16 %v19199_v7, %v19200_v42 }
  0xc6   : > { %v1131_v39 = vor.u32 %v1129_v58, %v1127_v47  ;;  %19588 = vst [vmem:[#allocation94_spill] sm:$0xff] %v12744_v54  ;;  %v19197_v47 = vunpack.c.l.b16 %v12740_v14  ;;  %v19201_v9 = vunpack.c.l.b16 %v12744_v54 }
  0xc7   : > { %19591 = vst [vmem:[#allocation97_spill] sm:$0xff] %v12751_v19  ;;  %v1727_v21 = vrot.slane %v12768_v37, 1 }
  0xc8   : > { %v12758_v36 = vsel %vm1060_vm0, %v1131_v39, %v1135_v30  ;;  %19594 = vst [vmem:[#allocation100_spill] sm:$0xff] %v12768_v37  ;;  %v12777_v39 = vpack.c.b16 %v19197_v47, %v19198_v57  ;;  %v12784_v43 = vpack.c.b16 %v19201_v9, %v19202_v29  ;;  %v1137_v57 = vshrl.u32 %v12726_v46, 16 }
  0xc9   : > { %19592 = vst [vmem:[#allocation98_spill] sm:$0xff] %v12758_v36  ;;  %v12789_v13 = vsel %vm1699_vm1, %v1725_v31, %v1727_v21 }
  0xca   : > { %19595 = vst [vmem:[#allocation101_spill] sm:$0xff] %v12777_v39  ;;  %v1141_v7 = vshll.u32 %v12784_v43, 16 }
  0xcb   : > { %19596 = vst [vmem:[#allocation102_spill] sm:$0xff] %v12784_v43 }
  0xcc   : > { %19598 = vst [vmem:[#allocation104_spill] sm:$0xff] %v12789_v13  ;;  %v1143_v17 = vrot.slane %v1141_v7, 1 }
  0xcf   : > { %v844_v15 = vpop.f32.mrf.mxu0 }
  0xd1   : > { %v1374_v34 = vpop.f32.mrf.mxu1 }
  0xd2   : > { %v12762_v23 = vadd.f32 %v1374_v34, %v844_v15  ;;  %883 = vmatmul.bf16.gmra.mxu0 %v12667_v45  ;;  %1488 = vmatmul.bf16.gmra.mxu3 %v12751_v19  ;;  %v1261_v15 = vshll.u32 %v12777_v39, 16  ;;  %v11797_v34 = vld [vmem:[%s12302_s18 + $0x78] sm:$0xff]  }
  0xd3   : > { %1906 = vmatmul.bf16.gmra.mxu2 %v12789_v13  ;;  %v11601_v42 = vunpack.c.l.bf16 %v11797_v34  ;;  %v11602_v9 = vunpack.c.h.bf16 %v11797_v34  ;;  %v1139_v13 = vor.u32 %v1137_v57, %v1135_v30  ;;  %v11426_v57 = vld [vmem:[#allocation7 + $0xf8] sm:$0xff] }
  0xd4   : > { %19593 = vst [vmem:[#allocation99_spill] sm:$0xff] %v12762_v23  ;;  %1413 = vmatmul.bf16.gmra.mxu1 %v12758_v36  ;;  %v1259_v36 = vor.u32 %v1257_v59, %v1255_v1  ;;  %v1263_v14 = vrot.slane %v1261_v15, 1  ;;  %2275 = vmatpush.bf16.msra.mxu3 %v11426_v57  ;;  %v1269_v59 = vshll.u32 %v12364_v61, 16  ;;  %v11798_v15 = vld [vmem:[%s12302_s18 + $0x80] sm:$0xff]  }
  0xd5   : > { %v12786_v58 = vpop.f32.mrf.mxu3  ;;  %v507_v19 = vmax.f32 %v11601_v42, 0.0  ;;  %v508_v31 = vmax.f32 %v11602_v9, 0.0  ;;  %v12811_v1 = vsel %vm1060_vm0, %v1139_v13, %v1143_v17  ;;  %v11425_v9 = vld [vmem:[#allocation7 + $0xf0] sm:$0xff]  ;;  %v11605_v57 = vunpack.c.l.bf16 %v11798_v15 }
  0xd6   : > { %19597 = vst [vmem:[#allocation103_spill] sm:$0xff] %v12786_v58  ;;  %v12806_v38 = vsel %vm1060_vm0, %v1259_v36, %v1263_v14 }
  0xd7   : > { %v846_v62 = vpop.f32.mrf.mxu0  ;;  %v12799_v23 = vpack.c.bf16 %v507_v19, %v507_v19  ;;  %v12801_v45 = vpack.c.bf16 %v508_v31, %v508_v31  ;;  %19603 = vst [vmem:[#allocation109_spill] sm:$0xff] %v12806_v38 }
  0xd8   : > { %19604 = vst [vmem:[#allocation110_spill] sm:$0xff] %v12811_v1  ;;  %2276 = vmatpush.bf16.msra.mxu3 %v11425_v9 }
  0xd9   : > { %v1376_v47 = vpop.f32.mrf.mxu1  ;;  %19600 = vst [vmem:[#allocation106_spill] sm:$0xff] %v12799_v23  ;;  %v19217_v34 = vunpack.c.l.b16 %v12799_v23 }
  0xda   : > { %v12797_v29 = vadd.f32 %v1376_v47, %v846_v62  ;;  %19601 = vst [vmem:[#allocation107_spill] sm:$0xff] %v12801_v45  ;;  %v19216_v47 = vunpack.c.l.b16 %v12801_v45  ;;  %v1265_v62 = vshrl.u32 %v12777_v39, 16 }
  0xdc   : > { %19599 = vst [vmem:[#allocation105_spill] sm:$0xff] %v12797_v29  ;;  %v12819_v19 = vpack.c.b16 %v19216_v47, %v19217_v34  ;;  %v1149_v47 = vshll.u32 %v12644_v28, 16  ;;  %v11606_v34 = vunpack.c.h.bf16 %v11798_v15 }
  0xdd   : > { %v12803_v58 = vpop.f32.mrf.mxu3 }
  0xde   : > { %19602 = vst [vmem:[#allocation108_spill] sm:$0xff] %v12803_v58  ;;  %v1729_v7 = vrot.slane %v12819_v19, 1  ;;  %v509_v58 = vmax.f32 %v11605_v57, 0.0  ;;  %v1277_v57 = vshll.u32 %v12409_v10, 16 }
  0xdf   : > { %v849_v18 = vpop.f32.mrf.mxu0  ;;  %19606 = vst [vmem:[#allocation112_spill] sm:$0xff] %v12819_v19 }
  0xe1   : > { %v1379_v42 = vpop.f32.mrf.mxu1 }
  0xe2   : > { %v12813_v30 = vadd.f32 %v1379_v42, %v849_v18  ;;  %888 = vmatmul.bf16.gmra.mxu0 %v12726_v46  ;;  %1493 = vmatmul.bf16.gmra.mxu3 %v12806_v38  ;;  %v12828_v18 = vsel %vm1699_vm1, %v1727_v21, %v1729_v7  ;;  %v1145_v42 = vshrl.u32 %v12784_v43, 16  ;;  %v11424_v21 = vld [vmem:[#allocation7 + $0xe8] sm:$0xff]  ;;  %v1151_v46 = vrot.slane %v1149_v47, 1  ;;  %v11422_v47 = vld [vmem:[#allocation7 + $0xd8] sm:$0xff] }
  0xe3   : > { %19608 = vst [vmem:[#allocation114_spill] sm:$0xff] %v12828_v18  ;;  %1911 = vmatmul.bf16.gmra.mxu2 %v12828_v18  ;;  %v510_v18 = vmax.f32 %v11606_v34, 0.0  ;;  %2277 = vmatpush.bf16.msra.mxu3 %v11424_v21 }
  0xe4   : > { %19605 = vst [vmem:[#allocation111_spill] sm:$0xff] %v12813_v30  ;;  %1418 = vmatmul.bf16.gmra.mxu1 %v12811_v1  ;;  %v1267_v1 = vor.u32 %v1265_v62, %v1263_v14  ;;  %v1271_v30 = vrot.slane %v1269_v59, 1  ;;  %v1147_v29 = vor.u32 %v1145_v42, %v1143_v17  ;;  %v11810_v17 = vld [vmem:[%s12302_s18 + $0xe0] sm:$0xff]   ;;  %v11421_v59 = vld [vmem:[#allocation7 + $0xd0] sm:$0xff]  ;;  %v1273_v42 = vshrl.u32 %v12364_v61, 16 }
  0xe5   : > { %v12825_v36 = vpop.f32.mrf.mxu3  ;;  %v12840_v45 = vpack.c.bf16 %v510_v18, %v510_v18 }
  0xe6   : > { %19607 = vst [vmem:[#allocation113_spill] sm:$0xff] %v12825_v36  ;;  %v12838_v36 = vpack.c.bf16 %v509_v58, %v509_v58  ;;  %v12843_v15 = vsel %vm1060_vm0, %v1267_v1, %v1271_v30  ;;  %v12848_v62 = vsel %vm1060_vm0, %v1147_v29, %v1151_v46  ;;  %v11653_v1 = vunpack.c.l.bf16 %v11810_v17 }
  0xe7   : > { %v851_v13 = vpop.f32.mrf.mxu0  ;;  %19611 = vst [vmem:[#allocation117_spill] sm:$0xff] %v12840_v45  ;;  %v19229_v34 = vunpack.c.l.b16 %v12840_v45  ;;  %2278 = vmatpush.bf16.msra.mxu3 %v11423_v12  ;;  %v1157_v17 = vshll.u32 %v12650_v27, 16 }
  0xe8   : > { %19610 = vst [vmem:[#allocation116_spill] sm:$0xff] %v12838_v36  ;;  %v533_v21 = vmax.f32 %v11653_v1, 0.0 }
  0xe9   : > { %v1381_v31 = vpop.f32.mrf.mxu1  ;;  %19612 = vst [vmem:[#allocation118_spill] sm:$0xff] %v12843_v15 }
  0xea   : > { %v12836_v38 = vadd.f32 %v1381_v31, %v851_v13  ;;  %v19230_v13 = vunpack.c.l.b16 %v12838_v36  ;;  %19613 = vst [vmem:[#allocation119_spill] sm:$0xff] %v12848_v62 }
  0xeb   : > { %2279 = vmatpush.bf16.msra.mxu3 %v11422_v47 }
  0xec   : > { %19609 = vst [vmem:[#allocation115_spill] sm:$0xff] %v12836_v38 }
  0xed   : > { %v981_v23 = vpop.f32.mrf.mxu3 }
  0xee   : > { %v12857_v23 = vpack.c.b16 %v19229_v34, %v19230_v13  ;;  %v11420_v34 = vld [vmem:[#allocation7 + $0xc8] sm:$0xff]  ;;  %v1279_v13 = vrot.slane %v1277_v57, 1  ;;  %v1165_v57 = vshll.u32 %v12711_v16, 16 }
  0xef   : > { %v854_v9 = vpop.f32.mrf.mxu0  ;;  %2280 = vmatpush.bf16.msra.mxu3 %v11421_v59 }
  0xf0   : > { %19615 = vst [vmem:[#allocation121_spill] sm:$0xff] %v12857_v23  ;;  %v1731_v29 = vrot.slane %v12857_v23, 1 }
  0xf1   : > { %v1384_v14 = vpop.f32.mrf.mxu1 }
  0xf2   : > { %v12851_v58 = vadd.f32 %v1384_v14, %v854_v9  ;;  %893 = vmatmul.bf16.gmra.mxu0 %v12784_v43  ;;  %1498 = vmatmul.bf16.gmra.mxu3 %v12843_v15  ;;  %v12866_v18 = vsel %vm1699_vm1, %v1729_v7, %v1731_v29  ;;  %v1153_v14 = vshrl.u32 %v12644_v28, 16  ;;  %v1275_v7 = vor.u32 %v1273_v42, %v1271_v30 }
  0xf3   : > { %19617 = vst [vmem:[#allocation123_spill] sm:$0xff] %v12866_v18  ;;  %1916 = vmatmul.bf16.gmra.mxu2 %v12866_v18  ;;  %v596_v15 = vpack.c.bf16 %v533_v21, %v533_v21  ;;  %2281 = vmatpush.bf16.msra.mxu3 %v11420_v34  ;;  %v1161_v42 = vshrl.u32 %v12650_v27, 16 }
  0xf4   : > { %19614 = vst [vmem:[#allocation120_spill] sm:$0xff] %v12851_v58  ;;  %1423 = vmatmul.bf16.gmra.mxu1 %v12848_v62  ;;  %v1155_v18 = vor.u32 %v1153_v14, %v1151_v46  ;;  %v1159_v62 = vrot.slane %v1157_v17, 1  ;;  %v11419_v58 = vld [vmem:[#allocation7 + $0xc0] sm:$0xff]  ;;  %v12878_v1 = vsel %vm1060_vm0, %v1275_v7, %v1279_v13  ;;  %v1733_v46 = vrot.slane %v12417_v48, 1 }
  0xf5   : > { %v12863_v12 = vpop.f32.mrf.mxu3  ;;  %19618 = vst [vmem:[#allocation124_spill] sm:$0xff] %v12878_v1  ;;  %v12880_v43 = vunpack.c.l.b16 %v596_v15  ;;  %v1167_v17 = vrot.slane %v1165_v57, 1 }
  0xf6   : > { %19616 = vst [vmem:[#allocation122_spill] sm:$0xff] %v12863_v12  ;;  %v12883_v59 = vsel %vm1060_vm0, %v1155_v18, %v1159_v62  ;;  %v12896_v15 = vsel %vm1699_vm1, %v1731_v29, %v1733_v46  ;;  %v1163_v14 = vor.u32 %v1161_v42, %v1159_v62 }
  0xf7   : > { %v856_v31 = vpop.f32.mrf.mxu0  ;;  %19619 = vst [vmem:[#allocation125_spill] sm:$0xff] %v12880_v43  ;;  %2282 = vmatpush.bf16.msra.mxu3 %v11419_v58  ;;  %v12893_v34 = vpack.c.b16 %v12880_v43, %v12880_v43 }
  0xf8   : > { %19620 = vst [vmem:[#allocation126_spill] sm:$0xff] %v12883_v59 }
  0xf9   : > { %v1386_v9 = vpop.f32.mrf.mxu1  ;;  %19621 = vst [vmem:[#allocation127_spill] sm:$0xff] %v12896_v15  ;;  %v1285_v58 = vshll.u32 %v12893_v34, 16 }
  0xfa   : > { %v12873_v47 = vadd.f32 %v1386_v9, %v856_v31 }
  0xfb   : > { %v1287_v29 = vrot.slane %v1285_v58, 1 }
  0xfd   : > { %v12875_v12 = vpop.f32.mrf.mxu3 }
  0xff   : > { %v859_v38 = vpop.f32.mrf.mxu0 }
 0x101   : > { %v1389_v45 = vpop.f32.mrf.mxu1 }
 0x102   : > { %v12885_v30 = vadd.f32 %v1389_v45, %v859_v38  ;;  %898 = vmatmul.bf16.gmra.mxu0 %v12644_v28  ;;  %1503 = vmatmul.bf16.gmra.mxu3 %v12878_v1  ;;  %v1281_v38 = vshrl.u32 %v12409_v10, 16 }
 0x103   : > { %1921 = vmatmul.bf16.gmra.mxu2 %v12896_v15 }
 0x104   : > { %1428 = vmatmul.bf16.gmra.mxu1 %v12883_v59  ;;  %v12907_v9 = vor.u32 %v1281_v38, %v1279_v13  ;;  %v1735_v13 = vrot.slane %v12431_v56, 1 }
 0x105   : > { %v12898_v18 = vpop.f32.mrf.mxu3 }
 0x106   : > { %19622 = vst [vmem:[#allocation128_spill] sm:$0xff] %v12898_v18  ;;  %v1288_v1 = vsel %vm1060_vm0, %v12907_v9, %v1287_v29  ;;  %v12914_v18 = vsel %vm1060_vm0, %v1163_v14, %v1167_v17  ;;  %v12922_v62 = vsel %vm1699_vm1, %v1733_v46, %v1735_v13  ;;  %v12935_v46 = vpack.c.b16 %v12369_v5, %v12334_v32 }
 0x107   : > { %v861_v45 = vpop.f32.mrf.mxu0  ;;  %19623 = vst [vmem:[#allocation129_spill] sm:$0xff] %v12907_v9 }
 0x108   : > { %19625 = vst [vmem:[#allocation131_spill] sm:$0xff] %v12914_v18 }
 0x109   : > { %v1391_v31 = vpop.f32.mrf.mxu1  ;;  %19626 = vst [vmem:[#allocation132_spill] sm:$0xff] %v12922_v62 }
 0x10a   : > { %v12905_v21 = vadd.f32 %v1391_v31, %v861_v45  ;;  %v1169_v31 = vshrl.u32 %v12711_v16, 16 }
 0x10d   : > { %v12909_v7 = vpop.f32.mrf.mxu3 }
 0x10e   : > { %19624 = vst [vmem:[#allocation130_spill] sm:$0xff] %v12909_v7 }
 0x10f   : > { %v864_v15 = vpop.f32.mrf.mxu0 }
 0x111   : > { %v1394_v59 = vpop.f32.mrf.mxu1 }
 0x112   : > { %v12916_v43 = vadd.f32 %v1394_v59, %v864_v15  ;;  %903 = vmatmul.bf16.gmra.mxu0 %v12650_v27  ;;  %1508 = vmatmul.bf16.gmra.mxu3 %v1288_v1  ;;  %v1173_v59 = vshll.u32 %v12768_v37, 16  ;;  %v1171_v1 = vor.u32 %v1169_v31, %v1167_v17  ;;  %v1737_v17 = vrot.slane %v12474_v55, 1 }
 0x113   : > { %1926 = vmatmul.bf16.gmra.mxu2 %v12922_v62  ;;  %v1177_v31 = vshrl.u32 %v12768_v37, 16 }
 0x114   : > { %1433 = vmatmul.bf16.gmra.mxu1 %v12914_v18  ;;  %v1175_v42 = vrot.slane %v1173_v59, 1  ;;  %v1181_v59 = vshll.u32 %v12819_v19, 16 }
 0x115   : > { %v12924_v45 = vpop.f32.mrf.mxu3 }
 0x116   : > { %19627 = vst [vmem:[#allocation133_spill] sm:$0xff] %v12924_v45  ;;  %v12938_v62 = vsel %vm1060_vm0, %v1171_v1, %v1175_v42  ;;  %v1179_v1 = vor.u32 %v1177_v31, %v1175_v42  ;;  %v1739_v42 = vrot.slane %v12513_v63, 1 }
 0x117   : > { %v866_v38 = vpop.f32.mrf.mxu0  ;;  %19630 = vst [vmem:[#allocation136_spill] sm:$0xff] %v12938_v62 }
 0x118   : > { %v12975_v31 = vsel %vm1699_vm1, %v1737_v17, %v1739_v42 }
 0x119   : > { %v1396_v58 = vpop.f32.mrf.mxu1  ;;  %19640 = vst [vmem:[#allocation145_spill] sm:$0xff] %v12975_v31 }
 0x11a   : > { %v12929_v15 = vadd.f32 %v1396_v58, %v866_v38  ;;  %v12947_v38 = vsel %vm1699_vm1, %v1735_v13, %v1737_v17  ;;  %v19637_v13 = vunpack.c.l.b16 %v12401_v41  ;;  %v19645_v17 = vunpack.c.l.b16 %v12403_v44 }
 0x11b   : > { %19632 = vst [vmem:[#allocation138_spill] sm:$0xff] %v12947_v38  ;;  %v19654_v44 = vunpack.c.l.b16 %v12455_v22 }
 0x11c   : > { %19628 = vst [vmem:[#allocation134_spill] sm:$0xff] %v12929_v15 }
 0x11d   : > { %v12931_v57 = vpop.f32.mrf.mxu3 }
 0x11e   : > { %19629 = vst [vmem:[#allocation135_spill] sm:$0xff] %v12931_v57 }
 0x11f   : > { %v869_v29 = vpop.f32.mrf.mxu0 }
 0x121   : > { %v1399_v14 = vpop.f32.mrf.mxu1 }
 0x122   : > { %v12940_v9 = vadd.f32 %v1399_v14, %v869_v29  ;;  %908 = vmatmul.bf16.gmra.mxu0 %v12711_v16  ;;  %2283 = vmatmul.bf16.vlgmr.msra.gmra.mxu3 %v12935_v46  ;;  %v1183_v29 = vrot.slane %v1181_v59, 1 }
 0x123   : > { %1931 = vmatmul.bf16.gmra.mxu2 %v12947_v38 }
 0x124   : > { %19631 = vst [vmem:[#allocation137_spill] sm:$0xff] %v12940_v9  ;;  %1438 = vmatmul.bf16.gmra.mxu1 %v12938_v62  ;;  %v12963_v62 = vpack.c.b16 %v19637_v13, %v12371_v6  ;;  %v12966_v38 = vsel %vm1060_vm0, %v1179_v1, %v1183_v29 }
 0x125   : > { %v12949_v32 = vpop.f32.mrf.mxu3  ;;  %19638 = vst [vmem:[#allocation143_spill] sm:$0xff] %v12966_v38 }
 0x126   : > { %19633 = vst [vmem:[#allocation139_spill] sm:$0xff] %v12949_v32 }
 0x127   : > { %v12952_v5 = vpop.f32.mrf.mxu0 }
 0x128   : > { %19634 = vst [vmem:[#allocation140_spill] sm:$0xff] %v12952_v5  ;;  %v19735_v5 = vld [vmem:[#allocation106_spill] sm:$0xff] }
 0x129   : > { %v12954_v58 = vpop.f32.mrf.mxu1 }
 0x12a   : > { %19635 = vst [vmem:[#allocation141_spill] sm:$0xff] %v12954_v58  ;;  %v19733_v58 = vld [vmem:[#allocation96_spill] sm:$0xff] }
 0x12d   : > { %v12958_v14 = vpop.f32.mrf.mxu3 }
 0x12e   : > { %19636 = vst [vmem:[#allocation142_spill] sm:$0xff] %v12958_v14 }
 0x12f   : > { %v874_v18 = vpop.f32.mrf.mxu0 }
 0x131   : > { %v1404_v16 = vpop.f32.mrf.mxu1  ;;  %v12986_v13 = vpop.f32.mrf.mxu2 }
 0x132   : > { %v12968_v27 = vadd.f32 %v1404_v16, %v874_v18  ;;  %913 = vmatmul.bf16.gmra.mxu0 %v12768_v37  ;;  %2288 = vmatmul.bf16.gmra.mxu3 %v12963_v62  ;;  %v1185_v16 = vshrl.u32 %v12819_v19, 16  ;;  %v1189_v18 = vshll.u32 %v12857_v23, 16 }
 0x133   : > { %1936 = vmatmul.bf16.gmra.mxu2 %v12975_v31 }
 0x134   : > { %19639 = vst [vmem:[#allocation144_spill] sm:$0xff] %v12968_v27  ;;  %1443 = vmatmul.bf16.gmra.mxu1 %v12966_v38  ;;  %v1187_v41 = vor.u32 %v1185_v16, %v1183_v29  ;;  %v1191_v37 = vrot.slane %v1189_v18, 1  ;;  %v1741_v29 = vrot.slane %v12552_v26, 1 }
 0x135   : > { %v12977_v6 = vpop.f32.mrf.mxu3 }
 0x136   : > { %19641 = vst [vmem:[#allocation146_spill] sm:$0xff] %v12977_v6  ;;  %v19646_v6 = vunpack.c.l.b16 %v12453_v20  ;;  %v12997_v57 = vsel %vm1060_vm0, %v1187_v41, %v1191_v37 }
 0x137   : > { %v12980_v59 = vpop.f32.mrf.mxu0  ;;  %19647 = vst [vmem:[#allocation150_spill] sm:$0xff] %v12997_v57 }
 0x138   : > { %19642 = vst [vmem:[#allocation147_spill] sm:$0xff] %v12980_v59  ;;  %v12994_v14 = vpack.c.b16 %v19646_v6, %v19645_v17  ;;  %v13008_v6 = vsel %vm1699_vm1, %v1739_v42, %v1741_v29  ;;  %v19655_v42 = vunpack.c.l.b16 %v12490_v40  ;;  %v19664_v40 = vunpack.c.l.b16 %v12529_v35 }
 0x139   : > { %v12982_v1 = vpop.f32.mrf.mxu1  ;;  %v13001_v59 = vpop.f32.mrf.mxu2  ;;  %19649 = vst [vmem:[#allocation152_spill] sm:$0xff] %v13008_v6  ;;  %v19671_v35 = vunpack.c.l.b16 %v12531_v60 }
 0x13a   : > { %19643 = vst [vmem:[#allocation148_spill] sm:$0xff] %v12982_v1 }
 0x13d   : > { %v12988_v38 = vpop.f32.mrf.mxu3 }
 0x13e   : > { %19644 = vst [vmem:[#allocation149_spill] sm:$0xff] %v12988_v38 }
 0x13f   : > { %v879_v31 = vpop.f32.mrf.mxu0 }
 0x141   : > { %v1409_v32 = vpop.f32.mrf.mxu1 }
 0x142   : > { %v12999_v1 = vadd.f32 %v1409_v32, %v879_v31  ;;  %918 = vmatmul.bf16.gmra.mxu0 %v12819_v19  ;;  %2293 = vmatmul.bf16.gmra.mxu3 %v12994_v14  ;;  %v1193_v31 = vshrl.u32 %v12857_v23, 16 }
 0x143   : > { %1941 = vmatmul.bf16.gmra.mxu2 %v13008_v6 }
 0x144   : > { %19648 = vst [vmem:[#allocation151_spill] sm:$0xff] %v12999_v1  ;;  %1448 = vmatmul.bf16.gmra.mxu1 %v12997_v57  ;;  %v1195_v17 = vor.u32 %v1193_v31, %v1191_v37  ;;  %v13026_v57 = vpack.c.b16 %v19655_v42, %v19654_v44  ;;  %v1743_v37 = vrot.slane %v12597_v8, 1  ;;  %v19663_v42 = vunpack.c.l.b16 %v12492_v49 }
 0x145   : > { %v13010_v16 = vpop.f32.mrf.mxu3 }
 0x146   : > { %19650 = vst [vmem:[#allocation153_spill] sm:$0xff] %v13010_v16  ;;  %v13018_v18 = vpop.f32.mrf.mxu2  ;;  %v13030_v6 = vsel %vm1060_vm0, %v1195_v17, %v12442_v2  ;;  %v13041_v44 = vsel %vm1699_vm1, %v1741_v29, %v1743_v37  ;;  %v13058_v22 = vpack.c.b16 %v19664_v40, %v19663_v42 }
 0x147   : > { %v13013_v41 = vpop.f32.mrf.mxu0  ;;  %19656 = vst [vmem:[#allocation157_spill] sm:$0xff] %v13030_v6 }
 0x148   : > { %19651 = vst [vmem:[#allocation154_spill] sm:$0xff] %v13013_v41 }
 0x149   : > { %v13015_v32 = vpop.f32.mrf.mxu1  ;;  %19658 = vst [vmem:[#allocation159_spill] sm:$0xff] %v13041_v44 }
 0x14a   : > { %19652 = vst [vmem:[#allocation155_spill] sm:$0xff] %v13015_v32 }
 0x14d   : > { %v13020_v20 = vpop.f32.mrf.mxu3 }
 0x14e   : > { %19653 = vst [vmem:[#allocation156_spill] sm:$0xff] %v13020_v20  ;;  %v13034_v32 = vpop.f32.mrf.mxu2 }
 0x14f   : > { %v884_v19 = vpop.f32.mrf.mxu0 }
 0x151   : > { %v1414_v16 = vpop.f32.mrf.mxu1 }
 0x152   : > { %v13032_v38 = vadd.f32 %v1414_v16, %v884_v19  ;;  %923 = vmatmul.bf16.gmra.mxu0 %v12857_v23  ;;  %2298 = vmatmul.bf16.gmra.mxu3 %v13026_v57 }
 0x153   : > { %1946 = vmatmul.bf16.gmra.mxu2 %v13041_v44  ;;  %v1745_v44 = vrot.slane %v12658_v52, 1 }
 0x154   : > { %19657 = vst [vmem:[#allocation158_spill] sm:$0xff] %v13032_v38  ;;  %1453 = vmatmul.bf16.gmra.mxu1 %v13030_v6 }
 0x155   : > { %v13043_v31 = vpop.f32.mrf.mxu3 }
 0x156   : > { %19659 = vst [vmem:[#allocation160_spill] sm:$0xff] %v13043_v31  ;;  %v13050_v16 = vpop.f32.mrf.mxu2 }
 0x157   : > { %v13046_v2 = vpop.f32.mrf.mxu0 }
 0x158   : > { %19660 = vst [vmem:[#allocation161_spill] sm:$0xff] %v13046_v2 }
 0x159   : > { %v13048_v19 = vpop.f32.mrf.mxu1 }
 0x15a   : > { %19661 = vst [vmem:[#allocation162_spill] sm:$0xff] %v13048_v19 }
 0x15d   : > { %v13052_v17 = vpop.f32.mrf.mxu3 }
 0x15e   : > { %19662 = vst [vmem:[#allocation163_spill] sm:$0xff] %v13052_v17  ;;  %v13062_v31 = vpop.f32.mrf.mxu2  ;;  %v13068_v17 = vsel %vm1699_vm1, %v1743_v37, %v1745_v44 }
 0x15f   : > { %v889_v29 = vpop.f32.mrf.mxu0  ;;  %19666 = vst [vmem:[#allocation165_spill] sm:$0xff] %v13068_v17 }
 0x161   : > { %v1419_v6 = vpop.f32.mrf.mxu1 }
 0x162   : > { %v13060_v23 = vadd.f32 %v1419_v6, %v889_v29  ;;  %928 = vmatmul.bf16.gmra.mxu0 %v12417_v48  ;;  %2303 = vmatmul.bf16.gmra.mxu3 %v13058_v22  ;;  %v19672_v48 = vunpack.c.l.b16 %v12564_v50  ;;  %v19680_v50 = vunpack.c.l.b16 %v12566_v51 }
 0x163   : > { %1951 = vmatmul.bf16.gmra.mxu2 %v13068_v17  ;;  %v1747_v17 = vrot.slane %v12719_v25, 1 }
 0x164   : > { %19665 = vst [vmem:[#allocation164_spill] sm:$0xff] %v13060_v23  ;;  %v13085_v20 = vpack.c.b16 %v19672_v48, %v19671_v35 }
 0x165   : > { %v13070_v49 = vpop.f32.mrf.mxu3 }
 0x166   : > { %19667 = vst [vmem:[#allocation166_spill] sm:$0xff] %v13070_v49  ;;  %v13077_v6 = vpop.f32.mrf.mxu2 }
 0x167   : > { %v13073_v40 = vpop.f32.mrf.mxu0  ;;  %19673 = vst [vmem:[#allocation170_spill] sm:$0xff] %v13085_v20 }
 0x168   : > { %19668 = vst [vmem:[#allocation167_spill] sm:$0xff] %v13073_v40 }
 0x169   : > { %v13075_v42 = vpop.f32.mrf.mxu1 }
 0x16a   : > { %19669 = vst [vmem:[#allocation168_spill] sm:$0xff] %v13075_v42 }
 0x16d   : > { %v13079_v29 = vpop.f32.mrf.mxu3 }
 0x16e   : > { %19670 = vst [vmem:[#allocation169_spill] sm:$0xff] %v13079_v29  ;;  %v13089_v49 = vpop.f32.mrf.mxu2  ;;  %v13095_v29 = vsel %vm1699_vm1, %v1745_v44, %v1747_v17 }
 0x16f   : > { %v894_v37 = vpop.f32.mrf.mxu0  ;;  %19675 = vst [vmem:[#allocation172_spill] sm:$0xff] %v13095_v29 }
 0x171   : > { %v1424_v23 = vpop.f32.mrf.mxu1 }
 0x172   : > { %v13087_v19 = vadd.f32 %v1424_v23, %v894_v37  ;;  %933 = vmatmul.bf16.gmra.mxu0 %v12431_v56  ;;  %2308 = vmatmul.bf16.gmra.mxu3 %v13085_v20  ;;  %v19681_v56 = vunpack.c.l.b16 %v12611_v0  ;;  %v19685_v0 = vunpack.c.l.b16 %v12613_v3 }
 0x173   : > { %1956 = vmatmul.bf16.gmra.mxu2 %v13095_v29  ;;  %v1749_v29 = vrot.slane %v12777_v39, 1 }
 0x174   : > { %19674 = vst [vmem:[#allocation171_spill] sm:$0xff] %v13087_v19  ;;  %v13112_v19 = vpack.c.b16 %v19681_v56, %v19680_v50 }
 0x175   : > { %v13097_v60 = vpop.f32.mrf.mxu3 }
 0x176   : > { %19676 = vst [vmem:[#allocation173_spill] sm:$0xff] %v13097_v60  ;;  %v13104_v23 = vpop.f32.mrf.mxu2 }
 0x177   : > { %v13100_v35 = vpop.f32.mrf.mxu0  ;;  %19682 = vst [vmem:[#allocation177_spill] sm:$0xff] %v13112_v19 }
 0x178   : > { %19677 = vst [vmem:[#allocation174_spill] sm:$0xff] %v13100_v35 }
 0x179   : > { %v13102_v48 = vpop.f32.mrf.mxu1 }
 0x17a   : > { %19678 = vst [vmem:[#allocation175_spill] sm:$0xff] %v13102_v48 }
 0x17d   : > { %v13106_v37 = vpop.f32.mrf.mxu3 }
 0x17e   : > { %19679 = vst [vmem:[#allocation176_spill] sm:$0xff] %v13106_v37  ;;  %v13116_v60 = vpop.f32.mrf.mxu2  ;;  %v13122_v37 = vsel %vm1699_vm1, %v1747_v17, %v1749_v29 }
 0x17f   : > { %v899_v44 = vpop.f32.mrf.mxu0  ;;  %19683 = vst [vmem:[#allocation178_spill] sm:$0xff] %v13122_v37 }
 0x181   : > { %v1429_v42 = vpop.f32.mrf.mxu1 }
 0x182   : > { %v13114_v40 = vadd.f32 %v1429_v42, %v899_v44  ;;  %938 = vmatmul.bf16.gmra.mxu0 %v12474_v55  ;;  %2313 = vmatmul.bf16.gmra.mxu3 %v13112_v19  ;;  %v19686_v55 = vunpack.c.l.b16 %v12684_v33  ;;  %v19689_v33 = vunpack.c.l.b16 %v12686_v11  ;;  %v19698_v11 = vunpack.c.l.b16 %v12744_v54 }
 0x183   : > { %1961 = vmatmul.bf16.gmra.mxu2 %v13122_v37  ;;  %v1751_v37 = vrot.slane %v12364_v61, 1 }
 0x184   : > { %v13139_v48 = vpack.c.b16 %v19686_v55, %v19685_v0 }
 0x185   : > { %v13124_v51 = vpop.f32.mrf.mxu3 }
 0x186   : > { %v13131_v42 = vpop.f32.mrf.mxu2  ;;  %19687 = vst [vmem:[#allocation180_spill] sm:$0xff] %v13139_v48 }
 0x187   : > { %v13127_v50 = vpop.f32.mrf.mxu0 }
 0x189   : > { %v13129_v56 = vpop.f32.mrf.mxu1 }
 0x18d   : > { %v13133_v44 = vpop.f32.mrf.mxu3 }
 0x18e   : > { %19684 = vst [vmem:[#allocation179_spill] sm:$0xff] %v13133_v44  ;;  %v13143_v38 = vpop.f32.mrf.mxu2  ;;  %v13149_v44 = vsel %vm1699_vm1, %v1749_v29, %v1751_v37 }
 0x18f   : > { %v904_v17 = vpop.f32.mrf.mxu0  ;;  %19688 = vst [vmem:[#allocation181_spill] sm:$0xff] %v13149_v44 }
 0x191   : > { %v1434_v35 = vpop.f32.mrf.mxu1 }
 0x192   : > { %v13141_v2 = vadd.f32 %v1434_v35, %v904_v17  ;;  %943 = vmatmul.bf16.gmra.mxu0 %v12513_v63  ;;  %2318 = vmatmul.bf16.gmra.mxu3 %v13139_v48  ;;  %v19690_v63 = vunpack.c.l.b16 %v12742_v24 }
 0x193   : > { %1966 = vmatmul.bf16.gmra.mxu2 %v13149_v44  ;;  %v13173_v44 = vrot.slane %v12409_v10, 1  ;;  %v19699_v10 = vunpack.c.l.b16 %v12615_v4  ;;  %v19706_v4 = vld [vmem:[#allocation71_spill] sm:$0xff] }
 0x194   : > { %v13164_v41 = vpack.c.b16 %v19690_v63, %v19689_v33 }
 0x195   : > { %v13151_v3 = vpop.f32.mrf.mxu3  ;;  %19693 = vst [vmem:[#allocation184_spill] sm:$0xff] %v13173_v44 }
 0x196   : > { %v13158_v35 = vpop.f32.mrf.mxu2  ;;  %19691 = vst [vmem:[#allocation182_spill] sm:$0xff] %v13164_v41 }
 0x197   : > { %v13154_v55 = vpop.f32.mrf.mxu0 }
 0x199   : > { %v13156_v0 = vpop.f32.mrf.mxu1 }
 0x19d   : > { %v1511_v17 = vpop.f32.mrf.mxu3 }
 0x19e   : > { %v13168_v1 = vpop.f32.mrf.mxu2  ;;  %v13177_v17 = vsel %vm1699_vm1, %v1751_v37, %v13173_v44 }
 0x19f   : > { %v909_v61 = vpop.f32.mrf.mxu0  ;;  %19692 = vst [vmem:[#allocation183_spill] sm:$0xff] %v13168_v1 }
 0x1a0   : > { %19694 = vst [vmem:[#allocation185_spill] sm:$0xff] %v13177_v17 }
 0x1a1   : > { %v1439_v29 = vpop.f32.mrf.mxu1 }
 0x1a2   : > { %v13166_v48 = vadd.f32 %v1439_v29, %v909_v61  ;;  %948 = vmatmul.bf16.gmra.mxu0 %v12552_v26  ;;  %2323 = vmatmul.bf16.gmra.mxu3 %v13164_v41  ;;  %v13194_v26 = vpack.c.b16 %v19699_v10, %v19698_v11  ;;  %v1755_v10 = vrot.slane %v12893_v34, 1 }
 0x1a3   : > { %1971 = vmatmul.bf16.gmra.mxu2 %v13177_v17 }
 0x1a4   : > { %19700 = vst [vmem:[#allocation189_spill] sm:$0xff] %v13194_v26  ;;  %v1756_v11 = vsel %vm1699_vm1, %v13173_v44, %v1755_v10 }
 0x1a5   : > { %v13179_v24 = vpop.f32.mrf.mxu3 }
 0x1a6   : > { %19695 = vst [vmem:[#allocation186_spill] sm:$0xff] %v13179_v24  ;;  %v13186_v63 = vpop.f32.mrf.mxu2 }
 0x1a7   : > { %v13182_v33 = vpop.f32.mrf.mxu0  ;;  %19696 = vst [vmem:[#allocation187_spill] sm:$0xff] %v13186_v63 }
 0x1a9   : > { %v13184_v61 = vpop.f32.mrf.mxu1 }
 0x1ad   : > { %v13188_v29 = vpop.f32.mrf.mxu3 }
 0x1ae   : > { %19697 = vst [vmem:[#allocation188_spill] sm:$0xff] %v13188_v29  ;;  %v13198_v24 = vpop.f32.mrf.mxu2 }
 0x1af   : > { %v914_v37 = vpop.f32.mrf.mxu0  ;;  %19701 = vst [vmem:[#allocation190_spill] sm:$0xff] %v13198_v24 }
 0x1b1   : > { %v1444_v41 = vpop.f32.mrf.mxu1 }
 0x1b2   : > { %v13196_v19 = vadd.f32 %v1444_v41, %v914_v37  ;;  %953 = vmatmul.bf16.gmra.mxu0 %v12597_v8  ;;  %2328 = vmatmul.bf16.gmra.mxu3 %v13194_v26  ;;  %v19705_v37 = vunpack.c.l.b16 %v12617_v53  ;;  %v19707_v8 = vunpack.c.l.b16 %v19706_v4 }
 0x1b3   : > { %1976 = vmatmul.bf16.gmra.mxu2 %v1756_v11 }
 0x1b4   : > { %v13219_v26 = vpack.c.b16 %v19707_v8, %v19705_v37  ;;  %v19713_v37 = vld [vmem:[#allocation72_spill] sm:$0xff] }
 0x1b5   : > { %v13202_v17 = vpop.f32.mrf.mxu3  ;;  %v19714_v4 = vunpack.c.l.b16 %v19713_v37 }
 0x1b6   : > { %19702 = vst [vmem:[#allocation191_spill] sm:$0xff] %v13202_v17  ;;  %v13208_v54 = vpop.f32.mrf.mxu2 }
 0x1b7   : > { %v13204_v27 = vpop.f32.mrf.mxu0  ;;  %19703 = vst [vmem:[#allocation192_spill] sm:$0xff] %v13208_v54 }
 0x1b8   : > { %19708 = vst [vmem:[#allocation194_spill] sm:$0xff] %v13219_v26 }
 0x1b9   : > { %v13206_v29 = vpop.f32.mrf.mxu1 }
 0x1bd   : > { %v13213_v41 = vpop.f32.mrf.mxu3 }
 0x1be   : > { %19704 = vst [vmem:[#allocation193_spill] sm:$0xff] %v13213_v41  ;;  %v13223_v7 = vpop.f32.mrf.mxu2 }
 0x1bf   : > { %v919_v17 = vpop.f32.mrf.mxu0  ;;  %19709 = vst [vmem:[#allocation195_spill] sm:$0xff] %v13223_v7 }
 0x1c1   : > { %v1449_v45 = vpop.f32.mrf.mxu1 }
 0x1c2   : > { %v13221_v24 = vadd.f32 %v1449_v45, %v919_v17  ;;  %958 = vmatmul.bf16.gmra.mxu0 %v12658_v52  ;;  %2333 = vmatmul.bf16.gmra.mxu3 %v13219_v26  ;;  %v19715_v45 = vld [vmem:[#allocation83_spill] sm:$0xff] }
 0x1c3   : > { %v19716_v17 = vunpack.c.l.b16 %v19715_v45 }
 0x1c5   : > { %v13227_v34 = vpop.f32.mrf.mxu3  ;;  %v13241_v44 = vpack.c.b16 %v19716_v17, %v19714_v4  ;;  %v19722_v17 = vld [vmem:[#allocation84_spill] sm:$0xff] }
 0x1c6   : > { %19710 = vst [vmem:[#allocation196_spill] sm:$0xff] %v13227_v34  ;;  %v13233_v53 = vpop.f32.mrf.mxu2  ;;  %v11434_v34 = vld [vmem:[#allocation7 + $0x138] sm:$0xff]  ;;  %v19723_v45 = vunpack.c.l.b16 %v19722_v17  ;;  %v19730_v17 = vld [vmem:[#allocation16_spill] sm:$0xff] }
 0x1c7   : > { %v13229_v10 = vpop.f32.mrf.mxu0  ;;  %19711 = vst [vmem:[#allocation197_spill] sm:$0xff] %v13233_v53  ;;  %2916 = vmatpush.bf16.msra.mxu0 %v11434_v34 }
 0x1c8   : > { %19717 = vst [vmem:[#allocation199_spill] sm:$0xff] %v13241_v44 }
 0x1c9   : > { %v13231_v11 = vpop.f32.mrf.mxu1 }
 0x1cd   : > { %v13235_v8 = vpop.f32.mrf.mxu3 }
 0x1ce   : > { %19712 = vst [vmem:[#allocation198_spill] sm:$0xff] %v13235_v8  ;;  %v13245_v26 = vpop.f32.mrf.mxu2 }
 0x1cf   : > { %v924_v41 = vpop.f32.mrf.mxu0  ;;  %19718 = vst [vmem:[#allocation200_spill] sm:$0xff] %v13245_v26 }
 0x1d1   : > { %v1454_v52 = vpop.f32.mrf.mxu1 }
 0x1d2   : > { %v13243_v7 = vadd.f32 %v1454_v52, %v924_v41  ;;  %963 = vmatmul.bf16.gmra.mxu0 %v12719_v25  ;;  %2338 = vmatmul.bf16.gmra.mxu3 %v13241_v44  ;;  %v19724_v52 = vld [vmem:[#allocation95_spill] sm:$0xff]  ;;  %v11433_v44 = vld [vmem:[#allocation7 + $0x130] sm:$0xff] }
 0x1d3   : > { %v19725_v41 = vunpack.c.l.b16 %v19724_v52  ;;  %2917 = vmatpush.bf16.msra.mxu0 %v11433_v44  ;;  %v1700_v52 = vrot.slane %v19730_v17, 1 }
 0x1d5   : > { %v13249_v53 = vpop.f32.mrf.mxu3  ;;  %v13261_v54 = vpack.c.b16 %v19725_v41, %v19723_v45  ;;  %v19731_v45 = vld [vmem:[#allocation17_spill] sm:$0xff] }
 0x1d6   : > { %19719 = vst [vmem:[#allocation201_spill] sm:$0xff] %v13249_v53  ;;  %v13253_v37 = vpop.f32.mrf.mxu2  ;;  %v1701_v41 = vrot.slane %v19731_v45, 1 }
 0x1d7   : > { %v13251_v8 = vpop.f32.mrf.mxu0  ;;  %19720 = vst [vmem:[#allocation202_spill] sm:$0xff] %v13253_v37 }
 0x1d8   : > { %19726 = vst [vmem:[#allocation204_spill] sm:$0xff] %v13261_v54 }
 0x1dd   : > { %v13255_v4 = vpop.f32.mrf.mxu3 }
 0x1de   : > { %19721 = vst [vmem:[#allocation203_spill] sm:$0xff] %v13255_v4  ;;  %v13265_v25 = vpop.f32.mrf.mxu2 }
 0x1df   : > { %v13263_v26 = vpop.f32.mrf.mxu0  ;;  %19727 = vst [vmem:[#allocation205_spill] sm:$0xff] %v13265_v25  ;;  %v19734_v25 = vunpack.c.l.b16 %v19733_v58  ;;  %v19743_v58 = vld [vmem:[#allocation21_spill] sm:$0xff] }
 0x1e2   : > { %968 = vmatmul.bf16.gmra.mxu0 %v12777_v39  ;;  %2343 = vmatmul.bf16.gmra.mxu3 %v13261_v54  ;;  %v19736_v39 = vunpack.c.l.b16 %v19735_v5 }
 0x1e4   : > { %v13283_v63 = vpack.c.b16 %v19736_v39, %v19734_v25  ;;  %v11432_v25 = vld [vmem:[#allocation7 + $0x128] sm:$0xff]  ;;  %v19745_v39 = vld [vmem:[#allocation107_spill] sm:$0xff] }
 0x1e5   : > { %v13269_v34 = vpop.f32.mrf.mxu3  ;;  %2918 = vmatpush.bf16.msra.mxu0 %v11432_v25 }
 0x1e6   : > { %19728 = vst [vmem:[#allocation206_spill] sm:$0xff] %v13269_v34  ;;  %v13273_v4 = vpop.f32.mrf.mxu2  ;;  %v1702_v34 = vsel %vm1699_vm1, %v1700_v52, %v1701_v41  ;;  %v19747_v52 = vunpack.c.l.b16 %v12838_v36 }
 0x1e7   : > { %v13271_v53 = vpop.f32.mrf.mxu0  ;;  %19729 = vst [vmem:[#allocation207_spill] sm:$0xff] %v13273_v4  ;;  %v19746_v4 = vunpack.c.l.b16 %v19745_v39  ;;  %v19754_v39 = vld [vmem:[#allocation33_spill] sm:$0xff] }
 0x1e8   : > { %19737 = vst [vmem:[#allocation17_spill] sm:$0xff] %v13283_v63  ;;  %v1705_v36 = vrot.slane %v19754_v39, 1 }
 0x1e9   : > { %v13304_v9 = vpack.c.b16 %v19747_v52, %v19746_v4  ;;  %v19756_v52 = vld [vmem:[#allocation117_spill] sm:$0xff] }
 0x1eb   : > { %19748 = vst [vmem:[#allocation213_spill] sm:$0xff] %v13304_v9 }
 0x1ed   : > { %v13277_v37 = vpop.f32.mrf.mxu3 }
 0x1ee   : > { %19732 = vst [vmem:[#allocation16_spill] sm:$0xff] %v13277_v37  ;;  %v13288_v20 = vpop.f32.mrf.mxu2  ;;  %v1703_v37 = vrot.slane %v19743_v58, 1 }
 0x1ef   : > { %v13285_v54 = vpop.f32.mrf.mxu0  ;;  %19739 = vst [vmem:[#allocation209_spill] sm:$0xff] %v13288_v20  ;;  %v19757_v20 = vunpack.c.l.b16 %v19756_v52  ;;  %v11450_v52 = vld [vmem:[#allocation7 + $0x1b8] sm:$0xff] }
 0x1f0   : > { %19738 = vst [vmem:[#allocation208_spill] sm:$0xff] %v13285_v54  ;;  %3775 = vmatpush.bf16.msrb.mxu2 %v11450_v52 }
 0x1f2   : > { %1841 = vmatmul.bf16.vlgmr.msrb.gmra.mxu0 %v1702_v34  ;;  %2348 = vmatmul.bf16.gmra.mxu3 %v13283_v63  ;;  %v1704_v63 = vsel %vm1699_vm1, %v1701_v41, %v1703_v37 }
 0x1f5   : > { %v13291_v44 = vpop.f32.mrf.mxu3 }
 0x1f6   : > { %19740 = vst [vmem:[#allocation210_spill] sm:$0xff] %v13291_v44  ;;  %v13295_v45 = vpop.f32.mrf.mxu2 }
 0x1f7   : > { %v13293_v17 = vpop.f32.mrf.mxu0  ;;  %19742 = vst [vmem:[#allocation212_spill] sm:$0xff] %v13295_v45 }
 0x1f8   : > { %19741 = vst [vmem:[#allocation211_spill] sm:$0xff] %v13293_v17 }
 0x1fd   : > { %v13298_v5 = vpop.f32.mrf.mxu3 }
 0x1fe   : > { %19744 = vst [vmem:[#allocation21_spill] sm:$0xff] %v13298_v5  ;;  %v13309_v44 = vpop.f32.mrf.mxu2 }
 0x1ff   : > { %v13306_v34 = vpop.f32.mrf.mxu0  ;;  %19750 = vst [vmem:[#allocation215_spill] sm:$0xff] %v13309_v44 }
 0x200   : > { %19749 = vst [vmem:[#allocation214_spill] sm:$0xff] %v13306_v34  ;;  %v19758_v34 = vld [vmem:[#allocation23_spill] sm:$0xff] }
 0x201   : > { %v19759_v41 = vunpack.c.l.b16 %v19758_v34 }
 0x202   : > { %1846 = vmatmul.bf16.gmra.mxu0 %v1704_v63  ;;  %2353 = vmatmul.bf16.gmra.mxu3 %v13304_v9  ;;  %v1706_v63 = vsel %vm1699_vm1, %v1703_v37, %v1705_v36  ;;  %v19768_v37 = vld [vmem:[#allocation24_spill] sm:$0xff] }
 0x203   : > { %v13325_v25 = vpack.c.b16 %v19759_v41, %v19757_v20  ;;  %v19766_v20 = vld [vmem:[#allocation40_spill] sm:$0xff] }
 0x204   : > { %v1707_v41 = vrot.slane %v19766_v20, 1 }
 0x205   : > { %v13312_v58 = vpop.f32.mrf.mxu3  ;;  %19760 = vst [vmem:[#allocation219_spill] sm:$0xff] %v13325_v25 }
 0x206   : > { %19751 = vst [vmem:[#allocation216_spill] sm:$0xff] %v13312_v58  ;;  %v13316_v45 = vpop.f32.mrf.mxu2  ;;  %v11431_v58 = vld [vmem:[#allocation7 + $0x120] sm:$0xff] }
 0x207   : > { %v13314_v5 = vpop.f32.mrf.mxu0  ;;  %19753 = vst [vmem:[#allocation218_spill] sm:$0xff] %v13316_v45  ;;  %2919 = vmatpush.bf16.msra.mxu0 %v11431_v58  ;;  %v13351_v58 = vsel %vm1699_vm1, %v1705_v36, %v1707_v41  ;;  %v19780_v36 = vld [vmem:[#allocation48_spill] sm:$0xff] }
 0x208   : > { %19752 = vst [vmem:[#allocation217_spill] sm:$0xff] %v13314_v5 }
 0x209   : > { %19774 = vst [vmem:[#allocation227_spill] sm:$0xff] %v13351_v58 }
 0x20d   : > { %v13319_v4 = vpop.f32.mrf.mxu3 }
 0x20e   : > { %19755 = vst [vmem:[#allocation33_spill] sm:$0xff] %v13319_v4  ;;  %v13330_v9 = vpop.f32.mrf.mxu2 }
 0x20f   : > { %v13327_v44 = vpop.f32.mrf.mxu0  ;;  %19762 = vst [vmem:[#allocation221_spill] sm:$0xff] %v13330_v9  ;;  %v19770_v9 = vld [vmem:[#allocation26_spill] sm:$0xff] }
 0x210   : > { %19761 = vst [vmem:[#allocation220_spill] sm:$0xff] %v13327_v44  ;;  %v19769_v44 = vunpack.c.l.b16 %v19768_v37  ;;  %v19777_v37 = vld [vmem:[#allocation103_spill] sm:$0xff] }
 0x212   : > { %1851 = vmatmul.bf16.gmra.mxu0 %v1706_v63  ;;  %2358 = vmatmul.bf16.gmra.mxu3 %v13325_v25  ;;  %v19771_v63 = vunpack.c.l.b16 %v19770_v9  ;;  %v1622_v9 = vadd.f32 %v13124_v51, %v19777_v37 }
 0x214   : > { %v13346_v17 = vpack.c.b16 %v19771_v63, %v19769_v44  ;;  %v11430_v63 = vld [vmem:[#allocation7 + $0x118] sm:$0xff] }
 0x215   : > { %v13333_v45 = vpop.f32.mrf.mxu3  ;;  %2920 = vmatpush.bf16.msra.mxu0 %v11430_v63  ;;  %v19792_v63 = vld [vmem:[#allocation56_spill] sm:$0xff] }
 0x216   : > { %19763 = vst [vmem:[#allocation222_spill] sm:$0xff] %v13333_v45  ;;  %v13337_v5 = vpop.f32.mrf.mxu2  ;;  %v11442_v45 = vld [vmem:[#allocation7 + $0x178] sm:$0xff] }
 0x217   : > { %v13335_v4 = vpop.f32.mrf.mxu0  ;;  %19765 = vst [vmem:[#allocation224_spill] sm:$0xff] %v13337_v5  ;;  %3383 = vmatpush.bf16.msrb.mxu1 %v11442_v45 }
 0x218   : > { %19764 = vst [vmem:[#allocation223_spill] sm:$0xff] %v13335_v4 }
 0x219   : > { %19772 = vst [vmem:[#allocation225_spill] sm:$0xff] %v13346_v17 }
 0x21d   : > { %v13340_v34 = vpop.f32.mrf.mxu3 }
 0x21e   : > { %19767 = vst [vmem:[#allocation40_spill] sm:$0xff] %v13340_v34  ;;  %v13353_v4 = vpop.f32.mrf.mxu2 }
 0x21f   : > { %v13348_v25 = vpop.f32.mrf.mxu0  ;;  %19775 = vst [vmem:[#allocation228_spill] sm:$0xff] %v13353_v4 }
 0x220   : > { %19773 = vst [vmem:[#allocation226_spill] sm:$0xff] %v13348_v25  ;;  %v1709_v25 = vrot.slane %v19780_v36, 1 }
 0x222   : > { %1856 = vmatmul.bf16.gmra.mxu0 %v13351_v58  ;;  %2363 = vmatmul.bf16.gmra.mxu3 %v13346_v17  ;;  %v19782_v58 = vld [vmem:[#allocation27_spill] sm:$0xff]  ;;  %v19784_v17 = vld [vmem:[#allocation34_spill] sm:$0xff]  ;;  %v13377_v51 = vsel %vm1699_vm1, %v1707_v41, %v1709_v25 }
 0x223   : > { %v19783_v54 = vunpack.c.l.b16 %v19782_v58  ;;  %v19785_v45 = vunpack.c.l.b16 %v19784_v17  ;;  %19788 = vst [vmem:[#allocation233_spill] sm:$0xff] %v13377_v51  ;;  %v1711_v58 = vrot.slane %v19792_v63, 1  ;;  %v19793_v17 = vld [vmem:[#allocation113_spill] sm:$0xff] }
 0x225   : > { %v13357_v52 = vpop.f32.mrf.mxu3  ;;  %v13372_v1 = vpack.c.b16 %v19785_v45, %v19783_v54  ;;  %v1624_v54 = vadd.f32 %v13151_v3, %v19793_v17  ;;  %v11441_v3 = vld [vmem:[#allocation7 + $0x170] sm:$0xff] }
 0x226   : > { %19776 = vst [vmem:[#allocation229_spill] sm:$0xff] %v13357_v52  ;;  %v1972_v34 = vpop.f32.mrf.mxu2  ;;  %3384 = vmatpush.bf16.msrb.mxu1 %v11441_v3  ;;  %v2060_v3 = vadd.f32 %v12986_v13, %v13114_v40  ;;  %v19817_v13 = vld [vmem:[#allocation59_spill] sm:$0xff] }
 0x227   : > { %v13361_v44 = vpop.f32.mrf.mxu0  ;;  %v13363_v5 = vadd.f32 %v1972_v34, %v1622_v9  ;;  %19786 = vst [vmem:[#allocation231_spill] sm:$0xff] %v13372_v1  ;;  %v19818_v40 = vunpack.c.l.b16 %v19817_v13 }
 0x228   : > { %19778 = vst [vmem:[#allocation103_spill] sm:$0xff] %v13361_v44 }
 0x229   : > { %19779 = vst [vmem:[#allocation230_spill] sm:$0xff] %v13363_v5  ;;  %v19797_v5 = vld [vmem:[#allocation41_spill] sm:$0xff] }
 0x22d   : > { %v13366_v4 = vpop.f32.mrf.mxu3 }
 0x22e   : > { %19781 = vst [vmem:[#allocation48_spill] sm:$0xff] %v13366_v4  ;;  %v13385_v37 = vpop.f32.mrf.mxu2  ;;  %v19795_v4 = vld [vmem:[#allocation35_spill] sm:$0xff] }
 0x22f   : > { %v13374_v52 = vpop.f32.mrf.mxu0  ;;  %19791 = vst [vmem:[#allocation236_spill] sm:$0xff] %v13385_v37  ;;  %v19796_v41 = vunpack.c.l.b16 %v19795_v4 }
 0x230   : > { %19787 = vst [vmem:[#allocation232_spill] sm:$0xff] %v13374_v52  ;;  %v19798_v52 = vunpack.c.l.b16 %v19797_v5  ;;  %v19803_v5 = vld [vmem:[#allocation63_spill] sm:$0xff] }
 0x232   : > { %1861 = vmatmul.bf16.gmra.mxu0 %v13377_v51  ;;  %2368 = vmatmul.bf16.gmra.mxu3 %v13372_v1  ;;  %v13396_v51 = vpack.c.b16 %v19798_v52, %v19796_v41  ;;  %v11449_v1 = vld [vmem:[#allocation7 + $0x1b0] sm:$0xff] }
 0x233   : > { %3776 = vmatpush.bf16.msrb.mxu2 %v11449_v1  ;;  %v19805_v1 = vld [vmem:[#allocation42_spill] sm:$0xff] }
 0x234   : > { %19799 = vst [vmem:[#allocation113_spill] sm:$0xff] %v13396_v51 }
 0x235   : > { %v13381_v9 = vpop.f32.mrf.mxu3 }
 0x236   : > { %19789 = vst [vmem:[#allocation234_spill] sm:$0xff] %v13381_v9  ;;  %v13401_v9 = vsel %vm1699_vm1, %v1709_v25, %v1711_v58  ;;  %v1977_v37 = vpop.f32.mrf.mxu2  ;;  %v1713_v25 = vrot.slane %v19803_v5, 1 }
 0x237   : > { %v13383_v34 = vpop.f32.mrf.mxu0  ;;  %19800 = vst [vmem:[#allocation237_spill] sm:$0xff] %v13401_v9  ;;  %v13403_v15 = vadd.f32 %v1977_v37, %v1624_v54  ;;  %v19807_v37 = vld [vmem:[#allocation49_spill] sm:$0xff] }
 0x238   : > { %19790 = vst [vmem:[#allocation235_spill] sm:$0xff] %v13383_v34  ;;  %v11429_v34 = vld [vmem:[#allocation7 + $0x110] sm:$0xff]  ;;  %v19808_v54 = vunpack.c.l.b16 %v19807_v37 }
 0x239   : > { %19801 = vst [vmem:[#allocation238_spill] sm:$0xff] %v13403_v15  ;;  %2921 = vmatpush.bf16.msra.mxu0 %v11429_v34  ;;  %v13423_v34 = vsel %vm1699_vm1, %v1711_v58, %v1713_v25 }
 0x23a   : > { %19811 = vst [vmem:[#allocation242_spill] sm:$0xff] %v13423_v34 }
 0x23d   : > { %v13390_v45 = vpop.f32.mrf.mxu3 }
 0x23e   : > { %19794 = vst [vmem:[#allocation56_spill] sm:$0xff] %v13390_v45  ;;  %v1979_v41 = vpop.f32.mrf.mxu2  ;;  %v19806_v45 = vunpack.c.l.b16 %v19805_v1  ;;  %v11428_v1 = vld [vmem:[#allocation7 + $0x108] sm:$0xff] }
 0x23f   : > { %v13398_v44 = vpop.f32.mrf.mxu0  ;;  %2922 = vmatpush.bf16.msra.mxu0 %v11428_v1 }
 0x240   : > { %v13418_v15 = vpack.c.b16 %v19808_v54, %v19806_v45  ;;  %v1593_v45 = vadd.f32 %v13129_v56, %v13127_v50  ;;  %v19813_v54 = vld [vmem:[#allocation77_spill] sm:$0xff]  ;;  %v2062_v56 = vadd.f32 %v13018_v18, %v13141_v2  ;;  %v19822_v18 = vld [vmem:[#allocation60_spill] sm:$0xff] }
 0x241   : > { %v1715_v58 = vrot.slane %v19813_v54, 1  ;;  %v11448_v50 = vld [vmem:[#allocation7 + $0x1a8] sm:$0xff]  ;;  %v19823_v2 = vunpack.c.l.b16 %v19822_v18  ;;  %v19830_v18 = vld [vmem:[#allocation102_spill] sm:$0xff] }
 0x242   : > { %1866 = vmatmul.bf16.gmra.mxu0 %v13401_v9  ;;  %2373 = vmatmul.bf16.gmra.mxu3 %v13396_v51  ;;  %19809 = vst [vmem:[#allocation240_spill] sm:$0xff] %v13418_v15  ;;  %v2061_v37 = vadd.f32 %v13001_v59, %v1593_v45  ;;  %v11440_v59 = vld [vmem:[#allocation7 + $0x168] sm:$0xff] }
 0x243   : > { %3777 = vmatpush.bf16.msrb.mxu2 %v11448_v50  ;;  %3385 = vmatpush.bf16.msrb.mxu1 %v11440_v59  ;;  %v19821_v45 = vld [vmem:[#allocation89_spill] sm:$0xff] }
 0x244   : > { %v19824_v59 = vld [vmem:[#allocation65_spill] sm:$0xff] }
 0x245   : > { %v13407_v17 = vpop.f32.mrf.mxu3 }
 0x246   : > { %19802 = vst [vmem:[#allocation239_spill] sm:$0xff] %v13407_v17 }
 0x247   : > { %v13409_v52 = vpop.f32.mrf.mxu0 }
 0x24d   : > { %v13412_v4 = vpop.f32.mrf.mxu3 }
 0x24e   : > { %19804 = vst [vmem:[#allocation63_spill] sm:$0xff] %v13412_v4 }
 0x24f   : > { %v13420_v9 = vpop.f32.mrf.mxu0 }
 0x250   : > { %19810 = vst [vmem:[#allocation241_spill] sm:$0xff] %v13420_v9 }
 0x252   : > { %1871 = vmatmul.bf16.gmra.mxu0 %v13423_v34  ;;  %2378 = vmatmul.bf16.gmra.mxu3 %v13418_v15  ;;  %v19815_v15 = vld [vmem:[#allocation50_spill] sm:$0xff] }
 0x253   : > { %v19816_v9 = vunpack.c.l.b16 %v19815_v15  ;;  %v11447_v15 = vld [vmem:[#allocation7 + $0x1a0] sm:$0xff] }
 0x254   : > { %3778 = vmatpush.bf16.msrb.mxu2 %v11447_v15  ;;  %v11445_v15 = vld [vmem:[#allocation7 + $0x190] sm:$0xff] }
 0x255   : > { %v2339_v41 = vpop.f32.mrf.mxu3 }
 0x256   : > { %v13429_v4 = vadd.f32 %v2339_v41, %v2060_v3  ;;  %v13443_v3 = vpack.c.b16 %v19818_v40, %v19816_v9  ;;  %v1717_v40 = vrot.slane %v19821_v45, 1 }
 0x257   : > { %v13431_v17 = vpop.f32.mrf.mxu0 }
 0x258   : > { %19812 = vst [vmem:[#allocation243_spill] sm:$0xff] %v13429_v4  ;;  %v13448_v4 = vsel %vm1699_vm1, %v1713_v25, %v1715_v58  ;;  %v1595_v25 = vadd.f32 %v13156_v0, %v13154_v55  ;;  %v13471_v55 = vsel %vm1699_vm1, %v1715_v58, %v1717_v40  ;;  %v19827_v0 = vld [vmem:[#allocation99_spill] sm:$0xff] }
 0x259   : > { %19819 = vst [vmem:[#allocation244_spill] sm:$0xff] %v13448_v4 }
 0x25a   : > { %v2063_v13 = vadd.f32 %v13034_v32, %v1595_v25  ;;  %19826 = vst [vmem:[#allocation89_spill] sm:$0xff] %v13471_v55  ;;  %v11446_v32 = vld [vmem:[#allocation7 + $0x198] sm:$0xff] }
 0x25b   : > { %3779 = vmatpush.bf16.msrb.mxu2 %v11446_v32  ;;  %v11438_v25 = vld [vmem:[#allocation7 + $0x158] sm:$0xff] }
 0x25c   : > { %v11458_v32 = vld [vmem:[#allocation7 + $0x1f8] sm:$0xff] }
 0x25d   : > { %v2341_v34 = vpop.f32.mrf.mxu3  ;;  %4193 = vmatpush.bf16.msrb.mxu3 %v11458_v32 }
 0x25e   : > { %v13437_v51 = vadd.f32 %v2341_v34, %v2061_v37  ;;  %v11427_v34 = vld [vmem:[#allocation7 + $0x100] sm:$0xff] }
 0x25f   : > { %v13445_v41 = vpop.f32.mrf.mxu0  ;;  %2923 = vmatpush.bf16.msra.mxu0 %v11427_v34  ;;  %3780 = vmatpush.bf16.msrb.mxu2 %v11445_v15 }
 0x260   : > { %19814 = vst [vmem:[#allocation77_spill] sm:$0xff] %v13437_v51  ;;  %v11439_v51 = vld [vmem:[#allocation7 + $0x160] sm:$0xff] }
 0x261   : > { %3386 = vmatpush.bf16.msrb.mxu1 %v11439_v51  ;;  %v11444_v51 = vld [vmem:[#allocation7 + $0x188] sm:$0xff] }
 0x262   : > { %1876 = vmatmul.bf16.gmra.mxu0 %v13448_v4  ;;  %2383 = vmatmul.bf16.gmra.mxu3 %v13443_v3 }
 0x263   : > { %3781 = vmatpush.bf16.msrb.mxu2 %v11444_v51 }
 0x265   : > { %v2344_v1 = vpop.f32.mrf.mxu3  ;;  %3387 = vmatpush.bf16.msrb.mxu1 %v11438_v25 }
 0x266   : > { %v13454_v37 = vadd.f32 %v2344_v1, %v2062_v56  ;;  %v19825_v56 = vunpack.c.l.b16 %v19824_v59  ;;  %v11437_v59 = vld [vmem:[#allocation7 + $0x150] sm:$0xff] }
 0x267   : > { %v13456_v9 = vpop.f32.mrf.mxu0 }
 0x268   : > { %19820 = vst [vmem:[#allocation245_spill] sm:$0xff] %v13454_v37  ;;  %v13468_v1 = vpack.c.b16 %v19825_v56, %v19823_v2  ;;  %v19829_v56 = vld [vmem:[#allocation105_spill] sm:$0xff] }
 0x269   : > { %3388 = vmatpush.bf16.msrb.mxu1 %v11437_v59  ;;  %v19836_v59 = vld [vmem:[#allocation111_spill] sm:$0xff] }
 0x26d   : > { %v2346_v50 = vpop.f32.mrf.mxu3 }
 0x26e   : > { %v13462_v4 = vadd.f32 %v2346_v50, %v2063_v13  ;;  %v2064_v13 = vadd.f32 %v13050_v16, %v13166_v48  ;;  %v1719_v16 = vrot.slane %v19830_v18, 1 }
 0x26f   : > { %v1842_v37 = vpop.f32.mrf.mxu0 }
 0x270   : > { %v13474_v34 = vadd.f32 %v1842_v37, %v19827_v0  ;;  %v1597_v37 = vadd.f32 %v13184_v61, %v13182_v33  ;;  %v19833_v61 = vld [vmem:[#allocation79_spill] sm:$0xff]  ;;  %v13498_v32 = vsel %vm1699_vm1, %v1717_v40, %v1719_v16  ;;  %v2066_v40 = vadd.f32 %v13077_v6, %v13196_v19  ;;  %v19839_v19 = vld [vmem:[#allocation80_spill] sm:$0xff] }
 0x271   : > { %19835 = vst [vmem:[#allocation105_spill] sm:$0xff] %v13498_v32  ;;  %v19840_v6 = vunpack.c.l.b16 %v19839_v19 }
 0x272   : > { %1881 = vmatmul.bf16.gmra.mxu0 %v13471_v55  ;;  %2388 = vmatmul.bf16.gmra.mxu3 %v13468_v1  ;;  %v2065_v48 = vadd.f32 %v13062_v31, %v1597_v37  ;;  %v19831_v55 = vld [vmem:[#allocation66_spill] sm:$0xff]  ;;  %v11435_v31 = vld [vmem:[#allocation7 + $0x140] sm:$0xff]  ;;  %v11466_v37 = vld [vmem:[#allocation7 + $0x238] sm:$0xff] }
 0x273   : > { %v19832_v33 = vunpack.c.l.b16 %v19831_v55  ;;  %4587 = vmatpush.bf16.msrb.mxu0 %v11466_v37  ;;  %v19841_v37 = vld [vmem:[#allocation91_spill] sm:$0xff] }
 0x275   : > { %v2349_v50 = vpop.f32.mrf.mxu3 }
 0x276   : > { %v13480_v2 = vadd.f32 %v2349_v50, %v2064_v13  ;;  %v11436_v13 = vld [vmem:[#allocation7 + $0x148] sm:$0xff]  ;;  %v11443_v50 = vld [vmem:[#allocation7 + $0x180] sm:$0xff] }
 0x277   : > { %v1844_v58 = vpop.f32.mrf.mxu0  ;;  %3389 = vmatpush.bf16.msrb.mxu1 %v11436_v13  ;;  %3782 = vmatpush.bf16.msrb.mxu2 %v11443_v50 }
 0x278   : > { %19828 = vst [vmem:[#allocation99_spill] sm:$0xff] %v13480_v2  ;;  %v13485_v0 = vadd.f32 %v1844_v58, %v19829_v56  ;;  %v19834_v58 = vunpack.c.l.b16 %v19833_v61 }
 0x27a   : > { %v13495_v56 = vpack.c.b16 %v19834_v58, %v19832_v33  ;;  %3783 = vmatmul.bf16.vlgmr.msrb.gmra.mxu2 %v19754_v39  ;;  %v1599_v58 = vadd.f32 %v13206_v29, %v13204_v27  ;;  %v19845_v27 = vld [vmem:[#allocation120_spill] sm:$0xff] }
 0x27b   : > { %3390 = vmatpush.bf16.msrb.mxu1 %v11435_v31 }
 0x27c   : > { %v2067_v39 = vadd.f32 %v13089_v49, %v1599_v58  ;;  %v3253_v49 = vrot.slane %v12994_v14, 1  ;;  %v2068_v58 = vadd.f32 %v13104_v23, %v13221_v24 }
 0x27d   : > { %v2351_v25 = vpop.f32.mrf.mxu3 }
 0x27e   : > { %v13489_v15 = vadd.f32 %v2351_v25, %v2065_v48  ;;  %v3250_v48 = vrot.slane %v12935_v46, 1  ;;  %v3251_v25 = vrot.slane %v12963_v62, 1 }
 0x27f   : > { %v1847_v2 = vpop.f32.mrf.mxu0 }
 0x280   : > { %v13501_v51 = vadd.f32 %v1847_v2, %v19836_v59  ;;  %v3252_v2 = vsel %vm1699_vm1, %v3250_v48, %v3251_v25  ;;  %v19837_v59 = vld [vmem:[#allocation115_spill] sm:$0xff]  ;;  %v19842_v48 = vunpack.c.l.b16 %v19841_v37  ;;  %v19850_v37 = vld [vmem:[#allocation18_spill] sm:$0xff] }
 0x281   : > { %3391 = vmatmul.bf16.vlgmr.msrb.gmra.mxu1 %v3252_v2  ;;  %v19843_v2 = vrot.slane %v12644_v28, 1 }
 0x282   : > { %1886 = vmatmul.bf16.gmra.mxu0 %v13498_v32  ;;  %2393 = vmatmul.bf16.gmra.mxu3 %v13495_v56  ;;  %v13525_v32 = vpack.c.b16 %v19842_v48, %v19840_v6  ;;  %v2613_v6 = vshrl.u32 %v12935_v46, 16 }
 0x285   : > { %v2354_v13 = vpop.f32.mrf.mxu3 }
 0x286   : > { %v13511_v50 = vadd.f32 %v2354_v13, %v2066_v40  ;;  %v13530_v13 = vsel %vm1699_vm1, %v1719_v16, %v19843_v2  ;;  %v1601_v2 = vadd.f32 %v13231_v11, %v13229_v10 }
 0x287   : > { %v1849_v33 = vpop.f32.mrf.mxu0  ;;  %19844 = vst [vmem:[#allocation111_spill] sm:$0xff] %v13530_v13 }
 0x288   : > { %v13516_v61 = vadd.f32 %v1849_v33, %v19837_v59  ;;  %v2615_v33 = vshll.u32 %v12935_v46, 16  ;;  %v3254_v59 = vsel %vm1699_vm1, %v3251_v25, %v3253_v49  ;;  %v2069_v23 = vadd.f32 %v13116_v60, %v1601_v2 }
 0x289   : > { %v19851_v46 = vunpack.c.l.b16 %v19850_v37  ;;  %v3255_v60 = vrot.slane %v13026_v57, 1 }
 0x28a   : > { %3788 = vmatmul.bf16.gmra.mxu2 %v19766_v20  ;;  %v2617_v48 = vrot.slane %v2615_v33, 1 }
 0x28b   : > { %v3256_v11 = vsel %vm1699_vm1, %v3253_v49, %v3255_v60 }
 0x28d   : > { %v2356_v31 = vpop.f32.mrf.mxu3 }
 0x28e   : > { %v13519_v55 = vadd.f32 %v2356_v31, %v2067_v39 }
 0x28f   : > { %v1852_v40 = vpop.f32.mrf.mxu0 }
 0x290   : > { %19838 = vst [vmem:[#allocation102_spill] sm:$0xff] %v13519_v55  ;;  %v13533_v29 = vadd.f32 %v1852_v40, %v19845_v27  ;;  %v2620_v40 = vshll.u32 %v12963_v62, 16  ;;  %v2618_v27 = vor.u32 %v2617_v48, %v2613_v6 }
 0x291   : > { %3396 = vmatmul.bf16.gmra.mxu1 %v3254_v59  ;;  %v19848_v59 = vld [vmem:[#allocation92_spill] sm:$0xff] }
 0x292   : > { %1891 = vmatmul.bf16.gmra.mxu0 %v13530_v13  ;;  %2398 = vmatmul.bf16.gmra.mxu3 %v13525_v32  ;;  %v2622_v24 = vrot.slane %v2620_v40, 1  ;;  %v11457_v40 = vld [vmem:[#allocation7 + $0x1f0] sm:$0xff] }
 0x293   : > { %4194 = vmatpush.bf16.msrb.mxu3 %v11457_v40 }
 0x294   : > { %v2623_v13 = vsel %vm1060_vm0, %v2618_v27, %v2622_v24 }
 0x295   : > { %v2359_v16 = vpop.f32.mrf.mxu3 }
 0x296   : > { %v13543_v39 = vadd.f32 %v2359_v16, %v2068_v58  ;;  %v19849_v16 = vunpack.c.l.b16 %v19848_v59 }
 0x297   : > { %v1854_v31 = vpop.f32.mrf.mxu0 }
 0x298   : > { %19846 = vst [vmem:[#allocation115_spill] sm:$0xff] %v13543_v39  ;;  %v13550_v20 = vadd.f32 %v1854_v31, %v12873_v47  ;;  %v13559_v33 = vpack.c.b16 %v19851_v46, %v19849_v16  ;;  %v2070_v47 = vadd.f32 %v13131_v42, %v13243_v7  ;;  %v1456_v31 = vpop.f32.mrf.mxu1  ;;  %v11456_v7 = vld [vmem:[#allocation7 + $0x1e8] sm:$0xff]  ;;  %v19854_v16 = vld [vmem:[#allocation19_spill] sm:$0xff] }
 0x299   : > { %v1603_v2 = vadd.f32 %v1456_v31, %v13251_v8  ;;  %4195 = vmatpush.bf16.msrb.mxu3 %v11456_v7  ;;  %v19855_v46 = vunpack.c.l.b16 %v19854_v16  ;;  %v11455_v8 = vld [vmem:[#allocation7 + $0x1e0] sm:$0xff]  ;;  %v19875_v16 = vld [vmem:[#allocation211_spill] sm:$0xff] }
 0x29a   : > { %3793 = vmatmul.bf16.gmra.mxu2 %v19780_v36 }
 0x29b   : > { %v2071_v27 = vadd.f32 %v13143_v38, %v1603_v2  ;;  %v11454_v38 = vld [vmem:[#allocation7 + $0x1d8] sm:$0xff] }
 0x29d   : > { %v2361_v25 = vpop.f32.mrf.mxu3  ;;  %4196 = vmatpush.bf16.msrb.mxu3 %v11455_v8 }
 0x29e   : > { %v13553_v58 = vadd.f32 %v2361_v25, %v2069_v23 }
 0x29f   : > { %v1857_v19 = vpop.f32.mrf.mxu0 }
 0x2a0   : > { %19847 = vst [vmem:[#allocation120_spill] sm:$0xff] %v13553_v58  ;;  %v13563_v10 = vadd.f32 %v1857_v19, %v12885_v30  ;;  %v2624_v19 = vshrl.u32 %v12963_v62, 16  ;;  %v19856_v62 = vld [vmem:[#allocation22_spill] sm:$0xff] }
 0x2a1   : > { %3401 = vmatmul.bf16.gmra.mxu1 %v3256_v11  ;;  %4197 = vmatpush.bf16.msrb.mxu3 %v11454_v38  ;;  %v19864_v38 = vld [vmem:[#allocation25_spill] sm:$0xff] }
 0x2a2   : > { %2403 = vmatmul.bf16.gmra.mxu3 %v13559_v33  ;;  %2924 = vmatmul.bf16.vlgmr.msra.gmra.mxu0 %v2623_v13  ;;  %v2628_v13 = vshll.u32 %v12994_v14, 16  ;;  %v2626_v42 = vor.u32 %v2624_v19, %v2622_v24 }
 0x2a4   : > { %v2630_v49 = vrot.slane %v2628_v13, 1 }
 0x2a5   : > { %v2364_v6 = vpop.f32.mrf.mxu3 }
 0x2a6   : > { %v13571_v48 = vadd.f32 %v2364_v6, %v2070_v47  ;;  %v19857_v47 = vunpack.c.l.b16 %v19856_v62  ;;  %v19859_v6 = vld [vmem:[#allocation122_spill] sm:$0xff]  ;;  %v19872_v62 = vld [vmem:[#allocation140_spill] sm:$0xff] }
 0x2a7   : > { %v1859_v30 = vpop.f32.mrf.mxu0  ;;  %v1604_v24 = vadd.f32 %v19859_v6, %v13263_v26 }
 0x2a8   : > { %19852 = vst [vmem:[#allocation246_spill] sm:$0xff] %v13571_v48  ;;  %v13577_v36 = vadd.f32 %v1859_v30, %v12905_v21  ;;  %v13586_v11 = vpack.c.b16 %v19857_v47, %v19855_v46  ;;  %v2631_v21 = vsel %vm1060_vm0, %v2626_v42, %v2630_v49  ;;  %v3257_v30 = vrot.slane %v13058_v22, 1  ;;  %v11452_v46 = vld [vmem:[#allocation7 + $0x1c8] sm:$0xff] }
 0x2a9   : > { %v2072_v19 = vadd.f32 %v13158_v35, %v1604_v24  ;;  %v2632_v42 = vshrl.u32 %v12994_v14, 16 }
 0x2aa   : > { %19858 = vst [vmem:[#allocation248_spill] sm:$0xff] %v13586_v11  ;;  %3798 = vmatmul.bf16.gmra.mxu2 %v19792_v63  ;;  %v3258_v13 = vsel %vm1699_vm1, %v3255_v60, %v3257_v30  ;;  %v1605_v63 = vadd.f32 %v12875_v12, %v13271_v53  ;;  %v11465_v60 = vld [vmem:[#allocation7 + $0x230] sm:$0xff]  ;;  %v11954_v53 = vld [vmem:[%s12302_s18 + $0xe0] sm:$0xff]  }
 0x2ab   : > { %4588 = vmatpush.bf16.msrb.mxu0 %v11465_v60  ;;  %v2634_v47 = vor.u32 %v2632_v42, %v2630_v49  ;;  %v11654_v12 = vunpack.c.h.bf16 %v11954_v53  ;;  %v19867_v49 = vld [vmem:[#allocation208_spill] sm:$0xff]  ;;  %v19869_v60 = vld [vmem:[#allocation137_spill] sm:$0xff] }
 0x2ac   : > { %v19868_v42 = vld [vmem:[#allocation128_spill] sm:$0xff] }
 0x2ad   : > { %v2366_v23 = vpop.f32.mrf.mxu3 }
 0x2ae   : > { %v13580_v25 = vadd.f32 %v2366_v23, %v2071_v27  ;;  %v2636_v27 = vshll.u32 %v13026_v57, 16  ;;  %v19861_v23 = vld [vmem:[#allocation134_spill] sm:$0xff] }
 0x2af   : > { %v1862_v31 = vpop.f32.mrf.mxu0 }
 0x2b0   : > { %19853 = vst [vmem:[#allocation247_spill] sm:$0xff] %v13580_v25  ;;  %v13592_v40 = vadd.f32 %v1862_v31, %v12916_v43  ;;  %v11453_v43 = vld [vmem:[#allocation7 + $0x1d0] sm:$0xff]  ;;  %v2638_v8 = vrot.slane %v2636_v27, 1  ;;  %v11811_v31 = vld [vmem:[%s12302_s18 + $0xe8] sm:$0xff]   ;;  %v1606_v27 = vadd.f32 %v19868_v42, %v19867_v49 }
 0x2b1   : > { %3406 = vmatmul.bf16.gmra.mxu1 %v3258_v13  ;;  %4198 = vmatpush.bf16.msrb.mxu3 %v11453_v43  ;;  %v11451_v43 = vld [vmem:[#allocation7 + $0x1c0] sm:$0xff]  ;;  %v19873_v49 = vld [vmem:[#allocation141_spill] sm:$0xff] }
 0x2b2   : > { %2408 = vmatmul.bf16.gmra.mxu3 %v13586_v11  ;;  %2929 = vmatmul.bf16.gmra.mxu0 %v2631_v21  ;;  %v19862_v21 = vld [vmem:[#allocation183_spill] sm:$0xff]  ;;  %v1581_v42 = vadd.f32 %v19873_v49, %v19872_v62 }
 0x2b3   : > { %v2073_v6 = vadd.f32 %v19862_v21, %v1605_v63 }
 0x2b5   : > { %v2369_v2 = vpop.f32.mrf.mxu3  ;;  %4199 = vmatpush.bf16.msrb.mxu3 %v11452_v46  ;;  %v534_v46 = vmax.f32 %v11654_v12, 0.0  ;;  %v2640_v12 = vshrl.u32 %v13026_v57, 16 }
 0x2b6   : > { %v13599_v26 = vadd.f32 %v2369_v2, %v2072_v19  ;;  %v19865_v19 = vld [vmem:[#allocation125_spill] sm:$0xff]  ;;  %v11657_v2 = vunpack.c.l.bf16 %v11811_v31  ;;  %v19871_v31 = vld [vmem:[#allocation187_spill] sm:$0xff] }
 0x2b7   : > { %v1864_v7 = vpop.f32.mrf.mxu0  ;;  %v13614_v13 = vpack.c.b16 %v19865_v19, %v19864_v38  ;;  %v2074_v38 = vadd.f32 %v19871_v31, %v1606_v27  ;;  %v2642_v62 = vor.u32 %v2640_v12, %v2638_v8  ;;  %v19886_v12 = vld [vmem:[#allocation192_spill] sm:$0xff] }
 0x2b8   : > { %19860 = vst [vmem:[#allocation122_spill] sm:$0xff] %v13599_v26  ;;  %v13606_v35 = vadd.f32 %v1864_v7, %v19861_v23  ;;  %v2639_v23 = vsel %vm1060_vm0, %v2634_v47, %v2638_v8  ;;  %v535_v21 = vmax.f32 %v11657_v2, 0.0  ;;  %v2644_v2 = vshll.u32 %v13058_v22, 16 }
 0x2b9   : > { %19866 = vst [vmem:[#allocation183_spill] sm:$0xff] %v13614_v13  ;;  %4200 = vmatpush.bf16.msrb.mxu3 %v11451_v43  ;;  %v597_v43 = vpack.c.bf16 %v534_v46, %v534_v46 }
 0x2ba   : > { %3803 = vmatmul.bf16.gmra.mxu2 %v19803_v5  ;;  %v19876_v5 = vld [vmem:[#allocation130_spill] sm:$0xff] }
 0x2bb   : > { %v1607_v37 = vadd.f32 %v19876_v5, %v19875_v16  ;;  %v19884_v5 = vld [vmem:[#allocation144_spill] sm:$0xff] }
 0x2bd   : > { %v2371_v14 = vpop.f32.mrf.mxu3 }
 0x2be   : > { %v13610_v24 = vadd.f32 %v2371_v14, %v2073_v6  ;;  %v19870_v6 = vld [vmem:[#allocation170_spill] sm:$0xff] }
 0x2bf   : > { %v1867_v7 = vpop.f32.mrf.mxu0  ;;  %v3259_v14 = vrot.slane %v19870_v6, 1 }
 0x2c0   : > { %19863 = vst [vmem:[#allocation134_spill] sm:$0xff] %v13610_v24  ;;  %v13621_v63 = vadd.f32 %v1867_v7, %v19869_v60  ;;  %v598_v60 = vpack.c.bf16 %v535_v21, %v535_v21 }
 0x2c1   : > { %v3260_v47 = vsel %vm1699_vm1, %v3257_v30, %v3259_v14  ;;  %v13638_v30 = vunpack.c.l.b16 %v597_v43 }
 0x2c2   : > { %2413 = vmatmul.bf16.gmra.mxu3 %v13614_v13  ;;  %2934 = vmatmul.bf16.gmra.mxu0 %v2639_v23  ;;  %v13640_v31 = vunpack.c.l.b16 %v598_v60  ;;  %v19934_v13 = vld [vmem:[#allocation171_spill] sm:$0xff] }
 0x2c3   : > { %3411 = vmatmul.bf16.gmra.mxu1 %v3260_v47  ;;  %19877 = vst [vmem:[#allocation208_spill] sm:$0xff] %v13638_v30 }
 0x2c4   : > { %19878 = vst [vmem:[#allocation128_spill] sm:$0xff] %v13640_v31  ;;  %v13647_v57 = vpack.c.b16 %v13640_v31, %v13638_v30  ;;  %v19931_v31 = vld [vmem:[#allocation209_spill] sm:$0xff] }
 0x2c5   : > { %v2374_v53 = vpop.f32.mrf.mxu3 }
 0x2c6   : > { %v13630_v7 = vadd.f32 %v2374_v53, %v2074_v38  ;;  %v2646_v38 = vrot.slane %v2644_v2, 1  ;;  %v19879_v53 = vld [vmem:[#allocation190_spill] sm:$0xff]  ;;  %19881 = vst [vmem:[#allocation170_spill] sm:$0xff] %v13647_v57 }
 0x2c7   : > { %v1869_v23 = vpop.f32.mrf.mxu0  ;;  %v2075_v46 = vadd.f32 %v19879_v53, %v1607_v37  ;;  %v19885_v37 = vld [vmem:[#allocation177_spill] sm:$0xff] }
 0x2c8   : > { %19874 = vst [vmem:[#allocation25_spill] sm:$0xff] %v13630_v7  ;;  %v13636_v27 = vadd.f32 %v1869_v23, %v1581_v42  ;;  %v2647_v16 = vsel %vm1060_vm0, %v2642_v62, %v2646_v38  ;;  %v19882_v42 = vld [vmem:[#allocation214_spill] sm:$0xff]  ;;  %v19883_v23 = vld [vmem:[#allocation133_spill] sm:$0xff]  ;;  %v3261_v8 = vrot.slane %v19885_v37, 1  ;;  %v19888_v62 = vld [vmem:[#allocation148_spill] sm:$0xff] }
 0x2c9   : > { %v1608_v43 = vadd.f32 %v19883_v23, %v19882_v42  ;;  %v2648_v42 = vshrl.u32 %v13058_v22, 16  ;;  %v19890_v23 = vld [vmem:[#allocation217_spill] sm:$0xff] }
 0x2ca   : > { %3808 = vmatmul.bf16.gmra.mxu2 %v19813_v54  ;;  %v3262_v53 = vsel %vm1699_vm1, %v3259_v14, %v3261_v8  ;;  %v19892_v14 = vld [vmem:[#allocation195_spill] sm:$0xff] }
 0x2cb   : > { %v2076_v2 = vadd.f32 %v19886_v12, %v1608_v43  ;;  %v2650_v43 = vor.u32 %v2648_v42, %v2646_v38  ;;  %v19900_v42 = vld [vmem:[#allocation154_spill] sm:$0xff] }
 0x2cd   : > { %v2376_v21 = vpop.f32.mrf.mxu3 }
 0x2ce   : > { %v13643_v47 = vadd.f32 %v2376_v21, %v2075_v46  ;;  %v19887_v21 = vld [vmem:[#allocation147_spill] sm:$0xff] }
 0x2cf   : > { %v1872_v49 = vpop.f32.mrf.mxu0  ;;  %v1583_v59 = vadd.f32 %v19888_v62, %v19887_v21  ;;  %v19895_v21 = vld [vmem:[#allocation139_spill] sm:$0xff] }
 0x2d0   : > { %19880 = vst [vmem:[#allocation137_spill] sm:$0xff] %v13643_v47  ;;  %v13653_v60 = vadd.f32 %v1872_v49, %v19884_v5  ;;  %v19891_v5 = vld [vmem:[#allocation135_spill] sm:$0xff] }
 0x2d1   : > { %v1609_v7 = vadd.f32 %v19891_v5, %v19890_v23  ;;  %v19896_v62 = vld [vmem:[#allocation151_spill] sm:$0xff]  ;;  %v19897_v23 = vld [vmem:[#allocation46_spill] sm:$0xff] }
 0x2d2   : > { %2418 = vmatmul.bf16.gmra.mxu3 %v13647_v57  ;;  %2939 = vmatmul.bf16.gmra.mxu0 %v2647_v16  ;;  %v2652_v16 = vshll.u32 %v19870_v6, 16 }
 0x2d3   : > { %3416 = vmatmul.bf16.gmra.mxu1 %v3262_v53  ;;  %v2077_v24 = vadd.f32 %v19892_v14, %v1609_v7  ;;  %v19899_v7 = vld [vmem:[#allocation197_spill] sm:$0xff] }
 0x2d4   : > { %v2654_v12 = vrot.slane %v2652_v16, 1  ;;  %v19901_v16 = vld [vmem:[#allocation155_spill] sm:$0xff] }
 0x2d5   : > { %v2379_v46 = vpop.f32.mrf.mxu3  ;;  %v1585_v5 = vadd.f32 %v19901_v16, %v19900_v42  ;;  %v19908_v42 = vld [vmem:[#allocation146_spill] sm:$0xff] }
 0x2d6   : > { %v13662_v47 = vadd.f32 %v2379_v46, %v2076_v2  ;;  %v2655_v53 = vsel %vm1060_vm0, %v2650_v43, %v2654_v12  ;;  %v19894_v46 = vld [vmem:[#allocation220_spill] sm:$0xff]  ;;  %v19909_v16 = vld [vmem:[#allocation158_spill] sm:$0xff] }
 0x2d7   : > { %v1874_v49 = vpop.f32.mrf.mxu0  ;;  %v1610_v22 = vadd.f32 %v19895_v21, %v19894_v46  ;;  %v19903_v46 = vld [vmem:[#allocation223_spill] sm:$0xff]  ;;  %v19904_v21 = vld [vmem:[#allocation142_spill] sm:$0xff] }
 0x2d8   : > { %19889 = vst [vmem:[#allocation187_spill] sm:$0xff] %v13662_v47  ;;  %v13668_v54 = vadd.f32 %v1874_v49, %v1583_v59  ;;  %v19898_v59 = vld [vmem:[#allocation180_spill] sm:$0xff] }
 0x2d9   : > { %v3263_v38 = vrot.slane %v19898_v59, 1  ;;  %v2078_v49 = vadd.f32 %v19899_v7, %v1610_v22 }
 0x2da   : > { %3813 = vmatmul.bf16.gmra.mxu2 %v19821_v45 }
 0x2dd   : > { %v2381_v26 = vpop.f32.mrf.mxu3 }
 0x2de   : > { %v13671_v25 = vadd.f32 %v2381_v26, %v2077_v24  ;;  %v3264_v26 = vsel %vm1699_vm1, %v3261_v8, %v3263_v38  ;;  %v19905_v8 = vld [vmem:[#allocation200_spill] sm:$0xff] }
 0x2df   : > { %v1877_v2 = vpop.f32.mrf.mxu0 }
 0x2e0   : > { %19893 = vst [vmem:[#allocation140_spill] sm:$0xff] %v13671_v25  ;;  %v13677_v47 = vadd.f32 %v1877_v2, %v19896_v62  ;;  %v2656_v2 = vshrl.u32 %v19870_v6, 16  ;;  %v1611_v62 = vadd.f32 %v19904_v21, %v19903_v46  ;;  %v19910_v46 = vld [vmem:[#allocation54_spill] sm:$0xff] }
 0x2e2   : > { %2944 = vmatmul.bf16.gmra.mxu0 %v2655_v53  ;;  %4201 = vmatmul.bf16.vlgmr.msrb.gmra.mxu3 %v19897_v23  ;;  %v2660_v53 = vshll.u32 %v19885_v37, 16  ;;  %v2658_v22 = vor.u32 %v2656_v2, %v2654_v12  ;;  %v2079_v7 = vadd.f32 %v19905_v8, %v1611_v62  ;;  %v19911_v12 = vld [vmem:[#allocation182_spill] sm:$0xff]  ;;  %v19913_v62 = vld [vmem:[#allocation161_spill] sm:$0xff] }
 0x2e3   : > { %3421 = vmatmul.bf16.gmra.mxu1 %v3264_v26  ;;  %v19912_v2 = vld [vmem:[#allocation202_spill] sm:$0xff] }
 0x2e4   : > { %v2662_v23 = vrot.slane %v2660_v53, 1 }
 0x2e5   : > { %v2384_v24 = vpop.f32.mrf.mxu3 }
 0x2e6   : > { %v13686_v43 = vadd.f32 %v2384_v24, %v2078_v49  ;;  %v2663_v26 = vsel %vm1060_vm0, %v2658_v22, %v2662_v23  ;;  %v19907_v24 = vld [vmem:[#allocation226_spill] sm:$0xff] }
 0x2e7   : > { %v1879_v14 = vpop.f32.mrf.mxu0  ;;  %v1612_v6 = vadd.f32 %v19908_v42, %v19907_v24  ;;  %v19914_v22 = vld [vmem:[#allocation162_spill] sm:$0xff]  ;;  %v2668_v24 = vshll.u32 %v19898_v59, 16  ;;  %v19916_v42 = vld [vmem:[#allocation103_spill] sm:$0xff] }
 0x2e8   : > { %19902 = vst [vmem:[#allocation141_spill] sm:$0xff] %v13686_v43  ;;  %v13692_v45 = vadd.f32 %v1879_v14, %v1585_v5  ;;  %v11464_v5 = vld [vmem:[#allocation7 + $0x228] sm:$0xff]  ;;  %v3265_v14 = vrot.slane %v19911_v12, 1  ;;  %v1587_v8 = vadd.f32 %v19914_v22, %v19913_v62  ;;  %v19922_v22 = vld [vmem:[#allocation164_spill] sm:$0xff] }
 0x2e9   : > { %4589 = vmatpush.bf16.msrb.mxu0 %v11464_v5  ;;  %v2670_v5 = vrot.slane %v2668_v24, 1  ;;  %v19921_v62 = vld [vmem:[#allocation153_spill] sm:$0xff] }
 0x2ea   : > { %3818 = vmatmul.bf16.gmra.mxu2 %v19830_v18  ;;  %v3266_v53 = vsel %vm1699_vm1, %v3263_v38, %v3265_v14  ;;  %v19918_v38 = vld [vmem:[#allocation205_spill] sm:$0xff] }
 0x2ed   : > { %v2386_v25 = vpop.f32.mrf.mxu3 }
 0x2ee   : > { %v13695_v57 = vadd.f32 %v2386_v25, %v2079_v7  ;;  %v2080_v25 = vadd.f32 %v19912_v2, %v1612_v6 }
 0x2ef   : > { %v1882_v49 = vpop.f32.mrf.mxu0 }
 0x2f0   : > { %19906 = vst [vmem:[#allocation211_spill] sm:$0xff] %v13695_v57  ;;  %v13701_v43 = vadd.f32 %v1882_v49, %v19909_v16  ;;  %v19917_v16 = vld [vmem:[#allocation149_spill] sm:$0xff] }
 0x2f1   : > { %v1613_v18 = vadd.f32 %v19917_v16, %v19916_v42  ;;  %v19923_v42 = vld [vmem:[#allocation62_spill] sm:$0xff] }
 0x2f2   : > { %2949 = vmatmul.bf16.gmra.mxu0 %v2663_v26  ;;  %4206 = vmatmul.bf16.gmra.mxu3 %v19910_v46  ;;  %v2664_v26 = vshrl.u32 %v19885_v37, 16 }
 0x2f3   : > { %3426 = vmatmul.bf16.gmra.mxu1 %v3266_v53  ;;  %v2081_v2 = vadd.f32 %v19918_v38, %v1613_v18  ;;  %v19926_v18 = vld [vmem:[#allocation167_spill] sm:$0xff] }
 0x2f4   : > { %v2666_v6 = vor.u32 %v2664_v26, %v2662_v23  ;;  %v19925_v26 = vld [vmem:[#allocation207_spill] sm:$0xff] }
 0x2f5   : > { %v2389_v21 = vpop.f32.mrf.mxu3 }
 0x2f6   : > { %v13710_v7 = vadd.f32 %v2389_v21, %v2080_v25  ;;  %v2671_v53 = vsel %vm1060_vm0, %v2666_v6, %v2670_v5  ;;  %v19920_v21 = vld [vmem:[#allocation232_spill] sm:$0xff] }
 0x2f7   : > { %v1884_v49 = vpop.f32.mrf.mxu0  ;;  %v1614_v37 = vadd.f32 %v19921_v62, %v19920_v21  ;;  %v19927_v6 = vld [vmem:[#allocation168_spill] sm:$0xff]  ;;  %v2672_v21 = vshrl.u32 %v19898_v59, 16  ;;  %v2676_v62 = vshll.u32 %v19911_v12, 16 }
 0x2f8   : > { %19915 = vst [vmem:[#allocation130_spill] sm:$0xff] %v13710_v7  ;;  %v13716_v46 = vadd.f32 %v1884_v49, %v1587_v8  ;;  %v19924_v8 = vld [vmem:[#allocation189_spill] sm:$0xff]  ;;  %v1589_v38 = vadd.f32 %v19927_v6, %v19926_v18  ;;  %v19933_v59 = vld [vmem:[#allocation160_spill] sm:$0xff] }
 0x2f9   : > { %v3267_v23 = vrot.slane %v19924_v8, 1 }
 0x2fa   : > { %3823 = vmatmul.bf16.gmra.mxu2 %v12644_v28  ;;  %v19930_v28 = vld [vmem:[#allocation156_spill] sm:$0xff] }
 0x2fb   : > { %v3268_v24 = vsel %vm1699_vm1, %v3265_v14, %v3267_v23  ;;  %v2678_v14 = vrot.slane %v2676_v62, 1 }
 0x2fd   : > { %v2391_v57 = vpop.f32.mrf.mxu3 }
 0x2fe   : > { %v13719_v48 = vadd.f32 %v2391_v57, %v2081_v2  ;;  %v3392_v49 = vpop.f32.mrf.mxu1  ;;  %v2082_v57 = vadd.f32 %v19925_v26, %v1614_v37  ;;  %v2674_v37 = vor.u32 %v2672_v21, %v2670_v5  ;;  %v19936_v5 = vld [vmem:[#allocation194_spill] sm:$0xff]  ;;  %v19937_v21 = vld [vmem:[#allocation75_spill] sm:$0xff] }
 0x2ff   : > { %v1887_v25 = vpop.f32.mrf.mxu0 }
 0x300   : > { %19919 = vst [vmem:[#allocation190_spill] sm:$0xff] %v13719_v48  ;;  %v13725_v7 = vadd.f32 %v1887_v25, %v19922_v22  ;;  %v3784_v25 = vpop.f32.mrf.mxu2  ;;  %v19929_v22 = vld [vmem:[#allocation235_spill] sm:$0xff]  ;;  %v2679_v6 = vsel %vm1060_vm0, %v2674_v37, %v2678_v14 }
 0x301   : > { %v19940_v37 = vld [vmem:[#allocation175_spill] sm:$0xff] }
 0x302   : > { %2954 = vmatmul.bf16.gmra.mxu0 %v2671_v53  ;;  %4211 = vmatmul.bf16.gmra.mxu3 %v19923_v42  ;;  %v1615_v42 = vadd.f32 %v19930_v28, %v19929_v22 }
 0x303   : > { %3431 = vmatmul.bf16.gmra.mxu1 %v3268_v24 }
 0x304   : > { %v2083_v58 = vadd.f32 %v19931_v31, %v1615_v42  ;;  %v19939_v42 = vld [vmem:[#allocation174_spill] sm:$0xff] }
 0x305   : > { %v2394_v16 = vpop.f32.mrf.mxu3 }
 0x306   : > { %v13734_v2 = vadd.f32 %v2394_v16, %v2082_v57  ;;  %v3394_v26 = vpop.f32.mrf.mxu1 }
 0x307   : > { %v1889_v53 = vpop.f32.mrf.mxu0 }
 0x308   : > { %19928 = vst [vmem:[#allocation214_spill] sm:$0xff] %v13734_v2  ;;  %v13740_v48 = vadd.f32 %v1889_v53, %v1589_v38  ;;  %v3786_v16 = vpop.f32.mrf.mxu2  ;;  %v1616_v2 = vadd.f32 %v19933_v59, %v13398_v44  ;;  %v19935_v38 = vld [vmem:[#allocation74_spill] sm:$0xff]  ;;  %v3269_v53 = vrot.slane %v19936_v5, 1  ;;  %v1591_v44 = vadd.f32 %v19940_v37, %v19939_v42  ;;  %v19943_v42 = vld [vmem:[#allocation215_spill] sm:$0xff] }
 0x309   : > { %v2684_v59 = vshll.u32 %v19924_v8, 16 }
 0x30a   : > { %3828 = vmatmul.bf16.gmra.mxu2 %v19937_v21  ;;  %v3270_v22 = vsel %vm1699_vm1, %v3267_v23, %v3269_v53 }
 0x30d   : > { %v2396_v18 = vpop.f32.mrf.mxu3 }
 0x30e   : > { %v13743_v57 = vadd.f32 %v2396_v18, %v2083_v58  ;;  %v13754_v31 = vpop.f32.mrf.mxu1  ;;  %v19938_v58 = vld [vmem:[#allocation212_spill] sm:$0xff] }
 0x30f   : > { %v1892_v24 = vpop.f32.mrf.mxu0  ;;  %v2084_v62 = vadd.f32 %v19938_v58, %v1616_v2  ;;  %v2686_v58 = vrot.slane %v2684_v59, 1  ;;  %v19948_v59 = vld [vmem:[#allocation86_spill] sm:$0xff] }
 0x310   : > { %19932 = vst [vmem:[#allocation133_spill] sm:$0xff] %v13743_v57  ;;  %v13749_v39 = vadd.f32 %v1892_v24, %v19934_v13  ;;  %v13762_v13 = vpop.f32.mrf.mxu2 }
 0x312   : > { %2959 = vmatmul.bf16.gmra.mxu0 %v2679_v6  ;;  %4216 = vmatmul.bf16.gmra.mxu3 %v19935_v38  ;;  %v2680_v6 = vshrl.u32 %v19911_v12, 16  ;;  %v19942_v38 = vld [vmem:[#allocation163_spill] sm:$0xff] }
 0x313   : > { %3436 = vmatmul.bf16.gmra.mxu1 %v3270_v22  ;;  %v1617_v21 = vadd.f32 %v19942_v38, %v13409_v52  ;;  %v19945_v22 = vld [vmem:[#allocation186_spill] sm:$0xff]  ;;  %v19946_v52 = vld [vmem:[#allocation241_spill] sm:$0xff]  ;;  %v19949_v38 = vld [vmem:[#allocation199_spill] sm:$0xff] }
 0x314   : > { %v2682_v23 = vor.u32 %v2680_v6, %v2678_v14 }
 0x315   : > { %v2399_v28 = vpop.f32.mrf.mxu3 }
 0x316   : > { %v13760_v18 = vadd.f32 %v2399_v28, %v2084_v62  ;;  %v13770_v57 = vpop.f32.mrf.mxu1  ;;  %v2085_v62 = vadd.f32 %v19943_v42, %v1617_v21  ;;  %v2687_v19 = vsel %vm1060_vm0, %v2682_v23, %v2686_v58  ;;  %v3271_v21 = vrot.slane %v19949_v38, 1  ;;  %v19950_v42 = vld [vmem:[#allocation87_spill] sm:$0xff] }
 0x317   : > { %v1894_v24 = vpop.f32.mrf.mxu0 }
 0x318   : > { %19941 = vst [vmem:[#allocation144_spill] sm:$0xff] %v13760_v18  ;;  %v13768_v2 = vadd.f32 %v1894_v24, %v1591_v44  ;;  %v2480_v18 = vadd.f32 %v19945_v22, %v13474_v34  ;;  %v13777_v12 = vpop.f32.mrf.mxu2  ;;  %v19947_v44 = vld [vmem:[#allocation166_spill] sm:$0xff]  ;;  %v3272_v23 = vsel %vm1699_vm1, %v3269_v53, %v3271_v21  ;;  %v11463_v53 = vld [vmem:[#allocation7 + $0x220] sm:$0xff] }
 0x319   : > { %v1618_v24 = vadd.f32 %v19947_v44, %v19946_v52  ;;  %v2688_v52 = vshrl.u32 %v19924_v8, 16  ;;  %v2692_v44 = vshll.u32 %v19936_v5, 16  ;;  %4590 = vmatpush.bf16.msrb.mxu0 %v11463_v53  ;;  %v19961_v53 = vld [vmem:[#allocation224_spill] sm:$0xff] }
 0x31a   : > { %3833 = vmatmul.bf16.gmra.mxu2 %v19950_v42 }
 0x31d   : > { %v2401_v28 = vpop.f32.mrf.mxu3 }
 0x31e   : > { %v13773_v37 = vadd.f32 %v2401_v28, %v2085_v62  ;;  %v13785_v62 = vpop.f32.mrf.mxu1  ;;  %v19951_v28 = vld [vmem:[#allocation218_spill] sm:$0xff] }
 0x31f   : > { %v2925_v30 = vpop.f32.mrf.mxu0  ;;  %v2086_v22 = vadd.f32 %v19951_v28, %v1618_v24 }
 0x320   : > { %19944 = vst [vmem:[#allocation177_spill] sm:$0xff] %v13773_v37  ;;  %v3121_v14 = vadd.f32 %v2925_v30, %v2480_v18  ;;  %v19953_v30 = vld [vmem:[#allocation188_spill] sm:$0xff] }
 0x322   : > { %v3588_v6 = vadd.f32 %v3392_v49, %v3121_v14  ;;  %2964 = vmatmul.bf16.gmra.mxu0 %v2687_v19  ;;  %4221 = vmatmul.bf16.gmra.mxu3 %v19948_v59  ;;  %v2481_v19 = vadd.f32 %v19953_v30, %v13485_v0  ;;  %v13795_v49 = vpop.f32.mrf.mxu2  ;;  %v2690_v59 = vor.u32 %v2688_v52, %v2686_v58  ;;  %v19955_v0 = vld [vmem:[#allocation221_spill] sm:$0xff]  ;;  %v11474_v52 = vld [vmem:[#allocation9 + $0x38] sm:$0xff] }
 0x323   : > { %3441 = vmatmul.bf16.gmra.mxu1 %v3272_v23  ;;  %v11482_v23 = vld [vmem:[#allocation9 + $0x78] sm:$0xff] }
 0x324   : > { %v13787_v34 = vadd.f32 %v3784_v25, %v3588_v6  ;;  %v19954_v25 = vld [vmem:[#allocation169_spill] sm:$0xff]  ;;  %7020 = vmatpush.bf16.msra.mxu2 %v11482_v23  ;;  %6555 = vmatpush.bf16.msra.mxu1 %v11474_v52 }
 0x325   : > { %v2404_v37 = vpop.f32.mrf.mxu3  ;;  %v1619_v14 = vadd.f32 %v19954_v25, %v13431_v17  ;;  %v19958_v25 = vld [vmem:[#allocation98_spill] sm:$0xff] }
 0x326   : > { %v13791_v55 = vadd.f32 %v2404_v37, %v2086_v22  ;;  %v2694_v37 = vrot.slane %v2692_v44, 1  ;;  %v13801_v42 = vpop.f32.mrf.mxu1 }
 0x327   : > { %v2927_v18 = vpop.f32.mrf.mxu0  ;;  %v2087_v22 = vadd.f32 %v19955_v0, %v1619_v14  ;;  %v19959_v14 = vld [vmem:[#allocation204_spill] sm:$0xff] }
 0x328   : > { %19952 = vst [vmem:[#allocation192_spill] sm:$0xff] %v13791_v55  ;;  %v3122_v24 = vadd.f32 %v2927_v18, %v2481_v19  ;;  %v19956_v55 = vld [vmem:[#allocation191_spill] sm:$0xff]  ;;  %v2695_v58 = vsel %vm1060_vm0, %v2690_v59, %v2694_v37  ;;  %v19957_v19 = vld [vmem:[#allocation173_spill] sm:$0xff] }
 0x329   : > { %v2482_v11 = vadd.f32 %v19956_v55, %v13501_v51 }
 0x32a   : > { %v3589_v6 = vadd.f32 %v3394_v26, %v3122_v24  ;;  %v13810_v17 = vpop.f32.mrf.mxu2  ;;  %v3273_v24 = vrot.slane %v19959_v14, 1 }
 0x32c   : > { %v13803_v28 = vadd.f32 %v3786_v16, %v3589_v6  ;;  %v1620_v16 = vadd.f32 %v19957_v19, %v13445_v41  ;;  %v19960_v6 = vld [vmem:[#allocation100_spill] sm:$0xff]  ;;  %v3274_v41 = vsel %vm1699_vm1, %v3271_v21, %v3273_v24 }
 0x32d   : > { %v2406_v30 = vpop.f32.mrf.mxu3  ;;  %3838 = vmatmul.bf16.gmra.mxu2 %v19960_v6 }
 0x32e   : > { %v13806_v8 = vadd.f32 %v2406_v30, %v2087_v22  ;;  %v3407_v55 = vpop.f32.mrf.mxu1  ;;  %v2088_v59 = vadd.f32 %v19961_v53, %v1620_v16 }
 0x32f   : > { %v2930_v26 = vpop.f32.mrf.mxu0 }
 0x330   : > { %v3123_v18 = vadd.f32 %v2930_v26, %v2482_v11  ;;  %v2696_v26 = vshrl.u32 %v19936_v5, 16  ;;  %v19966_v5 = vld [vmem:[#allocation196_spill] sm:$0xff] }
 0x332   : > { %v3590_v44 = vadd.f32 %v13754_v31, %v3123_v18  ;;  %2969 = vmatmul.bf16.gmra.mxu0 %v2695_v58  ;;  %4226 = vmatmul.bf16.gmra.mxu3 %v19958_v25  ;;  %v19962_v31 = vld [vmem:[#allocation193_spill] sm:$0xff]  ;;  %v3799_v23 = vpop.f32.mrf.mxu2  ;;  %v2700_v58 = vshll.u32 %v19949_v38, 16  ;;  %v2698_v21 = vor.u32 %v2696_v26, %v2694_v37  ;;  %v19967_v37 = vld [vmem:[#allocation110_spill] sm:$0xff]  ;;  %v19969_v26 = vld [vmem:[#allocation112_spill] sm:$0xff] }
 0x333   : > { %v2483_v22 = vadd.f32 %v19962_v31, %v13516_v61  ;;  %3446 = vmatmul.bf16.gmra.mxu1 %v3274_v41  ;;  %v19964_v61 = vld [vmem:[#allocation228_spill] sm:$0xff]  ;;  %v2484_v41 = vadd.f32 %v19966_v5, %v13533_v29  ;;  %v2708_v5 = vshll.u32 %v19959_v14, 16 }
 0x334   : > { %v13820_v51 = vadd.f32 %v13762_v13, %v3590_v44  ;;  %v19963_v13 = vld [vmem:[#allocation176_spill] sm:$0xff]  ;;  %v2702_v52 = vrot.slane %v2700_v58, 1 }
 0x335   : > { %v2409_v11 = vpop.f32.mrf.mxu3  ;;  %v1621_v19 = vadd.f32 %v19963_v13, %v13456_v9 }
 0x336   : > { %v13824_v0 = vadd.f32 %v2409_v11, %v2088_v59  ;;  %v3409_v44 = vpop.f32.mrf.mxu1  ;;  %v2703_v9 = vsel %vm1060_vm0, %v2698_v21, %v2702_v52  ;;  %v19972_v21 = vld [vmem:[#allocation198_spill] sm:$0xff] }
 0x337   : > { %v2932_v30 = vpop.f32.mrf.mxu0  ;;  %v2089_v6 = vadd.f32 %v19964_v61, %v1621_v19 }
 0x338   : > { %v3124_v18 = vadd.f32 %v2932_v30, %v2483_v22 }
 0x33a   : > { %v3591_v16 = vadd.f32 %v13770_v57, %v3124_v18  ;;  %v3801_v11 = vpop.f32.mrf.mxu2  ;;  %v19970_v18 = vld [vmem:[#allocation230_spill] sm:$0xff] }
 0x33c   : > { %v13834_v25 = vadd.f32 %v13777_v12, %v3591_v16  ;;  %v19968_v12 = vld [vmem:[#allocation17_spill] sm:$0xff] }
 0x33d   : > { %v2411_v53 = vpop.f32.mrf.mxu3  ;;  %v3275_v30 = vrot.slane %v19968_v12, 1  ;;  %3843 = vmatmul.bf16.gmra.mxu2 %v19969_v26  ;;  %v19975_v26 = vld [vmem:[#allocation236_spill] sm:$0xff] }
 0x33e   : > { %v13837_v59 = vadd.f32 %v2411_v53, %v2089_v6  ;;  %v2704_v53 = vshrl.u32 %v19949_v38, 16  ;;  %v19976_v38 = vld [vmem:[#allocation201_spill] sm:$0xff] }
 0x33f   : > { %v2935_v31 = vpop.f32.mrf.mxu0  ;;  %v3276_v29 = vsel %vm1699_vm1, %v3273_v24, %v3275_v30 }
 0x340   : > { %19965 = vst [vmem:[#allocation147_spill] sm:$0xff] %v13837_v59  ;;  %v3125_v22 = vadd.f32 %v2935_v31, %v2484_v41  ;;  %v3412_v58 = vpop.f32.mrf.mxu1  ;;  %v19973_v41 = vld [vmem:[#allocation108_spill] sm:$0xff]  ;;  %v19974_v31 = vld [vmem:[#allocation179_spill] sm:$0xff] }
 0x342   : > { %v3592_v57 = vadd.f32 %v13785_v62, %v3125_v22  ;;  %2974 = vmatmul.bf16.gmra.mxu0 %v2703_v9  ;;  %4231 = vmatmul.bf16.gmra.mxu3 %v19967_v37  ;;  %v2485_v62 = vadd.f32 %v19972_v21, %v13550_v20  ;;  %v3804_v61 = vpop.f32.mrf.mxu2  ;;  %v2706_v22 = vor.u32 %v2704_v53, %v2702_v52  ;;  %v19977_v52 = vld [vmem:[#allocation119_spill] sm:$0xff]  ;;  %v19978_v53 = vld [vmem:[#allocation213_spill] sm:$0xff] }
 0x343   : > { %3451 = vmatmul.bf16.gmra.mxu1 %v3276_v29  ;;  %v2486_v21 = vadd.f32 %v19976_v38, %v13563_v10  ;;  %v19980_v10 = vld [vmem:[#allocation238_spill] sm:$0xff] }
 0x344   : > { %v13847_v13 = vadd.f32 %v13795_v49, %v3592_v57  ;;  %v1623_v49 = vadd.f32 %v19974_v31, %v19973_v41  ;;  %v2710_v57 = vrot.slane %v2708_v5, 1  ;;  %v3277_v5 = vrot.slane %v19978_v53, 1  ;;  %v19979_v41 = vld [vmem:[#allocation121_spill] sm:$0xff] }
 0x345   : > { %v2414_v19 = vpop.f32.mrf.mxu3 }
 0x346   : > { %v13851_v16 = vadd.f32 %v2414_v19, %v19970_v18  ;;  %v2091_v19 = vadd.f32 %v19975_v26, %v1623_v49  ;;  %v3278_v49 = vsel %vm1699_vm1, %v3275_v30, %v3277_v5 }
 0x347   : > { %v2937_v6 = vpop.f32.mrf.mxu0 }
 0x348   : > { %19971 = vst [vmem:[#allocation148_spill] sm:$0xff] %v13851_v16  ;;  %v3126_v9 = vadd.f32 %v2937_v6, %v2485_v62  ;;  %v3414_v37 = vpop.f32.mrf.mxu1  ;;  %v2711_v62 = vsel %vm1060_vm0, %v2706_v22, %v2710_v57  ;;  %v19981_v22 = vld [vmem:[#allocation203_spill] sm:$0xff] }
 0x34a   : > { %v3593_v24 = vadd.f32 %v13801_v42, %v3126_v9  ;;  %v3806_v16 = vpop.f32.mrf.mxu2 }
 0x34c   : > { %v13862_v20 = vadd.f32 %v13810_v17, %v3593_v24 }
 0x34d   : > { %v2416_v29 = vpop.f32.mrf.mxu3  ;;  %3848 = vmatmul.bf16.gmra.mxu2 %v19979_v41 }
 0x34e   : > { %v13864_v18 = vadd.f32 %v2416_v29, %v2091_v19  ;;  %v2712_v19 = vshrl.u32 %v19959_v14, 16  ;;  %v2716_v29 = vshll.u32 %v19968_v12, 16  ;;  %v19983_v14 = vld [vmem:[#allocation126_spill] sm:$0xff] }
 0x34f   : > { %v2940_v59 = vpop.f32.mrf.mxu0 }
 0x350   : > { %v3127_v6 = vadd.f32 %v2940_v59, %v2486_v21  ;;  %v3417_v17 = vpop.f32.mrf.mxu1  ;;  %v2487_v59 = vadd.f32 %v19981_v22, %v13577_v36 }
 0x352   : > { %v3594_v42 = vadd.f32 %v3407_v55, %v3127_v6  ;;  %2979 = vmatmul.bf16.gmra.mxu0 %v2711_v62  ;;  %4236 = vmatmul.bf16.gmra.mxu3 %v19977_v52  ;;  %v3809_v55 = vpop.f32.mrf.mxu2  ;;  %v2718_v62 = vrot.slane %v2716_v29, 1  ;;  %v19982_v52 = vld [vmem:[#allocation206_spill] sm:$0xff] }
 0x353   : > { %3456 = vmatmul.bf16.gmra.mxu1 %v3278_v49  ;;  %v2488_v41 = vadd.f32 %v19982_v52, %v13592_v40  ;;  %v11481_v29 = vld [vmem:[#allocation9 + $0x70] sm:$0xff] }
 0x354   : > { %v13872_v31 = vadd.f32 %v3799_v23, %v3594_v42  ;;  %v2714_v23 = vor.u32 %v2712_v19, %v2710_v57  ;;  %7021 = vmatpush.bf16.msra.mxu2 %v11481_v29 }
 0x355   : > { %v2419_v9 = vpop.f32.mrf.mxu3 }
 0x356   : > { %v13876_v24 = vadd.f32 %v2419_v9, %v19980_v10  ;;  %v2719_v49 = vsel %vm1060_vm0, %v2714_v23, %v2718_v62 }
 0x357   : > { %v2942_v26 = vpop.f32.mrf.mxu0 }
 0x358   : > { %v3128_v38 = vadd.f32 %v2942_v26, %v2487_v59  ;;  %v3419_v6 = vpop.f32.mrf.mxu1  ;;  %v11462_v59 = vld [vmem:[#allocation7 + $0x218] sm:$0xff] }
 0x359   : > { %v19985_v26 = vld [vmem:[#allocation31_spill] sm:$0xff]  ;;  %4591 = vmatpush.bf16.msrb.mxu0 %v11462_v59 }
 0x35a   : > { %v3595_v21 = vadd.f32 %v3409_v44, %v3128_v38  ;;  %v3811_v9 = vpop.f32.mrf.mxu2  ;;  %v19984_v44 = vld [vmem:[#allocation219_spill] sm:$0xff] }
 0x35b   : > { %v3279_v57 = vrot.slane %v19984_v44, 1 }
 0x35c   : > { %v13882_v30 = vadd.f32 %v3801_v11, %v3595_v21 }
 0x35d   : > { %v2421_v42 = vpop.f32.mrf.mxu3  ;;  %3853 = vmatmul.bf16.gmra.mxu2 %v19985_v26  ;;  %v3280_v40 = vsel %vm1699_vm1, %v3277_v5, %v3279_v57  ;;  %v19987_v26 = vld [vmem:[#allocation210_spill] sm:$0xff] }
 0x35f   : > { %v2945_v36 = vpop.f32.mrf.mxu0 }
 0x360   : > { %v3129_v10 = vadd.f32 %v2945_v36, %v2488_v41  ;;  %v3422_v11 = vpop.f32.mrf.mxu1  ;;  %v2720_v41 = vshrl.u32 %v19968_v12, 16 }
 0x362   : > { %v3596_v22 = vadd.f32 %v3412_v58, %v3129_v10  ;;  %2984 = vmatmul.bf16.gmra.mxu0 %v2719_v49  ;;  %4241 = vmatmul.bf16.gmra.mxu3 %v19983_v14  ;;  %v19986_v58 = vld [vmem:[#allocation16_spill] sm:$0xff]  ;;  %v3814_v42 = vpop.f32.mrf.mxu2  ;;  %v11473_v49 = vld [vmem:[#allocation9 + $0x30] sm:$0xff]  ;;  %v2722_v5 = vor.u32 %v2720_v41, %v2718_v62  ;;  %v19989_v62 = vld [vmem:[#allocation225_spill] sm:$0xff] }
 0x363   : > { %v2489_v23 = vadd.f32 %v19986_v58, %v13606_v35  ;;  %3461 = vmatmul.bf16.gmra.mxu1 %v3280_v40  ;;  %v2490_v40 = vadd.f32 %v19987_v26, %v13621_v63  ;;  %v2732_v26 = vshll.u32 %v19984_v44, 16 }
 0x364   : > { %v13890_v19 = vadd.f32 %v3804_v61, %v3596_v22  ;;  %v2724_v61 = vshll.u32 %v19978_v53, 16  ;;  %6556 = vmatpush.bf16.msra.mxu1 %v11473_v49  ;;  %v19991_v49 = vld [vmem:[#allocation21_spill] sm:$0xff] }
 0x365   : > { %v4202_v38 = vpop.f32.mrf.mxu3 }
 0x366   : > { %v13894_v21 = vadd.f32 %v4202_v38, %v13787_v34  ;;  %v2726_v22 = vrot.slane %v2724_v61, 1 }
 0x367   : > { %v2947_v52 = vpop.f32.mrf.mxu0 }
 0x368   : > { %v3130_v36 = vadd.f32 %v2947_v52, %v2489_v23  ;;  %v3424_v14 = vpop.f32.mrf.mxu1  ;;  %v2727_v38 = vsel %vm1060_vm0, %v2722_v5, %v2726_v22  ;;  %v3281_v52 = vrot.slane %v19989_v62, 1 }
 0x36a   : > { %v3597_v10 = vadd.f32 %v3414_v37, %v3130_v36  ;;  %v3816_v29 = vpop.f32.mrf.mxu2  ;;  %v19988_v37 = vld [vmem:[#allocation131_spill] sm:$0xff] }
 0x36c   : > { %v13900_v34 = vadd.f32 %v3806_v16, %v3597_v10  ;;  %v19990_v16 = vld [vmem:[#allocation32_spill] sm:$0xff]  ;;  %v2491_v10 = vadd.f32 %v19991_v49, %v13636_v27 }
 0x36d   : > { %v4204_v59 = vpop.f32.mrf.mxu3  ;;  %3858 = vmatmul.bf16.gmra.mxu2 %v19990_v16  ;;  %v19992_v27 = vld [vmem:[#allocation216_spill] sm:$0xff] }
 0x36e   : > { %v13903_v35 = vadd.f32 %v4204_v59, %v13803_v28  ;;  %v3282_v28 = vsel %vm1699_vm1, %v3279_v57, %v3281_v52  ;;  %v2728_v59 = vshrl.u32 %v19978_v53, 16 }
 0x36f   : > { %v2950_v12 = vpop.f32.mrf.mxu0 }
 0x370   : > { %v3131_v58 = vadd.f32 %v2950_v12, %v2490_v40  ;;  %v3427_v41 = vpop.f32.mrf.mxu1 }
 0x372   : > { %v3598_v23 = vadd.f32 %v3417_v17, %v3131_v58  ;;  %2989 = vmatmul.bf16.gmra.mxu0 %v2727_v38  ;;  %4246 = vmatmul.bf16.gmra.mxu3 %v19988_v37  ;;  %v3819_v17 = vpop.f32.mrf.mxu2  ;;  %v2734_v38 = vrot.slane %v2732_v26, 1  ;;  %v2492_v37 = vadd.f32 %v19992_v27, %v13653_v60  ;;  %v2740_v27 = vshll.u32 %v19989_v62, 16 }
 0x373   : > { %3466 = vmatmul.bf16.gmra.mxu1 %v3282_v28 }
 0x374   : > { %v13911_v61 = vadd.f32 %v3809_v55, %v3598_v23  ;;  %v2730_v55 = vor.u32 %v2728_v59, %v2726_v22  ;;  %v19994_v22 = vld [vmem:[#allocation231_spill] sm:$0xff] }
 0x375   : > { %v4207_v36 = vpop.f32.mrf.mxu3 }
 0x376   : > { %v13915_v63 = vadd.f32 %v4207_v36, %v13820_v51  ;;  %v2735_v53 = vsel %vm1060_vm0, %v2730_v55, %v2734_v38 }
 0x377   : > { %v2952_v5 = vpop.f32.mrf.mxu0 }
 0x378   : > { %v3132_v40 = vadd.f32 %v2952_v5, %v2491_v10  ;;  %v3429_v58 = vpop.f32.mrf.mxu1  ;;  %v3283_v10 = vrot.slane %v19994_v22, 1 }
 0x37a   : > { %v3599_v12 = vadd.f32 %v3419_v6, %v3132_v40  ;;  %v3821_v16 = vpop.f32.mrf.mxu2  ;;  %v19993_v6 = vld [vmem:[#allocation136_spill] sm:$0xff]  ;;  %v19996_v40 = vld [vmem:[#allocation33_spill] sm:$0xff] }
 0x37c   : > { %v13921_v57 = vadd.f32 %v3811_v9, %v3599_v12  ;;  %v19995_v9 = vld [vmem:[#allocation39_spill] sm:$0xff]  ;;  %v2493_v12 = vadd.f32 %v19996_v40, %v13668_v54  ;;  %v19997_v54 = vld [vmem:[#allocation222_spill] sm:$0xff] }
 0x37d   : > { %v4209_v23 = vpop.f32.mrf.mxu3  ;;  %3863 = vmatmul.bf16.gmra.mxu2 %v19995_v9 }
 0x37e   : > { %v13924_v51 = vadd.f32 %v4209_v23, %v13834_v25  ;;  %v3284_v25 = vsel %vm1699_vm1, %v3281_v52, %v3283_v10  ;;  %v2736_v23 = vshrl.u32 %v19984_v44, 16 }
 0x37f   : > { %v2955_v28 = vpop.f32.mrf.mxu0 }
 0x380   : > { %v3133_v36 = vadd.f32 %v2955_v28, %v2492_v37  ;;  %v3432_v5 = vpop.f32.mrf.mxu1 }
 0x382   : > { %v3600_v49 = vadd.f32 %v3422_v11, %v3133_v36  ;;  %2994 = vmatmul.bf16.gmra.mxu0 %v2735_v53  ;;  %4251 = vmatmul.bf16.gmra.mxu3 %v19993_v6  ;;  %v3824_v11 = vpop.f32.mrf.mxu2  ;;  %v2742_v53 = vrot.slane %v2740_v27, 1  ;;  %v2494_v6 = vadd.f32 %v19997_v54, %v13677_v47  ;;  %v2748_v54 = vshll.u32 %v19994_v22, 16 }
 0x383   : > { %3471 = vmatmul.bf16.gmra.mxu1 %v3284_v25 }
 0x384   : > { %v13932_v59 = vadd.f32 %v3814_v42, %v3600_v49  ;;  %v2738_v42 = vor.u32 %v2736_v23, %v2734_v38  ;;  %v19999_v38 = vld [vmem:[#allocation113_spill] sm:$0xff] }
 0x385   : > { %v4212_v26 = vpop.f32.mrf.mxu3 }
 0x386   : > { %v13936_v60 = vadd.f32 %v4212_v26, %v13847_v13  ;;  %v2743_v44 = vsel %vm1060_vm0, %v2738_v42, %v2742_v53 }
 0x387   : > { %v2957_v55 = vpop.f32.mrf.mxu0 }
 0x388   : > { %v3134_v37 = vadd.f32 %v2957_v55, %v2493_v12  ;;  %v3434_v36 = vpop.f32.mrf.mxu1  ;;  %v3285_v12 = vrot.slane %v19999_v38, 1 }
 0x38a   : > { %v3601_v28 = vadd.f32 %v3424_v14, %v3134_v37  ;;  %v3826_v9 = vpop.f32.mrf.mxu2  ;;  %v19998_v14 = vld [vmem:[#allocation143_spill] sm:$0xff]  ;;  %v20001_v37 = vld [vmem:[#allocation40_spill] sm:$0xff] }
 0x38c   : > { %v13942_v52 = vadd.f32 %v3816_v29, %v3601_v28  ;;  %v20000_v29 = vld [vmem:[#allocation47_spill] sm:$0xff]  ;;  %v2495_v28 = vadd.f32 %v20001_v37, %v13692_v45 }
 0x38d   : > { %v4214_v49 = vpop.f32.mrf.mxu3  ;;  %3868 = vmatmul.bf16.gmra.mxu2 %v20000_v29  ;;  %v20002_v29 = vld [vmem:[#allocation229_spill] sm:$0xff] }
 0x38e   : > { %v13945_v13 = vadd.f32 %v4214_v49, %v13862_v20  ;;  %v3286_v20 = vsel %vm1699_vm1, %v3283_v10, %v3285_v12  ;;  %v2744_v49 = vshrl.u32 %v19989_v62, 16 }
 0x38f   : > { %v2960_v25 = vpop.f32.mrf.mxu0 }
 0x390   : > { %v3135_v26 = vadd.f32 %v2960_v25, %v2494_v6  ;;  %v3437_v55 = vpop.f32.mrf.mxu1 }
 0x392   : > { %v3602_v40 = vadd.f32 %v3427_v41, %v3135_v26  ;;  %2999 = vmatmul.bf16.gmra.mxu0 %v2743_v44  ;;  %4256 = vmatmul.bf16.gmra.mxu3 %v19998_v14  ;;  %v3829_v41 = vpop.f32.mrf.mxu2  ;;  %v2746_v44 = vor.u32 %v2744_v49, %v2742_v53  ;;  %v2750_v26 = vrot.slane %v2748_v54, 1  ;;  %v11472_v53 = vld [vmem:[#allocation9 + $0x28] sm:$0xff]  ;;  %v20005_v54 = vld [vmem:[#allocation55_spill] sm:$0xff] }
 0x393   : > { %3476 = vmatmul.bf16.gmra.mxu1 %v3286_v20  ;;  %v2496_v20 = vadd.f32 %v20002_v29, %v13701_v43  ;;  %v2752_v29 = vshrl.u32 %v19994_v22, 16 }
 0x394   : > { %v13953_v23 = vadd.f32 %v3819_v17, %v3602_v40  ;;  %v11461_v17 = vld [vmem:[#allocation7 + $0x210] sm:$0xff]  ;;  %6557 = vmatpush.bf16.msra.mxu1 %v11472_v53 }
 0x395   : > { %v4217_v27 = vpop.f32.mrf.mxu3  ;;  %4592 = vmatpush.bf16.msrb.mxu0 %v11461_v17 }
 0x396   : > { %v13957_v47 = vadd.f32 %v4217_v27, %v13872_v31  ;;  %v11480_v31 = vld [vmem:[#allocation9 + $0x68] sm:$0xff] }
 0x397   : > { %v2962_v42 = vpop.f32.mrf.mxu0  ;;  %7022 = vmatpush.bf16.msra.mxu2 %v11480_v31 }
 0x398   : > { %v3136_v6 = vadd.f32 %v2962_v42, %v2495_v28  ;;  %v3439_v10 = vpop.f32.mrf.mxu1  ;;  %v20004_v42 = vld [vmem:[#allocation240_spill] sm:$0xff] }
 0x399   : > { %v3287_v49 = vrot.slane %v20004_v42, 1 }
 0x39a   : > { %v3603_v25 = vadd.f32 %v3429_v58, %v3136_v6  ;;  %v3831_v62 = vpop.f32.mrf.mxu2  ;;  %v2751_v58 = vsel %vm1060_vm0, %v2746_v44, %v2750_v26  ;;  %v20006_v44 = vld [vmem:[#allocation48_spill] sm:$0xff] }
 0x39b   : > { %v3288_v43 = vsel %vm1699_vm1, %v3285_v12, %v3287_v49 }
 0x39c   : > { %v13963_v40 = vadd.f32 %v3821_v16, %v3603_v25  ;;  %v20003_v16 = vld [vmem:[#allocation150_spill] sm:$0xff] }
 0x39d   : > { %v4219_v14 = vpop.f32.mrf.mxu3  ;;  %3873 = vmatmul.bf16.gmra.mxu2 %v20005_v54 }
 0x39e   : > { %v13966_v45 = vadd.f32 %v4219_v14, %v13882_v30 }
 0x39f   : > { %v2965_v27 = vpop.f32.mrf.mxu0 }
 0x3a0   : > { %v3137_v37 = vadd.f32 %v2965_v27, %v2496_v20  ;;  %v3442_v30 = vpop.f32.mrf.mxu1  ;;  %v2756_v20 = vshll.u32 %v19999_v38, 16 }
 0x3a2   : > { %v3604_v28 = vadd.f32 %v3432_v5, %v3137_v37  ;;  %3004 = vmatmul.bf16.gmra.mxu0 %v2751_v58  ;;  %4261 = vmatmul.bf16.gmra.mxu3 %v20003_v16  ;;  %v2497_v5 = vadd.f32 %v20006_v44, %v13716_v46  ;;  %v3834_v31 = vpop.f32.mrf.mxu2  ;;  %v2758_v37 = vrot.slane %v2756_v20, 1  ;;  %v20007_v46 = vld [vmem:[#allocation234_spill] sm:$0xff]  ;;  %v20010_v20 = vld [vmem:[#allocation56_spill] sm:$0xff] }
 0x3a3   : > { %3481 = vmatmul.bf16.gmra.mxu1 %v3288_v43  ;;  %v2498_v16 = vadd.f32 %v20007_v46, %v13725_v7 }
 0x3a4   : > { %v13974_v6 = vadd.f32 %v3824_v11, %v3604_v28  ;;  %v2754_v11 = vor.u32 %v2752_v29, %v2750_v26  ;;  %v3289_v26 = vrot.slane %v13443_v3, 1 }
 0x3a5   : > { %v4222_v25 = vpop.f32.mrf.mxu3 }
 0x3a6   : > { %v13978_v17 = vadd.f32 %v4222_v25, %v13890_v19  ;;  %v2759_v22 = vsel %vm1060_vm0, %v2754_v11, %v2758_v37  ;;  %v2760_v11 = vshrl.u32 %v19999_v38, 16 }
 0x3a7   : > { %v2967_v14 = vpop.f32.mrf.mxu0 }
 0x3a8   : > { %v3138_v27 = vadd.f32 %v2967_v14, %v2497_v5  ;;  %v3444_v53 = vpop.f32.mrf.mxu1 }
 0x3aa   : > { %v3605_v58 = vadd.f32 %v3434_v36, %v3138_v27  ;;  %v3836_v54 = vpop.f32.mrf.mxu2  ;;  %v20008_v36 = vld [vmem:[#allocation157_spill] sm:$0xff]  ;;  %v2499_v27 = vadd.f32 %v20010_v20, %v13740_v48  ;;  %v20011_v48 = vld [vmem:[#allocation239_spill] sm:$0xff] }
 0x3ac   : > { %v13984_v12 = vadd.f32 %v3826_v9, %v3605_v58  ;;  %v20009_v9 = vld [vmem:[#allocation64_spill] sm:$0xff] }
 0x3ad   : > { %v4224_v28 = vpop.f32.mrf.mxu3  ;;  %3878 = vmatmul.bf16.gmra.mxu2 %v20009_v9 }
 0x3ae   : > { %v13987_v19 = vadd.f32 %v4224_v28, %v13900_v34  ;;  %v3290_v34 = vsel %vm1699_vm1, %v3287_v49, %v3289_v26  ;;  %v2764_v28 = vshll.u32 %v20004_v42, 16 }
 0x3af   : > { %v2970_v43 = vpop.f32.mrf.mxu0 }
 0x3b0   : > { %v3139_v25 = vadd.f32 %v2970_v43, %v2498_v16  ;;  %v3447_v5 = vpop.f32.mrf.mxu1  ;;  %v2766_v43 = vrot.slane %v2764_v28, 1 }
 0x3b2   : > { %v3606_v44 = vadd.f32 %v3437_v55, %v3139_v25  ;;  %3009 = vmatmul.bf16.gmra.mxu0 %v2759_v22  ;;  %4266 = vmatmul.bf16.gmra.mxu3 %v20008_v36  ;;  %v3839_v55 = vpop.f32.mrf.mxu2 }
 0x3b3   : > { %3486 = vmatmul.bf16.gmra.mxu1 %v3290_v34 }
 0x3b4   : > { %v13995_v14 = vadd.f32 %v3829_v41, %v3606_v44  ;;  %v2762_v41 = vor.u32 %v2760_v11, %v2758_v37  ;;  %v2500_v44 = vadd.f32 %v20011_v48, %v13749_v39  ;;  %v3291_v37 = vrot.slane %v13468_v1, 1  ;;  %v20014_v11 = vld [vmem:[#allocation63_spill] sm:$0xff] }
 0x3b5   : > { %v4227_v29 = vpop.f32.mrf.mxu3  ;;  %v2501_v28 = vadd.f32 %v20014_v11, %v13768_v2 }
 0x3b6   : > { %v13999_v7 = vadd.f32 %v4227_v29, %v13911_v61  ;;  %v2767_v38 = vsel %vm1060_vm0, %v2762_v41, %v2766_v43  ;;  %v2772_v41 = vshll.u32 %v13443_v3, 16 }
 0x3b7   : > { %v2972_v58 = vpop.f32.mrf.mxu0 }
 0x3b8   : > { %v3140_v46 = vadd.f32 %v2972_v58, %v2499_v27  ;;  %v3449_v22 = vpop.f32.mrf.mxu1 }
 0x3ba   : > { %v3607_v16 = vadd.f32 %v3439_v10, %v3140_v46  ;;  %v3841_v36 = vpop.f32.mrf.mxu2  ;;  %v20012_v10 = vld [vmem:[#allocation38_spill] sm:$0xff] }
 0x3bc   : > { %v14005_v49 = vadd.f32 %v3831_v62, %v3607_v16  ;;  %v20013_v62 = vld [vmem:[#allocation76_spill] sm:$0xff]  ;;  %v2768_v16 = vshrl.u32 %v20004_v42, 16 }
 0x3bd   : > { %v4229_v25 = vpop.f32.mrf.mxu3  ;;  %3883 = vmatmul.bf16.gmra.mxu2 %v20013_v62 }
 0x3be   : > { %v14008_v61 = vadd.f32 %v4229_v25, %v13921_v57  ;;  %v3292_v57 = vsel %vm1699_vm1, %v3289_v26, %v3291_v37 }
 0x3bf   : > { %v2975_v9 = vpop.f32.mrf.mxu0 }
 0x3c0   : > { %v3141_v34 = vadd.f32 %v2975_v9, %v2500_v44  ;;  %v3452_v20 = vpop.f32.mrf.mxu1  ;;  %v2774_v44 = vrot.slane %v2772_v41, 1 }
 0x3c2   : > { %v3608_v29 = vadd.f32 %v3442_v30, %v3141_v34  ;;  %3014 = vmatmul.bf16.gmra.mxu0 %v2767_v38  ;;  %4271 = vmatmul.bf16.gmra.mxu3 %v20012_v10  ;;  %v3844_v30 = vpop.f32.mrf.mxu2  ;;  %v20015_v10 = vld [vmem:[#allocation243_spill] sm:$0xff] }
 0x3c3   : > { %3491 = vmatmul.bf16.gmra.mxu1 %v3292_v57  ;;  %v20016_v57 = vld [vmem:[#allocation45_spill] sm:$0xff] }
 0x3c4   : > { %v14016_v27 = vadd.f32 %v3834_v31, %v3608_v29  ;;  %v2770_v31 = vor.u32 %v2768_v16, %v2766_v43  ;;  %v3293_v43 = vrot.slane %v13495_v56, 1 }
 0x3c5   : > { %v4232_v58 = vpop.f32.mrf.mxu3 }
 0x3c6   : > { %v14020_v39 = vadd.f32 %v4232_v58, %v13932_v59  ;;  %v2775_v29 = vsel %vm1060_vm0, %v2770_v31, %v2774_v44  ;;  %v20017_v58 = vld [vmem:[#allocation88_spill] sm:$0xff]  ;;  %v20018_v31 = vld [vmem:[#allocation77_spill] sm:$0xff] }
 0x3c7   : > { %v2977_v46 = vpop.f32.mrf.mxu0 }
 0x3c8   : > { %v3142_v25 = vadd.f32 %v2977_v46, %v2501_v28  ;;  %v3454_v9 = vpop.f32.mrf.mxu1  ;;  %v11479_v28 = vld [vmem:[#allocation9 + $0x60] sm:$0xff] }
 0x3c9   : > { %7023 = vmatpush.bf16.msra.mxu2 %v11479_v28 }
 0x3ca   : > { %v3609_v48 = vadd.f32 %v3444_v53, %v3142_v25  ;;  %v3846_v34 = vpop.f32.mrf.mxu2  ;;  %v11460_v53 = vld [vmem:[#allocation7 + $0x208] sm:$0xff]  ;;  %v2776_v25 = vshrl.u32 %v13443_v3, 16 }
 0x3cb   : > { %4593 = vmatpush.bf16.msrb.mxu0 %v11460_v53 }
 0x3cc   : > { %v14026_v26 = vadd.f32 %v3836_v54, %v3609_v48  ;;  %v2780_v48 = vshll.u32 %v13468_v1, 16 }
 0x3cd   : > { %v4234_v38 = vpop.f32.mrf.mxu3  ;;  %3888 = vmatmul.bf16.gmra.mxu2 %v20017_v58  ;;  %v20019_v58 = vld [vmem:[#allocation245_spill] sm:$0xff] }
 0x3ce   : > { %v14029_v59 = vadd.f32 %v4234_v38, %v13942_v52  ;;  %v3294_v52 = vsel %vm1699_vm1, %v3291_v37, %v3293_v43  ;;  %v2782_v37 = vrot.slane %v2780_v48, 1 }
 0x3cf   : > { %v2980_v2 = vpop.f32.mrf.mxu0 }
 0x3d0   : > { %v3143_v62 = vadd.f32 %v2980_v2, %v20015_v10  ;;  %v3457_v54 = vpop.f32.mrf.mxu1 }
 0x3d2   : > { %v3610_v42 = vadd.f32 %v3447_v5, %v3143_v62  ;;  %3019 = vmatmul.bf16.gmra.mxu0 %v2775_v29  ;;  %4276 = vmatmul.bf16.gmra.mxu3 %v20016_v57  ;;  %v3849_v5 = vpop.f32.mrf.mxu2  ;;  %v2778_v29 = vor.u32 %v2776_v25, %v2774_v44  ;;  %v20021_v44 = vld [vmem:[#allocation101_spill] sm:$0xff] }
 0x3d3   : > { %3496 = vmatmul.bf16.gmra.mxu1 %v3294_v52 }
 0x3d4   : > { %v14036_v11 = vadd.f32 %v3839_v55, %v3610_v42  ;;  %v11471_v55 = vld [vmem:[#allocation9 + $0x20] sm:$0xff]  ;;  %v2783_v3 = vsel %vm1060_vm0, %v2778_v29, %v2782_v37 }
 0x3d5   : > { %v4237_v46 = vpop.f32.mrf.mxu3  ;;  %6558 = vmatpush.bf16.msra.mxu1 %v11471_v55  ;;  %v2788_v55 = vshll.u32 %v13495_v56, 16 }
 0x3d6   : > { %v14040_v16 = vadd.f32 %v4237_v46, %v13953_v23  ;;  %v20020_v46 = vld [vmem:[#allocation53_spill] sm:$0xff] }
 0x3d7   : > { %v2982_v41 = vpop.f32.mrf.mxu0 }
 0x3d8   : > { %v3144_v38 = vadd.f32 %v2982_v41, %v20018_v31  ;;  %v3459_v10 = vpop.f32.mrf.mxu1 }
 0x3da   : > { %v3611_v2 = vadd.f32 %v3449_v22, %v3144_v38  ;;  %v3851_v57 = vpop.f32.mrf.mxu2  ;;  %v3295_v22 = vrot.slane %v13525_v32, 1 }
 0x3dc   : > { %v14045_v62 = vadd.f32 %v3841_v36, %v3611_v2 }
 0x3dd   : > { %v4239_v23 = vpop.f32.mrf.mxu3  ;;  %3893 = vmatmul.bf16.gmra.mxu2 %v20021_v44 }
 0x3de   : > { %v14048_v42 = vadd.f32 %v4239_v23, %v13963_v40  ;;  %v3296_v40 = vsel %vm1699_vm1, %v3293_v43, %v3295_v22 }
 0x3df   : > { %v2985_v53 = vpop.f32.mrf.mxu0 }
 0x3e0   : > { %v3145_v52 = vadd.f32 %v2985_v53, %v20019_v58  ;;  %v3462_v36 = vpop.f32.mrf.mxu1  ;;  %v2790_v53 = vrot.slane %v2788_v55, 1 }
 0x3e2   : > { %v3612_v28 = vadd.f32 %v3452_v20, %v3145_v52  ;;  %3024 = vmatmul.bf16.gmra.mxu0 %v2783_v3  ;;  %4281 = vmatmul.bf16.gmra.mxu3 %v20020_v46  ;;  %v3854_v31 = vpop.f32.mrf.mxu2  ;;  %v2784_v20 = vshrl.u32 %v13468_v1, 16  ;;  %v20023_v46 = vld [vmem:[#allocation99_spill] sm:$0xff] }
 0x3e3   : > { %3501 = vmatmul.bf16.gmra.mxu1 %v3296_v40  ;;  %v20024_v40 = vld [vmem:[#allocation61_spill] sm:$0xff] }
 0x3e4   : > { %v14055_v41 = vadd.f32 %v3844_v30, %v3612_v28  ;;  %v2786_v23 = vor.u32 %v2784_v20, %v2782_v37 }
 0x3e5   : > { %v4242_v25 = vpop.f32.mrf.mxu3 }
 0x3e6   : > { %v14059_v48 = vadd.f32 %v4242_v25, %v13974_v6  ;;  %v2791_v28 = vsel %vm1060_vm0, %v2786_v23, %v2790_v53 }
 0x3e7   : > { %v2987_v38 = vpop.f32.mrf.mxu0 }
 0x3e8   : > { %v3146_v2 = vadd.f32 %v2987_v38, %v13462_v4  ;;  %v3464_v30 = vpop.f32.mrf.mxu1  ;;  %v3297_v4 = vrot.slane %v13559_v33, 1 }
 0x3ea   : > { %v3613_v29 = vadd.f32 %v3454_v9, %v3146_v2  ;;  %v3856_v6 = vpop.f32.mrf.mxu2  ;;  %v20025_v9 = vld [vmem:[#allocation20_spill] sm:$0xff]  ;;  %v2796_v2 = vshll.u32 %v13525_v32, 16 }
 0x3ec   : > { %v14064_v3 = vadd.f32 %v3846_v34, %v3613_v29 }
 0x3ed   : > { %v4244_v43 = vpop.f32.mrf.mxu3  ;;  %3898 = vmatmul.bf16.gmra.mxu2 %v20025_v9  ;;  %v20028_v9 = vld [vmem:[#allocation73_spill] sm:$0xff] }
 0x3ee   : > { %v14067_v58 = vadd.f32 %v4244_v43, %v13984_v12  ;;  %v3298_v12 = vsel %vm1699_vm1, %v3295_v22, %v3297_v4 }
 0x3ef   : > { %v2990_v52 = vpop.f32.mrf.mxu0 }
 0x3f0   : > { %20022 = vst [vmem:[#allocation217_spill] sm:$0xff] %v14067_v58  ;;  %v3147_v1 = vadd.f32 %v2990_v52, %v20023_v46  ;;  %v3467_v34 = vpop.f32.mrf.mxu1  ;;  %v2798_v52 = vrot.slane %v2796_v2, 1  ;;  %v2804_v2 = vshll.u32 %v13559_v33, 16 }
 0x3f2   : > { %v3614_v44 = vadd.f32 %v3457_v54, %v3147_v1  ;;  %3029 = vmatmul.bf16.gmra.mxu0 %v2791_v28  ;;  %4286 = vmatmul.bf16.gmra.mxu3 %v20024_v40  ;;  %v3859_v20 = vpop.f32.mrf.mxu2  ;;  %v2792_v54 = vshrl.u32 %v13495_v56, 16 }
 0x3f3   : > { %3506 = vmatmul.bf16.gmra.mxu1 %v3298_v12 }
 0x3f4   : > { %v14074_v37 = vadd.f32 %v3849_v5, %v3614_v44  ;;  %v2794_v43 = vor.u32 %v2792_v54, %v2790_v53  ;;  %v20030_v53 = vld [vmem:[#allocation30_spill] sm:$0xff] }
 0x3f5   : > { %v4247_v25 = vpop.f32.mrf.mxu3 }
 0x3f6   : > { %v14078_v38 = vadd.f32 %v4247_v25, %v13995_v14  ;;  %v2799_v44 = vsel %vm1060_vm0, %v2794_v43, %v2798_v52 }
 0x3f7   : > { %v2992_v55 = vpop.f32.mrf.mxu0 }
 0x3f8   : > { %20026 = vst [vmem:[#allocation135_spill] sm:$0xff] %v14078_v38  ;;  %v3148_v29 = vadd.f32 %v2992_v55, %v13489_v15  ;;  %v3469_v5 = vpop.f32.mrf.mxu1  ;;  %v20029_v15 = vld [vmem:[#allocation248_spill] sm:$0xff] }
 0x3fa   : > { %v3615_v23 = vadd.f32 %v3459_v10, %v3148_v29  ;;  %v3861_v14 = vpop.f32.mrf.mxu2  ;;  %v3299_v10 = vrot.slane %v20029_v15, 1  ;;  %v20032_v29 = vld [vmem:[#allocation102_spill] sm:$0xff] }
 0x3fc   : > { %v14083_v28 = vadd.f32 %v3851_v57, %v3615_v23 }
 0x3fd   : > { %v4249_v22 = vpop.f32.mrf.mxu3  ;;  %3903 = vmatmul.bf16.gmra.mxu2 %v20030_v53 }
 0x3fe   : > { %v14086_v46 = vadd.f32 %v4249_v22, %v14005_v49  ;;  %v3300_v49 = vsel %vm1699_vm1, %v3297_v4, %v3299_v10  ;;  %v11459_v22 = vld [vmem:[#allocation7 + $0x200] sm:$0xff] }
 0x3ff   : > { %v2995_v1 = vpop.f32.mrf.mxu0  ;;  %4594 = vmatpush.bf16.msrb.mxu0 %v11459_v22 }
 0x400   : > { %20027 = vst [vmem:[#allocation195_spill] sm:$0xff] %v14086_v46  ;;  %v3149_v56 = vadd.f32 %v2995_v1, %v13511_v50  ;;  %v3472_v57 = vpop.f32.mrf.mxu1  ;;  %v2806_v1 = vrot.slane %v2804_v2, 1  ;;  %v20038_v2 = vld [vmem:[#allocation85_spill] sm:$0xff] }
 0x402   : > { %v3616_v40 = vadd.f32 %v3462_v36, %v3149_v56  ;;  %3034 = vmatmul.bf16.gmra.mxu0 %v2799_v44  ;;  %4291 = vmatmul.bf16.gmra.mxu3 %v20028_v9  ;;  %v14099_v54 = vpop.f32.mrf.mxu2  ;;  %v2800_v36 = vshrl.u32 %v13525_v32, 16 }
 0x403   : > { %3511 = vmatmul.bf16.gmra.mxu1 %v3300_v49  ;;  %v20035_v49 = vld [vmem:[#allocation208_spill] sm:$0xff] }
 0x404   : > { %v14093_v12 = vadd.f32 %v3854_v31, %v3616_v40  ;;  %v2802_v31 = vor.u32 %v2800_v36, %v2798_v52 }
 0x405   : > { %v4252_v25 = vpop.f32.mrf.mxu3 }
 0x406   : > { %v14097_v55 = vadd.f32 %v4252_v25, %v14016_v27  ;;  %v11478_v27 = vld [vmem:[#allocation9 + $0x58] sm:$0xff]  ;;  %v2807_v53 = vsel %vm1060_vm0, %v2802_v31, %v2806_v1 }
 0x407   : > { %v2997_v50 = vpop.f32.mrf.mxu0  ;;  %7024 = vmatpush.bf16.msra.mxu2 %v11478_v27  ;;  %v20037_v25 = vld [vmem:[#allocation115_spill] sm:$0xff] }
 0x408   : > { %20031 = vst [vmem:[#allocation220_spill] sm:$0xff] %v14097_v55  ;;  %v3150_v23 = vadd.f32 %v2997_v50, %v20032_v29  ;;  %v14104_v44 = vpop.f32.mrf.mxu1 }
 0x40a   : > { %v3617_v43 = vadd.f32 %v3464_v30, %v3150_v23  ;;  %v14111_v9 = vpop.f32.mrf.mxu2  ;;  %v20034_v30 = vld [vmem:[#allocation125_spill] sm:$0xff] }
 0x40b   : > { %v14116_v52 = vpack.c.b16 %v20035_v49, %v20034_v30  ;;  %v11955_v30 = vld [vmem:[%s12302_s18 + $0xe8] sm:$0xff]  }
 0x40c   : > { %v14106_v4 = vadd.f32 %v3856_v6, %v3617_v43  ;;  %v11470_v6 = vld [vmem:[#allocation9 + $0x18] sm:$0xff]  ;;  %v11658_v49 = vunpack.c.h.bf16 %v11955_v30  ;;  %v20043_v30 = vld [vmem:[#allocation128_spill] sm:$0xff] }
 0x40d   : > { %v4254_v56 = vpop.f32.mrf.mxu3  ;;  %20036 = vst [vmem:[#allocation151_spill] sm:$0xff] %v14116_v52  ;;  %3908 = vmatmul.bf16.gmra.mxu2 %v14116_v52  ;;  %6559 = vmatpush.bf16.msra.mxu1 %v11470_v6 }
 0x40e   : > { %v14109_v40 = vadd.f32 %v4254_v56, %v14026_v26  ;;  %v20039_v26 = vld [vmem:[#allocation183_spill] sm:$0xff] }
 0x40f   : > { %v3000_v32 = vpop.f32.mrf.mxu0  ;;  %v3301_v29 = vrot.slane %v20039_v26, 1 }
 0x410   : > { %20033 = vst [vmem:[#allocation139_spill] sm:$0xff] %v14109_v40  ;;  %v3151_v50 = vadd.f32 %v3000_v32, %v20037_v25  ;;  %v14122_v23 = vpop.f32.mrf.mxu1  ;;  %v2808_v32 = vshrl.u32 %v13559_v33, 16  ;;  %v20041_v25 = vld [vmem:[#allocation120_spill] sm:$0xff] }
 0x411   : > { %v3302_v22 = vsel %vm1699_vm1, %v3299_v10, %v3301_v29 }
 0x412   : > { %v3618_v36 = vadd.f32 %v3467_v34, %v3151_v50  ;;  %3039 = vmatmul.bf16.gmra.mxu0 %v2807_v53  ;;  %4296 = vmatmul.bf16.gmra.mxu3 %v20038_v2  ;;  %v14130_v34 = vpop.f32.mrf.mxu2  ;;  %v2812_v53 = vshll.u32 %v20029_v15, 16 }
 0x413   : > { %3516 = vmatmul.bf16.gmra.mxu1 %v3302_v22 }
 0x414   : > { %v14124_v43 = vadd.f32 %v3859_v20, %v3618_v36  ;;  %v536_v20 = vmax.f32 %v11658_v49, 0.0  ;;  %v2810_v36 = vor.u32 %v2808_v32, %v2806_v1  ;;  %v2814_v10 = vrot.slane %v2812_v53, 1  ;;  %v20045_v1 = vld [vmem:[#allocation246_spill] sm:$0xff] }
 0x415   : > { %v4257_v31 = vpop.f32.mrf.mxu3  ;;  %v20047_v49 = vld [vmem:[#allocation170_spill] sm:$0xff] }
 0x416   : > { %v14128_v27 = vadd.f32 %v4257_v31, %v14036_v11  ;;  %v599_v11 = vpack.c.bf16 %v536_v20, %v536_v20 }
 0x417   : > { %v3002_v56 = vpop.f32.mrf.mxu0 }
 0x418   : > { %20040 = vst [vmem:[#allocation46_spill] sm:$0xff] %v14128_v27  ;;  %v3152_v50 = vadd.f32 %v3002_v56, %v20041_v25  ;;  %v14136_v2 = vpop.f32.mrf.mxu1  ;;  %v2610_v22 = vunpack.c.l.b16 %v599_v11  ;;  %v2815_v56 = vsel %vm1060_vm0, %v2810_v36, %v2814_v10  ;;  %v3303_v25 = vrot.slane %v20047_v49, 1 }
 0x419   : > { %v2816_v11 = vshrl.u32 %v20029_v15, 16 }
 0x41a   : > { %v3619_v6 = vadd.f32 %v3469_v5, %v3152_v50  ;;  %v14143_v33 = vpop.f32.mrf.mxu2  ;;  %v14147_v5 = vpack.c.b16 %v2610_v22, %v20043_v30  ;;  %v3304_v50 = vsel %vm1699_vm1, %v3301_v29, %v3303_v25 }
 0x41b   : > { %v2818_v29 = vor.u32 %v2816_v11, %v2814_v10  ;;  %v2611_v11 = vpack.c.b16 %v2610_v22, %v2610_v22 }
 0x41c   : > { %v14138_v31 = vadd.f32 %v3861_v14, %v3619_v6  ;;  %20044 = vst [vmem:[#allocation197_spill] sm:$0xff] %v14147_v5  ;;  %v20046_v14 = vld [vmem:[#allocation97_spill] sm:$0xff] }
 0x41d   : > { %v4259_v27 = vpop.f32.mrf.mxu3  ;;  %3913 = vmatmul.bf16.gmra.mxu2 %v14147_v5 }
 0x41e   : > { %v14141_v40 = vadd.f32 %v4259_v27, %v14045_v62 }
 0x41f   : > { %v3005_v55 = vpop.f32.mrf.mxu0 }
 0x420   : > { %20042 = vst [vmem:[#allocation180_spill] sm:$0xff] %v14141_v40  ;;  %v3153_v32 = vadd.f32 %v3005_v55, %v20045_v1  ;;  %v3482_v62 = vpop.f32.mrf.mxu1 }
 0x422   : > { %v3620_v53 = vadd.f32 %v3472_v57, %v3153_v32  ;;  %3044 = vmatmul.bf16.gmra.mxu0 %v2815_v56  ;;  %4301 = vmatmul.bf16.gmra.mxu3 %v20046_v14  ;;  %v3874_v36 = vpop.f32.mrf.mxu2  ;;  %v11812_v57 = vld [vmem:[%s12302_s18 + $0xf0] sm:$0xff]   ;;  %v2820_v56 = vshll.u32 %v20039_v26, 16  ;;  %v20049_v32 = vld [vmem:[#allocation247_spill] sm:$0xff] }
 0x423   : > { %3521 = vmatmul.bf16.gmra.mxu1 %v3304_v50  ;;  %v11661_v30 = vunpack.c.l.bf16 %v11812_v57  ;;  %v11662_v1 = vunpack.c.h.bf16 %v11812_v57 }
 0x424   : > { %v14154_v27 = vadd.f32 %v14099_v54, %v3620_v53  ;;  %v2822_v40 = vrot.slane %v2820_v56, 1 }
 0x425   : > { %v4262_v20 = vpop.f32.mrf.mxu3  ;;  %v537_v54 = vmax.f32 %v11661_v30, 0.0  ;;  %v538_v53 = vmax.f32 %v11662_v1, 0.0  ;;  %v20052_v30 = vld [vmem:[#allocation122_spill] sm:$0xff]  ;;  %v20053_v1 = vld [vmem:[#allocation109_spill] sm:$0xff] }
 0x426   : > { %v14158_v6 = vadd.f32 %v4262_v20, %v14055_v41 }
 0x427   : > { %v3007_v55 = vpop.f32.mrf.mxu0  ;;  %v600_v41 = vpack.c.bf16 %v537_v54, %v537_v54  ;;  %v601_v20 = vpack.c.bf16 %v538_v53, %v538_v53  ;;  %v3305_v54 = vrot.slane %v2611_v11, 1 }
 0x428   : > { %20048 = vst [vmem:[#allocation154_spill] sm:$0xff] %v14158_v6  ;;  %v14164_v14 = vadd.f32 %v3007_v55, %v20049_v32  ;;  %v14166_v46 = vpop.f32.mrf.mxu1  ;;  %v2823_v55 = vsel %vm1060_vm0, %v2818_v29, %v2822_v40 }
 0x429   : > { %v3719_v6 = vunpack.c.l.b16 %v600_v41  ;;  %v3720_v38 = vunpack.c.l.b16 %v601_v20  ;;  %v3306_v41 = vsel %vm1699_vm1, %v3303_v25, %v3305_v54  ;;  %v2828_v20 = vshll.u32 %v20047_v49, 16  ;;  %v20057_v54 = vld [vmem:[#allocation25_spill] sm:$0xff] }
 0x42a   : > { %v14171_v58 = vpop.f32.mrf.mxu2 }
 0x42b   : > { %v14174_v32 = vpack.c.b16 %v3720_v38, %v3719_v6 }
 0x42d   : > { %v4264_v50 = vpop.f32.mrf.mxu3  ;;  %20051 = vst [vmem:[#allocation223_spill] sm:$0xff] %v14174_v32  ;;  %3918 = vmatmul.bf16.gmra.mxu2 %v14174_v32 }
 0x42e   : > { %v14169_v15 = vadd.f32 %v4264_v50, %v14064_v3  ;;  %v20055_v50 = vld [vmem:[#allocation134_spill] sm:$0xff] }
 0x42f   : > { %v3010_v57 = vpop.f32.mrf.mxu0 }
 0x430   : > { %20050 = vst [vmem:[#allocation155_spill] sm:$0xff] %v14169_v15  ;;  %v3155_v10 = vadd.f32 %v3010_v57, %v20052_v30  ;;  %v3487_v3 = vpop.f32.mrf.mxu1  ;;  %v2830_v30 = vrot.slane %v2828_v20, 1  ;;  %v20074_v15 = vld [vmem:[#allocation211_spill] sm:$0xff] }
 0x432   : > { %v3622_v56 = vadd.f32 %v14122_v23, %v3155_v10  ;;  %3049 = vmatmul.bf16.gmra.mxu0 %v2823_v55  ;;  %4306 = vmatmul.bf16.gmra.mxu3 %v20053_v1  ;;  %v3879_v6 = vpop.f32.mrf.mxu2  ;;  %v2824_v23 = vshrl.u32 %v20039_v26, 16 }
 0x433   : > { %3526 = vmatmul.bf16.gmra.mxu1 %v3306_v41 }
 0x434   : > { %v14181_v53 = vadd.f32 %v14130_v34, %v3622_v56  ;;  %v2826_v55 = vor.u32 %v2824_v23, %v2822_v40  ;;  %v11477_v23 = vld [vmem:[#allocation9 + $0x50] sm:$0xff] }
 0x435   : > { %v4267_v29 = vpop.f32.mrf.mxu3  ;;  %7025 = vmatpush.bf16.msra.mxu2 %v11477_v23 }
 0x436   : > { %v14185_v38 = vadd.f32 %v4267_v29, %v14074_v37  ;;  %v2831_v1 = vsel %vm1060_vm0, %v2826_v55, %v2830_v30  ;;  %v20058_v29 = vld [vmem:[#allocation118_spill] sm:$0xff]  ;;  %v2836_v55 = vshll.u32 %v2611_v11, 16 }
 0x437   : > { %v3012_v22 = vpop.f32.mrf.mxu0 }
 0x438   : > { %20054 = vst [vmem:[#allocation142_spill] sm:$0xff] %v14185_v38  ;;  %v14190_v57 = vadd.f32 %v3012_v22, %v20055_v50  ;;  %v14192_v34 = vpop.f32.mrf.mxu1  ;;  %v20060_v38 = vld [vmem:[#allocation137_spill] sm:$0xff] }
 0x43a   : > { %v14197_v37 = vpop.f32.mrf.mxu2 }
 0x43d   : > { %v4269_v10 = vpop.f32.mrf.mxu3 }
 0x43e   : > { %v14195_v25 = vadd.f32 %v4269_v10, %v14083_v28 }
 0x43f   : > { %v3015_v56 = vpop.f32.mrf.mxu0 }
 0x440   : > { %20056 = vst [vmem:[#allocation200_spill] sm:$0xff] %v14195_v25  ;;  %v3157_v26 = vadd.f32 %v3015_v56, %v20057_v54  ;;  %v3492_v22 = vpop.f32.mrf.mxu1  ;;  %v2832_v25 = vshrl.u32 %v20047_v49, 16  ;;  %v2838_v54 = vrot.slane %v2836_v55, 1  ;;  %v20063_v49 = vld [vmem:[#allocation187_spill] sm:$0xff] }
 0x442   : > { %v3624_v41 = vadd.f32 %v3482_v62, %v3157_v26  ;;  %3054 = vmatmul.bf16.gmra.mxu0 %v2831_v1  ;;  %4311 = vmatmul.bf16.gmra.mxu3 %v20058_v29  ;;  %v3884_v28 = vpop.f32.mrf.mxu2  ;;  %v11469_v62 = vld [vmem:[#allocation9 + $0x10] sm:$0xff]  ;;  %v2834_v1 = vor.u32 %v2832_v25, %v2830_v30 }
 0x443   : > { %6560 = vmatpush.bf16.msra.mxu1 %v11469_v62 }
 0x444   : > { %v14202_v40 = vadd.f32 %v3874_v36, %v3624_v41  ;;  %v2839_v23 = vsel %vm1060_vm0, %v2834_v1, %v2838_v54 }
 0x445   : > { %v4272_v20 = vpop.f32.mrf.mxu3 }
 0x446   : > { %v14205_v50 = vadd.f32 %v4272_v20, %v14093_v12 }
 0x447   : > { %v3017_v10 = vpop.f32.mrf.mxu0 }
 0x448   : > { %20059 = vst [vmem:[#allocation226_spill] sm:$0xff] %v14205_v50  ;;  %v14209_v56 = vadd.f32 %v3017_v10, %v20060_v38  ;;  %v14211_v36 = vpop.f32.mrf.mxu1  ;;  %v20064_v38 = vld [vmem:[#allocation124_spill] sm:$0xff] }
 0x44a   : > { %v14216_v12 = vpop.f32.mrf.mxu2 }
 0x44b   : > { %20062 = vst [vmem:[#allocation158_spill] sm:$0xff] %v14216_v12  ;;  %v11468_v12 = vld [vmem:[#allocation9 + $0x8] sm:$0xff] }
 0x44c   : > { %6561 = vmatpush.bf16.msra.mxu1 %v11468_v12 }
 0x44d   : > { %v4274_v26 = vpop.f32.mrf.mxu3 }
 0x44e   : > { %v14214_v41 = vadd.f32 %v4274_v26, %v14106_v4  ;;  %v4113_v26 = vshll.u32 %v14116_v52, 16 }
 0x44f   : > { %v3020_v29 = vpop.f32.mrf.mxu0 }
 0x450   : > { %20061 = vst [vmem:[#allocation146_spill] sm:$0xff] %v14214_v41  ;;  %v3159_v11 = vadd.f32 %v3020_v29, %v20063_v49  ;;  %v3497_v10 = vpop.f32.mrf.mxu1  ;;  %v20066_v41 = vld [vmem:[#allocation140_spill] sm:$0xff]  ;;  %v4115_v1 = vrot.slane %v4113_v26, 1  ;;  %v20070_v49 = vld [vmem:[#allocation129_spill] sm:$0xff] }
 0x452   : > { %v3626_v20 = vadd.f32 %v3487_v3, %v3159_v11  ;;  %3059 = vmatmul.bf16.gmra.mxu0 %v2839_v23  ;;  %4316 = vmatmul.bf16.gmra.mxu3 %v20064_v38  ;;  %v3889_v4 = vpop.f32.mrf.mxu2  ;;  %v20071_v11 = vld [vmem:[#allocation141_spill] sm:$0xff] }
 0x454   : > { %v14221_v30 = vadd.f32 %v3879_v6, %v3626_v20 }
 0x455   : > { %v4277_v25 = vpop.f32.mrf.mxu3 }
 0x456   : > { %v14224_v55 = vadd.f32 %v4277_v25, %v14124_v43  ;;  %v4116_v43 = vsel %vm1060_vm0, %v20070_v49, %v4115_v1  ;;  %v20072_v25 = vld [vmem:[#allocation227_spill] sm:$0xff]  ;;  %v4121_v49 = vshll.u32 %v14147_v5, 16 }
 0x457   : > { %v3022_v62 = vpop.f32.mrf.mxu0 }
 0x458   : > { %20065 = vst [vmem:[#allocation54_spill] sm:$0xff] %v14224_v55  ;;  %v14228_v50 = vadd.f32 %v3022_v62, %v20066_v41  ;;  %v14230_v54 = vpop.f32.mrf.mxu1  ;;  %v4117_v55 = vshrl.u32 %v14116_v52, 16 }
 0x459   : > { %20067 = vst [vmem:[#allocation182_spill] sm:$0xff] %v14230_v54  ;;  %v20085_v54 = vld [vmem:[#allocation214_spill] sm:$0xff] }
 0x45a   : > { %v14235_v6 = vpop.f32.mrf.mxu2 }
 0x45b   : > { %20069 = vst [vmem:[#allocation161_spill] sm:$0xff] %v14235_v6  ;;  %v20079_v6 = vld [vmem:[#allocation233_spill] sm:$0xff] }
 0x45d   : > { %v4279_v3 = vpop.f32.mrf.mxu3 }
 0x45e   : > { %v14233_v29 = vadd.f32 %v4279_v3, %v14138_v31 }
 0x45f   : > { %v3025_v23 = vpop.f32.mrf.mxu0 }
 0x460   : > { %20068 = vst [vmem:[#allocation202_spill] sm:$0xff] %v14233_v29  ;;  %v3161_v20 = vadd.f32 %v3025_v23, %v20071_v11  ;;  %v3502_v41 = vpop.f32.mrf.mxu1 }
 0x462   : > { %v3628_v38 = vadd.f32 %v3492_v22, %v3161_v20  ;;  %4321 = vmatmul.bf16.gmra.mxu3 %v4116_v43  ;;  %4595 = vmatmul.bf16.vlgmr.msrb.gmra.mxu0 %v20072_v25  ;;  %v3894_v3 = vpop.f32.mrf.mxu2  ;;  %v4119_v22 = vor.u32 %v4117_v55, %v4115_v1  ;;  %v4123_v43 = vrot.slane %v4121_v49, 1  ;;  %v20078_v25 = vld [vmem:[#allocation130_spill] sm:$0xff] }
 0x464   : > { %v14241_v62 = vadd.f32 %v3884_v28, %v3628_v38 }
 0x465   : > { %v4282_v26 = vpop.f32.mrf.mxu3 }
 0x466   : > { %v14244_v31 = vadd.f32 %v4282_v26, %v14154_v27  ;;  %v4124_v27 = vsel %vm1060_vm0, %v4119_v22, %v4123_v43  ;;  %v4129_v22 = vshll.u32 %v14174_v32, 16 }
 0x467   : > { %v3027_v29 = vpop.f32.mrf.mxu0 }
 0x468   : > { %20073 = vst [vmem:[#allocation162_spill] sm:$0xff] %v14244_v31  ;;  %v14249_v23 = vadd.f32 %v3027_v29, %v20074_v15  ;;  %v14251_v11 = vpop.f32.mrf.mxu1  ;;  %v413_v31 = vld [vmem:[%s12302_s18 + $0xf8] sm:$0xf] }
 0x469   : > { %20075 = vst [vmem:[#allocation103_spill] sm:$0xff] %v14251_v11  ;;  %v476_v29 = vunpack.c.l.bf16 %v413_v31 }
 0x46a   : > { %v14255_v20 = vpop.f32.mrf.mxu2 }
 0x46b   : > { %20077 = vst [vmem:[#allocation205_spill] sm:$0xff] %v14255_v20 }
 0x46d   : > { %v14253_v28 = vpop.f32.mrf.mxu3 }
 0x46e   : > { %20076 = vst [vmem:[#allocation149_spill] sm:$0xff] %v14253_v28  ;;  %v4125_v28 = vshrl.u32 %v14147_v5, 16 }
 0x46f   : > { %v3030_v38 = vpop.f32.mrf.mxu0 }
 0x470   : > { %v3163_v26 = vadd.f32 %v3030_v38, %v20078_v25  ;;  %v3507_v15 = vpop.f32.mrf.mxu1  ;;  %v539_v38 = vmax.f32 %v476_v29, 0.0  ;;  %v20081_v25 = vld [vmem:[#allocation190_spill] sm:$0xff] }
 0x472   : > { %v3630_v52 = vadd.f32 %v3497_v10, %v3163_v26  ;;  %4326 = vmatmul.bf16.gmra.mxu3 %v4124_v27  ;;  %4600 = vmatmul.bf16.gmra.mxu0 %v20079_v6  ;;  %v3899_v11 = vpop.f32.mrf.mxu2  ;;  %v4127_v27 = vor.u32 %v4125_v28, %v4123_v43  ;;  %v4131_v6 = vrot.slane %v4129_v22, 1  ;;  %v602_v26 = vpack.c.bf16 %v539_v38, %v539_v38  ;;  %v20086_v43 = vld [vmem:[#allocation237_spill] sm:$0xff] }
 0x474   : > { %v14261_v55 = vadd.f32 %v3889_v4, %v3630_v52  ;;  %v11476_v52 = vld [vmem:[#allocation9 + $0x48] sm:$0xff]  ;;  %v4110_v5 = vunpack.c.l.b16 %v602_v26  ;;  %v4133_v26 = vshrl.u32 %v14174_v32, 16  ;;  %v20095_v32 = vld [vmem:[#allocation242_spill] sm:$0xff] }
 0x475   : > { %v4287_v1 = vpop.f32.mrf.mxu3  ;;  %7026 = vmatpush.bf16.msra.mxu2 %v11476_v52 }
 0x476   : > { %v14264_v49 = vadd.f32 %v4287_v1, %v14181_v53  ;;  %v14280_v28 = vpack.c.b16 %v4110_v5, %v4110_v5 }
 0x477   : > { %v3032_v20 = vpop.f32.mrf.mxu0 }
 0x478   : > { %20080 = vst [vmem:[#allocation232_spill] sm:$0xff] %v14264_v49  ;;  %v14269_v10 = vadd.f32 %v3032_v20, %v20081_v25  ;;  %v14271_v31 = vpop.f32.mrf.mxu1  ;;  %v4132_v49 = vsel %vm1060_vm0, %v4127_v27, %v4131_v6 }
 0x479   : > { %20082 = vst [vmem:[#allocation153_spill] sm:$0xff] %v14271_v31 }
 0x47a   : > { %v14275_v53 = vpop.f32.mrf.mxu2  ;;  %20087 = vst [vmem:[#allocation189_spill] sm:$0xff] %v14280_v28 }
 0x47b   : > { %20084 = vst [vmem:[#allocation62_spill] sm:$0xff] %v14275_v53 }
 0x47d   : > { %v14273_v4 = vpop.f32.mrf.mxu3 }
 0x47e   : > { %20083 = vst [vmem:[#allocation164_spill] sm:$0xff] %v14273_v4 }
 0x47f   : > { %v3035_v1 = vpop.f32.mrf.mxu0 }
 0x480   : > { %v3165_v29 = vadd.f32 %v3035_v1, %v20085_v54  ;;  %v3512_v22 = vpop.f32.mrf.mxu1  ;;  %v4137_v54 = vshll.u32 %v14280_v28, 16  ;;  %v4135_v1 = vor.u32 %v4133_v26, %v4131_v6 }
 0x482   : > { %v3632_v20 = vadd.f32 %v3502_v41, %v3165_v29  ;;  %4331 = vmatmul.bf16.gmra.mxu3 %v4132_v49  ;;  %4605 = vmatmul.bf16.gmra.mxu0 %v20086_v43  ;;  %v3904_v53 = vpop.f32.mrf.mxu2  ;;  %v20089_v41 = vld [vmem:[#allocation133_spill] sm:$0xff]  ;;  %v4139_v5 = vrot.slane %v4137_v54, 1  ;;  %v20094_v43 = vld [vmem:[#allocation144_spill] sm:$0xff] }
 0x484   : > { %v14282_v38 = vadd.f32 %v3894_v3, %v3632_v20 }
 0x485   : > { %v4292_v25 = vpop.f32.mrf.mxu3 }
 0x486   : > { %v14285_v52 = vadd.f32 %v4292_v25, %v14202_v40  ;;  %v4140_v40 = vsel %vm1060_vm0, %v4135_v1, %v4139_v5 }
 0x487   : > { %v3037_v27 = vpop.f32.mrf.mxu0 }
 0x488   : > { %20088 = vst [vmem:[#allocation207_spill] sm:$0xff] %v14285_v52  ;;  %v14290_v49 = vadd.f32 %v3037_v27, %v20089_v41  ;;  %v14292_v29 = vpop.f32.mrf.mxu1 }
 0x489   : > { %20091 = vst [vmem:[#allocation168_spill] sm:$0xff] %v14292_v29  ;;  %v20097_v29 = vld [vmem:[#allocation177_spill] sm:$0xff] }
 0x48a   : > { %20090 = vst [vmem:[#allocation167_spill] sm:$0xff] %v14290_v49  ;;  %v14296_v3 = vpop.f32.mrf.mxu2  ;;  %v20125_v49 = vmov 0  }
 0x48b   : > { %20093 = vst [vmem:[#allocation156_spill] sm:$0xff] %v14296_v3 }
 0x48d   : > { %v14294_v12 = vpop.f32.mrf.mxu3 }
 0x48e   : > { %20092 = vst [vmem:[#allocation235_spill] sm:$0xff] %v14294_v12 }
 0x48f   : > { %v3040_v20 = vpop.f32.mrf.mxu0 }
 0x490   : > { %v3167_v25 = vadd.f32 %v3040_v20, %v20094_v43  ;;  %v3517_v28 = vpop.f32.mrf.mxu1 }
 0x492   : > { %v3634_v52 = vadd.f32 %v3507_v15, %v3167_v25  ;;  %4336 = vmatmul.bf16.gmra.mxu3 %v4140_v40  ;;  %4610 = vmatmul.bf16.gmra.mxu0 %v20095_v32  ;;  %v3909_v54 = vpop.f32.mrf.mxu2  ;;  %v20102_v32 = vld [vmem:[#allocation192_spill] sm:$0xff] }
 0x494   : > { %v14301_v27 = vadd.f32 %v3899_v11, %v3634_v52  ;;  %v20103_v52 = vld [vmem:[#allocation244_spill] sm:$0xff] }
 0x495   : > { %v4297_v6 = vpop.f32.mrf.mxu3 }
 0x496   : > { %v14304_v26 = vadd.f32 %v4297_v6, %v14221_v30  ;;  %v11490_v6 = vld [vmem:[#allocation9 + $0xb8] sm:$0xff] }
 0x497   : > { %v3042_v41 = vpop.f32.mrf.mxu0  ;;  %7431 = vmatpush.bf16.msra.mxu3 %v11490_v6 }
 0x498   : > { %20096 = vst [vmem:[#allocation209_spill] sm:$0xff] %v14304_v26  ;;  %v14307_v3 = vadd.f32 %v3042_v41, %v20097_v29  ;;  %v14309_v31 = vpop.f32.mrf.mxu1 }
 0x499   : > { %20099 = vst [vmem:[#allocation171_spill] sm:$0xff] %v14309_v31 }
 0x49a   : > { %20098 = vst [vmem:[#allocation160_spill] sm:$0xff] %v14307_v3  ;;  %v14313_v15 = vpop.f32.mrf.mxu2 }
 0x49b   : > { %20101 = vst [vmem:[#allocation194_spill] sm:$0xff] %v14313_v15 }
 0x49d   : > { %v14311_v1 = vpop.f32.mrf.mxu3 }
 0x49e   : > { %20100 = vst [vmem:[#allocation74_spill] sm:$0xff] %v14311_v1 }
 0x49f   : > { %v3045_v5 = vpop.f32.mrf.mxu0 }
 0x4a0   : > { %v3169_v20 = vadd.f32 %v3045_v5, %v20102_v32  ;;  %v3522_v40 = vpop.f32.mrf.mxu1 }
 0x4a2   : > { %v3636_v11 = vadd.f32 %v3512_v22, %v3169_v20  ;;  %4615 = vmatmul.bf16.gmra.mxu0 %v20103_v52  ;;  %v3914_v29 = vpop.f32.mrf.mxu2 }
 0x4a4   : > { %v14317_v30 = vadd.f32 %v3904_v53, %v3636_v11  ;;  %v20109_v11 = vld [vmem:[#allocation89_spill] sm:$0xff] }
 0x4a5   : > { %v4302_v43 = vpop.f32.mrf.mxu3 }
 0x4a6   : > { %v14320_v25 = vadd.f32 %v4302_v43, %v14241_v62  ;;  %v11475_v43 = vld [vmem:[#allocation9 + $0x40] sm:$0xff] }
 0x4a7   : > { %v3047_v41 = vpop.f32.mrf.mxu0  ;;  %7027 = vmatpush.bf16.msra.mxu2 %v11475_v43 }
 0x4a8   : > { %20104 = vst [vmem:[#allocation75_spill] sm:$0xff] %v14320_v25  ;;  %v14323_v31 = vadd.f32 %v3047_v41, %v13806_v8  ;;  %v14325_v15 = vpop.f32.mrf.mxu1 }
 0x4a9   : > { %20106 = vst [vmem:[#allocation174_spill] sm:$0xff] %v14325_v15  ;;  %v11467_v15 = vld [vmem:[#allocation9] sm:$0xff] }
 0x4aa   : > { %20105 = vst [vmem:[#allocation212_spill] sm:$0xff] %v14323_v31  ;;  %v14329_v22 = vpop.f32.mrf.mxu2  ;;  %v5132_v31 = vlaneseq  ;;  %6562 = vmatpush.bf16.msra.mxu1 %v11467_v15 }
 0x4ab   : > { %20108 = vst [vmem:[#allocation163_spill] sm:$0xff] %v14329_v22  ;;  %v20111_v22 = vld [vmem:[#allocation147_spill] sm:$0xff] }
 0x4ad   : > { %v14327_v5 = vpop.f32.mrf.mxu3 }
 0x4ae   : > { %20107 = vst [vmem:[#allocation175_spill] sm:$0xff] %v14327_v5 }
 0x4af   : > { %v3050_v32 = vpop.f32.mrf.mxu0 }
 0x4b0   : > { %v3171_v53 = vadd.f32 %v3050_v32, %v13824_v0  ;;  %v3527_v62 = vpop.f32.mrf.mxu1  ;;  %v14341_v0 = vshrl.u32 %v5132_v31, 7 }
 0x4b2   : > { %v3638_v20 = vadd.f32 %v3517_v28, %v3171_v53  ;;  %4620 = vmatmul.bf16.gmra.mxu0 %v20109_v11  ;;  %v3919_v6 = vpop.f32.mrf.mxu2  ;;  %20113 = vst [vmem:[#allocation241_spill] sm:$0xff] %v14341_v0 }
 0x4b4   : > { %v14333_v52 = vadd.f32 %v3909_v54, %v3638_v20  ;;  %v5188_v20 = vcvt.s32.f32 %v14341_v0 }
 0x4b5   : > { %v4307_v25 = vpop.f32.mrf.mxu3 }
 0x4b6   : > { %v14336_v8 = vadd.f32 %v4307_v25, %v14261_v55  ;;  %v5134_v55 = vadd.s32 8, %v14341_v0  ;;  %v20115_v25 = vld [vmem:[#allocation148_spill] sm:$0xff]  ;;  %v5243_v5 = vadd.f32 0.5, %v5188_v20 }
 0x4b7   : > { %v3052_v41 = vpop.f32.mrf.mxu0 }
 0x4b8   : > { %20110 = vst [vmem:[#allocation215_spill] sm:$0xff] %v14336_v8  ;;  %v14339_v26 = vadd.f32 %v3052_v41, %v20111_v22  ;;  %v3529_v28 = vpop.f32.mrf.mxu1  ;;  %v20116_v8 = vld [vmem:[#allocation105_spill] sm:$0xff]  ;;  %v5189_v22 = vcvt.s32.f32 %v5134_v55 }
 0x4ba   : > { %20112 = vst [vmem:[#allocation186_spill] sm:$0xff] %v14339_v26  ;;  %v3921_v54 = vpop.f32.mrf.mxu2  ;;  %v5244_v26 = vadd.f32 0.5, %v5189_v22 }
 0x4bb   : > { %v5298_v54 = vmul.f32 0.041666668, %v5243_v5 }
 0x4bc   : > { %v5299_v3 = vmul.f32 0.041666668, %v5244_v26 }
 0x4bd   : > { %v14343_v32 = vpop.f32.mrf.mxu3  ;;  %v5353_v1 = vfloor.f32 %v5298_v54 }
 0x4be   : > { %20114 = vst [vmem:[#allocation166_spill] sm:$0xff] %v14343_v32 }
 0x4bf   : > { %v3055_v53 = vpop.f32.mrf.mxu0  ;;  %v5408_v55 = vmul.f32 24.0, %v5353_v1  ;;  %vm5962_vm13 = vcmp.lt.f32.partialorder %v5353_v1, 17.5 }
 0x4c0   : > { %v3173_v11 = vadd.f32 %v3055_v53, %v20115_v25  ;;  %v14362_v25 = vfloor.f32 %v5299_v3 }
 0x4c2   : > { %v3640_v43 = vadd.f32 %v3522_v40, %v3173_v11  ;;  %4625 = vmatmul.bf16.gmra.mxu0 %v20116_v8  ;;  %v14360_v40 = vadd.s32 16, %v14341_v0  ;;  %v11489_v8 = vld [vmem:[#allocation9 + $0xb0] sm:$0xff]  ;;  %v5522_v11 = vadd.f32 -1.0, %v5353_v1  ;;  %v5409_v54 = vmul.f32 24.0, %v14362_v25  ;;  %v14406_v1 = vld [vmem:[%s19077_s3] ss:$0 sm:$0xff] }
 0x4c3   : > { %7432 = vmatpush.bf16.msra.mxu3 %v11489_v8 }
 0x4c4   : > { %v14349_v41 = vadd.f32 %v3914_v29, %v3640_v43  ;;  %v20120_v43 = vld [vmem:[#allocation111_spill] sm:$0xff]  ;;  %vm5577_vm2 = vcmp.ge.f32.partialorder %v5522_v11, 0.0  ;;  %vm5632_vm3 = vcmp.lt.f32.partialorder %v5522_v11, 16.0 }
 0x4c5   : > { %v4312_v31 = vpop.f32.mrf.mxu3  ;;  %vm5687_vm4 = vmand %vm5577_vm2, %vm5632_vm3 }
 0x4c6   : > { %v14352_v15 = vadd.f32 %v4312_v31, %v14282_v38  ;;  %v14365_v38 = vadd.s32 24, %v14341_v0  ;;  %v11488_v31 = vld [vmem:[#allocation9 + $0xa8] sm:$0xff] }
 0x4c7   : > { %v3057_v28 = vpop.f32.mrf.mxu0  ;;  %7433 = vmatpush.bf16.msra.mxu3 %v11488_v31 }
 0x4c8   : > { %20117 = vst [vmem:[#allocation86_spill] sm:$0xff] %v14352_v15  ;;  %v14355_v32 = vadd.f32 %v3057_v28, %v13864_v18  ;;  %v19351_v18 = vcvt.s32.f32 %v14360_v40  ;;  %v5463_v28 = vsub.f32 %v5188_v20, %v5408_v55  ;;  %v14381_v20 = vadd.s32 32, %v14341_v0 }
 0x4ca   : > { %20118 = vst [vmem:[#allocation199_spill] sm:$0xff] %v14355_v32  ;;  %v19350_v32 = vcvt.s32.f32 %v14365_v38  ;;  %v5245_v8 = vadd.f32 0.5, %v19351_v18  ;;  %vm5742_vm5 = vcmp.ge.f32.partialorder %v5463_v28, 0.5  ;;  %v19349_v11 = vcvt.s32.f32 %v14381_v20 }
 0x4cb   : > { %vm5797_vm8 = vmand %vm5687_vm4, %vm5742_vm5  ;;  %vm5852_vm9 = vcmp.le.f32.partialorder %v5463_v28, 16.5  ;;  %v11485_v28 = vld [vmem:[#allocation9 + $0x90] sm:$0xff]  ;;  %vm5963_vm4 = vcmp.lt.f32.partialorder %v14362_v25, 17.5 }
 0x4cc   : > { %v5247_v31 = vadd.f32 0.5, %v19349_v11  ;;  %vm5907_vm12 = vmand %vm5797_vm8, %vm5852_vm9 }
 0x4cd   : > { %v14357_v53 = vpop.f32.mrf.mxu3  ;;  %vm6017_vm2 = vmand %vm5907_vm12, %vm5962_vm13 }
 0x4ce   : > { %20119 = vst [vmem:[#allocation87_spill] sm:$0xff] %v14357_v53  ;;  %v5523_v53 = vadd.f32 -1.0, %v14362_v25 }
 0x4cf   : > { %v3060_v29 = vpop.f32.mrf.mxu0 }
 0x4d0   : > { %v3175_v5 = vadd.f32 %v3060_v29, %v13876_v24  ;;  %v11487_v29 = vld [vmem:[#allocation9 + $0xa0] sm:$0xff]  ;;  %vm5578_vm6 = vcmp.ge.f32.partialorder %v5523_v53, 0.0  ;;  %vm5633_vm7 = vcmp.lt.f32.partialorder %v5523_v53, 16.0 }
 0x4d1   : > { %7434 = vmatpush.bf16.msra.mxu3 %v11487_v29  ;;  %vm5688_vm10 = vmand %vm5578_vm6, %vm5633_vm7  ;;  %v14395_v53 = vld [vmem:[%s19076_s2] ss:$0 sm:$0xff] }
 0x4d2   : > { %v3642_v26 = vadd.f32 %v3527_v62, %v3175_v5  ;;  %4630 = vmatmul.bf16.gmra.mxu0 %v20120_v43  ;;  %v5246_v5 = vadd.f32 0.5, %v19350_v32  ;;  %v19353_v32 = vmov 0  }
 0x4d4   : > { %v14372_v3 = vadd.f32 %v3919_v6, %v3642_v26  ;;  %v5464_v6 = vsub.f32 %v5189_v22, %v5409_v54  ;;  %v5300_v26 = vmul.f32 0.041666668, %v5245_v8  ;;  %v5301_v43 = vmul.f32 0.041666668, %v5246_v5 }
 0x4d5   : > { %v4317_v24 = vpop.f32.mrf.mxu3  ;;  %v5302_v5 = vmul.f32 0.041666668, %v5247_v31  ;;  %v6127_v31 = vsel %vm6017_vm2, 1, %v19353_v32  ;;  %v11483_v32 = vld [vmem:[#allocation9 + $0x80] sm:$0xff] }
 0x4d6   : > { %v14378_v62 = vadd.f32 %v4317_v24, %v14301_v27  ;;  %v11486_v27 = vld [vmem:[#allocation9 + $0x98] sm:$0xff]  ;;  %vm5743_vm11 = vcmp.ge.f32.partialorder %v5464_v6, 0.5  ;;  %v14390_v54 = vfloor.f32 %v5300_v26  ;;  %vm5853_vm15 = vcmp.le.f32.partialorder %v5464_v6, 16.5 }
 0x4d7   : > { %v3062_v55 = vpop.f32.mrf.mxu0  ;;  %7435 = vmatpush.bf16.msra.mxu3 %v11486_v27  ;;  %vm5798_vm14 = vmand %vm5688_vm10, %vm5743_vm11  ;;  %v14398_v24 = vadd.s32 40, %v14341_v0  ;;  %v14400_v29 = vfloor.f32 %v5301_v43  ;;  %v20123_v43 = vld [vmem:[#allocation78_spill] sm:$0xff]  ;;  %vm6182_vm6 = vcmp.eq.s32.totalorder %v6127_v31, 1  ;;  %v20131_v31 = vcvt.s32.f32 %v14381_v20 }
 0x4d8   : > { %20121 = vst [vmem:[#allocation218_spill] sm:$0xff] %v14378_v62  ;;  %vm5908_vm3 = vmand %vm5798_vm14, %vm5853_vm15  ;;  %v5410_v6 = vmul.f32 24.0, %v14390_v54  ;;  %v14420_v62 = vfloor.f32 %v5302_v5  ;;  %v14465_v20 = vadd.s32 56, %v14341_v0 }
 0x4d9   : > { %v19352_v26 = vcvt.s32.f32 %v14398_v24  ;;  %v5525_v18 = vadd.f32 -1.0, %v14400_v29  ;;  %vm6018_vm5 = vmand %vm5908_vm3, %vm5963_vm4 }
 0x4da   : > { %v6128_v4 = vsel %vm6018_vm5, 1, %v20125_v49  ;;  %vm14440_vm13 = vmpackc.low %vm6182_vm6, %vm6182_vm6 }
 0x4db   : > { %7436 = vmatpush.bf16.msra.mxu3 %v11485_v28  ;;  %v5248_v11 = vadd.f32 0.5, %v19352_v26  ;;  %v5411_v28 = vmul.f32 24.0, %v14400_v29  ;;  %vm5580_vm9 = vcmp.ge.f32.partialorder %v5525_v18, 0.0  ;;  %vm5635_vm10 = vcmp.lt.f32.partialorder %v5525_v18, 16.0 }
 0x4dc   : > { %vm6183_vm14 = vcmp.eq.s32.totalorder %v6128_v4, 1  ;;  %vm5690_vm15 = vmand %vm5580_vm9, %vm5635_vm10 }
 0x4dd   : > { %v14388_v22 = vpop.f32.mrf.mxu3  ;;  %v5303_v15 = vmul.f32 0.041666668, %v5248_v11  ;;  %vm14454_vm5 = vmpackc.low %vm6183_vm14, %vm6183_vm14 }
 0x4de   : > { %20122 = vst [vmem:[#allocation188_spill] sm:$0xff] %v14388_v22 }
 0x4df   : > { %v4596_v8 = vpop.f32.mrf.mxu0 }
 0x4e0   : > { %v4792_v55 = vadd.f32 %v4596_v8, %v13894_v21  ;;  %v5524_v21 = vadd.f32 -1.0, %v14390_v54  ;;  %v11484_v8 = vld [vmem:[#allocation9 + $0x88] sm:$0xff] }
 0x4e1   : > { %7437 = vmatpush.bf16.msra.mxu3 %v11484_v8  ;;  %v14431_v8 = vadd.s32 48, %v14341_v0 }
 0x4e2   : > { %v4963_v27 = vmul.f32 %v14395_v53, %v4792_v55  ;;  %4635 = vmatmul.bf16.gmra.mxu0 %v20123_v43  ;;  %v20124_v43 = vcvt.s32.f32 %v14360_v40  ;;  %vm5579_vm7 = vcmp.ge.f32.partialorder %v5524_v21, 0.0  ;;  %vm5634_vm8 = vcmp.lt.f32.partialorder %v5524_v21, 16.0 }
 0x4e3   : > { %vm5689_vm11 = vmand %vm5579_vm7, %vm5634_vm8  ;;  %v14436_v21 = vfloor.f32 %v5303_v15 }
 0x4e4   : > { %v5022_v25 = vadd.f32 %v14406_v1, %v4963_v27  ;;  %v5465_v22 = vsub.f32 %v20124_v43, %v5410_v6  ;;  %v20126_v27 = vcvt.s32.f32 %v14365_v38  ;;  %v5526_v6 = vadd.f32 -1.0, %v14420_v62 }
 0x4e5   : > { %v4322_v55 = vpop.f32.mrf.mxu3  ;;  %7438 = vmatpush.bf16.msra.mxu3 %v11483_v32  ;;  %v5413_v18 = vmul.f32 24.0, %v14436_v21  ;;  %v5527_v43 = vadd.f32 -1.0, %v14436_v21  ;;  %v19357_v38 = vcvt.s32.f32 %v14465_v20 }
 0x4e6   : > { %v14425_v26 = vadd.f32 %v4322_v55, %v14317_v30  ;;  %v5466_v5 = vsub.f32 %v20126_v27, %v5411_v28  ;;  %v5077_v40 = vmax.f32 %v5022_v25, 0.0  ;;  %v5412_v30 = vmul.f32 24.0, %v14420_v62 }
 0x4e7   : > { %v4598_v12 = vpop.f32.mrf.mxu0  ;;  %vm5744_vm12 = vcmp.ge.f32.partialorder %v5465_v22, 0.5  ;;  %vm5854_vm4 = vcmp.le.f32.partialorder %v5465_v22, 16.5  ;;  %vm5581_vm6 = vcmp.ge.f32.partialorder %v5526_v6, 0.0  ;;  %vm5636_vm7 = vcmp.lt.f32.partialorder %v5526_v6, 16.0 }
 0x4e8   : > { %v4793_v11 = vadd.f32 %v4598_v12, %v13903_v35  ;;  %v19355_v35 = vcvt.s32.f32 %v14431_v8  ;;  %vm5745_vm2 = vcmp.ge.f32.partialorder %v5466_v5, 0.5  ;;  %v6072_v12 = vpack.c.bf16 %v5077_v40, %v5077_v40  ;;  %vm14448_vm3 = vmand %vm5689_vm11, %vm5744_vm12 }
 0x4e9   : > { %v5467_v25 = vsub.f32 %v20131_v31, %v5412_v30  ;;  %vm5800_vm8 = vmand %vm5690_vm15, %vm5745_vm2  ;;  %vm5855_vm9 = vcmp.le.f32.partialorder %v5466_v5, 16.5  ;;  %vm5964_vm11 = vcmp.lt.f32.partialorder %v14390_v54, 17.5  ;;  %vm5965_vm2 = vcmp.lt.f32.partialorder %v14400_v29, 17.5  ;;  %v20141_v31 = vld [vmem:[#allocation90_spill] sm:$0xff] }
 0x4ea   : > { %v4964_v28 = vmul.f32 %v14395_v53, %v4793_v11  ;;  %v5249_v22 = vadd.f32 0.5, %v19355_v35  ;;  %vm5909_vm10 = vmand %vm14448_vm3, %vm5854_vm4  ;;  %v6292_v11 = vsel %vm14440_vm13, %v6072_v12, 0  ;;  %v20138_v54 = vcvt.s32.f32 %v14398_v24  ;;  %v11506_v24 = vld [vmem:[#allocation9 + $0x138] sm:$0xff] }
 0x4eb   : > { %vm14474_vm12 = vmand %vm5581_vm6, %vm5636_vm7  ;;  %vm5746_vm14 = vcmp.ge.f32.partialorder %v5467_v25, 0.5  ;;  %vm5582_vm3 = vcmp.ge.f32.partialorder %v5527_v43, 0.0  ;;  %vm5637_vm4 = vcmp.lt.f32.partialorder %v5527_v43, 16.0  ;;  %vm5856_vm7 = vcmp.le.f32.partialorder %v5467_v25, 16.5  ;;  %8382 = vmatpush.bf16.msrb.mxu2 %v11506_v24 }
 0x4ec   : > { %v5023_v32 = vadd.f32 %v14406_v1, %v4964_v28  ;;  %vm14478_vm15 = vmand %vm5800_vm8, %vm5855_vm9  ;;  %v5468_v15 = vsub.f32 %v20138_v54, %v5413_v18  ;;  %v5250_v25 = vadd.f32 0.5, %v19357_v38  ;;  %v14525_v5 = vadd.s32 64, %v14341_v0 }
 0x4ed   : > { %v14458_v4 = vpop.f32.mrf.mxu3  ;;  %vm14489_vm13 = vmand %vm5909_vm10, %vm5964_vm11  ;;  %vm5966_vm11 = vcmp.lt.f32.partialorder %v14420_v62, 17.5 }
 0x4ee   : > { %v5078_v27 = vmax.f32 %v5023_v32, 0.0  ;;  %vm5801_vm6 = vmand %vm14474_vm12, %vm5746_vm14  ;;  %vm5747_vm9 = vcmp.ge.f32.partialorder %v5468_v15, 0.5  ;;  %vm5857_vm14 = vcmp.le.f32.partialorder %v5468_v15, 16.5  ;;  %v5305_v62 = vmul.f32 0.041666668, %v5250_v25 }
 0x4ef   : > { %v4601_v40 = vpop.f32.mrf.mxu0  ;;  %vm14508_vm8 = vmand %vm5582_vm3, %vm5637_vm4  ;;  %vm5967_vm4 = vcmp.lt.f32.partialorder %v14436_v21, 17.5 }
 0x4f0   : > { %v6073_v30 = vpack.c.bf16 %v5078_v27, %v5078_v27  ;;  %v4794_v28 = vadd.f32 %v4601_v40, %v13915_v63  ;;  %v5304_v27 = vmul.f32 0.041666668, %v5249_v22  ;;  %v6411_v40 = vunpack.c.l.b16 %v6292_v11  ;;  %vm5911_vm10 = vmand %vm5801_vm6, %vm5856_vm7 }
 0x4f1   : > { %vm5802_vm12 = vmand %vm14508_vm8, %vm5747_vm9  ;;  %v20150_v11 = vcvt.s32.f32 %v14431_v8 }
 0x4f2   : > { %v6293_v63 = vsel %vm14454_vm5, %v6073_v30, 0  ;;  %v4965_v6 = vmul.f32 %v14395_v53, %v4794_v28  ;;  %4640 = vmatmul.bf16.gmra.mxu0 %v20141_v31  ;;  %vm14501_vm5 = vmand %vm14478_vm15, %vm5965_vm2  ;;  %v14518_v28 = vfloor.f32 %v5304_v27  ;;  %v11498_v31 = vld [vmem:[#allocation9 + $0xf8] sm:$0xff] }
 0x4f3   : > { %v6412_v35 = vunpack.c.l.b16 %v6293_v63  ;;  %vm6021_vm15 = vmand %vm5911_vm10, %vm5966_vm11  ;;  %v19356_v63 = vcvt.s32.f32 %v14525_v5  ;;  %7821 = vmatpush.bf16.msrb.mxu1 %v11498_v31 }
 0x4f4   : > { %v5024_v55 = vadd.f32 %v14406_v1, %v4965_v6  ;;  %v5414_v12 = vmul.f32 24.0, %v14518_v28  ;;  %v6131_v15 = vsel %vm6021_vm15, 1, %v20125_v49 }
 0x4f5   : > { %v14505_v30 = vpack.c.b16 %v6412_v35, %v6411_v40  ;;  %v4327_v22 = vpop.f32.mrf.mxu3  ;;  %v6129_v35 = vsel %vm14489_vm13, 1, %v20125_v49  ;;  %vm5912_vm13 = vmand %vm5802_vm12, %vm5857_vm14  ;;  %v5251_v24 = vadd.f32 0.5, %v19356_v63  ;;  %vm6186_vm8 = vcmp.eq.s32.totalorder %v6131_v15, 1 }
 0x4f6   : > { %v14515_v29 = vadd.f32 %v4327_v22, %v14333_v52  ;;  %v5079_v32 = vmax.f32 %v5024_v55, 0.0  ;;  %v6130_v52 = vsel %vm14501_vm5, 1, %v20125_v49  ;;  %vm6184_vm2 = vcmp.eq.s32.totalorder %v6129_v35, 1  ;;  %vm6022_vm7 = vmand %vm5912_vm13, %vm5967_vm4  ;;  %v20153_v55 = vld [vmem:[#allocation104_spill] sm:$0xff] }
 0x4f7   : > { %v4603_v43 = vpop.f32.mrf.mxu0  ;;  %6563 = vmatmul.bf16.vlgmr.msra.gmra.mxu1 %v14505_v30  ;;  %vm6185_vm3 = vcmp.eq.s32.totalorder %v6130_v52, 1  ;;  %vm14542_vm6 = vmpackc.low %vm6184_vm2, %vm6184_vm2  ;;  %v14548_v22 = vfloor.f32 %v5305_v62  ;;  %v5469_v25 = vsub.f32 %v20150_v11, %v5414_v12  ;;  %v14565_v52 = vsel %vm6022_vm7, 1, %v20125_v49 }
 0x4f8   : > { %20146 = vst [vmem:[#allocation169_spill] sm:$0xff] %v14515_v29  ;;  %v4795_v54 = vadd.f32 %v4603_v43, %v13924_v51  ;;  %v5528_v51 = vadd.f32 -1.0, %v14518_v28  ;;  %v6074_v27 = vpack.c.bf16 %v5079_v32, %v5079_v32  ;;  %vm14554_vm5 = vmpackc.low %vm6185_vm3, %vm6185_vm3  ;;  %v5306_v32 = vmul.f32 0.041666668, %v5251_v24 }
 0x4f9   : > { %v6755_v12 = vshll.u32 %v14505_v30, 16  ;;  %v5415_v31 = vmul.f32 24.0, %v14548_v22  ;;  %vm5748_vm11 = vcmp.ge.f32.partialorder %v5469_v25, 0.5  ;;  %v7310_v35 = vrot.slane %v14505_v30, 1  ;;  %vm14597_vm13 = vmpackc.low %vm6186_vm8, %vm6186_vm8 }
 0x4fa   : > { %v4966_v6 = vmul.f32 %v14395_v53, %v4795_v54  ;;  %vm5583_vm9 = vcmp.ge.f32.partialorder %v5528_v51, 0.0  ;;  %v14559_v54 = vadd.s32 72, %v14341_v0  ;;  %v6294_v62 = vsel %vm14542_vm6, %v6074_v27, 0 }
 0x4fb   : > { %vm5638_vm10 = vcmp.lt.f32.partialorder %v5528_v51, 16.0  ;;  %v6413_v27 = vunpack.c.l.b16 %v6294_v62  ;;  %vm5858_vm14 = vcmp.le.f32.partialorder %v5469_v25, 16.5  ;;  %v6757_v29 = vrot.slane %v6755_v12, 1 }
 0x4fc   : > { %v5025_v40 = vadd.f32 %v14406_v1, %v4966_v6  ;;  %vm5693_vm12 = vmand %vm5583_vm9, %vm5638_vm10  ;;  %v20154_v62 = vcvt.s32.f32 %v14465_v20  ;;  %vm5968_vm6 = vcmp.lt.f32.partialorder %v14518_v28, 17.5  ;;  %vm6187_vm7 = vcmp.eq.s32.totalorder %v14565_v52, 1 }
 0x4fd   : > { %v14546_v18 = vpop.f32.mrf.mxu3  ;;  %vm14591_vm15 = vmand %vm5693_vm12, %vm5748_vm11  ;;  %v20164_v52 = vcvt.s32.f32 %v14559_v54 }
 0x4fe   : > { %20149 = vst [vmem:[#allocation221_spill] sm:$0xff] %v14546_v18  ;;  %v5080_v21 = vmax.f32 %v5025_v40, 0.0  ;;  %v19358_v40 = vcvt.s32.f32 %v14559_v54  ;;  %v5470_v51 = vsub.f32 %v20154_v62, %v5415_v31  ;;  %vm5913_vm4 = vmand %vm14591_vm15, %vm5858_vm14 }
 0x4ff   : > { %v4606_v43 = vpop.f32.mrf.mxu0  ;;  %vm6023_vm10 = vmand %vm5913_vm4, %vm5968_vm6 }
 0x500   : > { %v6075_v6 = vpack.c.bf16 %v5080_v21, %v5080_v21  ;;  %v4796_v8 = vadd.f32 %v4606_v43, %v13936_v60  ;;  %v5529_v60 = vadd.f32 -1.0, %v14548_v22  ;;  %v14576_v43 = vfloor.f32 %v5306_v32  ;;  %vm14642_vm15 = vmpackc.low %vm6187_vm7, %vm6187_vm7 }
 0x501   : > { %v5252_v63 = vadd.f32 0.5, %v19358_v40  ;;  %vm5749_vm8 = vcmp.ge.f32.partialorder %v5470_v51, 0.5  ;;  %vm5859_vm14 = vcmp.le.f32.partialorder %v5470_v51, 16.5 }
 0x502   : > { %v6295_v24 = vsel %vm14554_vm5, %v6075_v6, 0  ;;  %v4967_v11 = vmul.f32 %v14395_v53, %v4796_v8  ;;  %4645 = vmatmul.bf16.gmra.mxu0 %v20153_v55  ;;  %v6753_v6 = vshrl.u32 %v14505_v30, 16  ;;  %vm5584_vm2 = vcmp.ge.f32.partialorder %v5529_v60, 0.0 }
 0x503   : > { %v6414_v21 = vunpack.c.l.b16 %v6295_v24  ;;  %v5307_v24 = vmul.f32 0.041666668, %v5252_v63  ;;  %vm5639_vm3 = vcmp.lt.f32.partialorder %v5529_v60, 16.0  ;;  %v5416_v63 = vmul.f32 24.0, %v14576_v43 }
 0x504   : > { %v5026_v38 = vadd.f32 %v14406_v1, %v4967_v11  ;;  %v5530_v12 = vadd.f32 -1.0, %v14576_v43  ;;  %v6758_v40 = vor.u32 %v6757_v29, %v6753_v6  ;;  %vm5694_vm5 = vmand %vm5584_vm2, %vm5639_vm3  ;;  %vm5969_vm2 = vcmp.lt.f32.partialorder %v14548_v22, 17.5 }
 0x505   : > { %v4332_v8 = vpop.f32.mrf.mxu3  ;;  %v14583_v55 = vpack.c.b16 %v6414_v21, %v6413_v27  ;;  %v14607_v15 = vfloor.f32 %v5307_v24  ;;  %vm5804_vm12 = vmand %vm5694_vm5, %vm5749_vm8 }
 0x506   : > { %v5081_v32 = vmax.f32 %v5026_v38, 0.0  ;;  %v14588_v18 = vadd.f32 %v4332_v8, %v14349_v41  ;;  %v14610_v8 = vadd.s32 80, %v14341_v0  ;;  %vm5585_vm9 = vcmp.ge.f32.partialorder %v5530_v12, 0.0  ;;  %vm5914_vm4 = vmand %vm5804_vm12, %vm5859_vm14 }
 0x507   : > { %v4608_v20 = vpop.f32.mrf.mxu0  ;;  %6568 = vmatmul.bf16.gmra.mxu1 %v14583_v55  ;;  %v7311_v38 = vrot.slane %v14583_v55, 1  ;;  %v6760_v41 = vshll.u32 %v14583_v55, 16  ;;  %vm5640_vm11 = vcmp.lt.f32.partialorder %v5530_v12, 16.0 }
 0x508   : > { %20155 = vst [vmem:[#allocation191_spill] sm:$0xff] %v14588_v18  ;;  %v6076_v31 = vpack.c.bf16 %v5081_v32, %v5081_v32  ;;  %v4797_v27 = vadd.f32 %v4608_v20, %v13945_v13  ;;  %v5417_v32 = vmul.f32 24.0, %v14607_v15  ;;  %v5198_v11 = vcvt.s32.f32 %v14610_v8  ;;  %vm5695_vm3 = vmand %vm5585_vm9, %vm5640_vm11 }
 0x509   : > { %v7312_v62 = vsel %vm1699_vm1, %v7310_v35, %v7311_v38  ;;  %v14615_v18 = vrot.slane %v6760_v41, 1  ;;  %v20160_v35 = vcvt.s32.f32 %v14525_v5  ;;  %v14653_v8 = vadd.s32 88, %v14341_v0 }
 0x50a   : > { %v6296_v13 = vsel %vm14597_vm13, %v6076_v31, 0  ;;  %v4968_v24 = vmul.f32 %v14395_v53, %v4797_v27  ;;  %7439 = vmatmul.bf16.vlgmr.msra.gmra.mxu3 %v7312_v62  ;;  %v5472_v27 = vsub.f32 %v20164_v52, %v5417_v32  ;;  %v6764_v32 = vshrl.u32 %v14583_v55, 16 }
 0x50b   : > { %v6415_v29 = vunpack.c.l.b16 %v6296_v13  ;;  %v6763_v25 = vsel %vm1060_vm0, %v6758_v40, %v14615_v18  ;;  %v5471_v6 = vsub.f32 %v20160_v35, %v5416_v63  ;;  %v5531_v40 = vadd.f32 -1.0, %v14607_v15 }
 0x50c   : > { %v5027_v28 = vadd.f32 %v14406_v1, %v4968_v24  ;;  %7028 = vmatmul.bf16.vlgmr.msra.gmra.mxu2 %v6763_v25  ;;  %v6133_v63 = vsel %vm6023_vm10, 1, %v20125_v49  ;;  %v20165_v24 = vld [vmem:[#allocation114_spill] sm:$0xff]  ;;  %vm14662_vm10 = vmand %vm5914_vm4, %vm5969_vm2  ;;  %vm5751_vm12 = vcmp.ge.f32.partialorder %v5472_v27, 0.5 }
 0x50d   : > { %v14634_v60 = vpack.c.b16 %v6415_v29, %v6414_v21  ;;  %v14636_v30 = vpop.f32.mrf.mxu3  ;;  %vm5750_vm13 = vcmp.ge.f32.partialorder %v5471_v6, 0.5  ;;  %v5253_v21 = vadd.f32 0.5, %v5198_v11  ;;  %vm5586_vm6 = vcmp.ge.f32.partialorder %v5531_v40, 0.0 }
 0x50e   : > { %20161 = vst [vmem:[#allocation173_spill] sm:$0xff] %v14636_v30  ;;  %v5082_v5 = vmax.f32 %v5027_v28, 0.0  ;;  %vm5641_vm7 = vcmp.lt.f32.partialorder %v5531_v40, 16.0  ;;  %vm5805_vm5 = vmand %vm5695_vm3, %vm5750_vm13  ;;  %vm5860_vm8 = vcmp.le.f32.partialorder %v5471_v6, 16.5  ;;  %vm6188_vm9 = vcmp.eq.s32.totalorder %v6133_v63, 1 }
 0x50f   : > { %v4611_v41 = vpop.f32.mrf.mxu0  ;;  %v5308_v62 = vmul.f32 0.041666668, %v5253_v21  ;;  %vm14671_vm11 = vmand %vm5586_vm6, %vm5641_vm7  ;;  %vm5861_vm13 = vcmp.le.f32.partialorder %v5472_v27, 16.5  ;;  %vm5971_vm6 = vcmp.lt.f32.partialorder %v14607_v15, 17.5  ;;  %v11505_v15 = vld [vmem:[#allocation9 + $0x130] sm:$0xff] }
 0x510   : > { %v6077_v51 = vpack.c.bf16 %v5082_v5, %v5082_v5  ;;  %v4798_v31 = vadd.f32 %v4611_v41, %v13957_v47  ;;  %v5199_v47 = vcvt.s32.f32 %v14653_v8  ;;  %vm14679_vm14 = vmand %vm5805_vm5, %vm5860_vm8  ;;  %v8115_v8 = vshrl.u32 %v14634_v60, 16  ;;  %8383 = vmatpush.bf16.msrb.mxu2 %v11505_v15 }
 0x511   : > { %v14666_v35 = vfloor.f32 %v5308_v62  ;;  %vm14686_vm2 = vmpackc.low %vm6188_vm9, %vm6188_vm9 }
 0x512   : > { %v6297_v13 = vsel %vm14642_vm15, %v6077_v51, 0  ;;  %v4969_v12 = vmul.f32 %v14395_v53, %v4798_v31  ;;  %4650 = vmatmul.bf16.gmra.mxu0 %v20165_v24  ;;  %v5254_v6 = vadd.f32 0.5, %v5199_v47  ;;  %vm5970_vm15 = vcmp.lt.f32.partialorder %v14576_v43, 17.5  ;;  %vm5806_vm3 = vmand %vm14671_vm11, %vm5751_vm12 }
 0x513   : > { %v6416_v25 = vunpack.c.l.b16 %v6297_v13  ;;  %v5418_v63 = vmul.f32 24.0, %v14666_v35  ;;  %v5532_v40 = vadd.f32 -1.0, %v14666_v35  ;;  %vm14708_vm4 = vmand %vm14679_vm14, %vm5970_vm15 }
 0x514   : > { %v5028_v28 = vadd.f32 %v14406_v1, %v4969_v12  ;;  %v5309_v52 = vmul.f32 0.041666668, %v5254_v6  ;;  %v6766_v12 = vor.u32 %v6764_v32, %v14615_v18  ;;  %vm5916_vm8 = vmand %vm5806_vm3, %vm5861_vm13  ;;  %vm5972_vm13 = vcmp.lt.f32.partialorder %v14666_v35, 17.5 }
 0x515   : > { %v4337_v22 = vpop.f32.mrf.mxu3  ;;  %v14677_v20 = vpack.c.b16 %v6416_v25, %v6415_v29  ;;  %v6134_v29 = vsel %vm14662_vm10, 1, %v20125_v49  ;;  %v5473_v18 = vsub.f32 %v5198_v11, %v5418_v63  ;;  %vm5587_vm7 = vcmp.ge.f32.partialorder %v5532_v40, 0.0  ;;  %vm14738_vm12 = vmand %vm5916_vm8, %vm5971_vm6 }
 0x516   : > { %v5083_v21 = vmax.f32 %v5028_v28, 0.0  ;;  %v14691_v31 = vadd.f32 %v4337_v22, %v14372_v3  ;;  %vm5642_vm5 = vcmp.lt.f32.partialorder %v5532_v40, 16.0  ;;  %v14723_v5 = vfloor.f32 %v5309_v52 }
 0x517   : > { %v4613_v62 = vpop.f32.mrf.mxu0  ;;  %6573 = vmatmul.bf16.gmra.mxu1 %v14677_v20  ;;  %v19360_v13 = vrot.slane %v14677_v20, 1  ;;  %v6768_v24 = vshll.u32 %v14677_v20, 16  ;;  %v14726_v11 = vadd.s32 96, %v14341_v0  ;;  %vm6189_vm9 = vcmp.eq.s32.totalorder %v6134_v29, 1  ;;  %vm5697_vm10 = vmand %vm5587_vm7, %vm5642_vm5 }
 0x518   : > { %20174 = vst [vmem:[#allocation98_spill] sm:$0xff] %v14691_v31  ;;  %v6078_v3 = vpack.c.bf16 %v5083_v21, %v5083_v21  ;;  %v4799_v28 = vadd.f32 %v4613_v62, %v13966_v45  ;;  %vm5752_vm11 = vcmp.ge.f32.partialorder %v5473_v18, 0.5  ;;  %v8117_v63 = vshll.u32 %v14634_v60, 16  ;;  %vm14744_vm14 = vmpackc.low %vm6189_vm9, %vm6189_vm9 }
 0x519   : > { %v7314_v27 = vsel %vm1699_vm1, %v7311_v38, %v19360_v13  ;;  %v14718_v32 = vrot.slane %v6768_v24, 1  ;;  %v6135_v38 = vsel %vm14708_vm4, 1, %v20125_v49  ;;  %v19359_v41 = vcvt.s32.f32 %v14726_v11  ;;  %v20184_v13 = vld [vmem:[#allocation123_spill] sm:$0xff] }
 0x51a   : > { %v6298_v45 = vsel %vm14686_vm2, %v6078_v3, 0  ;;  %v4970_v43 = vmul.f32 %v14395_v53, %v4799_v28  ;;  %7444 = vmatmul.bf16.gmra.mxu3 %v7314_v27  ;;  %vm6190_vm15 = vcmp.eq.s32.totalorder %v6135_v38, 1  ;;  %v5419_v62 = vmul.f32 24.0, %v14723_v5  ;;  %vm14750_vm2 = vmand %vm5697_vm10, %vm5752_vm11 }
 0x51b   : > { %v6417_v6 = vunpack.c.l.b16 %v6298_v45  ;;  %v6771_v55 = vsel %vm1060_vm0, %v6766_v12, %v14718_v32  ;;  %v5533_v12 = vadd.f32 -1.0, %v14723_v5  ;;  %vm5862_vm3 = vcmp.le.f32.partialorder %v5473_v18, 16.5  ;;  %vm14810_vm11 = vmpackc.low %vm6190_vm15, %vm6190_vm15 }
 0x51c   : > { %v5029_v22 = vadd.f32 %v14406_v1, %v4970_v43  ;;  %7033 = vmatmul.bf16.gmra.mxu2 %v6771_v55  ;;  %v14757_v3 = vadd.s32 104, %v14341_v0  ;;  %v8672_v28 = vrot.slane %v14634_v60, 1  ;;  %v14764_v45 = vsel %vm14738_vm12, 1, %v20125_v49  ;;  %vm5917_vm4 = vmand %vm14750_vm2, %vm5862_vm3 }
 0x51d   : > { %v4339_v21 = vpop.f32.mrf.mxu3  ;;  %v14742_v51 = vpack.c.b16 %v6417_v6, %v6416_v25  ;;  %v5255_v25 = vadd.f32 0.5, %v19359_v41  ;;  %v8119_v43 = vrot.slane %v8117_v63, 1  ;;  %vm5588_vm6 = vcmp.ge.f32.partialorder %v5533_v12, 0.0  ;;  %vm14796_vm8 = vmand %vm5917_vm4, %vm5972_vm13 }
 0x51e   : > { %v5084_v29 = vmax.f32 %v5029_v22, 0.0  ;;  %v19362_v22 = vcvt.s32.f32 %v14757_v3  ;;  %vm5643_vm7 = vcmp.lt.f32.partialorder %v5533_v12, 16.0  ;;  %vm6191_vm5 = vcmp.eq.s32.totalorder %v14764_v45, 1 }
 0x51f   : > { %20179 = vst [vmem:[#allocation204_spill] sm:$0xff] %v14742_v51  ;;  %v4616_v24 = vpop.f32.mrf.mxu0  ;;  %v5310_v55 = vmul.f32 0.041666668, %v5255_v25  ;;  %v19361_v21 = vrot.slane %v14742_v51, 1  ;;  %v8122_v52 = vshll.u32 %v14742_v51, 16  ;;  %vm14801_vm9 = vmand %vm5588_vm6, %vm5643_vm7  ;;  %vm5973_vm15 = vcmp.lt.f32.partialorder %v14723_v5, 17.5 }
 0x520   : > { %v6079_v54 = vpack.c.bf16 %v5084_v29, %v5084_v29  ;;  %v4800_v27 = vadd.f32 %v4616_v24, %v13978_v17  ;;  %v5474_v17 = vsub.f32 %v5199_v47, %v5419_v62  ;;  %v5256_v18 = vadd.f32 0.5, %v19362_v22  ;;  %v11497_v62 = vld [vmem:[#allocation9 + $0xf0] sm:$0xff]  ;;  %vm14856_vm3 = vmpackc.low %vm6191_vm5, %vm6191_vm5 }
 0x521   : > { %v14781_v40 = vsel %vm1699_vm1, %v8672_v28, %v19361_v21  ;;  %v20192_v22 = vrot.slane %v14677_v20, 1  ;;  %7822 = vmatpush.bf16.msrb.mxu1 %v11497_v62  ;;  %v8126_v45 = vshrl.u32 %v14742_v51, 16 }
 0x522   : > { %v6299_v41 = vsel %vm14744_vm14, %v6079_v54, 0  ;;  %v4971_v29 = vmul.f32 %v14395_v53, %v4800_v27  ;;  %4655 = vmatmul.bf16.gmra.mxu0 %v20184_v13  ;;  %20185 = vst [vmem:[#allocation100_spill] sm:$0xff] %v14781_v40  ;;  %v14785_v13 = vfloor.f32 %v5310_v55  ;;  %vm5753_vm10 = vcmp.ge.f32.partialorder %v5474_v17, 0.5 }
 0x523   : > { %v6418_v63 = vunpack.c.l.b16 %v6299_v41  ;;  %v6772_v41 = vshrl.u32 %v14677_v20, 16  ;;  %v8120_v54 = vor.u32 %v8119_v43, %v8115_v8  ;;  %v5311_v8 = vmul.f32 0.041666668, %v5256_v18  ;;  %vm5808_vm12 = vmand %vm14801_vm9, %vm5753_vm10 }
 0x524   : > { %v5030_v24 = vadd.f32 %v14406_v1, %v4971_v29  ;;  %v5420_v43 = vmul.f32 24.0, %v14785_v13  ;;  %vm5863_vm14 = vcmp.le.f32.partialorder %v5474_v17, 16.5  ;;  %v5534_v20 = vadd.f32 -1.0, %v14785_v13 }
 0x525   : > { %v14790_v47 = vpack.c.b16 %v6418_v63, %v6417_v6  ;;  %v14806_v6 = vadd.s32 112, %v14341_v0  ;;  %v6774_v55 = vor.u32 %v6772_v41, %v14718_v32  ;;  %v6137_v32 = vsel %vm14796_vm8, 1, %v20125_v49  ;;  %vm5918_vm2 = vmand %vm5808_vm12, %vm5863_vm14 }
 0x526   : > { %v5085_v25 = vmax.f32 %v5030_v24, 0.0  ;;  %v14818_v24 = vrot.slane %v8122_v52, 1  ;;  %vm5589_vm13 = vcmp.ge.f32.partialorder %v5534_v20, 0.0  ;;  %vm5644_vm4 = vcmp.lt.f32.partialorder %v5534_v20, 16.0  ;;  %vm14862_vm7 = vmand %vm5918_vm2, %vm5973_vm15 }
 0x527   : > { %v4618_v27 = vpop.f32.mrf.mxu0  ;;  %6578 = vmatmul.bf16.gmra.mxu1 %v14790_v47  ;;  %v19365_v12 = vrot.slane %v14790_v47, 1  ;;  %v6776_v29 = vshll.u32 %v14790_v47, 16  ;;  %vm6192_vm6 = vcmp.eq.s32.totalorder %v6137_v32, 1  ;;  %vm14872_vm8 = vmand %vm5589_vm13, %vm5644_vm4  ;;  %vm5974_vm9 = vcmp.lt.f32.partialorder %v14785_v13, 17.5 }
 0x528   : > { %v6080_v21 = vpack.c.bf16 %v5085_v25, %v5085_v25  ;;  %v4801_v38 = vadd.f32 %v4618_v27, %v13987_v19  ;;  %v14842_v15 = vsel %vm1060_vm0, %v8120_v54, %v14818_v24  ;;  %v14847_v25 = vfloor.f32 %v5311_v8  ;;  %vm14916_vm15 = vmpackc.low %vm6192_vm6, %vm6192_vm6 }
 0x529   : > { %v7316_v31 = vsel %vm1699_vm1, %v20192_v22, %v19365_v12  ;;  %v6778_v40 = vrot.slane %v6776_v29, 1  ;;  %v19363_v22 = vcvt.s32.f32 %v14806_v6  ;;  %20193 = vst [vmem:[#allocation224_spill] sm:$0xff] %v14842_v15  ;;  %v14867_v29 = vadd.s32 120, %v14341_v0 }
 0x52a   : > { %v6300_v19 = vsel %vm14810_vm11, %v6080_v21, 0  ;;  %v4972_v52 = vmul.f32 %v14395_v53, %v4801_v38  ;;  %7449 = vmatmul.bf16.gmra.mxu3 %v7316_v31  ;;  %v20194_v31 = vcvt.s32.f32 %v14726_v11  ;;  %v5421_v8 = vmul.f32 24.0, %v14847_v25 }
 0x52b   : > { %v6419_v18 = vunpack.c.l.b16 %v6300_v19  ;;  %v6779_v41 = vsel %vm1060_vm0, %v6774_v55, %v6778_v40  ;;  %v5257_v28 = vadd.f32 0.5, %v19363_v22  ;;  %v5535_v5 = vadd.f32 -1.0, %v14847_v25 }
 0x52c   : > { %v5031_v17 = vadd.f32 %v14406_v1, %v4972_v52  ;;  %7038 = vmatmul.bf16.gmra.mxu2 %v6779_v41  ;;  %v5475_v21 = vsub.f32 %v20194_v31, %v5420_v43  ;;  %v19364_v52 = vcvt.s32.f32 %v14867_v29  ;;  %v6138_v31 = vsel %vm14862_vm7, 1, %v20125_v49 }
 0x52d   : > { %v14851_v35 = vpack.c.b16 %v6419_v18, %v6418_v63  ;;  %v5312_v63 = vmul.f32 0.041666668, %v5257_v28  ;;  %v20205_v55 = vcvt.s32.f32 %v14757_v3  ;;  %vm5590_vm12 = vcmp.ge.f32.partialorder %v5535_v5, 0.0 }
 0x52e   : > { %v5086_v27 = vmax.f32 %v5031_v17, 0.0  ;;  %vm5754_vm5 = vcmp.ge.f32.partialorder %v5475_v21, 0.5  ;;  %v20202_v17 = vld [vmem:[#allocation127_spill] sm:$0xff]  ;;  %v5258_v22 = vadd.f32 0.5, %v19364_v52  ;;  %vm5864_vm11 = vcmp.le.f32.partialorder %v5475_v21, 16.5 }
 0x52f   : > { %20195 = vst [vmem:[#allocation193_spill] sm:$0xff] %v14851_v35  ;;  %v4621_v11 = vpop.f32.mrf.mxu0  ;;  %v19366_v20 = vrot.slane %v14851_v35, 1  ;;  %v8130_v41 = vshll.u32 %v14851_v35, 16  ;;  %v14887_v28 = vfloor.f32 %v5312_v63  ;;  %vm14897_vm10 = vmand %vm14872_vm8, %vm5754_vm5  ;;  %v5476_v63 = vsub.f32 %v20205_v55, %v5421_v8 }
 0x530   : > { %v6081_v38 = vpack.c.bf16 %v5086_v27, %v5086_v27  ;;  %v4802_v43 = vadd.f32 %v4621_v11, %v13999_v7  ;;  %v6780_v11 = vshrl.u32 %v14790_v47, 16  ;;  %vm5645_vm14 = vcmp.lt.f32.partialorder %v5535_v5, 16.0  ;;  %vm14927_vm2 = vmand %vm14897_vm10, %vm5864_vm11 }
 0x531   : > { %v14912_v19 = vrot.slane %v8130_v41, 1  ;;  %v5422_v8 = vmul.f32 24.0, %v14887_v28  ;;  %v5313_v55 = vmul.f32 0.041666668, %v5258_v22  ;;  %v5536_v41 = vadd.f32 -1.0, %v14887_v28  ;;  %vm6029_vm6 = vmand %vm14927_vm2, %vm5974_vm9 }
 0x532   : > { %v6301_v62 = vsel %vm14856_vm3, %v6081_v38, 0  ;;  %v4973_v7 = vmul.f32 %v14395_v53, %v4802_v43  ;;  %4660 = vmatmul.bf16.gmra.mxu0 %v20202_v17  ;;  %v20206_v43 = vrot.slane %v14742_v51, 1  ;;  %v6782_v3 = vor.u32 %v6780_v11, %v6778_v40  ;;  %vm14936_vm3 = vmand %vm5590_vm12, %vm5645_vm14  ;;  %v11521_v51 = vld [vmem:[#allocation9 + $0x1b0] sm:$0xff] }
 0x533   : > { %v6420_v27 = vunpack.c.l.b16 %v6301_v62  ;;  %v8128_v40 = vor.u32 %v8126_v45, %v14818_v24  ;;  %vm5755_vm13 = vcmp.ge.f32.partialorder %v5476_v63, 0.5  ;;  %v14940_v21 = vfloor.f32 %v5313_v55 }
 0x534   : > { %v5032_v54 = vadd.f32 %v14406_v1, %v4973_v7  ;;  %v14908_v62 = vsel %vm1699_vm1, %v20206_v43, %v19366_v20  ;;  %v20214_v38 = vrot.slane %v14790_v47, 1  ;;  %vm6193_vm4 = vcmp.eq.s32.totalorder %v6138_v31, 1  ;;  %vm5810_vm7 = vmand %vm14936_vm3, %vm5755_vm13 }
 0x535   : > { %20207 = vst [vmem:[#allocation176_spill] sm:$0xff] %v14908_v62  ;;  %v14910_v17 = vpack.c.b16 %v6420_v27, %v6419_v18  ;;  %vm5865_vm5 = vcmp.le.f32.partialorder %v5476_v63, 16.5  ;;  %vm5591_vm8 = vcmp.ge.f32.partialorder %v5536_v41, 0.0  ;;  %vm5646_vm10 = vcmp.lt.f32.partialorder %v5536_v41, 16.0  ;;  %vm14978_vm9 = vmpackc.low %vm6193_vm4, %vm6193_vm4 }
 0x536   : > { %v5087_v7 = vmax.f32 %v5032_v54, 0.0  ;;  %v5423_v13 = vmul.f32 24.0, %v14940_v21  ;;  %vm5975_vm11 = vcmp.lt.f32.partialorder %v14847_v25, 17.5  ;;  %vm5920_vm12 = vmand %vm5810_vm7, %vm5865_vm5  ;;  %v16047_v62 = vadd.s32 248, %v14341_v0 }
 0x537   : > { %v4623_v12 = vpop.f32.mrf.mxu0  ;;  %6583 = vmatmul.bf16.gmra.mxu1 %v14910_v17  ;;  %v19367_v18 = vrot.slane %v14910_v17, 1  ;;  %v6784_v43 = vshll.u32 %v14910_v17, 16  ;;  %vm14989_vm2 = vmand %vm5591_vm8, %vm5646_vm10  ;;  %v20239_v31 = vrot.slane %v14910_v17, 1 }
 0x538   : > { %v6082_v11 = vpack.c.bf16 %v5087_v7, %v5087_v7  ;;  %v4803_v22 = vadd.f32 %v4623_v12, %v14008_v61  ;;  %v14952_v61 = vadd.s32 128, %v14341_v0  ;;  %v14956_v12 = vsel %vm1060_vm0, %v8128_v40, %v14912_v19  ;;  %vm15005_vm13 = vmand %vm5920_vm12, %vm5975_vm11 }
 0x539   : > { %v14947_v20 = vsel %vm1699_vm1, %v20214_v38, %v19367_v18  ;;  %v14949_v24 = vrot.slane %v6784_v43, 1  ;;  %20216 = vst [vmem:[#allocation196_spill] sm:$0xff] %v14956_v12  ;;  %v20217_v7 = vcvt.s32.f32 %v14806_v6  ;;  %v5537_v6 = vadd.f32 -1.0, %v14940_v21 }
 0x53a   : > { %20215 = vst [vmem:[#allocation228_spill] sm:$0xff] %v14947_v20  ;;  %v6302_v45 = vsel %vm14916_vm15, %v6082_v11, 0  ;;  %v4974_v5 = vmul.f32 %v14395_v53, %v4803_v22  ;;  %7454 = vmatmul.bf16.gmra.mxu3 %v14947_v20  ;;  %v19369_v63 = vcvt.s32.f32 %v14952_v61  ;;  %v8134_v11 = vshrl.u32 %v14851_v35, 16 }
 0x53b   : > { %v5477_v55 = vsub.f32 %v20217_v7, %v5422_v8  ;;  %v6421_v43 = vunpack.c.l.b16 %v6302_v45  ;;  %v14970_v40 = vsel %vm1060_vm0, %v6782_v3, %v14949_v24  ;;  %v6139_v3 = vsel %vm6029_vm6, 1, %v20125_v49 }
 0x53c   : > { %20218 = vst [vmem:[#allocation110_spill] sm:$0xff] %v14970_v40  ;;  %v5033_v52 = vadd.f32 %v14406_v1, %v4974_v5  ;;  %7043 = vmatmul.bf16.gmra.mxu2 %v14970_v40  ;;  %v5259_v38 = vadd.f32 0.5, %v19369_v63  ;;  %v14996_v45 = vadd.s32 136, %v14341_v0  ;;  %v20224_v18 = vcvt.s32.f32 %v14867_v29 }
 0x53d   : > { %v14985_v8 = vpack.c.b16 %v6421_v43, %v6420_v27  ;;  %vm5756_vm14 = vcmp.ge.f32.partialorder %v5477_v55, 0.5  ;;  %vm5866_vm15 = vcmp.le.f32.partialorder %v5477_v55, 16.5  ;;  %vm5592_vm3 = vcmp.ge.f32.partialorder %v5537_v6, 0.0 }
 0x53e   : > { %v5088_v32 = vmax.f32 %v5033_v52, 0.0  ;;  %v5478_v41 = vsub.f32 %v20224_v18, %v5423_v13  ;;  %vm5647_vm4 = vcmp.lt.f32.partialorder %v5537_v6, 16.0  ;;  %v5314_v63 = vmul.f32 0.041666668, %v5259_v38  ;;  %v20229_v18 = vld [vmem:[#allocation132_spill] sm:$0xff]  ;;  %vm5811_vm6 = vmand %vm14989_vm2, %vm5756_vm14 }
 0x53f   : > { %20221 = vst [vmem:[#allocation17_spill] sm:$0xff] %v14985_v8  ;;  %v4626_v22 = vpop.f32.mrf.mxu0  ;;  %v19372_v27 = vrot.slane %v14985_v8, 1  ;;  %v8138_v5 = vshll.u32 %v14985_v8, 16  ;;  %v20227_v40 = vrot.slane %v14851_v35, 1  ;;  %v19371_v13 = vcvt.s32.f32 %v14996_v45  ;;  %vm15031_vm5 = vmand %vm5592_vm3, %vm5647_vm4 }
 0x540   : > { %v6083_v7 = vpack.c.bf16 %v5088_v32, %v5088_v32  ;;  %v4804_v52 = vadd.f32 %v4626_v22, %v14020_v39  ;;  %v8136_v22 = vor.u32 %v8134_v11, %v14912_v19  ;;  %vm6194_vm7 = vcmp.eq.s32.totalorder %v6139_v3, 1  ;;  %vm15045_vm10 = vmand %vm5811_vm6, %vm5866_vm15 }
 0x541   : > { %v15014_v32 = vsel %vm1699_vm1, %v20227_v40, %v19372_v27  ;;  %v15016_v39 = vrot.slane %v8138_v5, 1  ;;  %v15027_v40 = vfloor.f32 %v5314_v63  ;;  %vm5757_vm8 = vcmp.ge.f32.partialorder %v5478_v41, 0.5  ;;  %vm15050_vm11 = vmpackc.low %vm6194_vm7, %vm6194_vm7 }
 0x542   : > { %20228 = vst [vmem:[#allocation112_spill] sm:$0xff] %v15014_v32  ;;  %v6303_v29 = vsel %vm14978_vm9, %v6083_v7, 0  ;;  %v4975_v25 = vmul.f32 %v14395_v53, %v4804_v52  ;;  %4665 = vmatmul.bf16.gmra.mxu0 %v20229_v18  ;;  %v6140_v19 = vsel %vm15005_vm13, 1, %v20125_v49  ;;  %vm5976_vm9 = vcmp.lt.f32.partialorder %v14887_v28, 17.5  ;;  %vm15066_vm12 = vmand %vm15031_vm5, %vm5757_vm8 }
 0x543   : > { %v6422_v38 = vunpack.c.l.b16 %v6303_v29  ;;  %v15037_v54 = vsel %vm1060_vm0, %v8136_v22, %v15016_v39  ;;  %v6788_v11 = vshrl.u32 %v14910_v17, 16  ;;  %v15058_v20 = vadd.s32 144, %v14341_v0  ;;  %vm6031_vm2 = vmand %vm15045_vm10, %vm5976_vm9 }
 0x544   : > { %v5034_v5 = vadd.f32 %v14406_v1, %v4975_v25  ;;  %20232 = vst [vmem:[#allocation230_spill] sm:$0xff] %v15037_v54  ;;  %vm5867_vm14 = vcmp.le.f32.partialorder %v5478_v41, 16.5  ;;  %v5424_v18 = vmul.f32 24.0, %v15027_v40  ;;  %vm6195_vm15 = vcmp.eq.s32.totalorder %v6140_v19, 1 }
 0x545   : > { %v15039_v7 = vpack.c.b16 %v6422_v38, %v6421_v43  ;;  %v5260_v43 = vadd.f32 0.5, %v19371_v13  ;;  %v5538_v13 = vadd.f32 -1.0, %v15027_v40  ;;  %v6790_v41 = vor.u32 %v6788_v11, %v14949_v24  ;;  %vm5922_vm13 = vmand %vm15066_vm12, %vm5867_vm14 }
 0x546   : > { %v5089_v6 = vmax.f32 %v5034_v5, 0.0  ;;  %vm5977_vm3 = vcmp.lt.f32.partialorder %v14940_v21, 17.5  ;;  %v6141_v24 = vsel %vm6031_vm2, 1, %v20125_v49  ;;  %v20242_v11 = vcvt.s32.f32 %v14952_v61  ;;  %vm15113_vm5 = vmpackc.low %vm6195_vm15, %vm6195_vm15 }
 0x547   : > { %v4628_v55 = vpop.f32.mrf.mxu0  ;;  %6588 = vmatmul.bf16.gmra.mxu1 %v15039_v7  ;;  %v19373_v52 = vrot.slane %v15039_v7, 1  ;;  %v6792_v29 = vshll.u32 %v15039_v7, 16  ;;  %v5315_v3 = vmul.f32 0.041666668, %v5260_v43  ;;  %vm5593_vm4 = vcmp.ge.f32.partialorder %v5538_v13, 0.0  ;;  %vm6032_vm7 = vmand %vm5922_vm13, %vm5977_vm3 }
 0x548   : > { %v6084_v22 = vpack.c.bf16 %v5089_v6, %v5089_v6  ;;  %v4805_v5 = vadd.f32 %v4628_v55, %v14029_v59  ;;  %v19374_v55 = vcvt.s32.f32 %v15058_v20  ;;  %v5479_v63 = vsub.f32 %v20242_v11, %v5424_v18  ;;  %v15139_v11 = vld [vmem:[%s19076_s2] ss:$0 sm:$0xff] }
 0x549   : > { %v15082_v27 = vsel %vm1699_vm1, %v20239_v31, %v19373_v52  ;;  %v6794_v6 = vrot.slane %v6792_v29, 1  ;;  %vm5648_vm6 = vcmp.lt.f32.partialorder %v5538_v13, 16.0  ;;  %v15109_v25 = vadd.f32 %v14104_v44, %v14164_v14 }
 0x54a   : > { %20240 = vst [vmem:[#allocation198_spill] sm:$0xff] %v15082_v27  ;;  %v6304_v59 = vsel %vm15050_vm11, %v6084_v22, 0  ;;  %v4976_v28 = vmul.f32 %v14395_v53, %v4805_v5  ;;  %7459 = vmatmul.bf16.gmra.mxu3 %v15082_v27  ;;  %v5261_v53 = vadd.f32 0.5, %v19374_v55  ;;  %v15117_v13 = vfloor.f32 %v5315_v3  ;;  %vm15119_vm10 = vmand %vm5593_vm4, %vm5648_vm6 }
 0x54b   : > { %v6423_v31 = vunpack.c.l.b16 %v6304_v59  ;;  %v15094_v52 = vsel %vm1060_vm0, %v6790_v41, %v6794_v6  ;;  %vm6196_vm8 = vcmp.eq.s32.totalorder %v6141_v24, 1  ;;  %vm5758_vm9 = vcmp.ge.f32.partialorder %v5479_v63, 0.5 }
 0x54c   : > { %20241 = vst [vmem:[#allocation108_spill] sm:$0xff] %v15094_v52  ;;  %v5035_v29 = vadd.f32 %v14406_v1, %v4976_v28  ;;  %7048 = vmatmul.bf16.gmra.mxu2 %v15094_v52  ;;  %v15124_v44 = vadd.s32 152, %v14341_v0  ;;  %v15128_v22 = vsel %vm6032_vm7, 1, %v20125_v49  ;;  %v8142_v5 = vshrl.u32 %v14985_v8, 16  ;;  %vm5813_vm12 = vmand %vm15119_vm10, %vm5758_vm9 }
 0x54d   : > { %v15105_v43 = vpack.c.b16 %v6423_v31, %v6422_v38  ;;  %v5316_v38 = vmul.f32 0.041666668, %v5261_v53  ;;  %vm5868_vm11 = vcmp.le.f32.partialorder %v5479_v63, 16.5  ;;  %v5425_v53 = vmul.f32 24.0, %v15117_v13  ;;  %vm15183_vm3 = vmpackc.low %vm6196_vm8, %vm6196_vm8 }
 0x54e   : > { %v5090_v61 = vmax.f32 %v5035_v29, 0.0  ;;  %v19376_v41 = vcvt.s32.f32 %v15124_v44  ;;  %v20248_v29 = vld [vmem:[#allocation138_spill] sm:$0xff]  ;;  %v6796_v1 = vshrl.u32 %v15039_v7, 16  ;;  %vm6197_vm14 = vcmp.eq.s32.totalorder %v15128_v22, 1  ;;  %vm15171_vm15 = vmand %vm5813_vm12, %vm5868_vm11 }
 0x54f   : > { %20243 = vst [vmem:[#allocation179_spill] sm:$0xff] %v15105_v43  ;;  %v4631_v18 = vpop.f32.mrf.mxu0  ;;  %v19379_v59 = vrot.slane %v15105_v43, 1  ;;  %v8146_v28 = vshll.u32 %v15105_v43, 16  ;;  %vm5978_vm2 = vcmp.lt.f32.partialorder %v15027_v40, 17.5  ;;  %vm15238_vm9 = vmpackc.low %vm6197_vm14, %vm6197_vm14  ;;  %vm5979_vm12 = vcmp.lt.f32.partialorder %v15117_v13, 17.5 }
 0x550   : > { %v6085_v14 = vpack.c.bf16 %v5090_v61, %v5090_v61  ;;  %v4806_v19 = vadd.f32 %v4631_v18, %v14040_v16  ;;  %v15147_v61 = vfloor.f32 %v5316_v38  ;;  %v5262_v55 = vadd.f32 0.5, %v19376_v41  ;;  %vm6033_vm6 = vmand %vm15171_vm15, %vm5978_vm2 }
 0x551   : > { %v20249_v38 = vrot.slane %v14985_v8, 1  ;;  %v6798_v41 = vor.u32 %v6796_v1, %v6794_v6  ;;  %v15176_v54 = vrot.slane %v8146_v28, 1  ;;  %v20253_v8 = vcvt.s32.f32 %v14996_v45 }
 0x552   : > { %v6305_v3 = vsel %vm15113_vm5, %v6085_v14, 0  ;;  %v4977_v16 = vmul.f32 %v15139_v11, %v4806_v19  ;;  %4670 = vmatmul.bf16.gmra.mxu0 %v20248_v29  ;;  %v5539_v14 = vadd.f32 -1.0, %v15117_v13  ;;  %v15156_v19 = vld [vmem:[%s19077_s3] ss:$0 sm:$0xff]  ;;  %v8144_v29 = vor.u32 %v8142_v5, %v15016_v39 }
 0x553   : > { %v6424_v18 = vunpack.c.l.b16 %v6305_v3  ;;  %v15165_v3 = vsel %vm1699_vm1, %v20249_v38, %v19379_v59  ;;  %v5480_v38 = vsub.f32 %v20253_v8, %v5425_v53  ;;  %v5426_v59 = vmul.f32 24.0, %v15147_v61 }
 0x554   : > { %v5036_v21 = vadd.f32 %v15156_v19, %v4977_v16  ;;  %20250 = vst [vmem:[#allocation236_spill] sm:$0xff] %v15165_v3  ;;  %v11504_v16 = vld [vmem:[#allocation9 + $0x128] sm:$0xff]  ;;  %v5317_v39 = vmul.f32 0.041666668, %v5262_v55  ;;  %vm5594_vm13 = vcmp.ge.f32.partialorder %v5539_v14, 0.0  ;;  %vm5649_vm4 = vcmp.lt.f32.partialorder %v5539_v14, 16.0 }
 0x555   : > { %v15168_v27 = vpack.c.b16 %v6424_v18, %v6423_v31  ;;  %8384 = vmatpush.bf16.msrb.mxu2 %v11504_v16  ;;  %v5540_v55 = vadd.f32 -1.0, %v15147_v61  ;;  %v20256_v28 = vrot.slane %v15039_v7, 1  ;;  %vm15228_vm7 = vmand %vm5594_vm13, %vm5649_vm4  ;;  %vm5759_vm5 = vcmp.ge.f32.partialorder %v5480_v38, 0.5 }
 0x556   : > { %v5091_v32 = vmax.f32 %v5036_v21, 0.0  ;;  %v15196_v24 = vfloor.f32 %v5317_v39  ;;  %v20259_v21 = vcvt.s32.f32 %v15058_v20  ;;  %vm5869_vm11 = vcmp.le.f32.partialorder %v5480_v38, 16.5  ;;  %vm5814_vm15 = vmand %vm15228_vm7, %vm5759_vm5 }
 0x557   : > { %v4633_v31 = vpop.f32.mrf.mxu0  ;;  %6593 = vmatmul.bf16.gmra.mxu1 %v15168_v27  ;;  %v19380_v63 = vrot.slane %v15168_v27, 1  ;;  %v6800_v5 = vshll.u32 %v15168_v27, 16  ;;  %vm5595_vm8 = vcmp.ge.f32.partialorder %v5540_v55, 0.0  ;;  %vm5650_vm10 = vcmp.lt.f32.partialorder %v5540_v55, 16.0  ;;  %vm15265_vm4 = vmand %vm5814_vm15, %vm5869_vm11 }
 0x558   : > { %v6086_v8 = vpack.c.bf16 %v5091_v32, %v5091_v32  ;;  %v4807_v45 = vadd.f32 %v4633_v31, %v14048_v42  ;;  %v15208_v42 = vadd.s32 160, %v14341_v0  ;;  %v15212_v32 = vsel %vm1060_vm0, %v8144_v29, %v15176_v54  ;;  %vm15252_vm14 = vmand %vm5595_vm8, %vm5650_vm10 }
 0x559   : > { %v15203_v53 = vsel %vm1699_vm1, %v20256_v28, %v19380_v63  ;;  %v15205_v1 = vrot.slane %v6800_v5, 1  ;;  %20258 = vst [vmem:[#allocation119_spill] sm:$0xff] %v15212_v32  ;;  %v5481_v16 = vsub.f32 %v20259_v21, %v5426_v59  ;;  %v5427_v39 = vmul.f32 24.0, %v15196_v24 }
 0x55a   : > { %20257 = vst [vmem:[#allocation201_spill] sm:$0xff] %v15203_v53  ;;  %v6306_v40 = vsel %vm15183_vm3, %v6086_v8, 0  ;;  %v4978_v52 = vmul.f32 %v15139_v11, %v4807_v45  ;;  %7464 = vmatmul.bf16.gmra.mxu3 %v15203_v53  ;;  %v6143_v29 = vsel %vm6033_vm6, 1, %v20125_v49  ;;  %v11496_v8 = vld [vmem:[#allocation9 + $0xe8] sm:$0xff]  ;;  %v5541_v59 = vadd.f32 -1.0, %v15196_v24 }
 0x55b   : > { %v6425_v31 = vunpack.c.l.b16 %v6306_v40  ;;  %v15223_v5 = vsel %vm1060_vm0, %v6798_v41, %v15205_v1  ;;  %7823 = vmatpush.bf16.msrb.mxu1 %v11496_v8  ;;  %v19381_v14 = vcvt.s32.f32 %v15208_v42  ;;  %vm5760_vm2 = vcmp.ge.f32.partialorder %v5481_v16, 0.5 }
 0x55c   : > { %20260 = vst [vmem:[#allocation213_spill] sm:$0xff] %v15223_v5  ;;  %v5037_v20 = vadd.f32 %v15156_v19, %v4978_v52  ;;  %7053 = vmatmul.bf16.gmra.mxu2 %v15223_v5  ;;  %v20266_v22 = vcvt.s32.f32 %v15124_v44  ;;  %v8150_v52 = vshrl.u32 %v15105_v43, 16  ;;  %v15259_v8 = vadd.s32 168, %v14341_v0  ;;  %vm15286_vm6 = vmand %vm15252_vm14, %vm5760_vm2 }
 0x55d   : > { %v15244_v45 = vpack.c.b16 %v6425_v31, %v6424_v18  ;;  %v5263_v18 = vadd.f32 0.5, %v19381_v14  ;;  %vm5596_vm3 = vcmp.ge.f32.partialorder %v5541_v59, 0.0  ;;  %vm5651_vm13 = vcmp.lt.f32.partialorder %v5541_v59, 16.0 }
 0x55e   : > { %v5092_v28 = vmax.f32 %v5037_v20, 0.0  ;;  %v5482_v40 = vsub.f32 %v20266_v22, %v5427_v39  ;;  %v19387_v14 = vcvt.s32.f32 %v15259_v8  ;;  %v20271_v53 = vrot.slane %v15105_v43, 1  ;;  %vm5706_vm5 = vmand %vm5596_vm3, %vm5651_vm13 }
 0x55f   : > { %20265 = vst [vmem:[#allocation121_spill] sm:$0xff] %v15244_v45  ;;  %v4636_v21 = vpop.f32.mrf.mxu0  ;;  %v19384_v6 = vrot.slane %v15244_v45, 1  ;;  %v8154_v20 = vshll.u32 %v15244_v45, 16  ;;  %v5318_v22 = vmul.f32 0.041666668, %v5263_v18  ;;  %vm5870_vm7 = vcmp.le.f32.partialorder %v5481_v16, 16.5 }
 0x560   : > { %v6087_v44 = vpack.c.bf16 %v5092_v28, %v5092_v28  ;;  %v4808_v39 = vadd.f32 %v4636_v21, %v14059_v48  ;;  %v20273_v21 = vld [vmem:[#allocation145_spill] sm:$0xff]  ;;  %vm5761_vm8 = vcmp.ge.f32.partialorder %v5482_v40, 0.5  ;;  %v5264_v41 = vadd.f32 0.5, %v19387_v14  ;;  %vm15321_vm11 = vmand %vm15286_vm6, %vm5870_vm7 }
 0x561   : > { %v15275_v5 = vsel %vm1699_vm1, %v20271_v53, %v19384_v6  ;;  %v15277_v28 = vrot.slane %v8154_v20, 1  ;;  %v8152_v53 = vor.u32 %v8150_v52, %v15176_v54  ;;  %v3623_v20 = vadd.f32 %v14136_v2, %v14190_v57  ;;  %vm15326_vm15 = vmand %vm5706_vm5, %vm5761_vm8  ;;  %v20285_v18 = vld [vmem:[#allocation217_spill] sm:$0xff] }
 0x562   : > { %20272 = vst [vmem:[#allocation238_spill] sm:$0xff] %v15275_v5  ;;  %v6307_v48 = vsel %vm15238_vm9, %v6087_v44, 0  ;;  %v4979_v38 = vmul.f32 %v15139_v11, %v4808_v39  ;;  %4675 = vmatmul.bf16.gmra.mxu0 %v20273_v21  ;;  %vm6198_vm10 = vcmp.eq.s32.totalorder %v6143_v29, 1  ;;  %vm15301_vm9 = vmand %vm15265_vm4, %vm5979_vm12  ;;  %v15305_v54 = vfloor.f32 %v5318_v22 }
 0x563   : > { %v6426_v6 = vunpack.c.l.b16 %v6307_v48  ;;  %v15309_v2 = vsel %vm1060_vm0, %v8152_v53, %v15277_v28  ;;  %v15313_v57 = vadd.f32 %v14111_v9, %v15109_v25  ;;  %v6804_v13 = vshrl.u32 %v15168_v27, 16  ;;  %vm15336_vm14 = vmpackc.low %vm6198_vm10, %vm6198_vm10 }
 0x564   : > { %v5038_v44 = vadd.f32 %v15156_v19, %v4979_v38  ;;  %20278 = vst [vmem:[#allocation203_spill] sm:$0xff] %v15309_v2  ;;  %vm5980_vm12 = vcmp.lt.f32.partialorder %v15147_v61, 17.5  ;;  %vm5871_vm2 = vcmp.le.f32.partialorder %v5482_v40, 16.5  ;;  %v5319_v9 = vmul.f32 0.041666668, %v5264_v41 }
 0x565   : > { %v15315_v59 = vpack.c.b16 %v6426_v6, %v6425_v31  ;;  %v15331_v25 = vadd.s32 176, %v14341_v0  ;;  %v15334_v16 = vadd.f32 %v14143_v33, %v3623_v20  ;;  %v6144_v22 = vsel %vm15301_vm9, 1, %v20125_v49  ;;  %vm6035_vm3 = vmand %vm15321_vm11, %vm5980_vm12 }
 0x566   : > { %v5093_v52 = vmax.f32 %v5038_v44, 0.0  ;;  %v6806_v33 = vor.u32 %v6804_v13, %v15205_v1  ;;  %v5428_v20 = vmul.f32 24.0, %v15305_v54  ;;  %v20286_v41 = vrot.slane %v15168_v27, 1  ;;  %vm15363_vm13 = vmand %vm15326_vm15, %vm5871_vm2 }
 0x567   : > { %v4638_v55 = vpop.f32.mrf.mxu0  ;;  %6598 = vmatmul.bf16.gmra.mxu1 %v15315_v59  ;;  %v19385_v48 = vrot.slane %v15315_v59, 1  ;;  %v6808_v38 = vshll.u32 %v15315_v59, 16  ;;  %vm5981_vm4 = vcmp.lt.f32.partialorder %v15196_v24, 17.5  ;;  %v5542_v61 = vadd.f32 -1.0, %v15305_v54 }
 0x568   : > { %v6088_v21 = vpack.c.bf16 %v5093_v52, %v5093_v52  ;;  %v4809_v53 = vadd.f32 %v4638_v55, %v20285_v18  ;;  %v15373_v52 = vfloor.f32 %v5319_v9  ;;  %v19386_v40 = vcvt.s32.f32 %v15331_v25  ;;  %vm6036_vm7 = vmand %vm15363_vm13, %vm5981_vm4 }
 0x569   : > { %v15358_v44 = vsel %vm1699_vm1, %v20286_v41, %v19385_v48  ;;  %v6810_v63 = vrot.slane %v6808_v38, 1  ;;  %v15378_v39 = vadd.f32 %v14166_v46, %v14209_v56  ;;  %v6145_v38 = vsel %vm6035_vm3, 1, %v20125_v49 }
 0x56a   : > { %20287 = vst [vmem:[#allocation206_spill] sm:$0xff] %v15358_v44  ;;  %v6308_v13 = vsel %vm15336_vm14, %v6088_v21, 0  ;;  %v4980_v29 = vmul.f32 %v15139_v11, %v4809_v53  ;;  %7469 = vmatmul.bf16.gmra.mxu3 %v15358_v44  ;;  %vm6199_vm6 = vcmp.eq.s32.totalorder %v6144_v22, 1  ;;  %v20291_v9 = vcvt.s32.f32 %v15208_v42  ;;  %v20296_v44 = vld [vmem:[#allocation152_spill] sm:$0xff] }
 0x56b   : > { %v6427_v55 = vunpack.c.l.b16 %v6308_v13  ;;  %v15381_v24 = vsel %vm1060_vm0, %v6806_v33, %v6810_v63  ;;  %v5265_v46 = vadd.f32 0.5, %v19386_v40  ;;  %v15394_v56 = vadd.f32 %v14192_v34, %v14228_v50  ;;  %vm15400_vm9 = vmpackc.low %vm6199_vm6, %vm6199_vm6  ;;  %v20295_v13 = vld [vmem:[#allocation135_spill] sm:$0xff] }
 0x56c   : > { %20290 = vst [vmem:[#allocation126_spill] sm:$0xff] %v15381_v24  ;;  %v5039_v31 = vadd.f32 %v15156_v19, %v4980_v29  ;;  %7058 = vmatmul.bf16.gmra.mxu2 %v15381_v24  ;;  %v5483_v21 = vsub.f32 %v20291_v9, %v5428_v20  ;;  %vm5597_vm5 = vcmp.ge.f32.partialorder %v5542_v61, 0.0  ;;  %vm5652_vm8 = vcmp.lt.f32.partialorder %v5542_v61, 16.0 }
 0x56d   : > { %v15396_v18 = vpack.c.b16 %v6427_v55, %v6426_v6  ;;  %vm6200_vm10 = vcmp.eq.s32.totalorder %v6145_v38, 1  ;;  %v5429_v53 = vmul.f32 24.0, %v15373_v52  ;;  %v8158_v33 = vshrl.u32 %v15244_v45, 16  ;;  %vm5707_vm11 = vmand %vm5597_vm5, %vm5652_vm8 }
 0x56e   : > { %v5094_v22 = vmax.f32 %v5039_v31, 0.0  ;;  %v15405_v41 = vsel %vm6036_vm7, 1, %v20125_v49  ;;  %v6812_v34 = vshrl.u32 %v15315_v59, 16  ;;  %v5320_v50 = vmul.f32 0.041666668, %v5265_v46  ;;  %vm15455_vm7 = vmpackc.low %vm6200_vm10, %vm6200_vm10 }
 0x56f   : > { %20292 = vst [vmem:[#allocation219_spill] sm:$0xff] %v15396_v18  ;;  %v4641_v20 = vpop.f32.mrf.mxu0  ;;  %v15409_v6 = vadd.s32 184, %v14341_v0  ;;  %vm5762_vm12 = vcmp.ge.f32.partialorder %v5483_v21, 0.5  ;;  %v5543_v31 = vadd.f32 -1.0, %v15373_v52  ;;  %v8162_v14 = vshll.u32 %v15396_v18, 16 }
 0x570   : > { %v6089_v1 = vpack.c.bf16 %v5094_v22, %v5094_v22  ;;  %v4810_v29 = vadd.f32 %v4641_v20, %v20295_v13  ;;  %v15414_v9 = vfloor.f32 %v5320_v50  ;;  %vm5872_vm15 = vcmp.le.f32.partialorder %v5483_v21, 16.5  ;;  %vm5817_vm2 = vmand %vm5707_vm11, %vm5762_vm12 }
 0x571   : > { %v19390_v48 = vcvt.s32.f32 %v15409_v6  ;;  %v20297_v61 = vcvt.s32.f32 %v15259_v8  ;;  %vm5982_vm14 = vcmp.lt.f32.partialorder %v15305_v54, 17.5  ;;  %v20299_v8 = vrot.slane %v15244_v45, 1  ;;  %vm15448_vm13 = vmand %vm5817_vm2, %vm5872_vm15 }
 0x572   : > { %v6309_v46 = vsel %vm15400_vm9, %v6089_v1, 0  ;;  %v4981_v22 = vmul.f32 %v15139_v11, %v4810_v29  ;;  %4680 = vmatmul.bf16.gmra.mxu0 %v20296_v44  ;;  %v5430_v13 = vmul.f32 24.0, %v15414_v9  ;;  %v5544_v40 = vadd.f32 -1.0, %v15414_v9  ;;  %vm15480_vm10 = vmand %vm15448_vm13, %vm5982_vm14 }
 0x573   : > { %v15425_v20 = vsub.f32 %v20297_v61, %v5429_v53  ;;  %v6428_v50 = vunpack.c.l.b16 %v6309_v46  ;;  %v5266_v24 = vadd.f32 0.5, %v19390_v48  ;;  %v20298_v44 = vrot.slane %v15396_v18, 1 }
 0x574   : > { %v5040_v42 = vadd.f32 %v15156_v19, %v4981_v22  ;;  %v15432_v1 = vpop.f32.mrf.mxu1  ;;  %v8160_v29 = vor.u32 %v8158_v33, %v15277_v28  ;;  %v6814_v61 = vor.u32 %v6812_v34, %v6810_v63  ;;  %vm5598_vm3 = vcmp.ge.f32.partialorder %v5543_v31, 0.0 }
 0x575   : > { %v15440_v53 = vsel %vm1699_vm1, %v20299_v8, %v20298_v44  ;;  %v15443_v46 = vpack.c.b16 %v6428_v50, %v6427_v55  ;;  %v15445_v48 = vrot.slane %v8162_v14, 1  ;;  %vm5653_vm4 = vcmp.lt.f32.partialorder %v5543_v31, 16.0 }
 0x576   : > { %20300 = vst [vmem:[#allocation31_spill] sm:$0xff] %v15440_v53  ;;  %v5095_v22 = vmax.f32 %v5040_v42, 0.0  ;;  %vm5763_vm6 = vcmp.ge.f32.partialorder %v15425_v20, 0.5  ;;  %v5321_v5 = vmul.f32 0.041666668, %v5266_v24  ;;  %v20305_v21 = vcvt.s32.f32 %v15331_v25  ;;  %v20306_v42 = vld [vmem:[#allocation195_spill] sm:$0xff]  ;;  %vm5708_vm9 = vmand %vm5598_vm3, %vm5653_vm4 }
 0x577   : > { %v4643_v63 = vpop.f32.mrf.mxu0  ;;  %6603 = vmatmul.bf16.gmra.mxu1 %v15443_v46  ;;  %v19391_v14 = vrot.slane %v15443_v46, 1  ;;  %v6816_v55 = vshll.u32 %v15443_v46, 16  ;;  %vm5599_vm5 = vcmp.ge.f32.partialorder %v5544_v40, 0.0  ;;  %vm5654_vm8 = vcmp.lt.f32.partialorder %v5544_v40, 16.0  ;;  %vm15518_vm14 = vmand %vm5708_vm9, %vm5763_vm6 }
 0x578   : > { %v5485_v33 = vsub.f32 %v20305_v21, %v5430_v13  ;;  %v6090_v34 = vpack.c.bf16 %v5095_v22, %v5095_v22  ;;  %v4811_v24 = vadd.f32 %v4643_v63, %v20306_v42  ;;  %v15465_v38 = vfloor.f32 %v5321_v5  ;;  %vm5709_vm11 = vmand %vm5599_vm5, %vm5654_vm8 }
 0x579   : > { %v20307_v44 = vrot.slane %v15315_v59, 1  ;;  %v15474_v53 = vrot.slane %v6816_v55, 1  ;;  %v15485_v5 = vadd.s32 192, %v14341_v0  ;;  %v15489_v13 = vsel %vm1060_vm0, %v8160_v29, %v15445_v48 }
 0x57a   : > { %20311 = vst [vmem:[#allocation210_spill] sm:$0xff] %v15489_v13  ;;  %v6310_v22 = vsel %vm15455_vm7, %v6090_v34, 0  ;;  %v4982_v63 = vmul.f32 %v15139_v11, %v4811_v24  ;;  %v5431_v54 = vmul.f32 24.0, %v15465_v38  ;;  %v5545_v2 = vadd.f32 -1.0, %v15465_v38 }
 0x57b   : > { %v15472_v8 = vsel %vm1699_vm1, %v20307_v44, %v19391_v14  ;;  %v3629_v55 = vadd.f32 %v14211_v36, %v14249_v23  ;;  %v6429_v21 = vunpack.c.l.b16 %v6310_v22  ;;  %v15503_v29 = vsel %vm1060_vm0, %v6814_v61, %v15474_v53 }
 0x57c   : > { %20308 = vst [vmem:[#allocation16_spill] sm:$0xff] %v15472_v8  ;;  %7474 = vmatmul.bf16.gmra.mxu3 %v15472_v8  ;;  %vm5764_vm12 = vcmp.ge.f32.partialorder %v5485_v33, 0.5  ;;  %v5041_v28 = vadd.f32 %v15156_v19, %v4982_v63  ;;  %vm6201_vm15 = vcmp.eq.s32.totalorder %v15405_v41, 1  ;;  %v15509_v31 = vpop.f32.mrf.mxu1  ;;  %7063 = vmatmul.bf16.gmra.mxu2 %v15503_v29  ;;  %v6147_v36 = vsel %vm15480_vm10, 1, %v20125_v49  ;;  %v20341_v63 = vld [vmem:[#allocation158_spill] sm:$0xff] }
 0x57d   : > { %20312 = vst [vmem:[#allocation131_spill] sm:$0xff] %v15503_v29  ;;  %vm5983_vm2 = vcmp.lt.f32.partialorder %v15373_v52, 17.5  ;;  %vm5873_vm3 = vcmp.le.f32.partialorder %v15425_v20, 16.5  ;;  %vm5874_vm13 = vcmp.le.f32.partialorder %v5485_v33, 16.5  ;;  %v19392_v40 = vcvt.s32.f32 %v15485_v5  ;;  %vm15526_vm4 = vmand %vm5709_vm11, %vm5764_vm12  ;;  %v20329_v29 = vld [vmem:[#allocation159_spill] sm:$0xff] }
 0x57e   : > { %v15524_v41 = vpack.c.b16 %v6429_v21, %v6428_v50  ;;  %v5096_v61 = vmax.f32 %v5041_v28, 0.0  ;;  %v20318_v42 = vcvt.s32.f32 %v15409_v6  ;;  %vm5600_vm7 = vcmp.ge.f32.partialorder %v5545_v2, 0.0  ;;  %vm15532_vm5 = vmpackc.low %vm6201_vm15, %vm6201_vm15  ;;  %v20321_v6 = vld [vmem:[#allocation220_spill] sm:$0xff] }
 0x57f   : > { %vm5655_vm6 = vcmp.lt.f32.partialorder %v5545_v2, 16.0  ;;  %v4646_v25 = vpop.f32.mrf.mxu0  ;;  %v5267_v22 = vadd.f32 0.5, %v19392_v40  ;;  %v15539_v50 = vadd.s32 200, %v14341_v0  ;;  %vm15548_vm8 = vmand %vm15518_vm14, %vm5873_vm3  ;;  %vm5984_vm10 = vcmp.lt.f32.partialorder %v15414_v9, 17.5  ;;  %v11503_v9 = vld [vmem:[#allocation9 + $0x120] sm:$0xff] }
 0x580   : > { %20315 = vst [vmem:[#allocation225_spill] sm:$0xff] %v15524_v41  ;;  %v5486_v24 = vsub.f32 %v20318_v42, %v5431_v54  ;;  %v8170_v28 = vshll.u32 %v15524_v41, 16  ;;  %v6091_v14 = vpack.c.bf16 %v5096_v61, %v5096_v61  ;;  %v4812_v54 = vadd.f32 %v4646_v25, %v20321_v6  ;;  %vm15557_vm9 = vmand %vm15526_vm4, %vm5874_vm13  ;;  %8385 = vmatpush.bf16.msrb.mxu2 %v11503_v9 }
 0x581   : > { %v8166_v40 = vshrl.u32 %v15396_v18, 16  ;;  %v5322_v61 = vmul.f32 0.041666668, %v5267_v22  ;;  %v20326_v23 = vrot.slane %v15524_v41, 1  ;;  %v20327_v25 = vrot.slane %v15396_v18, 1  ;;  %vm15577_vm11 = vmand %vm5600_vm7, %vm5655_vm6  ;;  %v20358_v18 = vld [vmem:[#allocation46_spill] sm:$0xff] }
 0x582   : > { %v15569_v8 = vrot.slane %v8170_v28, 1  ;;  %v6311_v33 = vsel %vm15532_vm5, %v6091_v14, 0  ;;  %v4983_v34 = vmul.f32 %v15139_v11, %v4812_v54  ;;  %4685 = vmatmul.bf16.gmra.mxu0 %v20329_v29  ;;  %vm5765_vm12 = vcmp.ge.f32.partialorder %v5486_v24, 0.5  ;;  %vm15590_vm15 = vmand %vm15548_vm8, %vm5983_vm2 }
 0x583   : > { %v15567_v6 = vsel %vm1699_vm1, %v20327_v25, %v20326_v23  ;;  %v8168_v20 = vor.u32 %v8166_v40, %v15445_v48  ;;  %v15584_v28 = vadd.f32 %v14171_v58, %v15378_v39  ;;  %v6430_v23 = vunpack.c.l.b16 %v6311_v33  ;;  %vm15609_vm2 = vmand %vm15557_vm9, %vm5984_vm10 }
 0x584   : > { %20328 = vst [vmem:[#allocation32_spill] sm:$0xff] %v15567_v6  ;;  %v15594_v2 = vfloor.f32 %v5322_v61  ;;  %v20334_v29 = vcvt.s32.f32 %v15539_v50  ;;  %v15600_v48 = vadd.f32 %v14197_v37, %v15394_v56  ;;  %v5042_v58 = vadd.f32 %v15156_v19, %v4983_v34  ;;  %v15603_v39 = vpop.f32.mrf.mxu1  ;;  %vm15623_vm3 = vmand %vm15577_vm11, %vm5765_vm12 }
 0x585   : > { %vm6202_vm14 = vcmp.eq.s32.totalorder %v6147_v36, 1  ;;  %v15615_v40 = vsel %vm1060_vm0, %v8168_v20, %v15569_v8  ;;  %v15617_v54 = vpack.c.b16 %v6430_v23, %v6429_v21  ;;  %v6820_v37 = vshrl.u32 %v15443_v46, 16 }
 0x586   : > { %v5268_v44 = vadd.f32 0.5, %v20334_v29  ;;  %20337 = vst [vmem:[#allocation21_spill] sm:$0xff] %v15615_v40  ;;  %vm5875_vm13 = vcmp.le.f32.partialorder %v5486_v24, 16.5  ;;  %v5432_v36 = vmul.f32 24.0, %v15594_v2  ;;  %v15629_v42 = vadd.f32 %v20341_v63, %v3629_v55  ;;  %vm15634_vm4 = vmpackc.low %vm6202_vm14, %vm6202_vm14 }
 0x587   : > { %20338 = vst [vmem:[#allocation216_spill] sm:$0xff] %v15617_v54  ;;  %v5097_v61 = vmax.f32 %v5042_v58, 0.0  ;;  %v15632_v21 = vadd.s32 208, %v14341_v0  ;;  %v4648_v33 = vpop.f32.mrf.mxu0  ;;  %v6148_v34 = vsel %vm15590_vm15, 1, %v20125_v49  ;;  %6608 = vmatmul.bf16.gmra.mxu1 %v15617_v54  ;;  %v19395_v22 = vrot.slane %v15617_v54, 1  ;;  %v20344_v58 = vld [vmem:[#allocation139_spill] sm:$0xff]  ;;  %vm15654_vm7 = vmand %vm15623_vm3, %vm5875_vm13 }
 0x588   : > { %v5323_v20 = vmul.f32 0.041666668, %v5268_v44  ;;  %v6822_v55 = vor.u32 %v6820_v37, %v15474_v53  ;;  %v6824_v29 = vshll.u32 %v15617_v54, 16  ;;  %v4813_v63 = vadd.f32 %v4648_v33, %v20344_v58 }
 0x589   : > { %v6092_v44 = vpack.c.bf16 %v5097_v61, %v5097_v61  ;;  %v15649_v40 = vsel %vm15609_vm2, 1, %v20125_v49  ;;  %vm5985_vm6 = vcmp.lt.f32.partialorder %v15465_v38, 17.5  ;;  %v20347_v53 = vrot.slane %v15443_v46, 1 }
 0x58a   : > { %v15666_v9 = vrot.slane %v6824_v29, 1  ;;  %v20349_v52 = vcvt.s32.f32 %v15485_v5  ;;  %v5546_v56 = vadd.f32 -1.0, %v15594_v2  ;;  %v4984_v38 = vmul.f32 %v15139_v11, %v4813_v63  ;;  %v20350_v29 = vld [vmem:[#allocation182_spill] sm:$0xff]  ;;  %vm15690_vm8 = vmand %vm15654_vm7, %vm5985_vm6 }
 0x58b   : > { %v15664_v37 = vsel %vm1699_vm1, %v20347_v53, %v19395_v22  ;;  %v6312_v61 = vsel %vm15634_vm4, %v6092_v44, 0  ;;  %v15677_v33 = vfloor.f32 %v5323_v20  ;;  %v5214_v58 = vcvt.s32.f32 %v15632_v21  ;;  %v11495_v20 = vld [vmem:[#allocation9 + $0xe0] sm:$0xff] }
 0x58c   : > { %20348 = vst [vmem:[#allocation136_spill] sm:$0xff] %v15664_v37  ;;  %v15670_v24 = vsub.f32 %v20349_v52, %v5432_v36  ;;  %7479 = vmatmul.bf16.gmra.mxu3 %v15664_v37  ;;  %v15682_v53 = vadd.f32 %v20350_v29, %v14269_v10  ;;  %v6431_v5 = vunpack.c.l.b16 %v6312_v61  ;;  %vm6203_vm5 = vcmp.eq.s32.totalorder %v6148_v34, 1  ;;  %v15695_v21 = vpop.f32.mrf.mxu1  ;;  %7824 = vmatpush.bf16.msrb.mxu1 %v11495_v20 }
 0x58d   : > { %v15686_v36 = vsel %vm1060_vm0, %v6822_v55, %v15666_v9  ;;  %v5043_v44 = vadd.f32 %v15156_v19, %v4984_v38  ;;  %vm6204_vm10 = vcmp.eq.s32.totalorder %v15649_v40, 1  ;;  %v5433_v10 = vmul.f32 24.0, %v15677_v33  ;;  %v7440_v52 = vpop.f32.mrf.mxu3  ;;  %vm15713_vm15 = vmpackc.low %vm6203_vm5, %vm6203_vm5 }
 0x58e   : > { %20351 = vst [vmem:[#allocation231_spill] sm:$0xff] %v15686_v36  ;;  %7068 = vmatmul.bf16.gmra.mxu2 %v15686_v36  ;;  %v5547_v55 = vadd.f32 -1.0, %v15677_v33  ;;  %v5269_v63 = vadd.f32 0.5, %v5214_v58  ;;  %vm5601_vm9 = vcmp.ge.f32.partialorder %v5546_v56, 0.0  ;;  %vm5656_vm11 = vcmp.lt.f32.partialorder %v5546_v56, 16.0 }
 0x58f   : > { %v15701_v14 = vpack.c.b16 %v6431_v5, %v6430_v23  ;;  %v8174_v61 = vshrl.u32 %v15524_v41, 16  ;;  %v5098_v38 = vmax.f32 %v5043_v44, 0.0  ;;  %v15707_v29 = vsel %vm15690_vm8, 1, %v20125_v49  ;;  %v4651_v23 = vpop.f32.mrf.mxu0  ;;  %v7029_v20 = vpop.f32.mrf.mxu2  ;;  %vm5711_vm2 = vmand %vm5601_vm9, %vm5656_vm11 }
 0x590   : > { %v6828_v22 = vshrl.u32 %v15617_v54, 16  ;;  %vm5766_vm12 = vcmp.ge.f32.partialorder %v15670_v24, 0.5  ;;  %vm5876_vm14 = vcmp.le.f32.partialorder %v15670_v24, 16.5  ;;  %v20357_v44 = vcvt.s32.f32 %v15539_v50  ;;  %vm15786_vm11 = vmpackc.low %vm6204_vm10, %vm6204_vm10 }
 0x591   : > { %20354 = vst [vmem:[#allocation39_spill] sm:$0xff] %v15701_v14  ;;  %v5324_v25 = vmul.f32 0.041666668, %v5269_v63  ;;  %v15723_v6 = vadd.s32 216, %v14341_v0  ;;  %v6093_v13 = vpack.c.bf16 %v5098_v38, %v5098_v38  ;;  %v4814_v34 = vadd.f32 %v4651_v23, %v20358_v18  ;;  %vm15742_vm4 = vmand %vm5711_vm2, %vm5766_vm12 }
 0x592   : > { %v15720_v36 = vsub.f32 %v20357_v44, %v5433_v10  ;;  %v7197_v45 = vadd.f32 %v7029_v20, %v15432_v1  ;;  %vm5602_vm3 = vcmp.ge.f32.partialorder %v5547_v55, 0.0  ;;  %vm5657_vm13 = vcmp.lt.f32.partialorder %v5547_v55, 16.0  ;;  %v20359_v44 = vld [vmem:[#allocation165_spill] sm:$0xff]  ;;  %vm15776_vm8 = vmand %vm15742_vm4, %vm5876_vm14 }
 0x593   : > { %v15729_v32 = vfloor.f32 %v5324_v25  ;;  %v19400_v50 = vcvt.s32.f32 %v15723_v6  ;;  %v19403_v10 = vrot.slane %v15701_v14, 1  ;;  %v6313_v63 = vsel %vm15713_vm15, %v6093_v13, 0  ;;  %4690 = vmatmul.bf16.gmra.mxu0 %v20359_v44  ;;  %vm15767_vm6 = vmand %vm5602_vm3, %vm5657_vm13 }
 0x594   : > { %v4985_v38 = vmul.f32 %v15139_v11, %v4814_v34  ;;  %v15737_v18 = vadd.f32 %v7440_v52, %v7197_v45  ;;  %v8178_v1 = vshll.u32 %v15701_v14, 16  ;;  %v6432_v56 = vunpack.c.l.b16 %v6313_v63  ;;  %v15751_v45 = vpop.f32.mrf.mxu1 }
 0x595   : > { %v5434_v20 = vmul.f32 24.0, %v15729_v32  ;;  %v5548_v37 = vadd.f32 -1.0, %v15729_v32  ;;  %v5270_v13 = vadd.f32 0.5, %v19400_v50  ;;  %vm5986_vm7 = vcmp.lt.f32.partialorder %v15594_v2, 17.5 }
 0x596   : > { %20360 = vst [vmem:[#allocation33_spill] sm:$0xff] %v15737_v18  ;;  %v5044_v25 = vadd.f32 %v15156_v19, %v4985_v38  ;;  %v20363_v52 = vrot.slane %v15524_v41, 1  ;;  %v8176_v63 = vor.u32 %v8174_v61, %v15569_v8  ;;  %v15762_v44 = vpack.c.b16 %v6432_v56, %v6431_v5  ;;  %v7442_v18 = vpop.f32.mrf.mxu3  ;;  %vm15816_vm2 = vmand %vm15776_vm8, %vm5986_vm7 }
 0x597   : > { %v6830_v50 = vor.u32 %v6828_v22, %v15666_v9  ;;  %vm5767_vm5 = vcmp.ge.f32.partialorder %v15720_v36, 0.5  ;;  %v5489_v3 = vsub.f32 %v5214_v58, %v5434_v20  ;;  %vm5877_vm9 = vcmp.le.f32.partialorder %v15720_v36, 16.5  ;;  %v4653_v58 = vpop.f32.mrf.mxu0  ;;  %v7031_v24 = vpop.f32.mrf.mxu2 }
 0x598   : > { %v15759_v34 = vsel %vm1699_vm1, %v20363_v52, %v19403_v10  ;;  %20365 = vst [vmem:[#allocation143_spill] sm:$0xff] %v15762_v44  ;;  %v5099_v41 = vmax.f32 %v5044_v25, 0.0  ;;  %v5325_v22 = vmul.f32 0.041666668, %v5270_v13  ;;  %v15781_v9 = vrot.slane %v8178_v1, 1  ;;  %6613 = vmatmul.bf16.gmra.mxu1 %v15762_v44  ;;  %v20372_v1 = vld [vmem:[#allocation180_spill] sm:$0xff]  ;;  %vm15799_vm10 = vmand %vm15767_vm6, %vm5767_vm5 }
 0x599   : > { %20364 = vst [vmem:[#allocation222_spill] sm:$0xff] %v15759_v34  ;;  %v19402_v55 = vrot.slane %v15762_v44, 1  ;;  %v6832_v61 = vshll.u32 %v15762_v44, 16  ;;  %vm5603_vm12 = vcmp.ge.f32.partialorder %v5548_v37, 0.0  ;;  %vm5658_vm15 = vcmp.lt.f32.partialorder %v5548_v37, 16.0  ;;  %vm15852_vm13 = vmand %vm15799_vm10, %vm5877_vm9  ;;  %v20397_v13 = vld [vmem:[#allocation172_spill] sm:$0xff] }
 0x59a   : > { %v6094_v23 = vpack.c.bf16 %v5099_v41, %v5099_v41  ;;  %v4815_v20 = vadd.f32 %v4653_v58, %v20372_v1  ;;  %v7198_v40 = vadd.f32 %v7031_v24, %v15509_v31  ;;  %vm5768_vm14 = vcmp.ge.f32.partialorder %v5489_v3, 0.5  ;;  %vm15830_vm3 = vmand %vm5603_vm12, %vm5658_vm15 }
 0x59b   : > { %v20375_v25 = vrot.slane %v15617_v54, 1  ;;  %v15810_v41 = vrot.slane %v6832_v61, 1  ;;  %v15820_v38 = vfloor.f32 %v5325_v22  ;;  %v15823_v58 = vadd.s32 224, %v14341_v0  ;;  %v20383_v61 = vld [vmem:[#allocation149_spill] sm:$0xff]  ;;  %vm15871_vm6 = vmand %vm15830_vm3, %vm5768_vm14 }
 0x59c   : > { %v6314_v24 = vsel %vm15786_vm11, %v6094_v23, 0  ;;  %v4986_v1 = vmul.f32 %v15139_v11, %v4815_v20  ;;  %v15834_v8 = vadd.f32 %v7442_v18, %v7198_v40  ;;  %v15838_v22 = vsel %vm1060_vm0, %v8176_v63, %v15781_v9  ;;  %v20387_v63 = vld [vmem:[#allocation161_spill] sm:$0xff] }
 0x59d   : > { %v15808_v52 = vsel %vm1699_vm1, %v20375_v25, %v19402_v55  ;;  %20382 = vst [vmem:[#allocation40_spill] sm:$0xff] %v15838_v22  ;;  %v15842_v25 = vadd.f32 %v20383_v61, %v15313_v57  ;;  %v6433_v5 = vunpack.c.l.b16 %v6314_v24  ;;  %v15846_v23 = vsel %vm1060_vm0, %v6830_v50, %v15810_v41  ;;  %v15859_v57 = vpop.f32.mrf.mxu1 }
 0x59e   : > { %20376 = vst [vmem:[#allocation113_spill] sm:$0xff] %v15808_v52  ;;  %7484 = vmatmul.bf16.gmra.mxu3 %v15808_v52  ;;  %vm5987_vm4 = vcmp.lt.f32.partialorder %v15677_v33, 17.5  ;;  %v5045_v37 = vadd.f32 %v15156_v19, %v4986_v1  ;;  %vm6205_vm7 = vcmp.eq.s32.totalorder %v15707_v29, 1  ;;  %7073 = vmatmul.bf16.gmra.mxu2 %v15846_v23  ;;  %v5435_v50 = vmul.f32 24.0, %v15820_v38  ;;  %v7445_v40 = vpop.f32.mrf.mxu3 }
 0x59f   : > { %20381 = vst [vmem:[#allocation47_spill] sm:$0xff] %v15834_v8  ;;  %v5549_v36 = vadd.f32 -1.0, %v15820_v38  ;;  %v15866_v20 = vadd.f32 %v20387_v63, %v15682_v53  ;;  %vm5878_vm5 = vcmp.le.f32.partialorder %v5489_v3, 16.5  ;;  %v19404_v24 = vcvt.s32.f32 %v15823_v58  ;;  %vm6042_vm8 = vmand %vm15852_vm13, %vm5987_vm4  ;;  %v7034_v63 = vpop.f32.mrf.mxu2 }
 0x5a0   : > { %20384 = vst [vmem:[#allocation229_spill] sm:$0xff] %v15846_v23  ;;  %v15876_v1 = vpack.c.b16 %v6433_v5, %v6432_v56  ;;  %v5100_v61 = vmax.f32 %v5045_v37, 0.0  ;;  %v6151_v55 = vsel %vm15816_vm2, 1, %v20125_v49  ;;  %v20391_v53 = vcvt.s32.f32 %v15723_v6  ;;  %vm15890_vm11 = vmpackc.low %vm6205_vm7, %vm6205_vm7  ;;  %v4656_v37 = vpop.f32.mrf.mxu0 }
 0x5a1   : > { %vm5604_vm9 = vcmp.ge.f32.partialorder %v5549_v36, 0.0  ;;  %vm5659_vm12 = vcmp.lt.f32.partialorder %v5549_v36, 16.0  ;;  %v5271_v33 = vadd.f32 0.5, %v19404_v24  ;;  %v15897_v31 = vadd.s32 232, %v14341_v0  ;;  %vm5933_vm15 = vmand %vm15871_vm6, %vm5878_vm5 }
 0x5a2   : > { %20390 = vst [vmem:[#allocation150_spill] sm:$0xff] %v15876_v1  ;;  %v5490_v2 = vsub.f32 %v20391_v53, %v5435_v50  ;;  %v19406_v6 = vrot.slane %v15876_v1, 1  ;;  %v6095_v18 = vpack.c.bf16 %v5100_v61, %v5100_v61  ;;  %v20394_v50 = vld [vmem:[#allocation154_spill] sm:$0xff]  ;;  %v7199_v29 = vadd.f32 %v7034_v63, %v15603_v39  ;;  %vm15923_vm14 = vmand %vm5604_vm9, %vm5659_vm12 }
 0x5a3   : > { %v4816_v53 = vadd.f32 %v4656_v37, %v20394_v50  ;;  %vm5988_vm10 = vcmp.lt.f32.partialorder %v15729_v32, 17.5  ;;  %v15907_v10 = vsel %vm6042_vm8, 1, %v20125_v49  ;;  %v5326_v24 = vmul.f32 0.041666668, %v5271_v33  ;;  %4695 = vmatmul.bf16.gmra.mxu0 %v20397_v13  ;;  %v20401_v33 = vld [vmem:[#allocation164_spill] sm:$0xff]  ;;  %v20405_v13 = vld [vmem:[#allocation103_spill] sm:$0xff] }
 0x5a4   : > { %v19408_v52 = vcvt.s32.f32 %v15897_v31  ;;  %v20395_v61 = vrot.slane %v15701_v14, 1  ;;  %v6315_v3 = vsel %vm15890_vm11, %v6095_v18, 0  ;;  %vm5769_vm2 = vcmp.ge.f32.partialorder %v5490_v2, 0.5  ;;  %vm15933_vm3 = vmand %vm5933_vm15, %vm5988_vm10 }
 0x5a5   : > { %v4987_v39 = vmul.f32 %v15139_v11, %v4816_v53  ;;  %v15927_v63 = vadd.f32 %v7445_v40, %v7199_v29  ;;  %v15931_v50 = vadd.f32 %v20401_v33, %v15334_v16  ;;  %v15937_v18 = vfloor.f32 %v5326_v24  ;;  %v20404_v53 = vld [vmem:[#allocation167_spill] sm:$0xff]  ;;  %v15946_v29 = vpop.f32.mrf.mxu1  ;;  %vm15959_vm7 = vmand %vm15923_vm14, %vm5769_vm2 }
 0x5a6   : > { %v15915_v37 = vsel %vm1699_vm1, %v20395_v61, %v19406_v6  ;;  %v6434_v61 = vunpack.c.l.b16 %v6315_v3  ;;  %v5272_v36 = vadd.f32 0.5, %v19408_v52  ;;  %v15943_v6 = vadd.f32 %v20405_v13, %v20404_v53  ;;  %v20406_v3 = vld [vmem:[#allocation235_spill] sm:$0xff]  ;;  %v7447_v23 = vpop.f32.mrf.mxu3 }
 0x5a7   : > { %20396 = vst [vmem:[#allocation240_spill] sm:$0xff] %v15915_v37  ;;  %v5046_v40 = vadd.f32 %v15156_v19, %v4987_v39  ;;  %vm6206_vm13 = vcmp.eq.s32.totalorder %v6151_v55, 1  ;;  %v6836_v16 = vshrl.u32 %v15762_v44, 16  ;;  %v15951_v33 = vadd.f32 %v20406_v3, %v15584_v28  ;;  %v7036_v32 = vpop.f32.mrf.mxu2  ;;  %v20412_v37 = vld [vmem:[#allocation155_spill] sm:$0xff] }
 0x5a8   : > { %20400 = vst [vmem:[#allocation55_spill] sm:$0xff] %v15927_v63  ;;  %v15953_v24 = vpack.c.b16 %v6434_v61, %v6433_v5  ;;  %vm6207_vm4 = vcmp.eq.s32.totalorder %v15907_v10, 1  ;;  %vm5879_vm6 = vcmp.le.f32.partialorder %v5490_v2, 16.5  ;;  %v15967_v28 = vsel %vm15933_vm3, 1, %v20125_v49  ;;  %vm15969_vm5 = vmpackc.low %vm6206_vm13, %vm6206_vm13  ;;  %v4658_v3 = vpop.f32.mrf.mxu0 }
 0x5a9   : > { %v5101_v55 = vmax.f32 %v5046_v40, 0.0  ;;  %v6838_v39 = vor.u32 %v6836_v16, %v15810_v41  ;;  %v5327_v5 = vmul.f32 0.041666668, %v5272_v36  ;;  %v5436_v41 = vmul.f32 24.0, %v15937_v18  ;;  %vm5934_vm8 = vmand %vm15959_vm7, %vm5879_vm6 }
 0x5aa   : > { %20407 = vst [vmem:[#allocation48_spill] sm:$0xff] %v15953_v24  ;;  %6618 = vmatmul.bf16.gmra.mxu1 %v15953_v24  ;;  %v19409_v52 = vrot.slane %v15953_v24, 1  ;;  %v6840_v40 = vshll.u32 %v15953_v24, 16  ;;  %v15978_v16 = vadd.s32 240, %v14341_v0  ;;  %v4817_v36 = vadd.f32 %v4658_v3, %v20412_v37  ;;  %vm16031_vm15 = vmpackc.low %vm6207_vm4, %vm6207_vm4 }
 0x5ab   : > { %v6096_v56 = vpack.c.bf16 %v5101_v55, %v5101_v55  ;;  %v7200_v63 = vadd.f32 %v7036_v32, %v15695_v21  ;;  %vm5989_vm9 = vcmp.lt.f32.partialorder %v15820_v38, 17.5  ;;  %v20413_v8 = vrot.slane %v15762_v44, 1 }
 0x5ac   : > { %v6842_v34 = vrot.slane %v6840_v40, 1  ;;  %v8182_v55 = vshrl.u32 %v15701_v14, 16  ;;  %v8186_v37 = vshll.u32 %v15876_v1, 16  ;;  %v4988_v2 = vmul.f32 %v15139_v11, %v4817_v36  ;;  %vm6044_vm11 = vmand %vm5934_vm8, %vm5989_vm9 }
 0x5ad   : > { %v15991_v22 = vsel %vm1699_vm1, %v20413_v8, %v19409_v52  ;;  %v6316_v21 = vsel %vm15969_vm5, %v6096_v56, 0  ;;  %v5550_v38 = vadd.f32 -1.0, %v15937_v18  ;;  %v16000_v53 = vfloor.f32 %v5327_v5  ;;  %v16011_v36 = vpop.f32.mrf.mxu1 }
 0x5ae   : > { %20414 = vst [vmem:[#allocation234_spill] sm:$0xff] %v15991_v22  ;;  %7489 = vmatmul.bf16.gmra.mxu3 %v15991_v22  ;;  %v6435_v3 = vunpack.c.l.b16 %v6316_v21  ;;  %v16003_v8 = vsel %vm1060_vm0, %v6838_v39, %v6842_v34  ;;  %v20416_v32 = vcvt.s32.f32 %v15823_v58  ;;  %v19412_v13 = vcvt.s32.f32 %v15978_v16  ;;  %v7450_v21 = vpop.f32.mrf.mxu3 }
 0x5af   : > { %20415 = vst [vmem:[#allocation157_spill] sm:$0xff] %v16003_v8  ;;  %v5047_v56 = vadd.f32 %v15156_v19, %v4988_v2  ;;  %7078 = vmatmul.bf16.gmra.mxu2 %v16003_v8  ;;  %vm6208_vm12 = vcmp.eq.s32.totalorder %v15967_v28, 1  ;;  %v16015_v5 = vadd.f32 %v7447_v23, %v7200_v63  ;;  %v8184_v39 = vor.u32 %v8182_v55, %v15781_v9  ;;  %v7039_v55 = vpop.f32.mrf.mxu2 }
 0x5b0   : > { %v16007_v40 = vsub.f32 %v20416_v32, %v5436_v41  ;;  %v5437_v52 = vmul.f32 24.0, %v16000_v53  ;;  %v5273_v58 = vadd.f32 0.5, %v19412_v13  ;;  %v8188_v41 = vrot.slane %v8186_v37, 1  ;;  %v4661_v63 = vpop.f32.mrf.mxu0  ;;  %vm16086_vm5 = vmpackc.low %vm6208_vm12, %vm6208_vm12 }
 0x5b1   : > { %20417 = vst [vmem:[#allocation64_spill] sm:$0xff] %v16015_v5  ;;  %v16021_v32 = vpack.c.b16 %v6435_v3, %v6434_v61  ;;  %v5102_v2 = vmax.f32 %v5047_v56, 0.0  ;;  %v16024_v22 = vsel %vm6044_vm11, 1, %v20125_v49  ;;  %v6844_v8 = vshrl.u32 %v15953_v24, 16  ;;  %v20421_v56 = vld [vmem:[#allocation142_spill] sm:$0xff] }
 0x5b2   : > { %v8190_v23 = vshrl.u32 %v15876_v1, 16  ;;  %vm5605_vm10 = vcmp.ge.f32.partialorder %v5550_v38, 0.0  ;;  %vm5660_vm14 = vcmp.lt.f32.partialorder %v5550_v38, 16.0  ;;  %vm5770_vm2 = vcmp.ge.f32.partialorder %v16007_v40, 0.5 }
 0x5b3   : > { %20418 = vst [vmem:[#allocation56_spill] sm:$0xff] %v16021_v32  ;;  %v5328_v61 = vmul.f32 0.041666668, %v5273_v58  ;;  %v6097_v37 = vpack.c.bf16 %v5102_v2, %v5102_v2  ;;  %v4818_v13 = vadd.f32 %v4661_v63, %v20421_v56  ;;  %v7201_v5 = vadd.f32 %v7039_v55, %v15751_v45  ;;  %v20424_v63 = vld [vmem:[#allocation178_spill] sm:$0xff]  ;;  %vm16063_vm13 = vmand %vm5605_vm10, %vm5660_vm14 }
 0x5b4   : > { %v5551_v14 = vadd.f32 -1.0, %v16000_v53  ;;  %vm5990_vm3 = vcmp.lt.f32.partialorder %v15937_v18, 17.5  ;;  %v20422_v10 = vcvt.s32.f32 %v15897_v31  ;;  %v16050_v58 = vsel %vm1060_vm0, %v8184_v39, %v8188_v41  ;;  %4700 = vmatmul.bf16.gmra.mxu0 %v20424_v63  ;;  %vm16096_vm9 = vmand %vm16063_vm13, %vm5770_vm2  ;;  %v20466_v18 = vld [vmem:[#allocation181_spill] sm:$0xff] }
 0x5b5   : > { %v16044_v12 = vfloor.f32 %v5328_v61  ;;  %20423 = vst [vmem:[#allocation239_spill] sm:$0xff] %v16050_v58  ;;  %v6317_v2 = vsel %vm16031_vm15, %v6097_v37, 0  ;;  %v4989_v45 = vmul.f32 %v15139_v11, %v4818_v13  ;;  %v16056_v55 = vadd.f32 %v7450_v21, %v7201_v5  ;;  %v16071_v5 = vpop.f32.mrf.mxu1 }
 0x5b6   : > { %v16042_v43 = vsub.f32 %v20422_v10, %v5437_v52  ;;  %v19415_v52 = vrot.slane %v16021_v32, 1  ;;  %v16059_v31 = vunpack.c.l.b16 %v6317_v2  ;;  %vm5880_vm4 = vcmp.le.f32.partialorder %v16007_v40, 16.5  ;;  %v11502_v10 = vld [vmem:[#allocation9 + $0x118] sm:$0xff]  ;;  %v20438_v2 = vld [vmem:[#allocation200_spill] sm:$0xff] }
 0x5b7   : > { %20425 = vst [vmem:[#allocation38_spill] sm:$0xff] %v16056_v55  ;;  %v5438_v39 = vmul.f32 24.0, %v16044_v12  ;;  %v5552_v11 = vadd.f32 -1.0, %v16044_v12  ;;  %v5048_v13 = vadd.f32 %v15156_v19, %v4989_v45  ;;  %vm5606_vm7 = vcmp.ge.f32.partialorder %v5551_v14, 0.0  ;;  %v7452_v19 = vpop.f32.mrf.mxu3  ;;  %8386 = vmatpush.bf16.msrb.mxu2 %v11502_v10  ;;  %vm16128_vm14 = vmand %vm16096_vm9, %vm5880_vm4  ;;  %v16142_v10 = vld [vmem:[%s19076_s2] ss:$0 sm:$0xff] }
 0x5b8   : > { %vm5661_vm6 = vcmp.lt.f32.partialorder %v5551_v14, 16.0  ;;  %v20428_v38 = vrot.slane %v15876_v1, 1  ;;  %v16081_v9 = vpack.c.b16 %v16059_v31, %v6435_v3  ;;  %v6846_v56 = vor.u32 %v6844_v8, %v6842_v34  ;;  %v4663_v34 = vpop.f32.mrf.mxu0  ;;  %v7041_v8 = vpop.f32.mrf.mxu2 }
 0x5b9   : > { %vm5771_vm8 = vcmp.ge.f32.partialorder %v16042_v43, 0.5  ;;  %v5103_v45 = vmax.f32 %v5048_v13, 0.0  ;;  %vm5881_vm11 = vcmp.le.f32.partialorder %v16042_v43, 16.5  ;;  %v8192_v28 = vor.u32 %v8190_v23, %v8188_v41  ;;  %vm16107_vm12 = vmand %vm5606_vm7, %vm5661_vm6 }
 0x5ba   : > { %v16078_v21 = vsel %vm1699_vm1, %v20428_v38, %v19415_v52  ;;  %20430 = vst [vmem:[#allocation63_spill] sm:$0xff] %v16081_v9  ;;  %v8194_v63 = vshll.u32 %v16021_v32, 16  ;;  %6623 = vmatmul.bf16.gmra.mxu1 %v16081_v9  ;;  %v19418_v38 = vrot.slane %v16081_v9, 1  ;;  %v6848_v13 = vshll.u32 %v16081_v9, 16  ;;  %vm16150_vm2 = vmand %vm16107_vm12, %vm5771_vm8 }
 0x5bb   : > { %20429 = vst [vmem:[#allocation76_spill] sm:$0xff] %v16078_v21  ;;  %v20437_v52 = vcvt.s32.f32 %v15978_v16  ;;  %vm5607_vm15 = vcmp.ge.f32.partialorder %v5552_v11, 0.0  ;;  %v6098_v23 = vpack.c.bf16 %v5103_v45, %v5103_v45  ;;  %v4819_v21 = vadd.f32 %v4663_v34, %v20438_v2  ;;  %vm16182_vm6 = vmand %vm16128_vm14, %vm5990_vm3 }
 0x5bc   : > { %v7202_v55 = vadd.f32 %v7041_v8, %v15859_v57  ;;  %vm5662_vm10 = vcmp.lt.f32.partialorder %v5552_v11, 16.0  ;;  %v20439_v58 = vrot.slane %v15953_v24, 1  ;;  %v16122_v1 = vrot.slane %v6848_v13, 1  ;;  %v11494_v8 = vld [vmem:[#allocation9 + $0xd8] sm:$0xff] }
 0x5bd   : > { %v5493_v41 = vsub.f32 %v20437_v52, %v5438_v39  ;;  %v20443_v57 = vcvt.s32.f32 %v16047_v62  ;;  %v16135_v39 = vadd.s32 256, %v14341_v0  ;;  %v4990_v40 = vmul.f32 %v16142_v10, %v4819_v21  ;;  %vm16164_vm13 = vmand %vm5607_vm15, %vm5662_vm10  ;;  %7825 = vmatpush.bf16.msrb.mxu1 %v11494_v8 }
 0x5be   : > { %v16120_v14 = vsel %vm1699_vm1, %v20439_v58, %v19418_v38  ;;  %v6318_v58 = vsel %vm16086_vm5, %v6098_v23, 0  ;;  %v16154_v45 = vadd.f32 %v7452_v19, %v7202_v55  ;;  %v16156_v37 = vrot.slane %v8194_v63, 1  ;;  %v16171_v55 = vld [vmem:[%s19077_s3] ss:$0 sm:$0xff]  ;;  %vm16199_vm5 = vmand %vm16150_vm2, %vm5881_vm11  ;;  %v20462_v38 = vld [vmem:[#allocation226_spill] sm:$0xff] }
 0x5bf   : > { %20440 = vst [vmem:[#allocation243_spill] sm:$0xff] %v16120_v14  ;;  %v5274_v52 = vadd.f32 0.5, %v20443_v57  ;;  %7494 = vmatmul.bf16.gmra.mxu3 %v16120_v14  ;;  %v6437_v3 = vunpack.c.l.b16 %v6318_v58  ;;  %v16160_v34 = vsel %vm1060_vm0, %v6846_v56, %v16122_v1  ;;  %vm5772_vm4 = vcmp.ge.f32.partialorder %v5493_v41, 0.5  ;;  %v16175_v56 = vpop.f32.mrf.mxu1  ;;  %v20453_v23 = vld [vmem:[#allocation160_spill] sm:$0xff]  ;;  %v20454_v57 = vld [vmem:[#allocation153_spill] sm:$0xff]  ;;  %v7455_v58 = vpop.f32.mrf.mxu3 }
 0x5c0   : > { %20446 = vst [vmem:[#allocation45_spill] sm:$0xff] %v16154_v45  ;;  %v5049_v19 = vadd.f32 %v16171_v55, %v4990_v40  ;;  %vm6209_vm7 = vcmp.eq.s32.totalorder %v16024_v22, 1  ;;  %7083 = vmatmul.bf16.gmra.mxu2 %v16160_v34  ;;  %v19417_v63 = vcvt.s32.f32 %v16135_v39  ;;  %v16189_v61 = vsel %vm1060_vm0, %v8192_v28, %v16156_v37  ;;  %vm16212_vm8 = vmand %vm16164_vm13, %vm5772_vm4  ;;  %v4666_v8 = vpop.f32.mrf.mxu0 }
 0x5c1   : > { %20447 = vst [vmem:[#allocation88_spill] sm:$0xff] %v16160_v34  ;;  %v5329_v13 = vmul.f32 0.041666668, %v5274_v52  ;;  %v16193_v52 = vadd.f32 %v20454_v57, %v20453_v23  ;;  %vm5991_vm3 = vcmp.lt.f32.partialorder %v16000_v53, 17.5  ;;  %v16207_v28 = vpack.c.b16 %v6437_v3, %v16059_v31  ;;  %vm16224_vm11 = vmpackc.low %vm6209_vm7, %vm6209_vm7 }
 0x5c2   : > { %20452 = vst [vmem:[#allocation77_spill] sm:$0xff] %v16189_v61  ;;  %v5104_v40 = vmax.f32 %v5049_v19, 0.0  ;;  %vm5882_vm9 = vcmp.le.f32.partialorder %v5493_v41, 16.5  ;;  %v5275_v2 = vadd.f32 0.5, %v19417_v63  ;;  %v16219_v23 = vadd.s32 264, %v14341_v0  ;;  %vm6046_vm15 = vmand %vm16199_vm5, %vm5991_vm3 }
 0x5c3   : > { %v16204_v16 = vfloor.f32 %v5329_v13  ;;  %20457 = vst [vmem:[#allocation245_spill] sm:$0xff] %v16207_v28  ;;  %v6155_v21 = vsel %vm16182_vm6, 1, %v20125_v49  ;;  %v7044_v13 = vpop.f32.mrf.mxu2  ;;  %vm5992_vm12 = vcmp.lt.f32.partialorder %v16044_v12, 17.5  ;;  %v4820_v22 = vadd.f32 %v4666_v8, %v20462_v38  ;;  %vm16243_vm10 = vmand %vm16212_vm8, %vm5882_vm9 }
 0x5c4   : > { %v6099_v63 = vpack.c.bf16 %v5104_v40, %v5104_v40  ;;  %v7203_v14 = vadd.f32 %v7044_v13, %v15946_v29  ;;  %v5330_v34 = vmul.f32 0.041666668, %v5275_v2  ;;  %v20465_v45 = vcvt.s32.f32 %v16047_v62  ;;  %4705 = vmatmul.bf16.gmra.mxu0 %v20466_v18  ;;  %v20467_v2 = vld [vmem:[#allocation74_spill] sm:$0xff]  ;;  %vm16270_vm4 = vmand %vm16243_vm10, %vm5992_vm12 }
 0x5c5   : > { %v5439_v19 = vmul.f32 24.0, %v16204_v16  ;;  %v5553_v57 = vadd.f32 -1.0, %v16204_v16  ;;  %v19421_v29 = vrot.slane %v16207_v28, 1  ;;  %v4991_v38 = vmul.f32 %v16142_v10, %v4820_v22 }
 0x5c6   : > { %v6319_v53 = vsel %vm16224_vm11, %v6099_v63, 0  ;;  %v16254_v41 = vfloor.f32 %v5330_v34  ;;  %v19422_v43 = vcvt.s32.f32 %v16219_v23  ;;  %v16259_v8 = vadd.f32 %v20467_v2, %v15600_v48 }
 0x5c7   : > { %v5494_v40 = vsub.f32 %v20465_v45, %v5439_v19  ;;  %vm5608_vm14 = vcmp.ge.f32.partialorder %v5553_v57, 0.0  ;;  %vm5663_vm2 = vcmp.lt.f32.partialorder %v5553_v57, 16.0  ;;  %v6438_v62 = vunpack.c.l.b16 %v6319_v53  ;;  %v16263_v31 = vpop.f32.mrf.mxu1  ;;  %v7457_v22 = vpop.f32.mrf.mxu3 }
 0x5c8   : > { %vm6210_vm13 = vcmp.eq.s32.totalorder %v6155_v21, 1  ;;  %v6156_v45 = vsel %vm6046_vm15, 1, %v20125_v49  ;;  %v5050_v13 = vadd.f32 %v16171_v55, %v4991_v38  ;;  %v6852_v63 = vshrl.u32 %v16081_v9, 16  ;;  %vm16279_vm6 = vmand %vm5608_vm14, %vm5663_vm2 }
 0x5c9   : > { %vm5773_vm7 = vcmp.ge.f32.partialorder %v5494_v40, 0.5  ;;  %v5440_v48 = vmul.f32 24.0, %v16254_v41  ;;  %v16275_v19 = vpack.c.b16 %v6438_v62, %v6437_v3  ;;  %v5554_v12 = vadd.f32 -1.0, %v16254_v41  ;;  %v20476_v3 = vld [vmem:[#allocation175_spill] sm:$0xff]  ;;  %vm16301_vm3 = vmpackc.low %vm6210_vm13, %vm6210_vm13 }
 0x5ca   : > { %v16284_v38 = vadd.f32 %v7455_v58, %v7203_v14  ;;  %v20474_v11 = vrot.slane %v16021_v32, 1  ;;  %v16295_v2 = vadd.f32 %v20476_v3, %v15629_v42  ;;  %v5105_v57 = vmax.f32 %v5050_v13, 0.0  ;;  %v4668_v58 = vpop.f32.mrf.mxu0  ;;  %vm5828_vm8 = vmand %vm16279_vm6, %vm5773_vm7 }
 0x5cb   : > { %20470 = vst [vmem:[#allocation53_spill] sm:$0xff] %v16275_v19  ;;  %vm6211_vm5 = vcmp.eq.s32.totalorder %v6156_v45, 1  ;;  %v5276_v61 = vadd.f32 0.5, %v19422_v43  ;;  %6628 = vmatmul.bf16.gmra.mxu1 %v16275_v19  ;;  %v6854_v42 = vor.u32 %v6852_v63, %v16122_v1  ;;  %v6856_v13 = vshll.u32 %v16275_v19, 16  ;;  %v20479_v43 = vld [vmem:[#allocation146_spill] sm:$0xff] }
 0x5cc   : > { %20473 = vst [vmem:[#allocation101_spill] sm:$0xff] %v16284_v38  ;;  %v16291_v18 = vsel %vm1699_vm1, %v20474_v11, %v19421_v29  ;;  %v7046_v11 = vpop.f32.mrf.mxu2  ;;  %v19424_v29 = vrot.slane %v16275_v19, 1  ;;  %v16312_v3 = vsel %vm16270_vm4, 1, %v20125_v49  ;;  %v6100_v21 = vpack.c.bf16 %v5105_v57, %v5105_v57  ;;  %vm16378_vm7 = vmpackc.low %vm6211_vm5, %vm6211_vm5 }
 0x5cd   : > { %20475 = vst [vmem:[#allocation99_spill] sm:$0xff] %v16291_v18  ;;  %v4821_v18 = vadd.f32 %v4668_v58, %v20479_v43  ;;  %v7204_v38 = vadd.f32 %v7046_v11, %v16011_v36  ;;  %vm5883_vm9 = vcmp.le.f32.partialorder %v5494_v40, 16.5  ;;  %v20480_v1 = vrot.slane %v16081_v9, 1  ;;  %v20494_v11 = vld [vmem:[#allocation151_spill] sm:$0xff] }
 0x5ce   : > { %v16326_v34 = vrot.slane %v6856_v13, 1  ;;  %v20482_v57 = vcvt.s32.f32 %v16135_v39  ;;  %vm5609_vm11 = vcmp.ge.f32.partialorder %v5554_v12, 0.0  ;;  %v6320_v36 = vsel %vm16301_vm3, %v6100_v21, 0  ;;  %vm16338_vm15 = vmand %vm5828_vm8, %vm5883_vm9  ;;  %v20497_v21 = vld [vmem:[#allocation185_spill] sm:$0xff] }
 0x5cf   : > { %v16324_v63 = vsel %vm1699_vm1, %v20480_v1, %v19424_v29  ;;  %v4992_v43 = vmul.f32 %v16142_v10, %v4821_v18  ;;  %vm5664_vm12 = vcmp.lt.f32.partialorder %v5554_v12, 16.0  ;;  %v5331_v40 = vmul.f32 0.041666668, %v5276_v61  ;;  %v16347_v18 = vpop.f32.mrf.mxu1  ;;  %v7460_v13 = vpop.f32.mrf.mxu3 }
 0x5d0   : > { %20481 = vst [vmem:[#allocation61_spill] sm:$0xff] %v16324_v63  ;;  %v5495_v24 = vsub.f32 %v20482_v57, %v5440_v48  ;;  %7499 = vmatmul.bf16.gmra.mxu3 %v16324_v63  ;;  %v6439_v53 = vunpack.c.l.b16 %v6320_v36  ;;  %v16336_v58 = vsel %vm1060_vm0, %v6854_v42, %v16326_v34  ;;  %vm5993_vm10 = vcmp.lt.f32.partialorder %v16204_v16, 17.5  ;;  %vm16358_vm2 = vmand %vm5609_vm11, %vm5664_vm12 }
 0x5d1   : > { %20483 = vst [vmem:[#allocation20_spill] sm:$0xff] %v16336_v58  ;;  %v16344_v39 = vadd.s32 272, %v14341_v0  ;;  %v5051_v48 = vadd.f32 %v16171_v55, %v4992_v43  ;;  %7088 = vmatmul.bf16.gmra.mxu2 %v16336_v58  ;;  %v16350_v61 = vfloor.f32 %v5331_v40  ;;  %v16352_v14 = vadd.f32 %v7457_v22, %v7204_v38  ;;  %vm16369_vm4 = vmand %vm16338_vm15, %vm5993_vm10 }
 0x5d2   : > { %v8202_v42 = vshll.u32 %v16207_v28, 16  ;;  %vm6212_vm14 = vcmp.eq.s32.totalorder %v16312_v3, 1  ;;  %vm5774_vm13 = vcmp.ge.f32.partialorder %v5495_v24, 0.5  ;;  %v16363_v57 = vpack.c.b16 %v6439_v53, %v6438_v62  ;;  %v4671_v40 = vpop.f32.mrf.mxu0  ;;  %v20503_v62 = vld [vmem:[#allocation184_spill] sm:$0xff]  ;;  %v20510_v3 = vld [vmem:[#allocation202_spill] sm:$0xff] }
 0x5d3   : > { %20486 = vst [vmem:[#allocation73_spill] sm:$0xff] %v16352_v14  ;;  %v19429_v1 = vcvt.s32.f32 %v16344_v39  ;;  %v5106_v36 = vmax.f32 %v5051_v48, 0.0  ;;  %v5441_v12 = vmul.f32 24.0, %v16350_v61  ;;  %v5555_v38 = vadd.f32 -1.0, %v16350_v61  ;;  %v20495_v14 = vld [vmem:[#allocation54_spill] sm:$0xff]  ;;  %vm5829_vm5 = vmand %vm16358_vm2, %vm5774_vm13 }
 0x5d4   : > { %20489 = vst [vmem:[#allocation248_spill] sm:$0xff] %v16363_v57  ;;  %v8198_v43 = vshrl.u32 %v16021_v32, 16  ;;  %v7049_v16 = vpop.f32.mrf.mxu2  ;;  %vm5884_vm6 = vcmp.le.f32.partialorder %v5495_v24, 16.5  ;;  %v16386_v63 = vadd.s32 280, %v14341_v0  ;;  %v4822_v32 = vadd.f32 %v4671_v40, %v20495_v14  ;;  %4710 = vmatmul.bf16.gmra.mxu0 %v20497_v21 }
 0x5d5   : > { %v5277_v29 = vadd.f32 0.5, %v19429_v1  ;;  %v6101_v58 = vpack.c.bf16 %v5106_v36, %v5106_v36  ;;  %v7205_v45 = vadd.f32 %v7049_v16, %v16071_v5  ;;  %v16393_v9 = vrot.slane %v8202_v42, 1  ;;  %vm16408_vm9 = vmand %vm5829_vm5, %vm5884_vm6 }
 0x5d6   : > { %v16398_v48 = vsel %vm16369_vm4, 1, %v20125_v49  ;;  %v20496_v1 = vcvt.s32.f32 %v16219_v23  ;;  %v8200_v36 = vor.u32 %v8198_v43, %v16156_v37  ;;  %v4993_v14 = vmul.f32 %v16142_v10, %v4822_v32  ;;  %vm16454_vm4 = vmpackc.low %vm6212_vm14, %vm6212_vm14 }
 0x5d7   : > { %v5332_v44 = vmul.f32 0.041666668, %v5277_v29  ;;  %v6321_v5 = vsel %vm16378_vm7, %v6101_v58, 0  ;;  %vm5610_vm3 = vcmp.ge.f32.partialorder %v5555_v38, 0.0  ;;  %vm5665_vm8 = vcmp.lt.f32.partialorder %v5555_v38, 16.0  ;;  %v16417_v58 = vpop.f32.mrf.mxu1  ;;  %v7462_v43 = vpop.f32.mrf.mxu3 }
 0x5d8   : > { %v5496_v35 = vsub.f32 %v20496_v1, %v5441_v12  ;;  %v6440_v42 = vunpack.c.l.b16 %v6321_v5  ;;  %vm5994_vm11 = vcmp.lt.f32.partialorder %v16254_v41, 17.5  ;;  %v19432_v37 = vcvt.s32.f32 %v16386_v63  ;;  %vm16437_vm15 = vmand %vm5610_vm3, %vm5665_vm8 }
 0x5d9   : > { %v16413_v23 = vfloor.f32 %v5332_v44  ;;  %v5052_v29 = vadd.f32 %v16171_v55, %v4993_v14  ;;  %v6860_v32 = vshrl.u32 %v16275_v19, 16  ;;  %v16422_v1 = vsel %vm1060_vm0, %v8200_v36, %v16393_v9  ;;  %vm16446_vm2 = vmand %vm16408_vm9, %vm5994_vm11 }
 0x5da   : > { %20500 = vst [vmem:[#allocation30_spill] sm:$0xff] %v16422_v1  ;;  %v16424_v24 = vadd.f32 %v7460_v13, %v7205_v45  ;;  %v16426_v12 = vpack.c.b16 %v6440_v42, %v6439_v53  ;;  %vm6213_vm12 = vcmp.eq.s32.totalorder %v16398_v48, 1  ;;  %v20502_v44 = vrot.slane %v20494_v11, 1  ;;  %v4673_v5 = vpop.f32.mrf.mxu0 }
 0x5db   : > { %vm5775_vm10 = vcmp.ge.f32.partialorder %v5496_v35, 0.5  ;;  %v5107_v13 = vmax.f32 %v5052_v29, 0.0  ;;  %v6862_v53 = vor.u32 %v6860_v32, %v16326_v34  ;;  %vm5885_vm13 = vcmp.le.f32.partialorder %v5496_v35, 16.5  ;;  %vm16537_vm9 = vmpackc.low %vm6213_vm12, %vm6213_vm12 }
 0x5dc   : > { %20501 = vst [vmem:[#allocation102_spill] sm:$0xff] %v16424_v24  ;;  %v16433_v40 = vsel %vm1699_vm1, %v20503_v62, %v20502_v44  ;;  %6633 = vmatmul.bf16.gmra.mxu1 %v16426_v12  ;;  %v7051_v41 = vpop.f32.mrf.mxu2  ;;  %v19433_v34 = vrot.slane %v16426_v12, 1  ;;  %v6864_v14 = vshll.u32 %v16426_v12, 16  ;;  %v5442_v21 = vmul.f32 24.0, %v16413_v23  ;;  %vm5830_vm14 = vmand %vm16437_vm15, %vm5775_vm10 }
 0x5dd   : > { %v5278_v22 = vadd.f32 0.5, %v19432_v37  ;;  %v6102_v29 = vpack.c.bf16 %v5107_v13, %v5107_v13  ;;  %v4823_v32 = vadd.f32 %v4673_v5, %v20510_v3  ;;  %v7206_v44 = vadd.f32 %v7051_v41, %v16175_v56  ;;  %vm16498_vm6 = vmand %vm5830_vm14, %vm5885_vm13 }
 0x5de   : > { %v16470_v62 = vadd.s32 288, %v14341_v0  ;;  %v20511_v36 = vrot.slane %v16275_v19, 1  ;;  %v16479_v37 = vrot.slane %v6864_v14, 1  ;;  %v16484_v56 = vsel %vm16446_vm2, 1, %v20125_v49 }
 0x5df   : > { %v5556_v16 = vadd.f32 -1.0, %v16413_v23  ;;  %v6322_v13 = vsel %vm16454_vm4, %v6102_v29, 0  ;;  %v4994_v5 = vmul.f32 %v16142_v10, %v4823_v32  ;;  %vm5995_vm7 = vcmp.lt.f32.partialorder %v16350_v61, 17.5 }
 0x5e0   : > { %v16477_v24 = vsel %vm1699_vm1, %v20511_v36, %v19433_v34  ;;  %v20513_v36 = vld [vmem:[#allocation197_spill] sm:$0xff]  ;;  %v6441_v14 = vunpack.c.l.b16 %v6322_v13  ;;  %v16495_v3 = vsel %vm1060_vm0, %v6862_v53, %v16479_v37  ;;  %v20517_v38 = vcvt.s32.f32 %v16344_v39  ;;  %v7465_v39 = vpop.f32.mrf.mxu3  ;;  %vm16526_vm8 = vmand %vm16498_vm6, %vm5995_vm7 }
 0x5e1   : > { %20512 = vst [vmem:[#allocation125_spill] sm:$0xff] %v16477_v24  ;;  %7504 = vmatmul.bf16.gmra.mxu3 %v16477_v24  ;;  %v5333_v32 = vmul.f32 0.041666668, %v5278_v22  ;;  %v5053_v34 = vadd.f32 %v16171_v55, %v4994_v5  ;;  %v16505_v24 = vpop.f32.mrf.mxu1  ;;  %7093 = vmatmul.bf16.gmra.mxu2 %v16495_v3  ;;  %v5224_v13 = vcvt.s32.f32 %v16470_v62  ;;  %v20518_v53 = vrot.slane %v16363_v57, 1 }
 0x5e2   : > { %20514 = vst [vmem:[#allocation208_spill] sm:$0xff] %v16495_v3  ;;  %v5497_v29 = vsub.f32 %v20517_v38, %v5442_v21  ;;  %v20519_v35 = vrot.slane %v16207_v28, 1  ;;  %v16516_v1 = vadd.f32 %v7462_v43, %v7206_v44  ;;  %vm5611_vm5 = vcmp.ge.f32.partialorder %v5556_v16, 0.0  ;;  %v4676_v61 = vpop.f32.mrf.mxu0 }
 0x5e3   : > { %vm5666_vm3 = vcmp.lt.f32.partialorder %v5556_v16, 16.0  ;;  %v16518_v21 = vfloor.f32 %v5333_v32  ;;  %v16520_v22 = vpack.c.b16 %v6441_v14, %v6440_v42  ;;  %v5108_v5 = vmax.f32 %v5053_v34, 0.0 }
 0x5e4   : > { %v16514_v41 = vsel %vm1699_vm1, %v20519_v35, %v20518_v53  ;;  %20521 = vst [vmem:[#allocation85_spill] sm:$0xff] %v16516_v1  ;;  %v5279_v38 = vadd.f32 0.5, %v5224_v13  ;;  %v16531_v43 = vadd.s32 296, %v14341_v0  ;;  %vm6214_vm11 = vcmp.eq.s32.totalorder %v16484_v56, 1  ;;  %v7054_v34 = vpop.f32.mrf.mxu2  ;;  %v20527_v35 = vld [vmem:[#allocation162_spill] sm:$0xff]  ;;  %vm5721_vm12 = vmand %vm5611_vm5, %vm5666_vm3  ;;  %4715 = vmatmul.bf16.gmra.mxu0 %v16433_v40 }
 0x5e5   : > { %20520 = vst [vmem:[#allocation115_spill] sm:$0xff] %v16514_v41  ;;  %vm5776_vm15 = vcmp.ge.f32.partialorder %v5497_v29, 0.5  ;;  %v5443_v45 = vmul.f32 24.0, %v16518_v21  ;;  %v5557_v32 = vadd.f32 -1.0, %v16518_v21  ;;  %v6103_v53 = vpack.c.bf16 %v5108_v5, %v5108_v5  ;;  %vm16592_vm6 = vmpackc.low %vm6214_vm11, %vm6214_vm11 }
 0x5e6   : > { %20522 = vst [vmem:[#allocation183_spill] sm:$0xff] %v16520_v22  ;;  %v4824_v3 = vadd.f32 %v4676_v61, %v20527_v35  ;;  %v7207_v44 = vadd.f32 %v7054_v34, %v16263_v31  ;;  %v5334_v48 = vmul.f32 0.041666668, %v5279_v38  ;;  %v16551_v1 = vsel %vm16526_vm8, 1, %v20125_v49  ;;  %v11522_v38 = vld [vmem:[#allocation9 + $0x1b8] sm:$0xff]  ;;  %vm16571_vm13 = vmand %vm5721_vm12, %vm5776_vm15 }
 0x5e7   : > { %vm5886_vm10 = vcmp.le.f32.partialorder %v5497_v29, 16.5  ;;  %vm5996_vm2 = vcmp.lt.f32.partialorder %v16413_v23, 17.5  ;;  %v20528_v41 = vrot.slane %v20513_v36, 1  ;;  %v20529_v5 = vrot.slane %v20494_v11, 1  ;;  %9141 = vmatpush.bf16.msra.mxu0 %v11522_v38 }
 0x5e8   : > { %v6323_v31 = vsel %vm16537_vm9, %v6103_v53, 0  ;;  %v4995_v16 = vmul.f32 %v16142_v10, %v4824_v3  ;;  %v16565_v62 = vfloor.f32 %v5334_v48  ;;  %v19439_v34 = vcvt.s32.f32 %v16531_v43  ;;  %vm16604_vm5 = vmand %vm16571_vm13, %vm5886_vm10 }
 0x5e9   : > { %v16559_v61 = vsel %vm1699_vm1, %v20529_v5, %v20528_v41  ;;  %v16568_v35 = vunpack.c.l.b16 %v6323_v31  ;;  %v20532_v41 = vcvt.s32.f32 %v16386_v63  ;;  %vm5612_vm4 = vcmp.ge.f32.partialorder %v5557_v32, 0.0  ;;  %v16581_v53 = vpop.f32.mrf.mxu1  ;;  %vm16642_vm12 = vmand %vm16604_vm5, %vm5996_vm2 }
 0x5ea   : > { %v8210_v3 = vshll.u32 %v16363_v57, 16  ;;  %v5054_v40 = vadd.f32 %v16171_v55, %v4995_v16  ;;  %vm6215_vm14 = vcmp.eq.s32.totalorder %v16551_v1, 1  ;;  %vm5667_vm7 = vcmp.lt.f32.partialorder %v5557_v32, 16.0  ;;  %v4678_v30 = vpop.f32.mrf.mxu0 }
 0x5eb   : > { %v16577_v42 = vsub.f32 %v20532_v41, %v5443_v45  ;;  %v5444_v48 = vmul.f32 24.0, %v16565_v62  ;;  %v5558_v5 = vadd.f32 -1.0, %v16565_v62  ;;  %v16587_v31 = vpack.c.b16 %v16568_v35, %v6441_v14  ;;  %v7467_v45 = vpop.f32.mrf.mxu3  ;;  %v11501_v41 = vld [vmem:[#allocation9 + $0x110] sm:$0xff]  ;;  %vm16613_vm9 = vmand %vm5612_vm4, %vm5667_vm7  ;;  %9142 = vmatpush.bf16.msra.mxu0 %v11521_v51 }
 0x5ec   : > { %v6868_v16 = vshrl.u32 %v16426_v12, 16  ;;  %v5280_v19 = vadd.f32 0.5, %v19439_v34  ;;  %v16599_v15 = vadd.f32 %v7465_v39, %v7207_v44  ;;  %v5109_v38 = vmax.f32 %v5054_v40, 0.0  ;;  %v7056_v54 = vpop.f32.mrf.mxu2  ;;  %8387 = vmatpush.bf16.msrb.mxu2 %v11501_v41 }
 0x5ed   : > { %20533 = vst [vmem:[#allocation120_spill] sm:$0xff] %v16587_v31  ;;  %v5499_v14 = vsub.f32 %v5224_v13, %v5444_v48  ;;  %vm5613_vm3 = vcmp.ge.f32.partialorder %v5558_v5, 0.0  ;;  %vm5668_vm8 = vcmp.lt.f32.partialorder %v5558_v5, 16.0  ;;  %6638 = vmatmul.bf16.gmra.mxu1 %v16587_v31  ;;  %v19441_v34 = vrot.slane %v16587_v31, 1 }
 0x5ee   : > { %20536 = vst [vmem:[#allocation128_spill] sm:$0xff] %v16599_v15  ;;  %v6872_v39 = vshll.u32 %v16587_v31, 16  ;;  %vm5777_vm11 = vcmp.ge.f32.partialorder %v16577_v42, 0.5  ;;  %v16618_v13 = vrot.slane %v8210_v3, 1  ;;  %v6104_v44 = vpack.c.bf16 %v5109_v38, %v5109_v38  ;;  %vm16623_vm15 = vmand %vm5613_vm3, %vm5668_vm8  ;;  %v20563_v38 = vld [vmem:[#allocation223_spill] sm:$0xff] }
 0x5ef   : > { %v4825_v11 = vadd.f32 %v4678_v30, %v15842_v25  ;;  %v7208_v40 = vadd.f32 %v7056_v54, %v16347_v18  ;;  %v19440_v32 = vrot.slane %v16520_v22, 1  ;;  %v20543_v15 = vrot.slane %v16426_v12, 1  ;;  %vm16652_vm13 = vmand %vm16613_vm9, %vm5777_vm11  ;;  %v11520_v18 = vld [vmem:[#allocation9 + $0x1a8] sm:$0xff] }
 0x5f0   : > { %v6870_v41 = vor.u32 %v6868_v16, %v16479_v37  ;;  %v16636_v30 = vrot.slane %v6872_v39, 1  ;;  %vm5778_vm10 = vcmp.ge.f32.partialorder %v5499_v14, 0.5  ;;  %vm5887_vm4 = vcmp.le.f32.partialorder %v16577_v42, 16.5  ;;  %9143 = vmatpush.bf16.msra.mxu0 %v11520_v18  ;;  %vm16722_vm9 = vmpackc.low %vm6215_vm14, %vm6215_vm14 }
 0x5f1   : > { %v16633_v3 = vsel %vm1699_vm1, %v20543_v15, %v19441_v34  ;;  %v4996_v51 = vmul.f32 %v16142_v10, %v4825_v11  ;;  %v5335_v25 = vmul.f32 0.041666668, %v5280_v19  ;;  %v20549_v23 = vshrl.u32 %v16207_v28, 16  ;;  %vm16668_vm2 = vmand %vm16623_vm15, %vm5778_vm10  ;;  %v11493_v19 = vld [vmem:[#allocation9 + $0xd0] sm:$0xff]  ;;  %v16676_v39 = vpop.f32.mrf.mxu1 }
 0x5f2   : > { %20544 = vst [vmem:[#allocation246_spill] sm:$0xff] %v16633_v3  ;;  %7509 = vmatmul.bf16.gmra.mxu3 %v16633_v3  ;;  %v6324_v5 = vsel %vm16592_vm6, %v6104_v44, 0  ;;  %v16664_v16 = vsel %vm1060_vm0, %v6870_v41, %v16636_v30  ;;  %vm5888_vm7 = vcmp.le.f32.partialorder %v5499_v14, 16.5  ;;  %v16673_v56 = vadd.s32 304, %v14341_v0  ;;  %vm16701_vm6 = vmand %vm16652_vm13, %vm5887_vm4  ;;  %7826 = vmatpush.bf16.msrb.mxu1 %v11493_v19  ;;  %v4681_v14 = vpop.f32.mrf.mxu0  ;;  %v20564_v3 = vld [vmem:[#allocation232_spill] sm:$0xff] }
 0x5f3   : > { %v8208_v37 = vor.u32 %v20549_v23, %v16393_v9  ;;  %20550 = vst [vmem:[#allocation97_spill] sm:$0xff] %v16664_v16  ;;  %v5055_v9 = vadd.f32 %v16171_v55, %v4996_v51  ;;  %7098 = vmatmul.bf16.gmra.mxu2 %v16664_v16  ;;  %v16679_v63 = vfloor.f32 %v5335_v25  ;;  %v20554_v44 = vrot.slane %v16363_v57, 1  ;;  %v7470_v48 = vpop.f32.mrf.mxu3  ;;  %vm16712_vm3 = vmand %vm16668_vm2, %vm5888_vm7 }
 0x5f4   : > { %v16695_v41 = vsel %vm16642_vm12, 1, %v20125_v49  ;;  %vm5997_vm5 = vcmp.lt.f32.partialorder %v16518_v21, 17.5  ;;  %v19444_v25 = vcvt.s32.f32 %v16673_v56  ;;  %v16707_v18 = vadd.f32 %v7467_v45, %v7208_v40  ;;  %v7059_v40 = vpop.f32.mrf.mxu2  ;;  %4720 = vmatmul.bf16.gmra.mxu0 %v16559_v61 }
 0x5f5   : > { %v16683_v29 = vsel %vm1060_vm0, %v8208_v37, %v16618_v13  ;;  %v16690_v11 = vsel %vm1699_vm1, %v20554_v44, %v19440_v32  ;;  %v5110_v23 = vmax.f32 %v5055_v9, 0.0  ;;  %vm5998_vm8 = vcmp.lt.f32.partialorder %v16565_v62, 17.5  ;;  %v11519_v37 = vld [vmem:[#allocation9 + $0x1a0] sm:$0xff]  ;;  %vm16738_vm14 = vmand %vm16701_vm6, %vm5997_vm5  ;;  %v11518_v62 = vld [vmem:[#allocation9 + $0x198] sm:$0xff] }
 0x5f6   : > { %20553 = vst [vmem:[#allocation170_spill] sm:$0xff] %v16683_v29  ;;  %v5445_v42 = vmul.f32 24.0, %v16679_v63  ;;  %v5559_v15 = vadd.f32 -1.0, %v16679_v63  ;;  %v6443_v19 = vunpack.c.l.b16 %v6324_v5  ;;  %v5281_v44 = vadd.f32 0.5, %v19444_v25  ;;  %9144 = vmatpush.bf16.msra.mxu0 %v11519_v37  ;;  %vm16749_vm15 = vmand %vm16712_vm3, %vm5998_vm8 }
 0x5f7   : > { %20555 = vst [vmem:[#allocation247_spill] sm:$0xff] %v16690_v11  ;;  %v16730_v32 = vadd.s32 312, %v14341_v0  ;;  %v6105_v34 = vpack.c.bf16 %v5110_v23, %v5110_v23  ;;  %v4826_v5 = vadd.f32 %v4681_v14, %v20564_v3  ;;  %v7209_v1 = vadd.f32 %v7059_v40, %v16417_v58  ;;  %v11516_v11 = vld [vmem:[#allocation9 + $0x188] sm:$0xff] }
 0x5f8   : > { %20558 = vst [vmem:[#allocation122_spill] sm:$0xff] %v16707_v18  ;;  %v20567_v9 = vcvt.s32.f32 %v16531_v43  ;;  %vm6216_vm11 = vcmp.eq.s32.totalorder %v16695_v41, 1  ;;  %vm5614_vm12 = vcmp.ge.f32.partialorder %v5559_v15, 0.0  ;;  %vm5669_vm10 = vcmp.lt.f32.partialorder %v5559_v15, 16.0 }
 0x5f9   : > { %v5336_v21 = vmul.f32 0.041666668, %v5281_v44  ;;  %v6325_v3 = vsel %vm16722_vm9, %v6105_v34, 0  ;;  %v4997_v43 = vmul.f32 %v16142_v10, %v4826_v5  ;;  %vm5724_vm13 = vmand %vm5614_vm12, %vm5669_vm10  ;;  %v16762_v23 = vsel %vm16738_vm14, 1, %v20125_v49  ;;  %v16768_v15 = vpop.f32.mrf.mxu1 }
 0x5fa   : > { %v5500_v18 = vsub.f32 %v20567_v9, %v5445_v42  ;;  %v16757_v51 = vunpack.c.l.b16 %v6325_v3  ;;  %v19445_v34 = vcvt.s32.f32 %v16730_v32  ;;  %v20570_v61 = vrot.slane %v20563_v38, 1  ;;  %9145 = vmatpush.bf16.msra.mxu0 %v11518_v62  ;;  %vm16822_vm9 = vmpackc.low %vm6216_vm11, %vm6216_vm11 }
 0x5fb   : > { %v16764_v54 = vfloor.f32 %v5336_v21  ;;  %v5056_v42 = vadd.f32 %v16171_v55, %v4997_v43  ;;  %v20571_v37 = vrot.slane %v20513_v36, 1  ;;  %v16777_v16 = vadd.f32 %v7470_v48, %v7209_v1  ;;  %v7472_v9 = vpop.f32.mrf.mxu3 }
 0x5fc   : > { %vm5779_vm4 = vcmp.ge.f32.partialorder %v5500_v18, 0.5  ;;  %vm5889_vm2 = vcmp.le.f32.partialorder %v5500_v18, 16.5  ;;  %v16780_v14 = vpack.c.b16 %v6443_v19, %v16568_v35  ;;  %v16783_v40 = vpack.c.b16 %v16757_v51, %v6443_v19  ;;  %v11517_v19 = vld [vmem:[#allocation9 + $0x190] sm:$0xff]  ;;  %v4683_v18 = vpop.f32.mrf.mxu0  ;;  %v7061_v21 = vpop.f32.mrf.mxu2 }
 0x5fd   : > { %vm5834_vm7 = vmand %vm5724_vm13, %vm5779_vm4  ;;  %v16775_v45 = vsel %vm1699_vm1, %v20571_v37, %v20570_v61  ;;  %20572 = vst [vmem:[#allocation109_spill] sm:$0xff] %v16777_v16  ;;  %v6876_v44 = vshrl.u32 %v16587_v31, 16  ;;  %vm5999_vm5 = vcmp.lt.f32.partialorder %v16679_v63, 17.5  ;;  %v5446_v36 = vmul.f32 24.0, %v16764_v54 }
 0x5fe   : > { %vm16787_vm6 = vmand %vm5834_vm7, %vm5889_vm2  ;;  %v5111_v48 = vmax.f32 %v5056_v42, 0.0  ;;  %vm6217_vm3 = vcmp.eq.s32.totalorder %v16762_v23, 1  ;;  %v16797_v35 = vsel %vm16749_vm15, 1, %v20125_v49  ;;  %v8214_v1 = vshrl.u32 %v16363_v57, 16  ;;  %6643 = vmatmul.bf16.gmra.mxu1 %v16783_v40  ;;  %9146 = vmatpush.bf16.msra.mxu0 %v11517_v19 }
 0x5ff   : > { %v6880_v43 = vshll.u32 %v16783_v40, 16  ;;  %v5560_v62 = vadd.f32 -1.0, %v16764_v54  ;;  %v5282_v42 = vadd.f32 0.5, %v19445_v34  ;;  %v4827_v58 = vadd.f32 %v4683_v18, %v15931_v50  ;;  %vm16812_vm8 = vmand %vm16787_vm6, %vm5999_vm5  ;;  %v20583_v34 = vld [vmem:[#allocation189_spill] sm:$0xff] }
 0x600   : > { %v6106_v61 = vpack.c.bf16 %v5111_v48, %v5111_v48  ;;  %v7210_v37 = vadd.f32 %v7061_v21, %v16505_v24  ;;  %v16817_v3 = vadd.s32 320, %v14341_v0  ;;  %v20579_v50 = vrot.slane %v16783_v40, 1  ;;  %vm16880_vm13 = vmpackc.low %vm6217_vm3, %vm6217_vm3 }
 0x601   : > { %v20580_v24 = vrot.slane %v16587_v31, 1  ;;  %v6878_v5 = vor.u32 %v6876_v44, %v16636_v30  ;;  %v16834_v19 = vrot.slane %v6880_v43, 1  ;;  %v20582_v18 = vcvt.s32.f32 %v16673_v56 }
 0x602   : > { %v4998_v41 = vmul.f32 %v16142_v10, %v4827_v58  ;;  %v8216_v29 = vor.u32 %v8214_v1, %v16618_v13  ;;  %vm6218_vm14 = vcmp.eq.s32.totalorder %v16797_v35, 1  ;;  %v16853_v56 = vsel %vm16812_vm8, 1, %v20125_v49  ;;  %v16858_v1 = vpop.f32.mrf.mxu1  ;;  %9147 = vmatpush.bf16.msra.mxu0 %v11516_v11 }
 0x603   : > { %v16831_v63 = vsel %vm1699_vm1, %v20580_v24, %v20579_v50  ;;  %v16838_v21 = vsub.f32 %v20582_v18, %v5446_v36  ;;  %v8218_v50 = vshll.u32 %v16520_v22, 16  ;;  %v16847_v30 = vsel %vm1060_vm0, %v6878_v5, %v16834_v19  ;;  %v16862_v58 = vpop.f32.mrf.mxu3  ;;  %v11515_v24 = vld [vmem:[#allocation9 + $0x180] sm:$0xff] }
 0x604   : > { %20581 = vst [vmem:[#allocation134_spill] sm:$0xff] %v16831_v63  ;;  %7514 = vmatmul.bf16.gmra.mxu3 %v16831_v63  ;;  %vm5615_vm11 = vcmp.ge.f32.partialorder %v5560_v62, 0.0  ;;  %v5337_v44 = vmul.f32 0.041666668, %v5282_v42  ;;  %v6326_v36 = vsel %vm16822_vm9, %v6106_v61, 0  ;;  %v5057_v13 = vadd.f32 %v16171_v55, %v4998_v41  ;;  %7103 = vmatmul.bf16.gmra.mxu2 %v16847_v30  ;;  %v4686_v41 = vpop.f32.mrf.mxu0 }
 0x605   : > { %20584 = vst [vmem:[#allocation25_spill] sm:$0xff] %v16847_v30  ;;  %vm5670_vm15 = vcmp.lt.f32.partialorder %v5560_v62, 16.0  ;;  %v5228_v43 = vcvt.s32.f32 %v16817_v3  ;;  %vm5780_vm12 = vcmp.ge.f32.partialorder %v16838_v21, 0.5  ;;  %vm5890_vm10 = vcmp.le.f32.partialorder %v16838_v21, 16.5  ;;  %4725 = vmatmul.bf16.gmra.mxu0 %v16775_v45 }
 0x606   : > { %v16866_v25 = vfloor.f32 %v5337_v44  ;;  %v16868_v42 = vadd.f32 %v7472_v9, %v7210_v37  ;;  %v5112_v61 = vmax.f32 %v5057_v13, 0.0  ;;  %v16871_v5 = vadd.s32 328, %v14341_v0  ;;  %v7064_v9 = vpop.f32.mrf.mxu2  ;;  %9148 = vmatpush.bf16.msra.mxu0 %v11515_v24  ;;  %vm16894_vm2 = vmand %vm5615_vm11, %vm5670_vm15 }
 0x607   : > { %v5283_v48 = vadd.f32 0.5, %v5228_v43  ;;  %v16873_v18 = vrot.slane %v8218_v50, 1  ;;  %v16875_v11 = vunpack.c.l.b16 %v6326_v36  ;;  %vm6000_vm4 = vcmp.lt.f32.partialorder %v16764_v54, 17.5  ;;  %v20588_v36 = vld [vmem:[#allocation207_spill] sm:$0xff]  ;;  %vm16927_vm8 = vmand %vm16894_vm2, %vm5780_vm12 }
 0x608   : > { %20585 = vst [vmem:[#allocation118_spill] sm:$0xff] %v16868_v42  ;;  %v5447_v37 = vmul.f32 24.0, %v16866_v25  ;;  %v5561_v44 = vadd.f32 -1.0, %v16866_v25  ;;  %v19450_v50 = vrot.slane %v16780_v14, 1  ;;  %v6107_v13 = vpack.c.bf16 %v5112_v61, %v5112_v61  ;;  %vm16956_vm15 = vmpackc.low %vm6218_vm14, %vm6218_vm14 }
 0x609   : > { %v4828_v16 = vadd.f32 %v4686_v41, %v20588_v36  ;;  %v16890_v23 = vadd.f32 %v7064_v9, %v16581_v53  ;;  %v5338_v63 = vmul.f32 0.041666668, %v5283_v48  ;;  %v20591_v42 = vcvt.s32.f32 %v16730_v32  ;;  %vm16967_vm2 = vmand %vm16927_vm8, %vm5890_vm10 }
 0x60a   : > { %vm5616_vm7 = vcmp.ge.f32.partialorder %v5561_v44, 0.0  ;;  %vm5671_vm6 = vcmp.lt.f32.partialorder %v5561_v44, 16.0  ;;  %v19449_v61 = vcvt.s32.f32 %v16871_v5  ;;  %v6327_v41 = vsel %vm16880_vm13, %v6107_v13, 0  ;;  %v16921_v3 = vpop.f32.mrf.mxu1 }
 0x60b   : > { %v5502_v57 = vsub.f32 %v20591_v42, %v5447_v37  ;;  %v4999_v53 = vmul.f32 %v16142_v10, %v4828_v16  ;;  %vm16905_vm5 = vmand %vm5616_vm7, %vm5671_vm6  ;;  %v16909_v48 = vfloor.f32 %v5338_v63  ;;  %v16913_v32 = vsel %vm1060_vm0, %v8216_v29, %v16873_v18  ;;  %v16944_v30 = vpop.f32.mrf.mxu3 }
 0x60c   : > { %20594 = vst [vmem:[#allocation137_spill] sm:$0xff] %v16913_v32  ;;  %v16915_v42 = vunpack.c.l.b16 %v6327_v41  ;;  %v5284_v24 = vadd.f32 0.5, %v19449_v61  ;;  %v8226_v16 = vshll.u32 %v16780_v14, 16  ;;  %v20597_v37 = vrot.slane %v16520_v22, 1 }
 0x60d   : > { %vm5781_vm3 = vcmp.ge.f32.partialorder %v5502_v57, 0.5  ;;  %v5058_v45 = vadd.f32 %v16171_v55, %v4999_v53  ;;  %v5448_v29 = vmul.f32 24.0, %v16909_v48  ;;  %v5562_v9 = vadd.f32 -1.0, %v16909_v48 }
 0x60e   : > { %v16938_v44 = vsel %vm1699_vm1, %v20597_v37, %v19450_v50  ;;  %v16942_v13 = vpack.c.b16 %v16915_v42, %v16875_v11  ;;  %v6884_v36 = vshrl.u32 %v16783_v40, 16  ;;  %vm16949_vm9 = vmand %vm16905_vm5, %vm5781_vm3  ;;  %vm5891_vm11 = vcmp.le.f32.partialorder %v5502_v57, 16.5  ;;  %v7066_v62 = vpop.f32.mrf.mxu2 }
 0x60f   : > { %20598 = vst [vmem:[#allocation187_spill] sm:$0xff] %v16938_v44  ;;  %v5339_v53 = vmul.f32 0.041666668, %v5284_v24  ;;  %v5113_v61 = vmax.f32 %v5058_v45, 0.0  ;;  %v5503_v50 = vsub.f32 %v5228_v43, %v5448_v29  ;;  %vm5617_vm12 = vcmp.ge.f32.partialorder %v5562_v9, 0.0  ;;  %v4688_v44 = vpop.f32.mrf.mxu0  ;;  %vm16978_vm7 = vmand %vm16949_vm9, %vm5891_vm11 }
 0x610   : > { %vm5672_vm13 = vcmp.lt.f32.partialorder %v5562_v9, 16.0  ;;  %6648 = vmatmul.bf16.gmra.mxu1 %v16942_v13  ;;  %v19454_v32 = vrot.slane %v16942_v13, 1  ;;  %v6888_v28 = vshll.u32 %v16942_v13, 16  ;;  %vm6001_vm14 = vcmp.lt.f32.partialorder %v16866_v25, 17.5  ;;  %vm17004_vm5 = vmand %vm16967_vm2, %vm6000_vm4 }
 0x611   : > { %v8222_v43 = vshrl.u32 %v16520_v22, 16  ;;  %v6108_v24 = vpack.c.bf16 %v5113_v61, %v5113_v61  ;;  %v4829_v45 = vadd.f32 %v4688_v44, %v15951_v33  ;;  %v7212_v29 = vadd.f32 %v7066_v62, %v16676_v39  ;;  %vm16994_vm10 = vmand %vm5617_vm12, %vm5672_vm13 }
 0x612   : > { %v16982_v63 = vrot.slane %v8226_v16, 1  ;;  %v20607_v31 = vrot.slane %v16783_v40, 1  ;;  %v6886_v33 = vor.u32 %v6884_v36, %v16834_v19  ;;  %v6890_v61 = vrot.slane %v6888_v28, 1  ;;  %vm17024_vm4 = vmand %vm16978_vm7, %vm6001_vm14  ;;  %v17034_v41 = vpop.f32.mrf.mxu1 }
 0x613   : > { %vm5782_vm6 = vcmp.ge.f32.partialorder %v5503_v50, 0.5  ;;  %v5000_v39 = vmul.f32 %v16142_v10, %v4829_v45  ;;  %v20613_v28 = vrot.slane %v20583_v34, 1  ;;  %v20614_v19 = vrot.slane %v20563_v38, 1  ;;  %v17049_v37 = vpop.f32.mrf.mxu3 }
 0x614   : > { %v16989_v22 = vsel %vm1699_vm1, %v20607_v31, %v19454_v32  ;;  %v17013_v9 = vfloor.f32 %v5339_v53  ;;  %v8224_v44 = vor.u32 %v8222_v43, %v16873_v18  ;;  %vm6219_vm3 = vcmp.eq.s32.totalorder %v16853_v56, 1  ;;  %vm17040_vm9 = vmand %vm16994_vm10, %vm5782_vm6 }
 0x615   : > { %20608 = vst [vmem:[#allocation124_spill] sm:$0xff] %v16989_v22  ;;  %7519 = vmatmul.bf16.gmra.mxu3 %v16989_v22  ;;  %v4534_v16 = vsel %vm1699_vm1, %v20614_v19, %v20613_v28  ;;  %v17018_v54 = vsel %vm1060_vm0, %v6886_v33, %v6890_v61  ;;  %vm5892_vm8 = vcmp.le.f32.partialorder %v5503_v50, 16.5  ;;  %v17029_v38 = vadd.s32 336, %v14341_v0  ;;  %vm17064_vm11 = vmpackc.low %vm6219_vm3, %vm6219_vm3 }
 0x616   : > { %20615 = vst [vmem:[#allocation140_spill] sm:$0xff] %v17018_v54  ;;  %v6328_v34 = vsel %vm16956_vm15, %v6108_v24, 0  ;;  %v5059_v18 = vadd.f32 %v16171_v55, %v5000_v39  ;;  %7108 = vmatmul.bf16.gmra.mxu2 %v17018_v54  ;;  %v5449_v53 = vmul.f32 24.0, %v17013_v9  ;;  %v17047_v62 = vsel %vm1060_vm0, %v8224_v44, %v16982_v63  ;;  %vm17084_vm15 = vmand %vm17040_vm9, %vm5892_vm8  ;;  %v20625_v44 = vld [vmem:[#allocation209_spill] sm:$0xff]  ;;  %4730 = vmatmul.bf16.gmra.mxu0 %v4534_v16 }
 0x617   : > { %v5563_v35 = vadd.f32 -1.0, %v17013_v9  ;;  %v5230_v43 = vcvt.s32.f32 %v17029_v38  ;;  %v17055_v24 = vadd.f32 %v16862_v58, %v16890_v23  ;;  %v17059_v45 = vpack.c.b16 %v16875_v11, %v16757_v51  ;;  %v4691_v56 = vpop.f32.mrf.mxu0  ;;  %v7069_v23 = vpop.f32.mrf.mxu2 }
 0x618   : > { %v5114_v21 = vmax.f32 %v5059_v18, 0.0  ;;  %v17071_v57 = vsel %vm17004_vm5, 1, %v20125_v49  ;;  %v17076_v58 = vsel %vm17024_vm4, 1, %v20125_v49  ;;  %v6892_v51 = vshrl.u32 %v16942_v13, 16 }
 0x619   : > { %20620 = vst [vmem:[#allocation129_spill] sm:$0xff] %v17059_v45  ;;  %v17079_v11 = vunpack.c.l.b16 %v6328_v34  ;;  %vm6002_vm12 = vcmp.lt.f32.partialorder %v16909_v48, 17.5  ;;  %v5285_v31 = vadd.f32 0.5, %v5230_v43  ;;  %v17090_v28 = vadd.s32 344, %v14341_v0 }
 0x61a   : > { %v6109_v19 = vpack.c.bf16 %v5114_v21, %v5114_v21  ;;  %v4830_v36 = vadd.f32 %v4691_v56, %v20625_v44  ;;  %v17094_v38 = vadd.f32 %v7069_v23, %v16768_v15  ;;  %v20626_v50 = vcvt.s32.f32 %v16871_v5  ;;  %vm6057_vm2 = vmand %vm17084_vm15, %vm6002_vm12 }
 0x61b   : > { %vm5618_vm13 = vcmp.ge.f32.partialorder %v5563_v35, 0.0  ;;  %v5340_v18 = vmul.f32 0.041666668, %v5285_v31  ;;  %v19456_v25 = vcvt.s32.f32 %v17090_v28  ;;  %v19455_v48 = vrot.slane %v17059_v45, 1  ;;  %v7482_v23 = vpop.f32.mrf.mxu3  ;;  %v11500_v31 = vld [vmem:[#allocation9 + $0x108] sm:$0xff] }
 0x61c   : > { %v17098_v34 = vsub.f32 %v20626_v50, %v5449_v53  ;;  %v6329_v32 = vsel %vm17064_vm11, %v6109_v19, 0  ;;  %v5001_v21 = vmul.f32 %v16142_v10, %v4830_v36  ;;  %vm5673_vm14 = vcmp.lt.f32.partialorder %v5563_v35, 16.0  ;;  %8388 = vmatpush.bf16.msrb.mxu2 %v11500_v31 }
 0x61d   : > { %v17108_v15 = vadd.f32 %v16944_v30, %v7212_v29  ;;  %v17110_v5 = vunpack.c.l.b16 %v6329_v32  ;;  %v17112_v53 = vfloor.f32 %v5340_v18  ;;  %v5286_v56 = vadd.f32 0.5, %v19456_v25  ;;  %v17125_v30 = vpop.f32.mrf.mxu1  ;;  %vm17139_vm6 = vmand %vm5618_vm13, %vm5673_vm14 }
 0x61e   : > { %v20628_v33 = vrot.slane %v16780_v14, 1  ;;  %v5060_v16 = vadd.f32 %v16171_v55, %v5001_v21  ;;  %vm6220_vm7 = vcmp.eq.s32.totalorder %v17071_v57, 1  ;;  %vm6221_vm10 = vcmp.eq.s32.totalorder %v17076_v58, 1 }
 0x61f   : > { %20627 = vst [vmem:[#allocation141_spill] sm:$0xff] %v17108_v15  ;;  %v6894_v32 = vor.u32 %v6892_v51, %v6890_v61  ;;  %v17130_v29 = vpack.c.b16 %v17110_v5, %v17079_v11  ;;  %v17133_v39 = vsel %vm6057_vm2, 1, %v20125_v49  ;;  %v5450_v19 = vmul.f32 24.0, %v17112_v53  ;;  %v4693_v51 = vpop.f32.mrf.mxu0  ;;  %v7071_v50 = vpop.f32.mrf.mxu2  ;;  %vm17189_vm13 = vmpackc.low %vm6220_vm7, %vm6220_vm7 }
 0x620   : > { %v17121_v10 = vsel %vm1699_vm1, %v20628_v33, %v19455_v48  ;;  %v5564_v55 = vadd.f32 -1.0, %v17112_v53  ;;  %v5115_v44 = vmax.f32 %v5060_v16, 0.0  ;;  %vm5783_vm5 = vcmp.ge.f32.partialorder %v17098_v34, 0.5 }
 0x621   : > { %20629 = vst [vmem:[#allocation227_spill] sm:$0xff] %v17121_v10  ;;  %vm6003_vm3 = vcmp.lt.f32.partialorder %v17013_v9, 17.5  ;;  %v5341_v61 = vmul.f32 0.041666668, %v5286_v56  ;;  %6653 = vmatmul.bf16.gmra.mxu1 %v17130_v29  ;;  %v19459_v18 = vrot.slane %v17130_v29, 1  ;;  %v6896_v21 = vshll.u32 %v17130_v29, 16  ;;  %vm17167_vm8 = vmand %vm17139_vm6, %vm5783_vm5 }
 0x622   : > { %v5505_v33 = vsub.f32 %v5230_v43, %v5450_v19  ;;  %v17149_v35 = vadd.s32 352, %v14341_v0  ;;  %v4831_v16 = vadd.f32 %v4693_v51, %v16259_v8  ;;  %v7214_v48 = vadd.f32 %v7071_v50, %v16858_v1  ;;  %v17175_v1 = vld [vmem:[%s19076_s2] ss:$0 sm:$0xff]  ;;  %v11492_v50 = vld [vmem:[#allocation9 + $0xc8] sm:$0xff]  ;;  %vm17241_vm6 = vmpackc.low %vm6221_vm10, %vm6221_vm10 }
 0x623   : > { %vm5619_vm4 = vcmp.ge.f32.partialorder %v5564_v55, 0.0  ;;  %v8234_v56 = vshll.u32 %v17059_v45, 16  ;;  %v20632_v25 = vrot.slane %v16942_v13, 1  ;;  %v17161_v54 = vrot.slane %v6896_v21, 1  ;;  %7827 = vmatpush.bf16.msrb.mxu1 %v11492_v50 }
 0x624   : > { %vm5893_vm9 = vcmp.le.f32.partialorder %v17098_v34, 16.5  ;;  %vm5674_vm11 = vcmp.lt.f32.partialorder %v5564_v55, 16.0  ;;  %v5002_v43 = vmul.f32 %v17175_v1, %v4831_v16  ;;  %vm5784_vm12 = vcmp.ge.f32.partialorder %v5505_v33, 0.5 }
 0x625   : > { %v17159_v22 = vsel %vm1699_vm1, %v20632_v25, %v19459_v18  ;;  %vm17179_vm15 = vmand %vm5619_vm4, %vm5674_vm11  ;;  %v17183_v31 = vfloor.f32 %v5341_v61  ;;  %v8230_v19 = vshrl.u32 %v16780_v14, 16  ;;  %v6110_v36 = vpack.c.bf16 %v5115_v44, %v5115_v44  ;;  %v17201_v61 = vld [vmem:[%s19077_s3] ss:$0 sm:$0xff]  ;;  %v17204_v44 = vpop.f32.mrf.mxu1 }
 0x626   : > { %20633 = vst [vmem:[#allocation211_spill] sm:$0xff] %v17159_v22  ;;  %7524 = vmatmul.bf16.gmra.mxu3 %v17159_v22  ;;  %v17195_v51 = vsel %vm1060_vm0, %v6894_v32, %v17161_v54  ;;  %vm5894_vm2 = vcmp.le.f32.partialorder %v5505_v33, 16.5  ;;  %v5061_v57 = vadd.f32 %v17201_v61, %v5002_v43  ;;  %vm17211_vm14 = vmand %vm17167_vm8, %vm5893_vm9  ;;  %v8236_v21 = vrot.slane %v8234_v56, 1  ;;  %v17217_v22 = vpop.f32.mrf.mxu3  ;;  %9149 = vmatmul.bf16.vlgmr.msra.gmra.mxu0 %v14790_v47 }
 0x627   : > { %20640 = vst [vmem:[#allocation130_spill] sm:$0xff] %v17195_v51  ;;  %7113 = vmatmul.bf16.gmra.mxu2 %v17195_v51  ;;  %v5451_v16 = vmul.f32 24.0, %v17183_v31  ;;  %v5565_v18 = vadd.f32 -1.0, %v17183_v31  ;;  %vm17222_vm7 = vmand %vm17179_vm15, %vm5784_vm12  ;;  %v20645_v34 = vcvt.s32.f32 %v17149_v35  ;;  %v17230_v51 = vadd.f32 %v17049_v37, %v17094_v38  ;;  %v7074_v38 = vpop.f32.mrf.mxu2 }
 0x628   : > { %v17234_v56 = vpack.c.b16 %v17079_v11, %v16915_v42  ;;  %v17236_v15 = vadd.f32 %v7482_v23, %v7214_v48  ;;  %v5116_v10 = vmax.f32 %v5061_v57, 0.0  ;;  %v20651_v50 = vcvt.s32.f32 %v17090_v28  ;;  %v4696_v11 = vpop.f32.mrf.mxu0  ;;  %vm17254_vm4 = vmand %vm17211_vm14, %vm6003_vm3  ;;  %v20654_v23 = vld [vmem:[#allocation75_spill] sm:$0xff] }
 0x629   : > { %v5287_v8 = vadd.f32 0.5, %v20645_v34  ;;  %20646 = vst [vmem:[#allocation233_spill] sm:$0xff] %v17230_v51  ;;  %vm5620_vm5 = vcmp.ge.f32.partialorder %v5565_v18, 0.0  ;;  %v8232_v37 = vor.u32 %v8230_v19, %v16982_v63  ;;  %v6330_v42 = vsel %vm17189_vm13, %v6110_v36, 0  ;;  %vm17264_vm9 = vmand %vm17222_vm7, %vm5894_vm2 }
 0x62a   : > { %20647 = vst [vmem:[#allocation190_spill] sm:$0xff] %v17234_v56  ;;  %v5506_v34 = vsub.f32 %v20651_v50, %v5451_v16  ;;  %vm6004_vm10 = vcmp.lt.f32.partialorder %v17112_v53, 17.5  ;;  %vm5675_vm8 = vcmp.lt.f32.partialorder %v5565_v18, 16.0  ;;  %v6111_v48 = vpack.c.bf16 %v5116_v10, %v5116_v10 }
 0x62b   : > { %20648 = vst [vmem:[#allocation214_spill] sm:$0xff] %v17236_v15  ;;  %v5342_v28 = vmul.f32 0.041666668, %v5287_v8  ;;  %v4832_v63 = vadd.f32 %v4696_v11, %v20654_v23  ;;  %v7215_v19 = vadd.f32 %v7074_v38, %v16921_v3  ;;  %vm6222_vm11 = vcmp.eq.s32.totalorder %v17133_v39, 1  ;;  %vm5730_vm15 = vmand %vm5620_vm5, %vm5675_vm8 }
 0x62c   : > { %vm5785_vm3 = vcmp.ge.f32.partialorder %v5506_v34, 0.5  ;;  %v17273_v10 = vadd.s32 360, %v14341_v0  ;;  %v17276_v55 = vsel %vm1060_vm0, %v8232_v37, %v8236_v21  ;;  %v6331_v3 = vsel %vm17241_vm6, %v6111_v48, 0  ;;  %vm6059_vm2 = vmand %vm17264_vm9, %vm6004_vm10 }
 0x62d   : > { %v17270_v36 = vfloor.f32 %v5342_v28  ;;  %20657 = vst [vmem:[#allocation237_spill] sm:$0xff] %v17276_v55  ;;  %v5003_v33 = vmul.f32 %v17175_v1, %v4832_v63  ;;  %vm17282_vm12 = vmand %vm5730_vm15, %vm5785_vm3  ;;  %vm5895_vm13 = vcmp.le.f32.partialorder %v5506_v34, 16.5  ;;  %v19462_v18 = vrot.slane %v17234_v56, 1  ;;  %v17298_v25 = vpop.f32.mrf.mxu1 }
 0x62e   : > { %v6449_v32 = vunpack.c.l.b16 %v6330_v42  ;;  %v17287_v16 = vunpack.c.l.b16 %v6331_v3  ;;  %v6168_v43 = vsel %vm17254_vm4, 1, %v20125_v49  ;;  %v6900_v8 = vshrl.u32 %v17130_v29, 16  ;;  %v7487_v11 = vpop.f32.mrf.mxu3  ;;  %vm17314_vm14 = vmand %vm17282_vm12, %vm5895_vm13 }
 0x62f   : > { %v5062_v47 = vadd.f32 %v17201_v61, %v5003_v33  ;;  %v5452_v50 = vmul.f32 24.0, %v17270_v36  ;;  %v5566_v34 = vadd.f32 -1.0, %v17270_v36  ;;  %v20660_v37 = vrot.slane %v17059_v45, 1  ;;  %v7076_v33 = vpop.f32.mrf.mxu2  ;;  %vm17366_vm8 = vmpackc.low %vm6222_vm11, %vm6222_vm11 }
 0x630   : > { %v17310_v53 = vpack.c.b16 %v17287_v16, %v6449_v32  ;;  %vm6005_vm7 = vcmp.lt.f32.partialorder %v17183_v31, 17.5  ;;  %v5233_v58 = vcvt.s32.f32 %v17273_v10  ;;  %v8238_v28 = vshrl.u32 %v17059_v45, 16  ;;  %v4698_v3 = vpop.f32.mrf.mxu0 }
 0x631   : > { %v17307_v42 = vsel %vm1699_vm1, %v20660_v37, %v19462_v18  ;;  %vm6223_vm6 = vcmp.eq.s32.totalorder %v6168_v43, 1  ;;  %v6902_v48 = vor.u32 %v6900_v8, %v17161_v54  ;;  %v17323_v23 = vsel %vm6059_vm2, 1, %v20125_v49  ;;  %vm6060_vm5 = vmand %vm17314_vm14, %vm6005_vm7 }
 0x632   : > { %20661 = vst [vmem:[#allocation133_spill] sm:$0xff] %v17307_v42  ;;  %v8242_v63 = vshll.u32 %v17234_v56, 16  ;;  %v5117_v9 = vmax.f32 %v5062_v47, 0.0  ;;  %6658 = vmatmul.bf16.gmra.mxu1 %v17310_v53  ;;  %v19464_v57 = vrot.slane %v17310_v53, 1  ;;  %v6904_v37 = vshll.u32 %v17310_v53, 16  ;;  %vm17402_vm12 = vmpackc.low %vm6223_vm6, %vm6223_vm6 }
 0x633   : > { %v8240_v10 = vor.u32 %v8238_v28, %v8236_v21  ;;  %v4833_v18 = vadd.f32 %v4698_v3, %v16295_v2  ;;  %v7216_v15 = vadd.f32 %v7076_v33, %v17034_v41  ;;  %v20664_v54 = vcvt.s32.f32 %v17149_v35 }
 0x634   : > { %vm5621_vm4 = vcmp.ge.f32.partialorder %v5566_v34, 0.0  ;;  %v20665_v47 = vrot.slane %v17130_v29, 1  ;;  %v17344_v21 = vrot.slane %v6904_v37, 1  ;;  %v5288_v2 = vadd.f32 0.5, %v5233_v58 }
 0x635   : > { %v5507_v8 = vsub.f32 %v20664_v54, %v5452_v50  ;;  %v17347_v41 = vadd.s32 368, %v14341_v0  ;;  %v5004_v31 = vmul.f32 %v17175_v1, %v4833_v18  ;;  %vm5676_vm10 = vcmp.lt.f32.partialorder %v5566_v34, 16.0 }
 0x636   : > { %v17342_v42 = vsel %vm1699_vm1, %v20665_v47, %v19464_v57  ;;  %v17351_v35 = vrot.slane %v8242_v63, 1  ;;  %v17354_v50 = vadd.f32 %v17217_v22, %v7215_v19  ;;  %v6112_v38 = vpack.c.bf16 %v5117_v9, %v5117_v9  ;;  %v17371_v22 = vpop.f32.mrf.mxu1  ;;  %v7490_v39 = vpop.f32.mrf.mxu3  ;;  %vm17382_vm3 = vmand %vm5621_vm4, %vm5676_vm10  ;;  %v20677_v57 = vld [vmem:[#allocation215_spill] sm:$0xff]  ;;  %9154 = vmatmul.bf16.gmra.mxu0 %v14910_v17 }
 0x637   : > { %20666 = vst [vmem:[#allocation144_spill] sm:$0xff] %v17342_v42  ;;  %7529 = vmatmul.bf16.gmra.mxu3 %v17342_v42  ;;  %v17358_v28 = vsel %vm1060_vm0, %v6902_v48, %v17344_v21  ;;  %v17361_v3 = vsel %vm6060_vm5, 1, %v20125_v49  ;;  %v5343_v33 = vmul.f32 0.041666668, %v5288_v2  ;;  %v5063_v63 = vadd.f32 %v17201_v61, %v5004_v31 }
 0x638   : > { %20667 = vst [vmem:[#allocation242_spill] sm:$0xff] %v17354_v50  ;;  %7118 = vmatmul.bf16.gmra.mxu2 %v17358_v28  ;;  %vm6006_vm9 = vcmp.lt.f32.partialorder %v17270_v36, 17.5  ;;  %v19463_v19 = vcvt.s32.f32 %v17347_v41  ;;  %v17378_v48 = vsel %vm1060_vm0, %v8240_v10, %v17351_v35  ;;  %vm5786_vm11 = vcmp.ge.f32.partialorder %v5507_v8, 0.5 }
 0x639   : > { %20668 = vst [vmem:[#allocation177_spill] sm:$0xff] %v17358_v28  ;;  %v17386_v37 = vfloor.f32 %v5343_v33  ;;  %v17389_v54 = vpack.c.b16 %v6449_v32, %v17110_v5  ;;  %v17391_v47 = vadd.f32 %v7487_v11, %v7216_v15  ;;  %v5118_v2 = vmax.f32 %v5063_v63, 0.0  ;;  %v4701_v5 = vpop.f32.mrf.mxu0  ;;  %v7079_v15 = vpop.f32.mrf.mxu2  ;;  %vm5841_vm13 = vmand %vm17382_vm3, %vm5786_vm11 }
 0x63a   : > { %20671 = vst [vmem:[#allocation192_spill] sm:$0xff] %v17378_v48  ;;  %vm5896_vm15 = vcmp.le.f32.partialorder %v5507_v8, 16.5  ;;  %v5289_v10 = vadd.f32 0.5, %v19463_v19  ;;  %v17396_v31 = vadd.s32 376, %v14341_v0  ;;  %v6332_v34 = vsel %vm17366_vm8, %v6112_v38, 0  ;;  %v20688_v8 = vld [vmem:[#allocation168_spill] sm:$0xff] }
 0x63b   : > { %20674 = vst [vmem:[#allocation244_spill] sm:$0xff] %v17391_v47  ;;  %v5453_v32 = vmul.f32 24.0, %v17386_v37  ;;  %v5567_v11 = vadd.f32 -1.0, %v17386_v37  ;;  %v6113_v19 = vpack.c.bf16 %v5118_v2, %v5118_v2  ;;  %v4834_v42 = vadd.f32 %v4701_v5, %v20677_v57  ;;  %vm17435_vm6 = vmand %vm5841_vm13, %vm5896_vm15  ;;  %v20686_v5 = vld [vmem:[#allocation62_spill] sm:$0xff] }
 0x63c   : > { %v7217_v18 = vadd.f32 %v7079_v15, %v17125_v30  ;;  %v5344_v43 = vmul.f32 0.041666668, %v5289_v10  ;;  %v19467_v28 = vcvt.s32.f32 %v17396_v31  ;;  %v17415_v47 = vunpack.c.l.b16 %v6332_v34  ;;  %v20685_v34 = vld [vmem:[#allocation205_spill] sm:$0xff]  ;;  %vm17479_vm11 = vmand %vm17435_vm6, %vm6006_vm9 }
 0x63d   : > { %v5508_v38 = vsub.f32 %v5233_v58, %v5453_v32  ;;  %vm5622_vm2 = vcmp.ge.f32.partialorder %v5567_v11, 0.0  ;;  %vm5677_vm14 = vcmp.lt.f32.partialorder %v5567_v11, 16.0  ;;  %v6333_v63 = vsel %vm17402_vm12, %v6113_v19, 0  ;;  %v20687_v32 = vld [vmem:[#allocation212_spill] sm:$0xff] }
 0x63e   : > { %v5005_v2 = vmul.f32 %v17175_v1, %v4834_v42  ;;  %vm17421_vm7 = vmand %vm5622_vm2, %vm5677_vm14  ;;  %v20680_v57 = vrot.slane %v17389_v54, 1  ;;  %v20681_v58 = vrot.slane %v17234_v56, 1  ;;  %v17432_v10 = vunpack.c.l.b16 %v6333_v63 }
 0x63f   : > { %vm5787_vm5 = vcmp.ge.f32.partialorder %v5508_v38, 0.5  ;;  %v17439_v17 = vfloor.f32 %v5344_v43  ;;  %v5290_v42 = vadd.f32 0.5, %v19467_v28  ;;  %v17445_v33 = vadd.f32 %v20685_v34, %v15943_v6  ;;  %v20689_v43 = vld [vmem:[#allocation166_spill] sm:$0xff]  ;;  %v7492_v6 = vpop.f32.mrf.mxu3 }
 0x640   : > { %v17430_v9 = vsel %vm1699_vm1, %v20681_v58, %v20680_v57  ;;  %v17449_v15 = vadd.f32 %v20686_v5, %v16193_v52  ;;  %v17453_v11 = vadd.f32 %v20688_v8, %v20687_v32  ;;  %v5064_v63 = vadd.f32 %v17201_v61, %v5005_v2  ;;  %v17456_v57 = vpop.f32.mrf.mxu1  ;;  %vm17466_vm4 = vmand %vm17421_vm7, %vm5787_vm5  ;;  %v20706_v2 = vld [vmem:[#allocation86_spill] sm:$0xff] }
 0x641   : > { %20682 = vst [vmem:[#allocation89_spill] sm:$0xff] %v17430_v9  ;;  %v4441_v58 = vadd.f32 %v20689_v43, %v15866_v20  ;;  %v17462_v28 = vpack.c.b16 %v17432_v10, %v17415_v47  ;;  %vm5897_vm10 = vcmp.le.f32.partialorder %v5508_v38, 16.5  ;;  %v17470_v34 = vadd.f32 %v7490_v39, %v7217_v18  ;;  %v4703_v32 = vpop.f32.mrf.mxu0  ;;  %v7081_v39 = vpop.f32.mrf.mxu2 }
 0x642   : > { %vm6224_vm8 = vcmp.eq.s32.totalorder %v17323_v23, 1  ;;  %vm6225_vm3 = vcmp.eq.s32.totalorder %v17361_v3, 1  ;;  %v6908_v20 = vshrl.u32 %v17310_v53, 16  ;;  %v5345_v30 = vmul.f32 0.041666668, %v5290_v42  ;;  %vm5952_vm9 = vmand %vm17466_vm4, %vm5897_vm10 }
 0x643   : > { %20692 = vst [vmem:[#allocation147_spill] sm:$0xff] %v17470_v34  ;;  %v5119_v5 = vmax.f32 %v5064_v63, 0.0  ;;  %6663 = vmatmul.bf16.gmra.mxu1 %v17462_v28  ;;  %v19468_v18 = vrot.slane %v17462_v28, 1  ;;  %v6912_v8 = vshll.u32 %v17462_v28, 16  ;;  %v5454_v43 = vmul.f32 24.0, %v17439_v17  ;;  %vm17532_vm13 = vmpackc.low %vm6224_vm8, %vm6224_vm8 }
 0x644   : > { %v4835_v34 = vadd.f32 %v4703_v32, %v4441_v58  ;;  %v7218_v36 = vadd.f32 %v7081_v39, %v17204_v44  ;;  %v6910_v19 = vor.u32 %v6908_v20, %v17344_v21  ;;  %vm6007_vm15 = vcmp.lt.f32.partialorder %v17386_v37, 17.5  ;;  %vm17564_vm7 = vmpackc.low %vm6225_vm3, %vm6225_vm3 }
 0x645   : > { %v20695_v42 = vrot.slane %v17310_v53, 1  ;;  %v17500_v9 = vrot.slane %v6912_v8, 1  ;;  %v17505_v44 = vsel %vm17479_vm11, 1, %v20125_v49  ;;  %v8250_v21 = vshll.u32 %v17389_v54, 16  ;;  %vm17518_vm12 = vmand %vm5952_vm9, %vm6007_vm15 }
 0x646   : > { %v5006_v38 = vmul.f32 %v17175_v1, %v4835_v34  ;;  %v5568_v37 = vadd.f32 -1.0, %v17439_v17  ;;  %v17511_v58 = vfloor.f32 %v5345_v30  ;;  %v8246_v52 = vshrl.u32 %v17234_v56, 16  ;;  %9159 = vmatmul.bf16.gmra.mxu0 %v15039_v7  ;;  %v20711_v7 = vld [vmem:[#allocation87_spill] sm:$0xff] }
 0x647   : > { %v17498_v63 = vsel %vm1699_vm1, %v20695_v42, %v19468_v18  ;;  %v6114_v20 = vpack.c.bf16 %v5119_v5, %v5119_v5  ;;  %v17516_v32 = vsel %vm1060_vm0, %v6910_v19, %v17500_v9  ;;  %v20700_v39 = vcvt.s32.f32 %v17347_v41 }
 0x648   : > { %20696 = vst [vmem:[#allocation148_spill] sm:$0xff] %v17498_v63  ;;  %7534 = vmatmul.bf16.gmra.mxu3 %v17498_v63  ;;  %v17527_v8 = vadd.s32 384, %v14341_v0  ;;  %v5065_v5 = vadd.f32 %v17201_v61, %v5006_v38  ;;  %v17537_v19 = vpop.f32.mrf.mxu1  ;;  %7123 = vmatmul.bf16.gmra.mxu2 %v17516_v32  ;;  %v5455_v41 = vmul.f32 24.0, %v17511_v58  ;;  %v8248_v42 = vor.u32 %v8246_v52, %v17351_v35 }
 0x649   : > { %20697 = vst [vmem:[#allocation105_spill] sm:$0xff] %v17516_v32  ;;  %v17524_v34 = vsub.f32 %v20700_v39, %v5454_v43  ;;  %v5569_v43 = vadd.f32 -1.0, %v17511_v58  ;;  %v17543_v39 = vpop.f32.mrf.mxu3  ;;  %v17546_v18 = vrot.slane %v8250_v21, 1  ;;  %v17550_v63 = vpack.c.b16 %v17415_v47, %v17287_v16  ;;  %v4706_v16 = vpop.f32.mrf.mxu0 }
 0x64a   : > { %v19472_v23 = vcvt.s32.f32 %v17527_v8  ;;  %v17552_v38 = vadd.f32 %v7492_v6, %v7218_v36  ;;  %v5120_v50 = vmax.f32 %v5065_v5, 0.0  ;;  %v17557_v32 = vsel %vm17518_vm12, 1, %v20125_v49  ;;  %v7084_v47 = vpop.f32.mrf.mxu2 }
 0x64b   : > { %vm5623_vm2 = vcmp.ge.f32.partialorder %v5568_v37, 0.0  ;;  %vm5678_vm14 = vcmp.lt.f32.partialorder %v5568_v37, 16.0  ;;  %v6334_v35 = vsel %vm17532_vm13, %v6114_v20, 0  ;;  %vm5788_vm6 = vcmp.ge.f32.partialorder %v17524_v34, 0.5 }
 0x64c   : > { %20703 = vst [vmem:[#allocation111_spill] sm:$0xff] %v17552_v38  ;;  %v5291_v6 = vadd.f32 0.5, %v19472_v23  ;;  %v17572_v36 = vadd.s32 392, %v14341_v0  ;;  %v6115_v52 = vpack.c.bf16 %v5120_v50, %v5120_v50  ;;  %v4836_v20 = vadd.f32 %v4706_v16, %v20706_v2  ;;  %vm17596_vm10 = vmand %vm5623_vm2, %vm5678_vm14 }
 0x64d   : > { %v17576_v3 = vadd.f32 %v7084_v47, %v17298_v25  ;;  %v20707_v30 = vcvt.s32.f32 %v17396_v31  ;;  %vm5624_vm5 = vcmp.ge.f32.partialorder %v5569_v43, 0.0  ;;  %v17583_v56 = vsel %vm1060_vm0, %v8248_v42, %v17546_v18  ;;  %vm17633_vm15 = vmand %vm17596_vm10, %vm5788_vm6 }
 0x64e   : > { %v5346_v38 = vmul.f32 0.041666668, %v5291_v6  ;;  %v19474_v48 = vcvt.s32.f32 %v17572_v36  ;;  %20708 = vst [vmem:[#allocation78_spill] sm:$0xff] %v17583_v56  ;;  %v6335_v23 = vsel %vm17564_vm7, %v6115_v52, 0  ;;  %v5007_v50 = vmul.f32 %v17175_v1, %v4836_v20  ;;  %v11499_v20 = vld [vmem:[#allocation9 + $0x100] sm:$0xff] }
 0x64f   : > { %v5510_v5 = vsub.f32 %v20707_v30, %v5455_v41  ;;  %vm5679_vm4 = vcmp.lt.f32.partialorder %v5569_v43, 16.0  ;;  %v19473_v25 = vrot.slane %v17550_v63, 1  ;;  %v17590_v31 = vunpack.c.l.b16 %v6334_v35  ;;  %8389 = vmatpush.bf16.msrb.mxu2 %v11499_v20 }
 0x650   : > { %v17592_v41 = vunpack.c.l.b16 %v6335_v23  ;;  %v17600_v42 = vfloor.f32 %v5346_v38  ;;  %v5292_v21 = vadd.f32 0.5, %v19474_v48  ;;  %v4443_v47 = vadd.f32 %v20711_v7, %v17445_v33  ;;  %v17608_v23 = vpop.f32.mrf.mxu1  ;;  %vm17625_vm11 = vmand %vm5624_vm5, %vm5679_vm4 }
 0x651   : > { %v5066_v6 = vadd.f32 %v17201_v61, %v5007_v50  ;;  %vm6226_vm8 = vcmp.eq.s32.totalorder %v17505_v44, 1  ;;  %v20712_v37 = vrot.slane %v17389_v54, 1  ;;  %v7497_v52 = vpop.f32.mrf.mxu3  ;;  %vm6227_vm3 = vcmp.eq.s32.totalorder %v17557_v32, 1 }
 0x652   : > { %v17619_v38 = vpack.c.b16 %v17592_v41, %v17590_v31  ;;  %v6916_v33 = vshrl.u32 %v17462_v28, 16  ;;  %vm5789_vm9 = vcmp.ge.f32.partialorder %v5510_v5, 0.5  ;;  %vm5898_vm12 = vcmp.le.f32.partialorder %v17524_v34, 16.5  ;;  %vm17677_vm6 = vmpackc.low %vm6226_vm8, %vm6226_vm8 }
 0x653   : > { %v17615_v35 = vsel %vm1699_vm1, %v20712_v37, %v19473_v25  ;;  %vm5899_vm13 = vcmp.le.f32.partialorder %v5510_v5, 16.5  ;;  %v5456_v50 = vmul.f32 24.0, %v17600_v42  ;;  %v5347_v43 = vmul.f32 0.041666668, %v5292_v21  ;;  %v4708_v37 = vpop.f32.mrf.mxu0  ;;  %v7086_v25 = vpop.f32.mrf.mxu2  ;;  %vm17649_vm2 = vmand %vm17625_vm11, %vm5789_vm9 }
 0x654   : > { %20713 = vst [vmem:[#allocation90_spill] sm:$0xff] %v17615_v35  ;;  %v5121_v7 = vmax.f32 %v5066_v6, 0.0  ;;  %6668 = vmatmul.bf16.gmra.mxu1 %v17619_v38  ;;  %v6920_v35 = vshll.u32 %v17619_v38, 16  ;;  %v17643_v16 = vadd.s32 400, %v14341_v0  ;;  %v4837_v56 = vadd.f32 %v4708_v37, %v4443_v47  ;;  %vm17669_vm14 = vmand %vm17633_vm15, %vm5898_vm12 }
 0x655   : > { %v7220_v51 = vadd.f32 %v7086_v25, %v17371_v22  ;;  %v5570_v6 = vadd.f32 -1.0, %v17600_v42  ;;  %v8258_v48 = vshll.u32 %v17550_v63, 16  ;;  %v20720_v55 = vrot.slane %v17619_v38, 1  ;;  %vm17694_vm4 = vmand %vm17649_vm2, %vm5899_vm13 }
 0x656   : > { %v20721_v20 = vrot.slane %v17462_v28, 1  ;;  %v6918_v22 = vor.u32 %v6916_v33, %v17500_v9  ;;  %v17663_v25 = vrot.slane %v6920_v35, 1  ;;  %vm6008_vm7 = vcmp.lt.f32.partialorder %v17439_v17, 17.5  ;;  %v11514_v35 = vld [vmem:[#allocation9 + $0x178] sm:$0xff]  ;;  %vm17751_vm15 = vmpackc.low %vm6227_vm3, %vm6227_vm3  ;;  %9164 = vmatmul.bf16.gmra.mxu0 %v15168_v27 }
 0x657   : > { %v5008_v9 = vmul.f32 %v17175_v1, %v4837_v56  ;;  %vm6009_vm5 = vcmp.lt.f32.partialorder %v17511_v58, 17.5  ;;  %v17684_v34 = vfloor.f32 %v5347_v43  ;;  %v8254_v33 = vshrl.u32 %v17389_v54, 16  ;;  %v11491_v43 = vld [vmem:[#allocation9 + $0xc0] sm:$0xff]  ;;  %vm17711_vm10 = vmand %vm17669_vm14, %vm6008_vm7  ;;  %8793 = vmatpush.bf16.msrb.mxu3 %v11514_v35 }
 0x658   : > { %v17660_v45 = vsel %vm1699_vm1, %v20721_v20, %v20720_v55  ;;  %v6116_v2 = vpack.c.bf16 %v5121_v7, %v5121_v7  ;;  %v17689_v44 = vsel %vm1060_vm0, %v6918_v22, %v17663_v25  ;;  %v20730_v56 = vcvt.s32.f32 %v17527_v8  ;;  %7828 = vmatpush.bf16.msrb.mxu1 %v11491_v43  ;;  %v20736_v35 = vld [vmem:[#allocation188_spill] sm:$0xff]  ;;  %vm17741_vm9 = vmand %vm17694_vm4, %vm6009_vm5 }
 0x659   : > { %20722 = vst [vmem:[#allocation104_spill] sm:$0xff] %v17660_v45  ;;  %7539 = vmatmul.bf16.gmra.mxu3 %v17660_v45  ;;  %v19478_v20 = vcvt.s32.f32 %v17643_v16  ;;  %v5067_v7 = vadd.f32 %v17201_v61, %v5008_v9  ;;  %v17704_v45 = vpop.f32.mrf.mxu1  ;;  %7128 = vmatmul.bf16.gmra.mxu2 %v17689_v44  ;;  %vm5625_vm8 = vcmp.ge.f32.partialorder %v5570_v6, 0.0  ;;  %vm5680_vm11 = vcmp.lt.f32.partialorder %v5570_v6, 16.0  ;;  %v20735_v9 = vld [vmem:[#allocation156_spill] sm:$0xff] }
 0x65a   : > { %20727 = vst [vmem:[#allocation114_spill] sm:$0xff] %v17689_v44  ;;  %v17700_v37 = vsub.f32 %v20730_v56, %v5456_v50  ;;  %v17715_v8 = vrot.slane %v8258_v48, 1  ;;  %v17717_v50 = vpop.f32.mrf.mxu3  ;;  %v17723_v17 = vadd.f32 %v17543_v39, %v17576_v3  ;;  %v17727_v22 = vpack.c.b16 %v17590_v31, %v17432_v10  ;;  %vm17766_vm3 = vmand %vm5625_vm8, %vm5680_vm11  ;;  %v11512_v39 = vld [vmem:[#allocation9 + $0x168] sm:$0xff] }
 0x65b   : > { %v5293_v21 = vadd.f32 0.5, %v19478_v20  ;;  %v17729_v47 = vadd.f32 %v7497_v52, %v7220_v51  ;;  %v17733_v48 = vadd.f32 %v20735_v9, %v17453_v11  ;;  %v4445_v56 = vadd.f32 %v20736_v35, %v17449_v15  ;;  %v11513_v51 = vld [vmem:[#allocation9 + $0x170] sm:$0xff]  ;;  %v4711_v11 = vpop.f32.mrf.mxu0  ;;  %v7089_v31 = vpop.f32.mrf.mxu2 }
 0x65c   : > { %20733 = vst [vmem:[#allocation123_spill] sm:$0xff] %v17723_v17  ;;  %v5122_v43 = vmax.f32 %v5067_v7, 0.0  ;;  %v5457_v10 = vmul.f32 24.0, %v17684_v34  ;;  %v6336_v3 = vsel %vm17677_vm6, %v6116_v2, 0  ;;  %v17758_v58 = vsel %vm17711_vm10, 1, %v20125_v49  ;;  %v20741_v2 = vld [vmem:[#allocation218_spill] sm:$0xff]  ;;  %8794 = vmatpush.bf16.msrb.mxu3 %v11513_v51 }
 0x65d   : > { %20734 = vst [vmem:[#allocation127_spill] sm:$0xff] %v17729_v47  ;;  %vm5790_vm12 = vcmp.ge.f32.partialorder %v17700_v37, 0.5  ;;  %v8256_v52 = vor.u32 %v8254_v33, %v17546_v18  ;;  %v4838_v30 = vadd.f32 %v4711_v11, %v20741_v2  ;;  %v7221_v32 = vadd.f32 %v7089_v31, %v17456_v57 }
 0x65e   : > { %v6117_v55 = vpack.c.bf16 %v5122_v43, %v5122_v43  ;;  %v5348_v9 = vmul.f32 0.041666668, %v5293_v21  ;;  %v17773_v5 = vsel %vm17741_vm9, 1, %v20125_v49  ;;  %v5571_v18 = vadd.f32 -1.0, %v17684_v34  ;;  %vm17801_vm2 = vmand %vm17766_vm3, %vm5790_vm12 }
 0x65f   : > { %v17777_v33 = vadd.s32 408, %v14341_v0  ;;  %v17781_v57 = vsel %vm1060_vm0, %v8256_v52, %v17715_v8  ;;  %v5009_v21 = vmul.f32 %v17175_v1, %v4838_v30  ;;  %v20744_v35 = vcvt.s32.f32 %v17572_v36 }
 0x660   : > { %v6337_v6 = vsel %vm17751_vm15, %v6117_v55, 0  ;;  %v19477_v51 = vrot.slane %v17727_v22, 1  ;;  %v17792_v11 = vunpack.c.l.b16 %v6336_v3  ;;  %vm6228_vm13 = vcmp.eq.s32.totalorder %v17758_v58, 1  ;;  %8795 = vmatpush.bf16.msrb.mxu3 %v11512_v39 }
 0x661   : > { %v17789_v43 = vsub.f32 %v20744_v35, %v5457_v10  ;;  %v17794_v31 = vunpack.c.l.b16 %v6337_v6  ;;  %vm5900_vm14 = vcmp.le.f32.partialorder %v17700_v37, 16.5  ;;  %v5068_v27 = vadd.f32 %v17201_v61, %v5009_v21  ;;  %v17807_v36 = vpop.f32.mrf.mxu1  ;;  %v11511_v6 = vld [vmem:[#allocation9 + $0x160] sm:$0xff]  ;;  %vm17894_vm3 = vmpackc.low %vm6228_vm13, %vm6228_vm13 }
 0x662   : > { %vm6229_vm7 = vcmp.eq.s32.totalorder %v17773_v5, 1  ;;  %v6924_v10 = vshrl.u32 %v17619_v38, 16  ;;  %v17811_v3 = vfloor.f32 %v5348_v9  ;;  %v20747_v52 = vrot.slane %v17550_v63, 1  ;;  %v7502_v2 = vpop.f32.mrf.mxu3  ;;  %vm17828_vm4 = vmand %vm17801_vm2, %vm5900_vm14  ;;  %v20769_v5 = vld [vmem:[#allocation186_spill] sm:$0xff] }
 0x663   : > { %v17822_v37 = vpack.c.b16 %v17794_v31, %v17792_v11  ;;  %vm5626_vm6 = vcmp.ge.f32.partialorder %v5571_v18, 0.0  ;;  %vm5681_vm5 = vcmp.lt.f32.partialorder %v5571_v18, 16.0  ;;  %vm6010_vm10 = vcmp.lt.f32.partialorder %v17600_v42, 17.5  ;;  %v4713_v39 = vpop.f32.mrf.mxu0 }
 0x664   : > { %v17818_v55 = vsel %vm1699_vm1, %v20747_v52, %v19477_v51  ;;  %v6926_v7 = vor.u32 %v6924_v10, %v17663_v25  ;;  %vm5791_vm8 = vcmp.ge.f32.partialorder %v17789_v43, 0.5  ;;  %v8266_v21 = vshll.u32 %v17727_v22, 16  ;;  %v7091_v52 = vpop.f32.mrf.mxu2  ;;  %vm17842_vm11 = vmand %vm5626_vm6, %vm5681_vm5  ;;  %8796 = vmatpush.bf16.msrb.mxu3 %v11511_v6 }
 0x665   : > { %20748 = vst [vmem:[#allocation132_spill] sm:$0xff] %v17818_v55  ;;  %v5123_v35 = vmax.f32 %v5068_v27, 0.0  ;;  %6673 = vmatmul.bf16.gmra.mxu1 %v17822_v37  ;;  %v19480_v25 = vrot.slane %v17822_v37, 1  ;;  %v6928_v15 = vshll.u32 %v17822_v37, 16  ;;  %v8262_v10 = vshrl.u32 %v17550_v63, 16  ;;  %vm17861_vm9 = vmand %vm17828_vm4, %vm6010_vm10 }
 0x666   : > { %v4839_v51 = vadd.f32 %v4713_v39, %v4445_v56  ;;  %v7222_v20 = vadd.f32 %v7091_v52, %v17537_v19  ;;  %v5458_v27 = vmul.f32 24.0, %v17811_v3  ;;  %v5572_v44 = vadd.f32 -1.0, %v17811_v3  ;;  %vm17886_vm15 = vmand %vm17842_vm11, %vm5791_vm8  ;;  %9169 = vmatmul.bf16.gmra.mxu0 %v15315_v59 }
 0x667   : > { %v20753_v47 = vrot.slane %v17619_v38, 1  ;;  %v17855_v56 = vrot.slane %v6928_v15, 1  ;;  %v20757_v18 = vcvt.s32.f32 %v17777_v33  ;;  %v8264_v39 = vor.u32 %v8262_v10, %v17715_v8  ;;  %vm17939_vm6 = vmpackc.low %vm6229_vm7, %vm6229_vm7 }
 0x668   : > { %v5010_v52 = vmul.f32 %v17175_v1, %v4839_v51  ;;  %v17871_v15 = vadd.s32 416, %v14341_v0  ;;  %v17873_v42 = vrot.slane %v8266_v21, 1  ;;  %v17876_v9 = vadd.f32 %v17717_v50, %v7221_v32 }
 0x669   : > { %v17853_v55 = vsel %vm1699_vm1, %v20753_v47, %v19480_v25  ;;  %v5294_v6 = vadd.f32 0.5, %v20757_v18  ;;  %v11510_v47 = vld [vmem:[#allocation9 + $0x158] sm:$0xff]  ;;  %v6118_v25 = vpack.c.bf16 %v5123_v35, %v5123_v35  ;;  %v17880_v17 = vsel %vm1060_vm0, %v6926_v7, %v17855_v56  ;;  %v17899_v7 = vpop.f32.mrf.mxu1 }
 0x66a   : > { %20754 = vst [vmem:[#allocation138_spill] sm:$0xff] %v17853_v55  ;;  %7544 = vmatmul.bf16.gmra.mxu3 %v17853_v55  ;;  %vm5901_vm12 = vcmp.le.f32.partialorder %v17789_v43, 16.5  ;;  %v5069_v32 = vadd.f32 %v17201_v61, %v5010_v52  ;;  %7133 = vmatmul.bf16.gmra.mxu2 %v17880_v17  ;;  %v6175_v30 = vsel %vm17861_vm9, 1, %v20125_v49  ;;  %vm6011_vm2 = vcmp.lt.f32.partialorder %v17684_v34, 17.5  ;;  %v7505_v21 = vpop.f32.mrf.mxu3 }
 0x66b   : > { %20758 = vst [vmem:[#allocation145_spill] sm:$0xff] %v17880_v17  ;;  %v5349_v51 = vmul.f32 0.041666668, %v5294_v6  ;;  %8797 = vmatpush.bf16.msrb.mxu3 %v11510_v47  ;;  %v17908_v58 = vsel %vm1060_vm0, %v8264_v39, %v17873_v42  ;;  %v20763_v35 = vcvt.s32.f32 %v17643_v16  ;;  %v17918_v6 = vpack.c.b16 %v17792_v11, %v17592_v41  ;;  %vm17926_vm13 = vmand %vm17886_vm15, %vm5901_vm12  ;;  %v4716_v43 = vpop.f32.mrf.mxu0  ;;  %v11508_v39 = vld [vmem:[#allocation9 + $0x148] sm:$0xff] }
 0x66c   : > { %v17920_v19 = vadd.f32 %v7502_v2, %v7222_v20  ;;  %v5124_v52 = vmax.f32 %v5069_v32, 0.0  ;;  %vm5627_vm14 = vcmp.ge.f32.partialorder %v5572_v44, 0.0  ;;  %v17932_v47 = vadd.s32 424, %v14341_v0  ;;  %v7094_v11 = vpop.f32.mrf.mxu2  ;;  %vm17958_vm7 = vmand %vm17926_vm13, %vm6011_vm2 }
 0x66d   : > { %v17912_v10 = vsub.f32 %v20763_v35, %v5458_v27  ;;  %v17914_v18 = vfloor.f32 %v5349_v51  ;;  %v11509_v27 = vld [vmem:[#allocation9 + $0x150] sm:$0xff]  ;;  %v6338_v41 = vsel %vm17894_vm3, %v6118_v25, 0  ;;  %vm5682_vm5 = vcmp.lt.f32.partialorder %v5572_v44, 16.0  ;;  %v20770_v35 = vld [vmem:[#allocation171_spill] sm:$0xff] }
 0x66e   : > { %20764 = vst [vmem:[#allocation217_spill] sm:$0xff] %v17920_v19  ;;  %v19482_v8 = vrot.slane %v17918_v6, 1  ;;  %v6119_v51 = vpack.c.bf16 %v5124_v52, %v5124_v52  ;;  %v4840_v32 = vadd.f32 %v4716_v43, %v14425_v26  ;;  %v7223_v50 = vadd.f32 %v7094_v11, %v17608_v23  ;;  %vm17970_vm10 = vmand %vm5627_vm14, %vm5682_vm5 }
 0x66f   : > { %v5459_v2 = vmul.f32 24.0, %v17914_v18  ;;  %v5573_v25 = vadd.f32 -1.0, %v17914_v18  ;;  %8798 = vmatpush.bf16.msrb.mxu3 %v11509_v27  ;;  %v17950_v16 = vadd.f32 %v20770_v35, %v20769_v5  ;;  %v4447_v55 = vadd.f32 %v14458_v4, %v17733_v48 }
 0x670   : > { %vm5792_vm4 = vcmp.ge.f32.partialorder %v17912_v10, 0.5  ;;  %v19483_v26 = vcvt.s32.f32 %v17932_v47  ;;  %v6339_v23 = vsel %vm17939_vm6, %v6119_v51, 0  ;;  %v5011_v27 = vmul.f32 %v17175_v1, %v4840_v32 }
 0x671   : > { %v20775_v34 = vcvt.s32.f32 %v17871_v15  ;;  %v20776_v43 = vrot.slane %v17727_v22, 1  ;;  %v6457_v11 = vunpack.c.l.b16 %v6338_v41  ;;  %v17983_v51 = vunpack.c.l.b16 %v6339_v23  ;;  %v17988_v5 = vpop.f32.mrf.mxu1  ;;  %vm18002_vm15 = vmand %vm17970_vm10, %vm5792_vm4 }
 0x672   : > { %vm6230_vm8 = vcmp.eq.s32.totalorder %v6175_v30, 1  ;;  %v20778_v59 = vcvt.s32.f32 %v17777_v33  ;;  %v5070_v32 = vadd.f32 %v17201_v61, %v5011_v27  ;;  %v6176_v35 = vsel %vm17958_vm7, 1, %v20125_v49  ;;  %v17996_v41 = vpop.f32.mrf.mxu3 }
 0x673   : > { %v5295_v48 = vadd.f32 0.5, %v20775_v34  ;;  %v17981_v20 = vsel %vm1699_vm1, %v20776_v43, %v19482_v8  ;;  %vm5628_vm11 = vcmp.ge.f32.partialorder %v5573_v25, 0.0  ;;  %vm5683_vm9 = vcmp.lt.f32.partialorder %v5573_v25, 16.0  ;;  %8799 = vmatpush.bf16.msrb.mxu3 %v11508_v39  ;;  %vm18011_vm3 = vmpackc.low %vm6230_vm8, %vm6230_vm8  ;;  %v11507_v39 = vld [vmem:[#allocation9 + $0x140] sm:$0xff]  ;;  %v4718_v43 = vpop.f32.mrf.mxu0 }
 0x674   : > { %20777 = vst [vmem:[#allocation135_spill] sm:$0xff] %v17981_v20  ;;  %v5514_v44 = vsub.f32 %v20778_v59, %v5459_v2  ;;  %v17994_v34 = vpack.c.b16 %v17983_v51, %v6457_v11  ;;  %vm5902_vm12 = vcmp.le.f32.partialorder %v17912_v10, 16.5  ;;  %v5296_v30 = vadd.f32 0.5, %v19483_v26  ;;  %v7096_v59 = vpop.f32.mrf.mxu2  ;;  %vm18024_vm13 = vmand %vm5628_vm11, %vm5683_vm9 }
 0x675   : > { %v18009_v2 = vadd.f32 %v7505_v21, %v7223_v50  ;;  %v5125_v52 = vmax.f32 %v5070_v32, 0.0  ;;  %v6932_v27 = vshrl.u32 %v17822_v37, 16  ;;  %vm6012_vm2 = vcmp.lt.f32.partialorder %v17811_v3, 17.5  ;;  %vm5957_vm6 = vmand %vm18002_vm15, %vm5902_vm12 }
 0x676   : > { %v5350_v4 = vmul.f32 0.041666668, %v5295_v48  ;;  %6678 = vmatmul.bf16.gmra.mxu1 %v17994_v34  ;;  %v18019_v8 = vrot.slane %v17994_v34, 1  ;;  %v6936_v21 = vshll.u32 %v17994_v34, 16  ;;  %vm5793_vm14 = vcmp.ge.f32.partialorder %v5514_v44, 0.5  ;;  %vm6067_vm4 = vmand %vm5957_vm6, %vm6012_vm2  ;;  %9174 = vmatmul.bf16.gmra.mxu0 %v15443_v46 }
 0x677   : > { %20781 = vst [vmem:[#allocation152_spill] sm:$0xff] %v18009_v2  ;;  %v8274_v32 = vshll.u32 %v17918_v6, 16  ;;  %v6120_v48 = vpack.c.bf16 %v5125_v52, %v5125_v52  ;;  %v4841_v26 = vadd.f32 %v4718_v43, %v4447_v55  ;;  %v7224_v0 = vadd.f32 %v7096_v59, %v17704_v45  ;;  %8800 = vmatpush.bf16.msrb.mxu3 %v11507_v39  ;;  %vm5848_vm5 = vmand %vm18024_vm13, %vm5793_vm14 }
 0x678   : > { %20784 = vst [vmem:[#allocation195_spill] sm:$0xff] %v18019_v8  ;;  %v6934_v17 = vor.u32 %v6932_v27, %v17855_v56  ;;  %v20787_v25 = vrot.slane %v17822_v37, 1  ;;  %v6938_v19 = vrot.slane %v6936_v21, 1  ;;  %v5351_v20 = vmul.f32 0.041666668, %v5296_v30 }
 0x679   : > { %v8270_v55 = vshrl.u32 %v17727_v22, 16  ;;  %v6340_v45 = vsel %vm18011_vm3, %v6120_v48, 0  ;;  %v5012_v56 = vmul.f32 %v17175_v1, %v4841_v26  ;;  %vm5903_vm7 = vcmp.le.f32.partialorder %v5514_v44, 16.5  ;;  %v18060_v27 = vpop.f32.mrf.mxu1 }
 0x67a   : > { %v18039_v2 = vsel %vm1699_vm1, %v20787_v25, %v18019_v8  ;;  %v18049_v10 = vfloor.f32 %v5350_v4  ;;  %v18051_v33 = vunpack.c.l.b16 %v6340_v45  ;;  %v18054_v30 = vsel %vm1060_vm0, %v6934_v17, %v6938_v19  ;;  %v7510_v4 = vpop.f32.mrf.mxu3  ;;  %vm18066_vm8 = vmand %vm5848_vm5, %vm5903_vm7 }
 0x67b   : > { %20788 = vst [vmem:[#allocation220_spill] sm:$0xff] %v18039_v2  ;;  %7549 = vmatmul.bf16.gmra.mxu3 %v18039_v2  ;;  %v8272_v52 = vor.u32 %v8270_v55, %v17873_v42  ;;  %v8276_v26 = vrot.slane %v8274_v32, 1  ;;  %v5071_v23 = vadd.f32 %v17201_v61, %v5012_v56  ;;  %vm6231_vm10 = vcmp.eq.s32.totalorder %v6176_v35, 1  ;;  %7138 = vmatmul.bf16.gmra.mxu2 %v18054_v30  ;;  %v20792_v35 = vld [vmem:[#allocation194_spill] sm:$0xff]  ;;  %v20795_v32 = vld [vmem:[#allocation221_spill] sm:$0xff] }
 0x67c   : > { %20789 = vst [vmem:[#allocation159_spill] sm:$0xff] %v18054_v30  ;;  %v18064_v44 = vpack.c.b16 %v6457_v11, %v17794_v31  ;;  %vm6013_vm11 = vcmp.lt.f32.partialorder %v17914_v18, 17.5  ;;  %v18071_v3 = vfloor.f32 %v5351_v20  ;;  %v4031_v39 = vadd.f32 %v20792_v35, %v17950_v16  ;;  %vm18079_vm9 = vmpackc.low %vm6231_vm10, %vm6231_vm10  ;;  %v4721_v11 = vpop.f32.mrf.mxu0  ;;  %v7099_v21 = vpop.f32.mrf.mxu2  ;;  %v20796_v55 = vld [vmem:[#allocation169_spill] sm:$0xff]  ;;  %v11538_v31 = vld [vmem:[#allocation9 + $0x238] sm:$0xff] }
 0x67d   : > { %v18074_v42 = vsel %vm1060_vm0, %v8272_v52, %v8276_v26  ;;  %v5126_v43 = vmax.f32 %v5071_v23, 0.0  ;;  %v6177_v59 = vsel %vm6067_vm4, 1, %v20125_v49  ;;  %v6751_v50 = vpack.c.b16 %v18051_v33, %v18051_v33  ;;  %vm6068_vm15 = vmand %vm18066_vm8, %vm6013_vm11  ;;  %9865 = vmatpush.bf16.msra.mxu2 %v11538_v31 }
 0x67e   : > { %v5460_v20 = vmul.f32 24.0, %v18049_v10  ;;  %v4449_v48 = vadd.f32 %v20795_v32, %v4031_v39  ;;  %v4842_v45 = vadd.f32 %v4721_v11, %v20796_v55  ;;  %v7225_v16 = vadd.f32 %v7099_v21, %v17807_v36 }
 0x67f   : > { %v6121_v25 = vpack.c.bf16 %v5126_v43, %v5126_v43  ;;  %vm6232_vm12 = vcmp.eq.s32.totalorder %v6177_v59, 1  ;;  %v6940_v56 = vshrl.u32 %v17994_v34, 16  ;;  %v18095_v52 = vadd.f32 -1.0, %v18049_v10 }
 0x680   : > { %v5461_v23 = vmul.f32 24.0, %v18071_v3  ;;  %v5013_v39 = vmul.f32 %v17175_v1, %v4842_v45  ;;  %v8713_v36 = vrot.slane %v18064_v44, 1  ;;  %v18104_v18 = vadd.f32 %v17996_v41, %v7224_v0  ;;  %vm18138_vm3 = vmpackc.low %vm6232_vm12, %vm6232_vm12 }
 0x681   : > { %v6341_v35 = vsel %vm18079_vm9, %v6121_v25, 0  ;;  %v18107_v17 = vsel %vm6068_vm15, 1, %v20125_v49  ;;  %v18109_v43 = vor.u32 %v6940_v56, %v6938_v19  ;;  %v6944_v11 = vshll.u32 %v6751_v50, 16  ;;  %v18118_v1 = vpop.f32.mrf.mxu1 }
 0x682   : > { %v20798_v21 = vcvt.s32.f32 %v17871_v15  ;;  %v18115_v25 = vunpack.c.l.b16 %v6341_v35  ;;  %v5072_v46 = vadd.f32 %v17201_v61, %v5013_v39  ;;  %v20799_v0 = vrot.slane %v17918_v6, 1  ;;  %v7512_v55 = vpop.f32.mrf.mxu3 }
 0x683   : > { %20797 = vst [vmem:[#allocation158_spill] sm:$0xff] %v18109_v43  ;;  %v8282_v19 = vshll.u32 %v18064_v44, 16  ;;  %v7357_v45 = vrot.slane %v6751_v50, 1  ;;  %v5575_v15 = vadd.f32 -1.0, %v18071_v3  ;;  %v18130_v56 = vpack.c.b16 %v18051_v33, %v17983_v51 }
 0x684   : > { %v18113_v32 = vsub.f32 %v20798_v21, %v5460_v20  ;;  %v18123_v41 = vsel %vm1699_vm1, %v20799_v0, %v8713_v36  ;;  %v8278_v20 = vshrl.u32 %v17918_v6, 16  ;;  %v5127_v61 = vmax.f32 %v5072_v46, 0.0  ;;  %v4723_v31 = vpop.f32.mrf.mxu0  ;;  %v7101_v2 = vpop.f32.mrf.mxu2 }
 0x685   : > { %v20800_v35 = vcvt.s32.f32 %v17932_v47  ;;  %v8284_v21 = vrot.slane %v8282_v19, 1  ;;  %v18134_v0 = vadd.f32 %v7510_v4, %v7225_v16  ;;  %v6946_v30 = vrot.slane %v6944_v11, 1 }
 0x686   : > { %7829 = vmatmul.bf16.vlgmr.msrb.gmra.mxu1 %v14634_v60  ;;  %v8280_v51 = vor.u32 %v8278_v20, %v8276_v26  ;;  %v8715_v46 = vrot.slane %v18130_v56, 1  ;;  %v8290_v47 = vshll.u32 %v18130_v56, 16  ;;  %v4843_v19 = vadd.f32 %v4723_v31, %v4449_v48  ;;  %v18160_v48 = vld [vmem:[%s19076_s2] ss:$0 sm:$0xff] }
 0x687   : > { %v5516_v39 = vsub.f32 %v20800_v35, %v5461_v23  ;;  %v6122_v23 = vpack.c.bf16 %v5127_v61, %v5127_v61  ;;  %v7226_v4 = vadd.f32 %v7101_v2, %v17899_v7  ;;  %v18148_v59 = vpack.c.b16 %v18115_v25, %v18051_v33 }
 0x688   : > { %v7358_v16 = vsel %vm1699_vm1, %v18019_v8, %v7357_v45  ;;  %vm5630_vm2 = vcmp.ge.f32.partialorder %v5575_v15, 0.0  ;;  %vm5685_vm13 = vcmp.lt.f32.partialorder %v5575_v15, 16.0  ;;  %v18153_v60 = vsel %vm1060_vm0, %v8280_v51, %v8284_v21  ;;  %v18176_v45 = vld [vmem:[%s19077_s3] ss:$0 sm:$0xff]  ;;  %v11530_v51 = vld [vmem:[#allocation9 + $0x1f8] sm:$0xff] }
 0x689   : > { %20803 = vst [vmem:[#allocation139_spill] sm:$0xff] %v18148_v59  ;;  %v6342_v26 = vsel %vm18138_vm3, %v6122_v23, 0  ;;  %v5014_v7 = vmul.f32 %v18160_v48, %v4843_v19  ;;  %v18166_v2 = vsel %vm1699_vm1, %v8713_v36, %v8715_v46  ;;  %v8286_v33 = vshrl.u32 %v18064_v44, 16  ;;  %v18180_v36 = vpop.f32.mrf.mxu1  ;;  %vm18184_vm7 = vmand %vm5630_vm2, %vm5685_vm13  ;;  %9515 = vmatpush.bf16.msra.mxu1 %v11530_v51 }
 0x68a   : > { %v6947_v11 = vsel %vm1060_vm0, %v18109_v43, %v6946_v30  ;;  %vm5629_vm14 = vcmp.ge.f32.partialorder %v18095_v52, 0.0  ;;  %vm5684_vm6 = vcmp.lt.f32.partialorder %v18095_v52, 16.0  ;;  %vm6233_vm5 = vcmp.eq.s32.totalorder %v18107_v17, 1  ;;  %v7515_v30 = vpop.f32.mrf.mxu3  ;;  %v20834_v43 = vld [vmem:[#allocation119_spill] sm:$0xff] }
 0x68b   : > { %7554 = vmatmul.bf16.gmra.mxu3 %v7358_v16  ;;  %v5073_v20 = vadd.f32 %v18176_v45, %v5014_v7  ;;  %7143 = vmatmul.bf16.gmra.mxu2 %v6947_v11  ;;  %v8288_v61 = vor.u32 %v8286_v33, %v8284_v21  ;;  %v8292_v35 = vrot.slane %v8290_v47, 1  ;;  %v7724_v50 = vunpack.c.l.b16 %v6342_v26  ;;  %vm5739_vm10 = vmand %vm5629_vm14, %vm5684_vm6  ;;  %v20806_v47 = vld [vmem:[#allocation199_spill] sm:$0xff]  ;;  %v20807_v16 = vld [vmem:[#allocation174_spill] sm:$0xff] }
 0x68c   : > { %vm5795_vm4 = vcmp.ge.f32.partialorder %v5516_v39, 0.5  ;;  %vm5794_vm8 = vcmp.ge.f32.partialorder %v18113_v32, 0.5  ;;  %v18191_v19 = vadd.f32 %v7512_v55, %v7226_v4  ;;  %v3641_v15 = vadd.f32 %v20807_v16, %v20806_v47  ;;  %vm18201_vm11 = vmpackc.low %vm6233_vm5, %vm6233_vm5  ;;  %v4726_v7 = vpop.f32.mrf.mxu0  ;;  %v7104_v52 = vpop.f32.mrf.mxu2  ;;  %v20810_v11 = vld [vmem:[#allocation191_spill] sm:$0xff] }
 0x68d   : > { %v5128_v23 = vmax.f32 %v5073_v20, 0.0  ;;  %v18194_v21 = vsel %vm1060_vm0, %v8288_v61, %v8292_v35  ;;  %v4844_v55 = vadd.f32 %v4726_v7, %v20810_v11  ;;  %v7227_v4 = vadd.f32 %v7104_v52, %v17988_v5  ;;  %vm5850_vm9 = vmand %vm18184_vm7, %vm5795_vm4  ;;  %v20811_v61 = vld [vmem:[#allocation216_spill] sm:$0xff] }
 0x68e   : > { %vm5905_vm15 = vcmp.le.f32.partialorder %v5516_v39, 16.5  ;;  %vm5849_vm12 = vmand %vm5739_vm10, %vm5794_vm8  ;;  %vm5904_vm3 = vcmp.le.f32.partialorder %v18113_v32, 16.5  ;;  %v18212_v17 = vpack.c.b16 %v7724_v50, %v18115_v25  ;;  %9179 = vmatmul.bf16.gmra.mxu0 %v20811_v61  ;;  %vm6015_vm2 = vcmp.lt.f32.partialorder %v18071_v3, 17.5  ;;  %v20812_v32 = vld [vmem:[#allocation163_spill] sm:$0xff]  ;;  %v20814_v61 = vld [vmem:[#allocation204_spill] sm:$0xff] }
 0x68f   : > { %v6123_v33 = vpack.c.bf16 %v5128_v23, %v5128_v23  ;;  %v5015_v5 = vmul.f32 %v18160_v48, %v4844_v55  ;;  %vm5960_vm13 = vmand %vm5850_vm9, %vm5905_vm15  ;;  %v8294_v39 = vshrl.u32 %v18130_v56, 16  ;;  %v4033_v23 = vadd.f32 %v20812_v32, %v3641_v15 }
 0x690   : > { %v8717_v31 = vrot.slane %v18212_v17, 1  ;;  %v8298_v51 = vshll.u32 %v18212_v17, 16  ;;  %vm5959_vm14 = vmand %vm5849_vm12, %vm5904_vm3  ;;  %vm6014_vm6 = vcmp.lt.f32.partialorder %v18049_v10, 17.5  ;;  %v18234_v15 = vadd.f32 %v7515_v30, %v7227_v4 }
 0x691   : > { %v6343_v20 = vsel %vm18201_vm11, %v6123_v33, 0  ;;  %v18224_v47 = vpop.f32.mrf.mxu1  ;;  %v8296_v7 = vor.u32 %v8294_v39, %v8292_v35  ;;  %v20813_v33 = vld [vmem:[#allocation173_spill] sm:$0xff]  ;;  %vm6070_vm5 = vmand %vm5960_vm13, %vm6015_vm2  ;;  %v5074_v55 = vadd.f32 %v18176_v45, %v5015_v5  ;;  %v20816_v5 = vld [vmem:[#allocation100_spill] sm:$0xff]  ;;  %vm10388_vm9 = vcmask 1045504  }
 0x692   : > { %v8112_v25 = vunpack.c.l.b16 %v6343_v20  ;;  %v7517_v16 = vpop.f32.mrf.mxu3  ;;  %v18229_v26 = vsel %vm1699_vm1, %v8715_v46, %v8717_v31  ;;  %v8300_v52 = vrot.slane %v8298_v51, 1  ;;  %v4451_v11 = vadd.f32 %v20813_v33, %v4033_v23  ;;  %vm6069_vm7 = vmand %vm5959_vm14, %vm6014_vm6 }
 0x693   : > { %v6180_v3 = vsel %vm6070_vm5, 1, %v20125_v49  ;;  %v6179_v30 = vsel %vm6069_vm7, 1, %v20125_v49  ;;  %v5129_v23 = vmax.f32 %v5074_v55, 0.0 }
 0x694   : > { %v4728_v10 = vpop.f32.mrf.mxu0  ;;  %v7106_v20 = vpop.f32.mrf.mxu2  ;;  %v18239_v32 = vsel %vm1060_vm0, %v8296_v7, %v8300_v52  ;;  %v18242_v39 = vpack.c.b16 %v8112_v25, %v7724_v50  ;;  %v8113_v51 = vpack.c.b16 %v8112_v25, %v8112_v25  ;;  %vm6235_vm4 = vcmp.eq.s32.totalorder %v6180_v3, 1  ;;  %v20817_v50 = vld [vmem:[#allocation224_spill] sm:$0xff] }
 0x695   : > { %v4845_v46 = vadd.f32 %v4728_v10, %v4451_v11  ;;  %v7228_v35 = vadd.f32 %v7106_v20, %v18060_v27  ;;  %vm6234_vm10 = vcmp.eq.s32.totalorder %v6179_v30, 1  ;;  %v6124_v55 = vpack.c.bf16 %v5129_v23, %v5129_v23  ;;  %vm6290_vm8 = vmpackc.low %vm6235_vm4, %vm6235_vm4 }
 0x696   : > { %7834 = vmatmul.bf16.gmra.mxu1 %v20814_v61  ;;  %20815 = vst [vmem:[#allocation182_spill] sm:$0xff] %v18242_v39  ;;  %v8719_v33 = vrot.slane %v8113_v51, 1  ;;  %v8302_v61 = vshrl.u32 %v18212_v17, 16  ;;  %v8306_v7 = vshll.u32 %v8113_v51, 16  ;;  %vm6289_vm11 = vmpackc.low %vm6234_vm10, %vm6234_vm10 }
 0x697   : > { %v5016_v4 = vmul.f32 %v18160_v48, %v4845_v46 }
 0x698   : > { %v18252_v25 = vsel %vm1699_vm1, %v8717_v31, %v8719_v33  ;;  %v8304_v20 = vor.u32 %v8302_v61, %v8300_v52  ;;  %v8308_v48 = vrot.slane %v8306_v7, 1  ;;  %v20820_v52 = vld [vmem:[#allocation143_spill] sm:$0xff]  ;;  %v6344_v61 = vsel %vm6289_vm11, %v6124_v55, 0  ;;  %v11537_v55 = vld [vmem:[#allocation9 + $0x230] sm:$0xff] }
 0x699   : > { %v5075_v11 = vadd.f32 %v18176_v45, %v5016_v4  ;;  %v6651_v27 = vpop.f32.mrf.mxu1  ;;  %v20818_v4 = vld [vmem:[#allocation98_spill] sm:$0xff]  ;;  %v9085_v7 = vunpack.c.l.b16 %v6344_v61  ;;  %9866 = vmatpush.bf16.msra.mxu2 %v11537_v55  ;;  %v20825_v61 = vld [vmem:[#allocation48_spill] sm:$0xff] }
 0x69a   : > { %v7520_v10 = vpop.f32.mrf.mxu3  ;;  %v18257_v45 = vsel %vm1060_vm0, %v8304_v20, %v8308_v48  ;;  %v20821_v48 = vld [vmem:[#allocation193_spill] sm:$0xff] }
 0x69b   : > { %8801 = vmatmul.bf16.vlgmr.msrb.gmra.mxu3 %v20816_v5  ;;  %8390 = vmatmul.bf16.vlgmr.msrb.gmra.mxu2 %v20817_v50  ;;  %v5130_v46 = vmax.f32 %v5075_v11, 0.0  ;;  %v18254_v5 = vadd.f32 %v7517_v16, %v7228_v35 }
 0x69c   : > { %v4731_v8 = vpop.f32.mrf.mxu0  ;;  %v7109_v51 = vpop.f32.mrf.mxu2 }
 0x69d   : > { %v6125_v3 = vpack.c.bf16 %v5130_v46, %v5130_v46  ;;  %v18260_v30 = vadd.f32 %v4731_v8, %v20818_v4  ;;  %v7229_v31 = vadd.f32 %v7109_v51, %v18118_v1  ;;  %v20823_v4 = vld [vmem:[#allocation176_spill] sm:$0xff] }
 0x69e   : > { %9184 = vmatmul.bf16.gmra.mxu0 %v20820_v52  ;;  %v20824_v51 = vld [vmem:[#allocation196_spill] sm:$0xff]  ;;  %v11529_v52 = vld [vmem:[#allocation9 + $0x1f0] sm:$0xff] }
 0x69f   : > { %20819 = vst [vmem:[#allocation46_spill] sm:$0xff] %v18260_v30  ;;  %v6345_v33 = vsel %vm6290_vm8, %v6125_v3, 0  ;;  %v18264_v11 = vadd.f32 %v7520_v10, %v7229_v31  ;;  %9516 = vmatpush.bf16.msra.mxu1 %v11529_v52  ;;  %v20833_v30 = vld [vmem:[#allocation236_spill] sm:$0xff] }
 0x6a0   : > { %v9086_v16 = vunpack.c.l.b16 %v6345_v33 }
 0x6a1   : > { %v6654_v35 = vpop.f32.mrf.mxu1 }
 0x6a2   : > { %v7522_v23 = vpop.f32.mrf.mxu3  ;;  %v18268_v8 = vpack.c.b16 %v9086_v16, %v9085_v7 }
 0x6a4   : > { %v4733_v50 = vpop.f32.mrf.mxu0  ;;  %v7111_v20 = vpop.f32.mrf.mxu2  ;;  %20822 = vst [vmem:[#allocation165_spill] sm:$0xff] %v18268_v8 }
 0x6a5   : > { %v7230_v46 = vadd.f32 %v7111_v20, %v18180_v36  ;;  %v20826_v20 = vld [vmem:[#allocation17_spill] sm:$0xff] }
 0x6a6   : > { %7839 = vmatmul.bf16.gmra.mxu1 %v20821_v48 }
 0x6a7   : > { %v18272_v33 = vadd.f32 %v7522_v23, %v7230_v46  ;;  %v20829_v46 = vld [vmem:[#allocation230_spill] sm:$0xff] }
 0x6a9   : > { %v6656_v1 = vpop.f32.mrf.mxu1 }
 0x6aa   : > { %v7525_v3 = vpop.f32.mrf.mxu3 }
 0x6ab   : > { %8806 = vmatmul.bf16.gmra.mxu3 %v20823_v4  ;;  %8395 = vmatmul.bf16.gmra.mxu2 %v20824_v51  ;;  %v20827_v4 = vld [vmem:[#allocation112_spill] sm:$0xff] }
 0x6ac   : > { %v7114_v10 = vpop.f32.mrf.mxu2  ;;  %v18280_v51 = vpop.f32.mrf.mxu0 }
 0x6ad   : > { %v7231_v31 = vadd.f32 %v7114_v10, %v18224_v47  ;;  %20828 = vst [vmem:[#allocation180_spill] sm:$0xff] %v18280_v51  ;;  %v20837_v51 = vld [vmem:[#allocation53_spill] sm:$0xff] }
 0x6ae   : > { %9189 = vmatmul.bf16.gmra.mxu0 %v20825_v61  ;;  %v20830_v61 = vld [vmem:[#allocation63_spill] sm:$0xff] }
 0x6af   : > { %v18276_v7 = vadd.f32 %v7525_v3, %v7231_v31 }
 0x6b1   : > { %v6659_v36 = vpop.f32.mrf.mxu1 }
 0x6b2   : > { %v7527_v16 = vpop.f32.mrf.mxu3 }
 0x6b4   : > { %v7116_v50 = vpop.f32.mrf.mxu2  ;;  %v18286_v49 = vpop.f32.mrf.mxu0 }
 0x6b5   : > { %v7232_v48 = vadd.f32 %v7116_v50, %v6651_v27  ;;  %20831 = vst [vmem:[#allocation149_spill] sm:$0xff] %v18286_v49  ;;  %v20832_v50 = vld [vmem:[#allocation179_spill] sm:$0xff] }
 0x6b6   : > { %7844 = vmatmul.bf16.gmra.mxu1 %v20826_v20 }
 0x6b7   : > { %v18283_v55 = vadd.f32 %v7527_v16, %v7232_v48 }
 0x6b9   : > { %v6661_v23 = vpop.f32.mrf.mxu1 }
 0x6ba   : > { %v7530_v47 = vpop.f32.mrf.mxu3 }
 0x6bb   : > { %8811 = vmatmul.bf16.gmra.mxu3 %v20827_v4  ;;  %8400 = vmatmul.bf16.gmra.mxu2 %v20829_v46 }
 0x6bc   : > { %v7119_v10 = vpop.f32.mrf.mxu2 }
 0x6bd   : > { %v7233_v52 = vadd.f32 %v7119_v10, %v6654_v35  ;;  %v18295_v10 = vpop.f32.mrf.mxu0 }
 0x6be   : > { %9194 = vmatmul.bf16.gmra.mxu0 %v20830_v61  ;;  %20836 = vst [vmem:[#allocation154_spill] sm:$0xff] %v18295_v10 }
 0x6bf   : > { %v18288_v20 = vadd.f32 %v7530_v47, %v7233_v52 }
 0x6c1   : > { %v6664_v3 = vpop.f32.mrf.mxu1 }
 0x6c2   : > { %v7532_v31 = vpop.f32.mrf.mxu3 }
 0x6c4   : > { %v7121_v27 = vpop.f32.mrf.mxu2 }
 0x6c5   : > { %v7234_v4 = vadd.f32 %v7121_v27, %v6656_v1  ;;  %v20839_v1 = vld [vmem:[#allocation121_spill] sm:$0xff]  ;;  %v18301_v27 = vpop.f32.mrf.mxu0 }
 0x6c6   : > { %7849 = vmatmul.bf16.gmra.mxu1 %v20832_v50  ;;  %20840 = vst [vmem:[#allocation164_spill] sm:$0xff] %v18301_v27  ;;  %v20846_v27 = vld [vmem:[#allocation219_spill] sm:$0xff] }
 0x6c7   : > { %v18293_v48 = vadd.f32 %v7532_v31, %v7234_v4  ;;  %v20842_v4 = vld [vmem:[#allocation203_spill] sm:$0xff] }
 0x6c9   : > { %v6666_v46 = vpop.f32.mrf.mxu1  ;;  %20835 = vst [vmem:[#allocation161_spill] sm:$0xff] %v18293_v48  ;;  %v11536_v48 = vld [vmem:[#allocation9 + $0x228] sm:$0xff] }
 0x6ca   : > { %9867 = vmatpush.bf16.msra.mxu2 %v11536_v48 }
 0x6cb   : > { %8816 = vmatmul.bf16.gmra.mxu3 %v20833_v30  ;;  %8405 = vmatmul.bf16.gmra.mxu2 %v20834_v43  ;;  %v7535_v16 = vpop.f32.mrf.mxu3  ;;  %v20841_v43 = vld [vmem:[#allocation238_spill] sm:$0xff] }
 0x6cc   : > { %v7124_v35 = vpop.f32.mrf.mxu2 }
 0x6cd   : > { %v7235_v61 = vadd.f32 %v7124_v35, %v6659_v36 }
 0x6ce   : > { %9199 = vmatmul.bf16.gmra.mxu0 %v20837_v51 }
 0x6cf   : > { %v18298_v49 = vadd.f32 %v7535_v16, %v7235_v61  ;;  %v11528_v16 = vld [vmem:[#allocation9 + $0x1e8] sm:$0xff]  ;;  %v18308_v61 = vpop.f32.mrf.mxu0 }
 0x6d0   : > { %9517 = vmatpush.bf16.msra.mxu1 %v11528_v16  ;;  %20844 = vst [vmem:[#allocation103_spill] sm:$0xff] %v18308_v61  ;;  %v20851_v61 = vld [vmem:[#allocation120_spill] sm:$0xff] }
 0x6d1   : > { %v6669_v47 = vpop.f32.mrf.mxu1  ;;  %20838 = vst [vmem:[#allocation172_spill] sm:$0xff] %v18298_v49  ;;  %v20847_v49 = vld [vmem:[#allocation31_spill] sm:$0xff] }
 0x6d3   : > { %v7537_v52 = vpop.f32.mrf.mxu3 }
 0x6d4   : > { %v7126_v50 = vpop.f32.mrf.mxu2 }
 0x6d5   : > { %v7236_v30 = vadd.f32 %v7126_v50, %v6661_v23 }
 0x6d6   : > { %7854 = vmatmul.bf16.gmra.mxu1 %v20839_v1 }
 0x6d7   : > { %v18305_v36 = vadd.f32 %v7537_v52, %v7236_v30  ;;  %v20848_v52 = vld [vmem:[#allocation210_spill] sm:$0xff]  ;;  %v18315_v30 = vpop.f32.mrf.mxu0 }
 0x6d8   : > { %20849 = vst [vmem:[#allocation155_spill] sm:$0xff] %v18315_v30  ;;  %v20856_v30 = vld [vmem:[#allocation21_spill] sm:$0xff] }
 0x6d9   : > { %v6671_v31 = vpop.f32.mrf.mxu1  ;;  %20843 = vst [vmem:[#allocation167_spill] sm:$0xff] %v18305_v36 }
 0x6db   : > { %8821 = vmatmul.bf16.gmra.mxu3 %v20841_v43  ;;  %8410 = vmatmul.bf16.gmra.mxu2 %v20842_v4 }
 0x6dc   : > { %v7540_v10 = vpop.f32.mrf.mxu3  ;;  %v7129_v51 = vpop.f32.mrf.mxu2 }
 0x6dd   : > { %v7237_v35 = vadd.f32 %v7129_v51, %v6664_v3 }
 0x6de   : > { %9204 = vmatmul.bf16.gmra.mxu0 %v16426_v12 }
 0x6df   : > { %v18310_v1 = vadd.f32 %v7540_v10, %v7237_v35 }
 0x6e1   : > { %20845 = vst [vmem:[#allocation235_spill] sm:$0xff] %v18310_v1 }
 0x6e2   : > { %v6674_v23 = vpop.f32.mrf.mxu1 }
 0x6e4   : > { %v7542_v50 = vpop.f32.mrf.mxu3  ;;  %v7131_v43 = vpop.f32.mrf.mxu2 }
 0x6e5   : > { %v7238_v4 = vadd.f32 %v7131_v43, %v6666_v46  ;;  %v20853_v46 = vld [vmem:[#allocation225_spill] sm:$0xff] }
 0x6e6   : > { %7859 = vmatmul.bf16.gmra.mxu1 %v20846_v27 }
 0x6e7   : > { %v18317_v12 = vadd.f32 %v7542_v50, %v7238_v4 }
 0x6e9   : > { %20850 = vst [vmem:[#allocation142_spill] sm:$0xff] %v18317_v12 }
 0x6ea   : > { %v6676_v48 = vpop.f32.mrf.mxu1 }
 0x6eb   : > { %8826 = vmatmul.bf16.gmra.mxu3 %v20847_v49  ;;  %8415 = vmatmul.bf16.gmra.mxu2 %v20848_v52  ;;  %v18323_v49 = vpop.f32.mrf.mxu0  ;;  %v20855_v52 = vld [vmem:[#allocation32_spill] sm:$0xff] }
 0x6ec   : > { %20854 = vst [vmem:[#allocation200_spill] sm:$0xff] %v18323_v49 }
 0x6ed   : > { %v7545_v3 = vpop.f32.mrf.mxu3  ;;  %v7134_v51 = vpop.f32.mrf.mxu2 }
 0x6ee   : > { %v7239_v16 = vadd.f32 %v7134_v51, %v6669_v47  ;;  %9209 = vmatmul.bf16.gmra.mxu0 %v20851_v61 }
 0x6f0   : > { %v18320_v1 = vadd.f32 %v7545_v3, %v7239_v16  ;;  %v20859_v16 = vld [vmem:[#allocation33_spill] sm:$0xff] }
 0x6f2   : > { %20852 = vst [vmem:[#allocation178_spill] sm:$0xff] %v18320_v1 }
 0x6f3   : > { %v6679_v10 = vpop.f32.mrf.mxu1  ;;  %v18329_v51 = vpop.f32.mrf.mxu0 }
 0x6f4   : > { %20858 = vst [vmem:[#allocation153_spill] sm:$0xff] %v18329_v51 }
 0x6f5   : > { %v7547_v35 = vpop.f32.mrf.mxu3  ;;  %v7136_v27 = vpop.f32.mrf.mxu2 }
 0x6f6   : > { %7864 = vmatmul.bf16.gmra.mxu1 %v20853_v46  ;;  %v7240_v43 = vadd.f32 %v7136_v27, %v6671_v31  ;;  %v20860_v27 = vld [vmem:[#allocation39_spill] sm:$0xff] }
 0x6f8   : > { %v18327_v4 = vadd.f32 %v7547_v35, %v7240_v43 }
 0x6fa   : > { %20857 = vst [vmem:[#allocation160_spill] sm:$0xff] %v18327_v4  ;;  %v11535_v4 = vld [vmem:[#allocation9 + $0x220] sm:$0xff] }
 0x6fb   : > { %8831 = vmatmul.bf16.gmra.mxu3 %v20855_v52  ;;  %v6681_v36 = vpop.f32.mrf.mxu1  ;;  %8420 = vmatmul.bf16.gmra.mxu2 %v20856_v30  ;;  %v20861_v30 = vld [vmem:[#allocation222_spill] sm:$0xff]  ;;  %v18337_v35 = vpop.f32.mrf.mxu0 }
 0x6fc   : > { %20862 = vst [vmem:[#allocation226_spill] sm:$0xff] %v18337_v35  ;;  %9868 = vmatpush.bf16.msra.mxu2 %v11535_v4 }
 0x6fe   : > { %v7550_v50 = vpop.f32.mrf.mxu3  ;;  %v7139_v47 = vpop.f32.mrf.mxu2  ;;  %9214 = vmatmul.bf16.gmra.mxu0 %v16783_v40 }
 0x6ff   : > { %v7241_v61 = vadd.f32 %v7139_v47, %v6674_v23  ;;  %v20863_v23 = vld [vmem:[#allocation40_spill] sm:$0xff]  ;;  %v20864_v47 = vld [vmem:[#allocation47_spill] sm:$0xff] }
 0x701   : > { %v18333_v49 = vadd.f32 %v7550_v50, %v7241_v61  ;;  %v11527_v61 = vld [vmem:[#allocation9 + $0x1e0] sm:$0xff] }
 0x702   : > { %9518 = vmatpush.bf16.msra.mxu1 %v11527_v61 }
 0x703   : > { %v7830_v3 = vpop.f32.mrf.mxu1 }
 0x704   : > { %v7998_v46 = vadd.f32 %v7830_v3, %v20859_v16  ;;  %v20865_v16 = vld [vmem:[#allocation55_spill] sm:$0xff] }
 0x706   : > { %v7552_v1 = vpop.f32.mrf.mxu3  ;;  %v7141_v31 = vpop.f32.mrf.mxu2  ;;  %7869 = vmatmul.bf16.gmra.mxu1 %v20860_v27 }
 0x707   : > { %v7242_v52 = vadd.f32 %v7141_v31, %v6676_v48 }
 0x709   : > { %v18341_v12 = vadd.f32 %v7552_v1, %v7242_v52  ;;  %v20869_v52 = vld [vmem:[#allocation240_spill] sm:$0xff] }
 0x70b   : > { %8836 = vmatmul.bf16.gmra.mxu3 %v20861_v30  ;;  %v7832_v43 = vpop.f32.mrf.mxu1  ;;  %8425 = vmatmul.bf16.gmra.mxu2 %v20863_v23  ;;  %v18345_v30 = vpop.f32.mrf.mxu0 }
 0x70c   : > { %v7999_v51 = vadd.f32 %v7832_v43, %v20864_v47  ;;  %20866 = vst [vmem:[#allocation181_spill] sm:$0xff] %v18345_v30  ;;  %v20868_v47 = vld [vmem:[#allocation150_spill] sm:$0xff] }
 0x70e   : > { %v7555_v40 = vpop.f32.mrf.mxu3  ;;  %v7144_v3 = vpop.f32.mrf.mxu2  ;;  %9219 = vmatmul.bf16.gmra.mxu0 %v16942_v13  ;;  %v20871_v13 = vld [vmem:[#allocation64_spill] sm:$0xff] }
 0x70f   : > { %v7243_v50 = vadd.f32 %v7144_v3, %v6679_v10  ;;  %v20870_v10 = vld [vmem:[#allocation239_spill] sm:$0xff] }
 0x711   : > { %v18347_v23 = vadd.f32 %v7555_v40, %v7243_v50 }
 0x713   : > { %v7835_v48 = vpop.f32.mrf.mxu1  ;;  %20867 = vst [vmem:[#allocation74_spill] sm:$0xff] %v18347_v23 }
 0x714   : > { %v8000_v31 = vadd.f32 %v7835_v48, %v20865_v16  ;;  %v18355_v16 = vpop.f32.mrf.mxu0 }
 0x715   : > { %20872 = vst [vmem:[#allocation175_spill] sm:$0xff] %v18355_v16 }
 0x716   : > { %v7557_v27 = vpop.f32.mrf.mxu3  ;;  %v7146_v43 = vpop.f32.mrf.mxu2  ;;  %7874 = vmatmul.bf16.gmra.mxu1 %v20868_v47 }
 0x717   : > { %v7244_v1 = vadd.f32 %v7146_v43, %v6681_v36  ;;  %v20873_v36 = vld [vmem:[#allocation38_spill] sm:$0xff] }
 0x719   : > { %v18353_v61 = vadd.f32 %v7557_v27, %v7244_v1  ;;  %v20876_v1 = vld [vmem:[#allocation76_spill] sm:$0xff] }
 0x71b   : > { %8841 = vmatmul.bf16.gmra.mxu3 %v20869_v52  ;;  %v7837_v4 = vpop.f32.mrf.mxu1  ;;  %8430 = vmatmul.bf16.gmra.mxu2 %v20870_v10  ;;  %v20874_v52 = vld [vmem:[#allocation56_spill] sm:$0xff] }
 0x71c   : > { %v8001_v3 = vadd.f32 %v7837_v4, %v20871_v13  ;;  %v18362_v4 = vpop.f32.mrf.mxu0 }
 0x71d   : > { %20875 = vst [vmem:[#allocation146_spill] sm:$0xff] %v18362_v4 }
 0x71e   : > { %v8802_v35 = vpop.f32.mrf.mxu3  ;;  %v8391_v48 = vpop.f32.mrf.mxu2  ;;  %9224 = vmatmul.bf16.gmra.mxu0 %v17130_v29 }
 0x71f   : > { %v8559_v30 = vadd.f32 %v8391_v48, %v7998_v46  ;;  %v20877_v46 = vld [vmem:[#allocation77_spill] sm:$0xff] }
 0x721   : > { %v18357_v40 = vadd.f32 %v8802_v35, %v8559_v30  ;;  %v20878_v35 = vld [vmem:[#allocation45_spill] sm:$0xff] }
 0x723   : > { %v7840_v50 = vpop.f32.mrf.mxu1 }
 0x724   : > { %v8002_v43 = vadd.f32 %v7840_v50, %v20873_v36  ;;  %v18372_v36 = vpop.f32.mrf.mxu0 }
 0x725   : > { %20880 = vst [vmem:[#allocation54_spill] sm:$0xff] %v18372_v36 }
 0x726   : > { %v8804_v47 = vpop.f32.mrf.mxu3  ;;  %7879 = vmatmul.bf16.gmra.mxu1 %v20874_v52  ;;  %v8393_v10 = vpop.f32.mrf.mxu2  ;;  %v20881_v52 = vld [vmem:[#allocation101_spill] sm:$0xff] }
 0x727   : > { %v8560_v23 = vadd.f32 %v8393_v10, %v7999_v51  ;;  %v20882_v10 = vld [vmem:[#allocation245_spill] sm:$0xff] }
 0x729   : > { %v18364_v27 = vadd.f32 %v8804_v47, %v8560_v23 }
 0x72b   : > { %8846 = vmatmul.bf16.gmra.mxu3 %v20876_v1  ;;  %v7842_v13 = vpop.f32.mrf.mxu1  ;;  %8435 = vmatmul.bf16.gmra.mxu2 %v20877_v46 }
 0x72c   : > { %v8003_v30 = vadd.f32 %v7842_v13, %v20878_v35  ;;  %v20883_v13 = vld [vmem:[#allocation99_spill] sm:$0xff]  ;;  %v18381_v36 = vpop.f32.mrf.mxu0 }
 0x72d   : > { %20886 = vst [vmem:[#allocation185_spill] sm:$0xff] %v18381_v36 }
 0x72e   : > { %v8807_v29 = vpop.f32.mrf.mxu3  ;;  %v8396_v48 = vpop.f32.mrf.mxu2  ;;  %9229 = vmatmul.bf16.gmra.mxu0 %v17310_v53 }
 0x72f   : > { %v8561_v16 = vadd.f32 %v8396_v48, %v8000_v31  ;;  %v20884_v31 = vld [vmem:[#allocation30_spill] sm:$0xff]  ;;  %v11534_v48 = vld [vmem:[#allocation9 + $0x218] sm:$0xff] }
 0x730   : > { %9869 = vmatpush.bf16.msra.mxu2 %v11534_v48  ;;  %v20891_v48 = vld [vmem:[#allocation115_spill] sm:$0xff] }
 0x731   : > { %v18369_v50 = vadd.f32 %v8807_v29, %v8561_v16  ;;  %v20885_v16 = vld [vmem:[#allocation73_spill] sm:$0xff] }
 0x733   : > { %20879 = vst [vmem:[#allocation151_spill] sm:$0xff] %v18369_v50  ;;  %v7845_v51 = vpop.f32.mrf.mxu1 }
 0x734   : > { %v8004_v23 = vadd.f32 %v7845_v51, %v20881_v52 }
 0x736   : > { %v8809_v47 = vpop.f32.mrf.mxu3  ;;  %7884 = vmatmul.bf16.gmra.mxu1 %v20882_v10  ;;  %v8398_v1 = vpop.f32.mrf.mxu2 }
 0x737   : > { %v8562_v4 = vadd.f32 %v8398_v1, %v8001_v3  ;;  %v11526_v3 = vld [vmem:[#allocation9 + $0x1d8] sm:$0xff] }
 0x738   : > { %9519 = vmatpush.bf16.msra.mxu1 %v11526_v3 }
 0x739   : > { %v18376_v46 = vadd.f32 %v8809_v47, %v8562_v4  ;;  %v20888_v47 = vld [vmem:[#allocation102_spill] sm:$0xff] }
 0x73b   : > { %8851 = vmatmul.bf16.gmra.mxu3 %v20883_v13  ;;  %v7847_v35 = vpop.f32.mrf.mxu1  ;;  %8440 = vmatmul.bf16.gmra.mxu2 %v20884_v31  ;;  %v20889_v13 = vld [vmem:[#allocation248_spill] sm:$0xff]  ;;  %v18388_v31 = vpop.f32.mrf.mxu0 }
 0x73c   : > { %v8005_v29 = vadd.f32 %v7847_v35, %v20885_v16  ;;  %20890 = vst [vmem:[#allocation202_spill] sm:$0xff] %v18388_v31 }
 0x73e   : > { %v8812_v53 = vpop.f32.mrf.mxu3  ;;  %v8401_v50 = vpop.f32.mrf.mxu2  ;;  %9234 = vmatmul.bf16.gmra.mxu0 %v17462_v28  ;;  %v20893_v28 = vld [vmem:[#allocation85_spill] sm:$0xff] }
 0x73f   : > { %v8563_v51 = vadd.f32 %v8401_v50, %v8002_v43  ;;  %v20892_v50 = vld [vmem:[#allocation170_spill] sm:$0xff] }
 0x741   : > { %v18383_v52 = vadd.f32 %v8812_v53, %v8563_v51 }
 0x743   : > { %20887 = vst [vmem:[#allocation184_spill] sm:$0xff] %v18383_v52  ;;  %v7850_v4 = vpop.f32.mrf.mxu1 }
 0x744   : > { %v8006_v10 = vadd.f32 %v7850_v4, %v20888_v47  ;;  %v18395_v4 = vpop.f32.mrf.mxu0 }
 0x745   : > { %20894 = vst [vmem:[#allocation197_spill] sm:$0xff] %v18395_v4 }
 0x746   : > { %v8814_v1 = vpop.f32.mrf.mxu3  ;;  %7889 = vmatmul.bf16.gmra.mxu1 %v20889_v13  ;;  %v8403_v35 = vpop.f32.mrf.mxu2 }
 0x747   : > { %v8564_v16 = vadd.f32 %v8403_v35, %v8003_v30  ;;  %v20896_v30 = vld [vmem:[#allocation128_spill] sm:$0xff] }
 0x749   : > { %v18390_v36 = vadd.f32 %v8814_v1, %v8564_v16  ;;  %v20897_v16 = vld [vmem:[#allocation183_spill] sm:$0xff] }
 0x74b   : > { %8856 = vmatmul.bf16.gmra.mxu3 %v20891_v48  ;;  %v7852_v43 = vpop.f32.mrf.mxu1  ;;  %8445 = vmatmul.bf16.gmra.mxu2 %v20892_v50 }
 0x74c   : > { %v8007_v53 = vadd.f32 %v7852_v43, %v20893_v28  ;;  %v20898_v43 = vld [vmem:[#allocation247_spill] sm:$0xff]  ;;  %v18405_v28 = vpop.f32.mrf.mxu0 }
 0x74d   : > { %20899 = vst [vmem:[#allocation223_spill] sm:$0xff] %v18405_v28 }
 0x74e   : > { %v8817_v51 = vpop.f32.mrf.mxu3  ;;  %v8406_v3 = vpop.f32.mrf.mxu2  ;;  %9239 = vmatmul.bf16.gmra.mxu0 %v17619_v38 }
 0x74f   : > { %v8565_v52 = vadd.f32 %v8406_v3, %v8004_v23  ;;  %v20900_v3 = vld [vmem:[#allocation137_spill] sm:$0xff] }
 0x751   : > { %v18397_v47 = vadd.f32 %v8817_v51, %v8565_v52  ;;  %v20901_v52 = vld [vmem:[#allocation122_spill] sm:$0xff] }
 0x753   : > { %20895 = vst [vmem:[#allocation162_spill] sm:$0xff] %v18397_v47  ;;  %v7855_v13 = vpop.f32.mrf.mxu1 }
 0x754   : > { %v8008_v1 = vadd.f32 %v7855_v13, %v20896_v30 }
 0x756   : > { %v8819_v35 = vpop.f32.mrf.mxu3  ;;  %7894 = vmatmul.bf16.gmra.mxu1 %v20897_v16  ;;  %v8408_v48 = vpop.f32.mrf.mxu2 }
 0x757   : > { %v8566_v31 = vadd.f32 %v8408_v48, %v8005_v29  ;;  %v20902_v29 = vld [vmem:[#allocation109_spill] sm:$0xff]  ;;  %v18413_v16 = vpop.f32.mrf.mxu0 }
 0x758   : > { %20903 = vst [vmem:[#allocation232_spill] sm:$0xff] %v18413_v16 }
 0x759   : > { %v18402_v50 = vadd.f32 %v8819_v35, %v8566_v31 }
 0x75b   : > { %8861 = vmatmul.bf16.gmra.mxu3 %v20898_v43  ;;  %v7857_v23 = vpop.f32.mrf.mxu1  ;;  %8450 = vmatmul.bf16.gmra.mxu2 %v20900_v3 }
 0x75c   : > { %v8009_v51 = vadd.f32 %v7857_v23, %v20901_v52  ;;  %v20904_v23 = vld [vmem:[#allocation187_spill] sm:$0xff] }
 0x75e   : > { %v8822_v38 = vpop.f32.mrf.mxu3  ;;  %v8411_v4 = vpop.f32.mrf.mxu2  ;;  %9244 = vmatmul.bf16.gmra.mxu0 %v17822_v37 }
 0x75f   : > { %v8567_v47 = vadd.f32 %v8411_v4, %v8006_v10  ;;  %v20905_v10 = vld [vmem:[#allocation118_spill] sm:$0xff] }
 0x761   : > { %v18409_v13 = vadd.f32 %v8822_v38, %v8567_v47  ;;  %v11533_v47 = vld [vmem:[#allocation9 + $0x210] sm:$0xff] }
 0x762   : > { %9870 = vmatpush.bf16.msra.mxu2 %v11533_v47  ;;  %v20909_v47 = vld [vmem:[#allocation227_spill] sm:$0xff] }
 0x763   : > { %v7860_v30 = vpop.f32.mrf.mxu1 }
 0x764   : > { %v8010_v31 = vadd.f32 %v7860_v30, %v20902_v29  ;;  %v18421_v30 = vpop.f32.mrf.mxu0 }
 0x765   : > { %20906 = vst [vmem:[#allocation189_spill] sm:$0xff] %v18421_v30 }
 0x766   : > { %v8824_v35 = vpop.f32.mrf.mxu3  ;;  %7899 = vmatmul.bf16.gmra.mxu1 %v16780_v14  ;;  %v8413_v48 = vpop.f32.mrf.mxu2  ;;  %v11525_v14 = vld [vmem:[#allocation9 + $0x1d0] sm:$0xff] }
 0x767   : > { %v8568_v43 = vadd.f32 %v8413_v48, %v8007_v53  ;;  %9520 = vmatpush.bf16.msra.mxu1 %v11525_v14 }
 0x769   : > { %v18416_v3 = vadd.f32 %v8824_v35, %v8568_v43 }
 0x76b   : > { %8866 = vmatmul.bf16.gmra.mxu3 %v20904_v23  ;;  %v7862_v52 = vpop.f32.mrf.mxu1  ;;  %8455 = vmatmul.bf16.gmra.mxu2 %v17047_v62  ;;  %v20907_v62 = vld [vmem:[#allocation129_spill] sm:$0xff] }
 0x76c   : > { %v8011_v4 = vadd.f32 %v7862_v52, %v20905_v10  ;;  %v18428_v52 = vpop.f32.mrf.mxu0 }
 0x76d   : > { %20908 = vst [vmem:[#allocation207_spill] sm:$0xff] %v18428_v52 }
 0x76e   : > { %v8827_v37 = vpop.f32.mrf.mxu3  ;;  %v8416_v38 = vpop.f32.mrf.mxu2  ;;  %9249 = vmatmul.bf16.gmra.mxu0 %v17994_v34  ;;  %v20911_v34 = vld [vmem:[#allocation141_spill] sm:$0xff] }
 0x76f   : > { %v8569_v29 = vadd.f32 %v8416_v38, %v8008_v1 }
 0x771   : > { %v18423_v16 = vadd.f32 %v8827_v37, %v8569_v29  ;;  %v20910_v37 = vld [vmem:[#allocation237_spill] sm:$0xff] }
 0x773   : > { %v7865_v53 = vpop.f32.mrf.mxu1 }
 0x774   : > { %v8012_v35 = vadd.f32 %v7865_v53, %v17055_v24  ;;  %v18438_v53 = vpop.f32.mrf.mxu0 }
 0x775   : > { %20912 = vst [vmem:[#allocation209_spill] sm:$0xff] %v18438_v53 }
 0x776   : > { %v8829_v48 = vpop.f32.mrf.mxu3  ;;  %7904 = vmatmul.bf16.gmra.mxu1 %v20907_v62  ;;  %v8418_v43 = vpop.f32.mrf.mxu2  ;;  %v20913_v62 = vld [vmem:[#allocation233_spill] sm:$0xff] }
 0x777   : > { %v8570_v23 = vadd.f32 %v8418_v43, %v8009_v51 }
 0x779   : > { %v18430_v10 = vadd.f32 %v8829_v48, %v8570_v23  ;;  %v20914_v23 = vld [vmem:[#allocation190_spill] sm:$0xff] }
 0x77b   : > { %8871 = vmatmul.bf16.gmra.mxu3 %v20909_v47  ;;  %v7867_v1 = vpop.f32.mrf.mxu1  ;;  %8460 = vmatmul.bf16.gmra.mxu2 %v20910_v37 }
 0x77c   : > { %v8013_v38 = vadd.f32 %v7867_v1, %v20911_v34  ;;  %v20915_v1 = vld [vmem:[#allocation133_spill] sm:$0xff] }
 0x77e   : > { %v8832_v29 = vpop.f32.mrf.mxu3  ;;  %v8421_v14 = vpop.f32.mrf.mxu2  ;;  %9254 = vmatmul.bf16.gmra.mxu0 %v18148_v59 }
 0x77f   : > { %v8571_v30 = vadd.f32 %v8421_v14, %v8010_v31  ;;  %v20916_v31 = vld [vmem:[#allocation192_spill] sm:$0xff]  ;;  %v18447_v59 = vpop.f32.mrf.mxu0 }
 0x780   : > { %20918 = vst [vmem:[#allocation75_spill] sm:$0xff] %v18447_v59 }
 0x781   : > { %v18435_v24 = vadd.f32 %v8832_v29, %v8571_v30  ;;  %v20917_v30 = vld [vmem:[#allocation214_spill] sm:$0xff] }
 0x783   : > { %v7870_v51 = vpop.f32.mrf.mxu1 }
 0x784   : > { %v8014_v48 = vadd.f32 %v7870_v51, %v20913_v62 }
 0x786   : > { %v8834_v43 = vpop.f32.mrf.mxu3  ;;  %7909 = vmatmul.bf16.gmra.mxu1 %v20914_v23  ;;  %v8423_v47 = vpop.f32.mrf.mxu2 }
 0x787   : > { %v8572_v52 = vadd.f32 %v8423_v47, %v8011_v4  ;;  %v20919_v4 = vld [vmem:[#allocation242_spill] sm:$0xff]  ;;  %v18454_v47 = vpop.f32.mrf.mxu0 }
 0x788   : > { %20920 = vst [vmem:[#allocation215_spill] sm:$0xff] %v18454_v47 }
 0x789   : > { %v18442_v37 = vadd.f32 %v8834_v43, %v8572_v52 }
 0x78b   : > { %8876 = vmatmul.bf16.gmra.mxu3 %v20915_v1  ;;  %v7872_v34 = vpop.f32.mrf.mxu1  ;;  %8465 = vmatmul.bf16.gmra.mxu2 %v20916_v31  ;;  %v20921_v31 = vld [vmem:[#allocation89_spill] sm:$0xff] }
 0x78c   : > { %v8015_v29 = vadd.f32 %v7872_v34, %v20917_v30 }
 0x78e   : > { %v8837_v14 = vpop.f32.mrf.mxu3  ;;  %v8426_v53 = vpop.f32.mrf.mxu2  ;;  %9259 = vmatmul.bf16.gmra.mxu0 %v18242_v39  ;;  %v11532_v39 = vld [vmem:[#allocation9 + $0x208] sm:$0xff] }
 0x78f   : > { %v8573_v28 = vadd.f32 %v8426_v53, %v8012_v35  ;;  %v20922_v35 = vld [vmem:[#allocation78_spill] sm:$0xff]  ;;  %9871 = vmatpush.bf16.msra.mxu2 %v11532_v39 }
 0x790   : > { %v20926_v39 = vld [vmem:[#allocation90_spill] sm:$0xff] }
 0x791   : > { %v18449_v51 = vadd.f32 %v8837_v14, %v8573_v28  ;;  %v20923_v28 = vld [vmem:[#allocation244_spill] sm:$0xff] }
 0x793   : > { %v7875_v62 = vpop.f32.mrf.mxu1 }
 0x794   : > { %v8016_v52 = vadd.f32 %v7875_v62, %v20919_v4  ;;  %v18461_v4 = vpop.f32.mrf.mxu0 }
 0x795   : > { %20924 = vst [vmem:[#allocation205_spill] sm:$0xff] %v18461_v4 }
 0x796   : > { %v8839_v43 = vpop.f32.mrf.mxu3  ;;  %7914 = vmatmul.bf16.gmra.mxu1 %v17389_v54  ;;  %v8428_v23 = vpop.f32.mrf.mxu2 }
 0x797   : > { %v8574_v1 = vadd.f32 %v8428_v23, %v8013_v38  ;;  %v11524_v38 = vld [vmem:[#allocation9 + $0x1c8] sm:$0xff]  ;;  %v20925_v23 = vld [vmem:[#allocation147_spill] sm:$0xff] }
 0x798   : > { %9521 = vmatpush.bf16.msra.mxu1 %v11524_v38 }
 0x799   : > { %v18456_v34 = vadd.f32 %v8839_v43, %v8574_v1 }
 0x79b   : > { %8881 = vmatmul.bf16.gmra.mxu3 %v20921_v31  ;;  %v7877_v30 = vpop.f32.mrf.mxu1  ;;  %8470 = vmatmul.bf16.gmra.mxu2 %v20922_v35 }
 0x79c   : > { %v8017_v53 = vadd.f32 %v7877_v30, %v20923_v28 }
 0x79e   : > { %v8842_v14 = vpop.f32.mrf.mxu3  ;;  %v8431_v59 = vpop.f32.mrf.mxu2  ;;  %9264 = vmatmul.bf16.gmra.mxu0 %v18268_v8 }
 0x79f   : > { %v8575_v62 = vadd.f32 %v8431_v59, %v8014_v48  ;;  %v20927_v48 = vld [vmem:[#allocation111_spill] sm:$0xff] }
 0x7a1   : > { %v18463_v54 = vadd.f32 %v8842_v14, %v8575_v62 }
 0x7a3   : > { %v7880_v43 = vpop.f32.mrf.mxu1 }
 0x7a4   : > { %v8018_v1 = vadd.f32 %v7880_v43, %v20925_v23  ;;  %v20928_v23 = vld [vmem:[#allocation123_spill] sm:$0xff] }
 0x7a6   : > { %v8844_v31 = vpop.f32.mrf.mxu3  ;;  %7919 = vmatmul.bf16.gmra.mxu1 %v17550_v63  ;;  %v8433_v30 = vpop.f32.mrf.mxu2 }
 0x7a7   : > { %v8576_v35 = vadd.f32 %v8433_v30, %v8015_v29 }
 0x7a9   : > { %v18468_v28 = vadd.f32 %v8844_v31, %v8576_v35  ;;  %v20929_v35 = vld [vmem:[#allocation132_spill] sm:$0xff] }
 0x7ab   : > { %8886 = vmatmul.bf16.gmra.mxu3 %v20926_v39  ;;  %v7882_v59 = vpop.f32.mrf.mxu1  ;;  %8475 = vmatmul.bf16.gmra.mxu2 %v17781_v57  ;;  %v20930_v39 = vld [vmem:[#allocation127_spill] sm:$0xff] }
 0x7ac   : > { %v8019_v14 = vadd.f32 %v7882_v59, %v20927_v48 }
 0x7ae   : > { %v8847_v62 = vpop.f32.mrf.mxu3  ;;  %v8436_v8 = vpop.f32.mrf.mxu2 }
 0x7af   : > { %v8577_v4 = vadd.f32 %v8436_v8, %v8016_v52 }
 0x7b1   : > { %v18473_v38 = vadd.f32 %v8847_v62, %v8577_v4 }
 0x7b3   : > { %v7885_v43 = vpop.f32.mrf.mxu1 }
 0x7b4   : > { %v8020_v47 = vadd.f32 %v7885_v43, %v20928_v23 }
 0x7b6   : > { %v8849_v63 = vpop.f32.mrf.mxu3  ;;  %7924 = vmatmul.bf16.gmra.mxu1 %v17727_v22  ;;  %v8438_v29 = vpop.f32.mrf.mxu2 }
 0x7b7   : > { %v8578_v31 = vadd.f32 %v8438_v29, %v8017_v53  ;;  %v20931_v29 = vld [vmem:[#allocation135_spill] sm:$0xff] }
 0x7b9   : > { %v18477_v30 = vadd.f32 %v8849_v63, %v8578_v31  ;;  %v20932_v31 = vld [vmem:[#allocation217_spill] sm:$0xff] }
 0x7bb   : > { %8891 = vmatmul.bf16.gmra.mxu3 %v20929_v35  ;;  %v7887_v57 = vpop.f32.mrf.mxu1  ;;  %8480 = vmatmul.bf16.gmra.mxu2 %v17908_v58 }
 0x7bc   : > { %v8021_v59 = vadd.f32 %v7887_v57, %v20930_v39 }
 0x7be   : > { %v8852_v8 = vpop.f32.mrf.mxu3  ;;  %v8441_v52 = vpop.f32.mrf.mxu2 }
 0x7bf   : > { %v8579_v4 = vadd.f32 %v8441_v52, %v8018_v1  ;;  %v11531_v1 = vld [vmem:[#allocation9 + $0x200] sm:$0xff] }
 0x7c0   : > { %9872 = vmatpush.bf16.msra.mxu2 %v11531_v1  ;;  %v11523_v52 = vld [vmem:[#allocation9 + $0x1c0] sm:$0xff] }
 0x7c1   : > { %v18482_v48 = vadd.f32 %v8852_v8, %v8579_v4  ;;  %9522 = vmatpush.bf16.msra.mxu1 %v11523_v52 }
 0x7c3   : > { %v7890_v62 = vpop.f32.mrf.mxu1 }
 0x7c4   : > { %v8022_v43 = vadd.f32 %v7890_v62, %v17876_v9 }
 0x7c6   : > { %v8854_v22 = vpop.f32.mrf.mxu3  ;;  %7929 = vmatmul.bf16.gmra.mxu1 %v17918_v6  ;;  %v8443_v53 = vpop.f32.mrf.mxu2 }
 0x7c7   : > { %v8580_v23 = vadd.f32 %v8443_v53, %v8019_v14  ;;  %v20933_v14 = vld [vmem:[#allocation152_spill] sm:$0xff] }
 0x7c9   : > { %v18486_v63 = vadd.f32 %v8854_v22, %v8580_v23 }
 0x7cb   : > { %8896 = vmatmul.bf16.gmra.mxu3 %v20931_v29  ;;  %v7892_v58 = vpop.f32.mrf.mxu1  ;;  %8485 = vmatmul.bf16.gmra.mxu2 %v18074_v42 }
 0x7cc   : > { %v8023_v35 = vadd.f32 %v7892_v58, %v20932_v31 }
 0x7ce   : > { %v8857_v57 = vpop.f32.mrf.mxu3  ;;  %v8446_v39 = vpop.f32.mrf.mxu2 }
 0x7cf   : > { %v8581_v8 = vadd.f32 %v8446_v39, %v8020_v47 }
 0x7d1   : > { %v18491_v9 = vadd.f32 %v8857_v57, %v8581_v8 }
 0x7d3   : > { %v7895_v6 = vpop.f32.mrf.mxu1 }
 0x7d4   : > { %v8024_v4 = vadd.f32 %v7895_v6, %v20933_v14 }
 0x7d6   : > { %7934 = vmatmul.bf16.gmra.mxu1 %v18064_v44  ;;  %v8448_v62 = vpop.f32.mrf.mxu2  ;;  %v8859_v53 = vpop.f32.mrf.mxu3 }
 0x7d7   : > { %v8582_v22 = vadd.f32 %v8448_v62, %v8021_v59 }
 0x7d9   : > { %v18495_v42 = vadd.f32 %v8859_v53, %v8582_v22 }
 0x7db   : > { %8901 = vmatmul.bf16.gmra.mxu3 %v18123_v41  ;;  %v7897_v23 = vpop.f32.mrf.mxu1  ;;  %8490 = vmatmul.bf16.gmra.mxu2 %v18153_v60 }
 0x7dc   : > { %v8025_v47 = vadd.f32 %v7897_v23, %v18104_v18 }
 0x7de   : > { %v8451_v29 = vpop.f32.mrf.mxu2 }
 0x7df   : > { %v18500_v58 = vadd.f32 %v8451_v29, %v8022_v43 }
 0x7e3   : > { %v7900_v31 = vpop.f32.mrf.mxu1 }
 0x7e4   : > { %v8026_v1 = vadd.f32 %v7900_v31, %v18134_v0 }
 0x7e6   : > { %7939 = vmatmul.bf16.gmra.mxu1 %v18130_v56  ;;  %v8453_v44 = vpop.f32.mrf.mxu2 }
 0x7e7   : > { %v18504_v59 = vadd.f32 %v8453_v44, %v8023_v35  ;;  %v20937_v44 = vld [vmem:[#allocation213_spill] sm:$0xff] }
 0x7eb   : > { %8906 = vmatmul.bf16.gmra.mxu3 %v18166_v2  ;;  %v7902_v57 = vpop.f32.mrf.mxu1  ;;  %8495 = vmatmul.bf16.gmra.mxu2 %v18194_v21 }
 0x7ec   : > { %v8027_v41 = vadd.f32 %v7902_v57, %v18191_v19 }
 0x7ee   : > { %v8456_v60 = vpop.f32.mrf.mxu2 }
 0x7ef   : > { %v18509_v18 = vadd.f32 %v8456_v60, %v8024_v4  ;;  %v20939_v60 = vld [vmem:[#allocation161_spill] sm:$0xff] }
 0x7f3   : > { %v7905_v43 = vpop.f32.mrf.mxu1 }
 0x7f4   : > { %v8028_v39 = vadd.f32 %v7905_v43, %v18234_v15  ;;  %v20934_v15 = vld [vmem:[#allocation110_spill] sm:$0xff] }
 0x7f6   : > { %7944 = vmatmul.bf16.gmra.mxu1 %v18212_v17  ;;  %v8458_v0 = vpop.f32.mrf.mxu2 }
 0x7f7   : > { %v18513_v56 = vadd.f32 %v8458_v0, %v8025_v47  ;;  %v20936_v47 = vld [vmem:[#allocation228_spill] sm:$0xff] }
 0x7fb   : > { %8911 = vmatmul.bf16.gmra.mxu3 %v18229_v26  ;;  %v7907_v35 = vpop.f32.mrf.mxu1  ;;  %8500 = vmatmul.bf16.gmra.mxu2 %v18239_v32 }
 0x7fc   : > { %v8029_v2 = vadd.f32 %v7907_v35, %v18254_v5  ;;  %v20940_v35 = vld [vmem:[#allocation172_spill] sm:$0xff] }
 0x7fe   : > { %v8461_v21 = vpop.f32.mrf.mxu2 }
 0x7ff   : > { %v18518_v19 = vadd.f32 %v8461_v21, %v8026_v1 }
 0x803   : > { %v7910_v8 = vpop.f32.mrf.mxu1 }
 0x804   : > { %v8030_v52 = vadd.f32 %v7910_v8, %v18264_v11  ;;  %v20935_v11 = vld [vmem:[#allocation108_spill] sm:$0xff]  ;;  %v20941_v8 = vld [vmem:[#allocation126_spill] sm:$0xff] }
 0x806   : > { %v8463_v6 = vpop.f32.mrf.mxu2  ;;  %9523 = vmatmul.bf16.vlgmr.msra.gmra.mxu1 %v20934_v15  ;;  %v20943_v15 = vld [vmem:[#allocation167_spill] sm:$0xff] }
 0x807   : > { %v18522_v17 = vadd.f32 %v8463_v6, %v8027_v41  ;;  %v20938_v41 = vld [vmem:[#allocation198_spill] sm:$0xff]  ;;  %v20942_v6 = vld [vmem:[#allocation201_spill] sm:$0xff] }
 0x80b   : > { %8916 = vmatmul.bf16.gmra.mxu3 %v18252_v25  ;;  %v7912_v14 = vpop.f32.mrf.mxu1  ;;  %8505 = vmatmul.bf16.gmra.mxu2 %v18257_v45 }
 0x80c   : > { %v8031_v26 = vadd.f32 %v7912_v14, %v18272_v33 }
 0x80e   : > { %v8466_v32 = vpop.f32.mrf.mxu2 }
 0x80f   : > { %v18527_v5 = vadd.f32 %v8466_v32, %v8028_v39 }
 0x813   : > { %v7915_v4 = vpop.f32.mrf.mxu1 }
 0x814   : > { %v8032_v62 = vadd.f32 %v7915_v4, %v18276_v7 }
 0x816   : > { %v8468_v22 = vpop.f32.mrf.mxu2  ;;  %9528 = vmatmul.bf16.gmra.mxu1 %v20935_v11 }
 0x817   : > { %v18531_v53 = vadd.f32 %v8468_v22, %v8029_v2  ;;  %v20944_v22 = vld [vmem:[#allocation235_spill] sm:$0xff] }
 0x81b   : > { %v7917_v23 = vpop.f32.mrf.mxu1  ;;  %9873 = vmatmul.bf16.vlgmr.msra.gmra.mxu2 %v20936_v47 }
 0x81c   : > { %v8033_v25 = vadd.f32 %v7917_v23, %v18283_v55  ;;  %v20945_v23 = vld [vmem:[#allocation131_spill] sm:$0xff] }
 0x81e   : > { %v8471_v29 = vpop.f32.mrf.mxu2 }
 0x81f   : > { %v18535_v45 = vadd.f32 %v8471_v29, %v8030_v52 }
 0x823   : > { %v7920_v33 = vpop.f32.mrf.mxu1 }
 0x824   : > { %v8034_v31 = vadd.f32 %v7920_v33, %v18288_v20  ;;  %v20946_v33 = vld [vmem:[#allocation206_spill] sm:$0xff] }
 0x826   : > { %v8473_v1 = vpop.f32.mrf.mxu2  ;;  %9533 = vmatmul.bf16.gmra.mxu1 %v20937_v44 }
 0x827   : > { %v18539_v7 = vadd.f32 %v8473_v1, %v8031_v26 }
 0x82b   : > { %v7922_v57 = vpop.f32.mrf.mxu1  ;;  %9878 = vmatmul.bf16.gmra.mxu2 %v20938_v41 }
 0x82c   : > { %v8035_v43 = vadd.f32 %v7922_v57, %v20939_v60  ;;  %v20948_v60 = vld [vmem:[#allocation178_spill] sm:$0xff] }
 0x82e   : > { %v8476_v39 = vpop.f32.mrf.mxu2 }
 0x82f   : > { %v18543_v0 = vadd.f32 %v8476_v39, %v8032_v62 }
 0x833   : > { %v7925_v55 = vpop.f32.mrf.mxu1 }
 0x834   : > { %v8036_v2 = vadd.f32 %v7925_v55, %v20940_v35  ;;  %v20949_v55 = vld [vmem:[#allocation231_spill] sm:$0xff] }
 0x836   : > { %v8478_v21 = vpop.f32.mrf.mxu2  ;;  %9538 = vmatmul.bf16.gmra.mxu1 %v20941_v8  ;;  %v20950_v8 = vld [vmem:[#allocation16_spill] sm:$0xff] }
 0x837   : > { %v18547_v20 = vadd.f32 %v8478_v21, %v8033_v25  ;;  %v20947_v25 = vld [vmem:[#allocation142_spill] sm:$0xff] }
 0x83b   : > { %v7927_v52 = vpop.f32.mrf.mxu1  ;;  %9883 = vmatmul.bf16.gmra.mxu2 %v20942_v6 }
 0x83c   : > { %v8037_v14 = vadd.f32 %v7927_v52, %v20943_v15 }
 0x83e   : > { %v8481_v26 = vpop.f32.mrf.mxu2 }
 0x83f   : > { %v18551_v32 = vadd.f32 %v8481_v26, %v8034_v31 }
 0x843   : > { %v7930_v4 = vpop.f32.mrf.mxu1 }
 0x844   : > { %v8038_v62 = vadd.f32 %v7930_v4, %v20944_v22  ;;  %v20953_v22 = vld [vmem:[#allocation229_spill] sm:$0xff] }
 0x846   : > { %v8483_v11 = vpop.f32.mrf.mxu2  ;;  %9543 = vmatmul.bf16.gmra.mxu1 %v20945_v23 }
 0x847   : > { %v18555_v47 = vadd.f32 %v8483_v11, %v8035_v43  ;;  %v20951_v43 = vld [vmem:[#allocation160_spill] sm:$0xff] }
 0x84b   : > { %v7932_v29 = vpop.f32.mrf.mxu1  ;;  %9888 = vmatmul.bf16.gmra.mxu2 %v20946_v33 }
 0x84c   : > { %v8039_v1 = vadd.f32 %v7932_v29, %v20947_v25  ;;  %v20955_v29 = vld [vmem:[#allocation136_spill] sm:$0xff] }
 0x84e   : > { %v8486_v44 = vpop.f32.mrf.mxu2 }
 0x84f   : > { %v18559_v57 = vadd.f32 %v8486_v44, %v8036_v2 }
 0x853   : > { %v7935_v41 = vpop.f32.mrf.mxu1 }
 0x854   : > { %v8040_v31 = vadd.f32 %v7935_v41, %v20948_v60  ;;  %v20957_v41 = vld [vmem:[#allocation74_spill] sm:$0xff] }
 0x856   : > { %v8488_v39 = vpop.f32.mrf.mxu2  ;;  %9548 = vmatmul.bf16.gmra.mxu1 %v20949_v55 }
 0x857   : > { %v18563_v35 = vadd.f32 %v8488_v39, %v8037_v14  ;;  %v20958_v39 = vld [vmem:[#allocation157_spill] sm:$0xff] }
 0x85b   : > { %v7937_v21 = vpop.f32.mrf.mxu1  ;;  %9893 = vmatmul.bf16.gmra.mxu2 %v20950_v8 }
 0x85c   : > { %v8041_v52 = vadd.f32 %v7937_v21, %v20951_v43  ;;  %v20960_v21 = vld [vmem:[#allocation113_spill] sm:$0xff] }
 0x85e   : > { %v8491_v6 = vpop.f32.mrf.mxu2 }
 0x85f   : > { %v18567_v15 = vadd.f32 %v8491_v6, %v8038_v62 }
 0x861   : > { %20952 = vst [vmem:[#allocation62_spill] sm:$0xff] %v18567_v15 }
 0x863   : > { %v7940_v26 = vpop.f32.mrf.mxu1 }
 0x864   : > { %v8042_v2 = vadd.f32 %v7940_v26, %v18333_v49 }
 0x866   : > { %v8493_v4 = vpop.f32.mrf.mxu2  ;;  %9553 = vmatmul.bf16.gmra.mxu1 %v20953_v22  ;;  %v20964_v22 = vld [vmem:[#allocation234_spill] sm:$0xff] }
 0x867   : > { %v18571_v11 = vadd.f32 %v8493_v4, %v8039_v1 }
 0x869   : > { %20954 = vst [vmem:[#allocation212_spill] sm:$0xff] %v18571_v11 }
 0x86b   : > { %v7942_v23 = vpop.f32.mrf.mxu1  ;;  %9898 = vmatmul.bf16.gmra.mxu2 %v20955_v29 }
 0x86c   : > { %v8043_v14 = vadd.f32 %v7942_v23, %v18341_v12 }
 0x86e   : > { %v8496_v33 = vpop.f32.mrf.mxu2 }
 0x86f   : > { %v18575_v25 = vadd.f32 %v8496_v33, %v8040_v31  ;;  %v20962_v31 = vld [vmem:[#allocation88_spill] sm:$0xff] }
 0x871   : > { %20956 = vst [vmem:[#allocation168_spill] sm:$0xff] %v18575_v25 }
 0x873   : > { %v7945_v44 = vpop.f32.mrf.mxu1 }
 0x874   : > { %v8044_v62 = vadd.f32 %v7945_v44, %v20957_v41  ;;  %v20966_v44 = vld [vmem:[#allocation20_spill] sm:$0xff]  ;;  %v20968_v41 = vld [vmem:[#allocation243_spill] sm:$0xff] }
 0x876   : > { %v8498_v60 = vpop.f32.mrf.mxu2  ;;  %9558 = vmatmul.bf16.gmra.mxu1 %v20958_v39 }
 0x877   : > { %v18579_v49 = vadd.f32 %v8498_v60, %v8041_v52  ;;  %v20969_v60 = vld [vmem:[#allocation180_spill] sm:$0xff] }
 0x878   : > { %v9318_v39 = vadd.f32 %v20969_v60, %v18357_v40  ;;  %v18611_v60 = vld [vmem:[%s19080_s6] ss:$0 sm:$0xff] }
 0x879   : > { %20959 = vst [vmem:[#allocation166_spill] sm:$0xff] %v18579_v49  ;;  %v20980_v49 = vld [vmem:[#allocation164_spill] sm:$0xff] }
 0x87b   : > { %v7947_v55 = vpop.f32.mrf.mxu1  ;;  %9903 = vmatmul.bf16.gmra.mxu2 %v20960_v21 }
 0x87c   : > { %v8045_v1 = vadd.f32 %v7947_v55, %v18353_v61 }
 0x87e   : > { %v8501_v8 = vpop.f32.mrf.mxu2 }
 0x87f   : > { %v18583_v43 = vadd.f32 %v8501_v8, %v8042_v2  ;;  %v20970_v8 = vld [vmem:[#allocation28_spill] sm:$0xff] }
 0x881   : > { %20961 = vst [vmem:[#allocation86_spill] sm:$0xff] %v18583_v43  ;;  %v20979_v43 = vld [vmem:[#allocation43_spill] sm:$0xff] }
 0x883   : > { %v9524_v12 = vpop.f32.mrf.mxu1 }
 0x884   : > { %v9692_v55 = vadd.f32 %v9524_v12, %v9318_v39 }
 0x886   : > { %v8503_v6 = vpop.f32.mrf.mxu2  ;;  %9563 = vmatmul.bf16.gmra.mxu1 %v20962_v31  ;;  %v20971_v31 = vld [vmem:[#allocation29_spill] sm:$0xff] }
 0x887   : > { %v18586_v26 = vadd.f32 %v8503_v6, %v8043_v14  ;;  %v10290_v6 = vunpack.c.l.bf16 %v20970_v8 }
 0x889   : > { %20963 = vst [vmem:[#allocation87_spill] sm:$0xff] %v18586_v26  ;;  %v10389_v39 = vrot.slane %v10290_v6, 2  ;;  %v20975_v6 = vld [vmem:[#allocation61_spill] sm:$0xff] }
 0x88b   : > { %v9526_v4 = vpop.f32.mrf.mxu1  ;;  %9908 = vmatmul.bf16.gmra.mxu2 %v20964_v22  ;;  %v10291_v22 = vunpack.c.l.bf16 %v20971_v31 }
 0x88e   : > { %v8506_v23 = vpop.f32.mrf.mxu2 }
 0x88f   : > { %v18589_v52 = vadd.f32 %v8506_v23, %v8044_v62  ;;  %v18600_v62 = vld [vmem:[%s19079_s5] ss:$0 sm:$0xff] }
 0x891   : > { %20965 = vst [vmem:[#allocation156_spill] sm:$0xff] %v18589_v52 }
 0x893   : > { %v9529_v29 = vpop.f32.mrf.mxu1 }
 0x896   : > { %v8508_v33 = vpop.f32.mrf.mxu2  ;;  %9568 = vmatmul.bf16.gmra.mxu1 %v20966_v44 }
 0x897   : > { %v18592_v61 = vadd.f32 %v8508_v33, %v8045_v1  ;;  %v20972_v1 = vld [vmem:[#allocation36_spill] sm:$0xff]  ;;  %v20973_v33 = vld [vmem:[#allocation149_spill] sm:$0xff] }
 0x898   : > { %v10292_v23 = vunpack.c.l.bf16 %v20972_v1  ;;  %v9319_v44 = vadd.f32 %v20973_v33, %v18364_v27 }
 0x899   : > { %20967 = vst [vmem:[#allocation188_spill] sm:$0xff] %v18592_v61 }
 0x89a   : > { %v9693_v40 = vadd.f32 %v9526_v4, %v9319_v44  ;;  %v10392_v31 = vrot.slane %v10292_v23, 2 }
 0x89b   : > { %v9531_v2 = vpop.f32.mrf.mxu1  ;;  %9913 = vmatmul.bf16.gmra.mxu2 %v20968_v41 }
 0x89e   : > { %v9874_v14 = vpop.f32.mrf.mxu2 }
 0x89f   : > { %v10042_v21 = vadd.f32 %v9874_v14, %v9692_v55  ;;  %v10390_v14 = vrot.slane %v10291_v22, 2  ;;  %v20974_v55 = vld [vmem:[#allocation208_spill] sm:$0xff]  ;;  %v20976_v22 = vld [vmem:[#allocation151_spill] sm:$0xff] }
 0x8a1   : > { %v10190_v12 = vmul.f32 %v18600_v62, %v10042_v21  ;;  %v10391_v4 = vsel %vm10388_vm9, %v10389_v39, %v10390_v14  ;;  %v10393_v21 = vsel %vm10388_vm9, %v10390_v14, %v10392_v31 }
 0x8a3   : > { %v9534_v41 = vpop.f32.mrf.mxu1  ;;  %v10242_v61 = vadd.f32 %v18611_v60, %v10190_v12 }
 0x8a5   : > { %v10534_v23 = vadd.f32 %v10391_v4, %v10242_v61 }
 0x8a6   : > { %9573 = vmatmul.bf16.gmra.mxu1 %v20974_v55  ;;  %v9876_v8 = vpop.f32.mrf.mxu2  ;;  %v20977_v55 = vld [vmem:[#allocation154_spill] sm:$0xff] }
 0x8a7   : > { %v10043_v1 = vadd.f32 %v9876_v8, %v9693_v40  ;;  %v9320_v52 = vadd.f32 %v20977_v55, %v20976_v22 }
 0x8a9   : > { %v10191_v27 = vmul.f32 %v18600_v62, %v10043_v1  ;;  %v9694_v8 = vadd.f32 %v9529_v29, %v9320_v52  ;;  %v20978_v1 = vld [vmem:[#allocation37_spill] sm:$0xff] }
 0x8aa   : > { %v10293_v14 = vunpack.c.l.bf16 %v20978_v1 }
 0x8ab   : > { %v10243_v33 = vadd.f32 %v18611_v60, %v10191_v27  ;;  %v9536_v44 = vpop.f32.mrf.mxu1  ;;  %9918 = vmatmul.bf16.gmra.mxu2 %v20975_v6  ;;  %v10294_v27 = vunpack.c.l.bf16 %v20979_v43  ;;  %v9321_v6 = vadd.f32 %v20980_v49, %v18376_v46 }
 0x8ac   : > { %v10394_v4 = vrot.slane %v10293_v14, 2 }
 0x8ad   : > { %v10535_v26 = vadd.f32 %v10393_v21, %v10243_v33  ;;  %v9695_v11 = vadd.f32 %v9531_v2, %v9321_v6  ;;  %v20981_v21 = vld [vmem:[#allocation97_spill] sm:$0xff]  ;;  %v10396_v52 = vrot.slane %v10294_v27, 2  ;;  %v20985_v6 = vld [vmem:[#allocation44_spill] sm:$0xff] }
 0x8ae   : > { %v9879_v40 = vpop.f32.mrf.mxu2  ;;  %v10395_v43 = vsel %vm10388_vm9, %v10392_v31, %v10394_v4  ;;  %v20982_v2 = vld [vmem:[#allocation125_spill] sm:$0xff]  ;;  %v20986_v31 = vld [vmem:[#allocation51_spill] sm:$0xff] }
 0x8af   : > { %v11666_v12 = vpack.c.bf16 %v10535_v26, %v10534_v23  ;;  %v10044_v39 = vadd.f32 %v9879_v40, %v9694_v8  ;;  %v10397_v55 = vsel %vm10388_vm9, %v10394_v4, %v10396_v52  ;;  %v20983_v23 = vld [vmem:[#allocation184_spill] sm:$0xff]  ;;  %v20984_v40 = vld [vmem:[#allocation103_spill] sm:$0xff] }
 0x8b0   : > { %v9322_v8 = vadd.f32 %v20984_v40, %v20983_v23  ;;  %v20987_v4 = vld [vmem:[#allocation155_spill] sm:$0xff]  ;;  %v20988_v23 = vld [vmem:[#allocation25_spill] sm:$0xff] }
 0x8b1   : > { %11667 = vst [vmem:[%s18623_s30] sm:$0xff] %v11666_v12   ;;  %v10192_v61 = vmul.f32 %v18600_v62, %v10044_v39 }
 0x8b3   : > { %v9539_v25 = vpop.f32.mrf.mxu1  ;;  %v10244_v33 = vadd.f32 %v18611_v60, %v10192_v61  ;;  %v10295_v61 = vunpack.c.l.bf16 %v20985_v6 }
 0x8b5   : > { %v10536_v12 = vadd.f32 %v10395_v43, %v10244_v33  ;;  %v10398_v15 = vrot.slane %v10295_v61, 2 }
 0x8b6   : > { %9578 = vmatmul.bf16.gmra.mxu1 %v20981_v21  ;;  %v9881_v26 = vpop.f32.mrf.mxu2  ;;  %v10296_v21 = vunpack.c.l.bf16 %v20986_v31 }
 0x8b7   : > { %v10045_v29 = vadd.f32 %v9881_v26, %v9695_v11  ;;  %v9696_v11 = vadd.f32 %v9534_v41, %v9322_v8  ;;  %v9323_v26 = vadd.f32 %v20987_v4, %v18390_v36  ;;  %v10399_v40 = vsel %vm10388_vm9, %v10396_v52, %v10398_v15  ;;  %v20992_v4 = vld [vmem:[#allocation52_spill] sm:$0xff]  ;;  %v20993_v52 = vld [vmem:[#allocation57_spill] sm:$0xff] }
 0x8b8   : > { %v10400_v41 = vrot.slane %v10296_v21, 2 }
 0x8b9   : > { %v10193_v22 = vmul.f32 %v18600_v62, %v10045_v29 }
 0x8ba   : > { %v10401_v8 = vsel %vm10388_vm9, %v10398_v15, %v10400_v41  ;;  %v20994_v15 = vld [vmem:[#allocation153_spill] sm:$0xff] }
 0x8bb   : > { %v10245_v46 = vadd.f32 %v18611_v60, %v10193_v22  ;;  %v9541_v49 = vpop.f32.mrf.mxu1  ;;  %9923 = vmatmul.bf16.gmra.mxu2 %v20982_v2  ;;  %v9697_v22 = vadd.f32 %v9536_v44, %v9323_v26  ;;  %v10297_v26 = vunpack.c.l.bf16 %v20992_v4 }
 0x8bd   : > { %v10537_v39 = vadd.f32 %v10397_v55, %v10245_v46 }
 0x8be   : > { %v9884_v1 = vpop.f32.mrf.mxu2 }
 0x8bf   : > { %v11671_v14 = vpack.c.bf16 %v10537_v39, %v10536_v12  ;;  %v10046_v27 = vadd.f32 %v9884_v1, %v9696_v11  ;;  %v20989_v12 = vld [vmem:[#allocation246_spill] sm:$0xff]  ;;  %v20991_v1 = vld [vmem:[#allocation200_spill] sm:$0xff] }
 0x8c0   : > { %v20990_v39 = vld [vmem:[#allocation162_spill] sm:$0xff] }
 0x8c1   : > { %11813 = vst [vmem:[%s18623_s30 + $0x8] sm:$0xff] %v11671_v14   ;;  %v10194_v2 = vmul.f32 %v18600_v62, %v10046_v27  ;;  %v9324_v11 = vadd.f32 %v20991_v1, %v20990_v39 }
 0x8c3   : > { %v9544_v29 = vpop.f32.mrf.mxu1  ;;  %v10246_v55 = vadd.f32 %v18611_v60, %v10194_v2  ;;  %v9698_v61 = vadd.f32 %v9539_v25, %v9324_v11  ;;  %v9325_v2 = vadd.f32 %v20994_v15, %v18402_v50  ;;  %v20996_v11 = vld [vmem:[#allocation134_spill] sm:$0xff] }
 0x8c5   : > { %v10538_v14 = vadd.f32 %v10399_v40, %v10246_v55 }
 0x8c6   : > { %9583 = vmatmul.bf16.gmra.mxu1 %v20988_v23  ;;  %v9886_v33 = vpop.f32.mrf.mxu2 }
 0x8c7   : > { %v10047_v43 = vadd.f32 %v9886_v33, %v9697_v22  ;;  %v10298_v22 = vunpack.c.l.bf16 %v20993_v52  ;;  %v9699_v33 = vadd.f32 %v9541_v49, %v9325_v2  ;;  %v20998_v52 = vld [vmem:[#allocation58_spill] sm:$0xff]  ;;  %v21000_v2 = vld [vmem:[#allocation181_spill] sm:$0xff] }
 0x8c9   : > { %v10195_v46 = vmul.f32 %v18600_v62, %v10047_v43  ;;  %v10404_v25 = vrot.slane %v10298_v22, 2  ;;  %v10299_v22 = vunpack.c.l.bf16 %v20998_v52  ;;  %v21004_v52 = vld [vmem:[#allocation68_spill] sm:$0xff] }
 0x8cb   : > { %v10247_v36 = vadd.f32 %v18611_v60, %v10195_v46  ;;  %v9546_v44 = vpop.f32.mrf.mxu1  ;;  %9928 = vmatmul.bf16.gmra.mxu2 %v20989_v12  ;;  %v10402_v46 = vrot.slane %v10297_v26, 2  ;;  %v20995_v12 = vld [vmem:[#allocation140_spill] sm:$0xff] }
 0x8cd   : > { %v10539_v27 = vadd.f32 %v10401_v8, %v10247_v36  ;;  %v10403_v39 = vsel %vm10388_vm9, %v10400_v41, %v10402_v46  ;;  %v10405_v1 = vsel %vm10388_vm9, %v10402_v46, %v10404_v25  ;;  %v20999_v41 = vld [vmem:[#allocation67_spill] sm:$0xff] }
 0x8ce   : > { %v9889_v6 = vpop.f32.mrf.mxu2  ;;  %v10300_v15 = vunpack.c.l.bf16 %v20999_v41 }
 0x8cf   : > { %v11676_v31 = vpack.c.bf16 %v10539_v27, %v10538_v14  ;;  %v10048_v21 = vadd.f32 %v9889_v6, %v9698_v61  ;;  %v20997_v14 = vld [vmem:[#allocation226_spill] sm:$0xff] }
 0x8d0   : > { %v9326_v27 = vadd.f32 %v20997_v14, %v18409_v13  ;;  %v21001_v13 = vld [vmem:[#allocation130_spill] sm:$0xff]  ;;  %v21003_v14 = vld [vmem:[#allocation175_spill] sm:$0xff] }
 0x8d1   : > { %11814 = vst [vmem:[%s18623_s30 + $0x10] sm:$0xff] %v11676_v31   ;;  %v10196_v43 = vmul.f32 %v18600_v62, %v10048_v21 }
 0x8d2   : > { %v9700_v21 = vadd.f32 %v9544_v29, %v9326_v27  ;;  %v10408_v29 = vrot.slane %v10300_v15, 2  ;;  %v9328_v27 = vadd.f32 %v21003_v14, %v18423_v16  ;;  %v21006_v15 = vld [vmem:[#allocation146_spill] sm:$0xff]  ;;  %v21007_v16 = vld [vmem:[#allocation177_spill] sm:$0xff] }
 0x8d3   : > { %v9549_v23 = vpop.f32.mrf.mxu1  ;;  %v10248_v8 = vadd.f32 %v18611_v60, %v10196_v43 }
 0x8d5   : > { %v10540_v6 = vadd.f32 %v10403_v39, %v10248_v8 }
 0x8d6   : > { %9588 = vmatmul.bf16.gmra.mxu1 %v20995_v12  ;;  %v9891_v55 = vpop.f32.mrf.mxu2 }
 0x8d7   : > { %v10049_v40 = vadd.f32 %v9891_v55, %v9699_v33  ;;  %v9327_v33 = vadd.f32 %v21000_v2, %v18416_v3  ;;  %v10406_v55 = vrot.slane %v10299_v22, 2  ;;  %v10301_v22 = vunpack.c.l.bf16 %v21004_v52 }
 0x8d8   : > { %v9329_v2 = vadd.f32 %v21006_v15, %v18430_v10 }
 0x8d9   : > { %v10197_v36 = vmul.f32 %v18600_v62, %v10049_v40  ;;  %v9701_v46 = vadd.f32 %v9546_v44, %v9327_v33 }
 0x8db   : > { %v10249_v50 = vadd.f32 %v18611_v60, %v10197_v36  ;;  %v9551_v49 = vpop.f32.mrf.mxu1  ;;  %9933 = vmatmul.bf16.gmra.mxu2 %v20996_v11  ;;  %v21002_v11 = vld [vmem:[#allocation124_spill] sm:$0xff] }
 0x8dd   : > { %v10541_v61 = vadd.f32 %v10405_v1, %v10249_v50  ;;  %v10407_v1 = vsel %vm10388_vm9, %v10404_v25, %v10406_v55  ;;  %v10409_v50 = vsel %vm10388_vm9, %v10406_v55, %v10408_v29  ;;  %v21005_v25 = vld [vmem:[#allocation81_spill] sm:$0xff]  ;;  %v10410_v55 = vrot.slane %v10301_v22, 2 }
 0x8de   : > { %v9894_v31 = vpop.f32.mrf.mxu2  ;;  %v10302_v41 = vunpack.c.l.bf16 %v21005_v25  ;;  %v21012_v22 = vld [vmem:[#allocation185_spill] sm:$0xff] }
 0x8df   : > { %v11681_v4 = vpack.c.bf16 %v10541_v61, %v10540_v6  ;;  %v10050_v26 = vadd.f32 %v9894_v31, %v9700_v21  ;;  %v9702_v21 = vadd.f32 %v9549_v23, %v9328_v27  ;;  %v9331_v25 = vadd.f32 %v21012_v22, %v18442_v37 }
 0x8e0   : > { %v10412_v23 = vrot.slane %v10302_v41, 2 }
 0x8e1   : > { %11815 = vst [vmem:[%s18623_s30 + $0x18] sm:$0xff] %v11681_v4   ;;  %v10198_v12 = vmul.f32 %v18600_v62, %v10050_v26 }
 0x8e3   : > { %v9554_v43 = vpop.f32.mrf.mxu1  ;;  %v10250_v36 = vadd.f32 %v18611_v60, %v10198_v12 }
 0x8e5   : > { %v10542_v6 = vadd.f32 %v10407_v1, %v10250_v36  ;;  %v10413_v1 = vsel %vm10388_vm9, %v10410_v55, %v10412_v23 }
 0x8e6   : > { %9593 = vmatmul.bf16.gmra.mxu1 %v21001_v13  ;;  %v9896_v40 = vpop.f32.mrf.mxu2 }
 0x8e7   : > { %v10051_v8 = vadd.f32 %v9896_v40, %v9701_v46  ;;  %v9703_v46 = vadd.f32 %v9551_v49, %v9329_v2 }
 0x8e9   : > { %v10199_v39 = vmul.f32 %v18600_v62, %v10051_v8 }
 0x8eb   : > { %v10251_v3 = vadd.f32 %v18611_v60, %v10199_v39  ;;  %v9556_v44 = vpop.f32.mrf.mxu1  ;;  %9938 = vmatmul.bf16.gmra.mxu2 %v21002_v11  ;;  %v10411_v39 = vsel %vm10388_vm9, %v10408_v29, %v10410_v55  ;;  %v21011_v29 = vld [vmem:[#allocation93_spill] sm:$0xff] }
 0x8ec   : > { %v10304_v52 = vunpack.c.l.bf16 %v21011_v29  ;;  %v9705_v15 = vadd.f32 %v9556_v44, %v9331_v25 }
 0x8ed   : > { %v10543_v61 = vadd.f32 %v10409_v50, %v10251_v3  ;;  %v21008_v50 = vld [vmem:[#allocation211_spill] sm:$0xff]  ;;  %v21009_v3 = vld [vmem:[#allocation54_spill] sm:$0xff] }
 0x8ee   : > { %v9899_v31 = vpop.f32.mrf.mxu2  ;;  %v9330_v11 = vadd.f32 %v21009_v3, %v18435_v24  ;;  %v21013_v24 = vld [vmem:[#allocation105_spill] sm:$0xff] }
 0x8ef   : > { %v11686_v4 = vpack.c.bf16 %v10543_v61, %v10542_v6  ;;  %v10052_v26 = vadd.f32 %v9899_v31, %v9702_v21 }
 0x8f0   : > { %v9704_v61 = vadd.f32 %v9554_v43, %v9330_v11  ;;  %v10416_v43 = vrot.slane %v10304_v52, 2 }
 0x8f1   : > { %11816 = vst [vmem:[%s18623_s30 + $0x20] sm:$0xff] %v11686_v4   ;;  %v10200_v12 = vmul.f32 %v18600_v62, %v10052_v26  ;;  %v21010_v4 = vld [vmem:[#allocation82_spill] sm:$0xff] }
 0x8f2   : > { %v10303_v26 = vunpack.c.l.bf16 %v21010_v4 }
 0x8f3   : > { %v9559_v33 = vpop.f32.mrf.mxu1  ;;  %v10252_v8 = vadd.f32 %v18611_v60, %v10200_v12 }
 0x8f5   : > { %v10544_v14 = vadd.f32 %v10411_v39, %v10252_v8  ;;  %v21015_v39 = vld [vmem:[#allocation202_spill] sm:$0xff] }
 0x8f6   : > { %9598 = vmatmul.bf16.gmra.mxu1 %v21007_v16  ;;  %v9901_v13 = vpop.f32.mrf.mxu2 }
 0x8f7   : > { %v10053_v40 = vadd.f32 %v9901_v13, %v9703_v46  ;;  %v10414_v46 = vrot.slane %v10303_v26, 2 }
 0x8f9   : > { %v10201_v36 = vmul.f32 %v18600_v62, %v10053_v40  ;;  %v10415_v40 = vsel %vm10388_vm9, %v10412_v23, %v10414_v46  ;;  %v10417_v8 = vsel %vm10388_vm9, %v10414_v46, %v10416_v43  ;;  %v21017_v23 = vld [vmem:[#allocation69_spill] sm:$0xff] }
 0x8fb   : > { %v10253_v10 = vadd.f32 %v18611_v60, %v10201_v36  ;;  %v9561_v49 = vpop.f32.mrf.mxu1  ;;  %9943 = vmatmul.bf16.gmra.mxu2 %v21008_v50  ;;  %v21014_v36 = vld [vmem:[#allocation144_spill] sm:$0xff] }
 0x8fd   : > { %v10545_v27 = vadd.f32 %v10413_v1, %v10253_v10  ;;  %v9332_v1 = vadd.f32 %v21015_v39, %v18449_v51  ;;  %v21019_v51 = vld [vmem:[#allocation114_spill] sm:$0xff] }
 0x8fe   : > { %v9904_v6 = vpop.f32.mrf.mxu2 }
 0x8ff   : > { %v11691_v31 = vpack.c.bf16 %v10545_v27, %v10544_v14  ;;  %v10054_v21 = vadd.f32 %v9904_v6, %v9704_v61  ;;  %v9706_v11 = vadd.f32 %v9559_v33, %v9332_v1  ;;  %v21016_v6 = vld [vmem:[#allocation94_spill] sm:$0xff] }
 0x900   : > { %v10305_v61 = vunpack.c.l.bf16 %v21016_v6 }
 0x901   : > { %11817 = vst [vmem:[%s18623_s30 + $0x28] sm:$0xff] %v11691_v31   ;;  %v10202_v2 = vmul.f32 %v18600_v62, %v10054_v21  ;;  %v10306_v31 = vunpack.c.l.bf16 %v21017_v23  ;;  %v21018_v21 = vld [vmem:[#allocation197_spill] sm:$0xff] }
 0x902   : > { %v9333_v4 = vadd.f32 %v21018_v21, %v18456_v34  ;;  %v10418_v22 = vrot.slane %v10305_v61, 2 }
 0x903   : > { %v9564_v41 = vpop.f32.mrf.mxu1  ;;  %v10254_v16 = vadd.f32 %v18611_v60, %v10202_v2  ;;  %v10420_v33 = vrot.slane %v10306_v31, 2 }
 0x904   : > { %v9707_v29 = vadd.f32 %v9561_v49, %v9333_v4  ;;  %v18737_v4 = vpop.f32.mrf.mxu3 }
 0x905   : > { %v10546_v10 = vadd.f32 %v10415_v40, %v10254_v16  ;;  %v21021_v16 = vld [vmem:[#allocation223_spill] sm:$0xff] }
 0x906   : > { %9603 = vmatmul.bf16.gmra.mxu1 %v21013_v24  ;;  %v9906_v12 = vpop.f32.mrf.mxu2  ;;  %v10419_v24 = vsel %vm10388_vm9, %v10416_v43, %v10418_v22  ;;  %v21023_v43 = vld [vmem:[#allocation71_spill] sm:$0xff] }
 0x907   : > { %v10055_v55 = vadd.f32 %v9906_v12, %v9705_v15  ;;  %v10421_v12 = vsel %vm10388_vm9, %v10418_v22, %v10420_v33 }
 0x909   : > { %v10203_v13 = vmul.f32 %v18600_v62, %v10055_v55  ;;  %v21020_v55 = vld [vmem:[#allocation148_spill] sm:$0xff] }
 0x90b   : > { %v10255_v37 = vadd.f32 %v18611_v60, %v10203_v13  ;;  %v9566_v44 = vpop.f32.mrf.mxu1  ;;  %9948 = vmatmul.bf16.gmra.mxu2 %v21014_v36  ;;  %v9334_v13 = vadd.f32 %v21021_v16, %v18463_v54  ;;  %v21025_v54 = vld [vmem:[#allocation145_spill] sm:$0xff] }
 0x90d   : > { %v10547_v50 = vadd.f32 %v10417_v8, %v10255_v37  ;;  %v9708_v36 = vadd.f32 %v9564_v41, %v9334_v13  ;;  %v21028_v13 = vld [vmem:[#allocation241_spill] sm:$0xff] }
 0x90e   : > { %v9909_v3 = vpop.f32.mrf.mxu2 }
 0x90f   : > { %v11696_v14 = vpack.c.bf16 %v10547_v50, %v10546_v10  ;;  %v10056_v27 = vadd.f32 %v9909_v3, %v9706_v11  ;;  %v21022_v10 = vld [vmem:[#allocation70_spill] sm:$0xff]  ;;  %v10308_v3 = vunpack.c.l.bf16 %v21023_v43  ;;  %v21024_v11 = vld [vmem:[#allocation232_spill] sm:$0xff] }
 0x910   : > { %v10307_v50 = vunpack.c.l.bf16 %v21022_v10  ;;  %v21031_v10 = vld [vmem:[#allocation207_spill] sm:$0xff] }
 0x911   : > { %11818 = vst [vmem:[%s18623_s30 + $0x30] sm:$0xff] %v11696_v14   ;;  %v10204_v52 = vmul.f32 %v18600_v62, %v10056_v27  ;;  %v9335_v14 = vadd.f32 %v21024_v11, %v18468_v28  ;;  %v10424_v21 = vrot.slane %v10308_v3, 2 }
 0x912   : > { %v10422_v23 = vrot.slane %v10307_v50, 2  ;;  %v9337_v50 = vadd.f32 %v21031_v10, %v18477_v30  ;;  %v21037_v10 = vld [vmem:[#allocation95_spill] sm:$0xff] }
 0x913   : > { %v9569_v26 = vpop.f32.mrf.mxu1  ;;  %v10256_v2 = vadd.f32 %v18611_v60, %v10204_v52  ;;  %v9709_v6 = vadd.f32 %v9566_v44, %v9335_v14  ;;  %v18743_v44 = vpop.f32.mrf.mxu0 }
 0x914   : > { %v10423_v22 = vsel %vm10388_vm9, %v10420_v33, %v10422_v23  ;;  %v10425_v28 = vsel %vm10388_vm9, %v10422_v23, %v10424_v21 }
 0x915   : > { %v10548_v40 = vadd.f32 %v10419_v24, %v10256_v2  ;;  %v21027_v2 = vld [vmem:[#allocation189_spill] sm:$0xff] }
 0x916   : > { %9608 = vmatmul.bf16.gmra.mxu1 %v21019_v51  ;;  %v9911_v25 = vpop.f32.mrf.mxu2 }
 0x917   : > { %v10057_v15 = vadd.f32 %v9911_v25, %v9707_v29 }
 0x919   : > { %v10205_v46 = vmul.f32 %v18600_v62, %v10057_v15  ;;  %v21026_v15 = vld [vmem:[#allocation104_spill] sm:$0xff] }
 0x91b   : > { %v10257_v34 = vadd.f32 %v18611_v60, %v10205_v46  ;;  %v9571_v49 = vpop.f32.mrf.mxu1  ;;  %9953 = vmatmul.bf16.gmra.mxu2 %v21020_v55  ;;  %v9336_v46 = vadd.f32 %v21027_v2, %v18473_v38  ;;  %v18759_v3 = vpop.f32.mrf.mxu0  ;;  %v21034_v2 = vld [vmem:[#allocation209_spill] sm:$0xff] }
 0x91d   : > { %v10549_v8 = vadd.f32 %v10421_v12, %v10257_v34  ;;  %v9710_v55 = vadd.f32 %v9569_v26, %v9336_v46  ;;  %v9711_v26 = vadd.f32 %v9571_v49, %v9337_v50  ;;  %v9338_v46 = vadd.f32 %v21034_v2, %v18482_v48 }
 0x91e   : > { %v9914_v37 = vpop.f32.mrf.mxu2  ;;  %v10312_v50 = vunpack.c.l.bf16 %v21037_v10 }
 0x91f   : > { %v11701_v39 = vpack.c.bf16 %v10549_v8, %v10548_v40  ;;  %v10058_v1 = vadd.f32 %v9914_v37, %v9708_v36  ;;  %v5187_v40 = vadd.s32 432, %v21028_v13  ;;  %v18751_v8 = vpop.f32.mrf.mxu3  ;;  %v21029_v37 = vld [vmem:[#allocation72_spill] sm:$0xff] }
 0x920   : > { %v10309_v36 = vunpack.c.l.bf16 %v21029_v37 }
 0x921   : > { %11819 = vst [vmem:[%s18623_s30 + $0x38] sm:$0xff] %v11701_v39   ;;  %v10206_v61 = vmul.f32 %v18600_v62, %v10058_v1  ;;  %v21030_v39 = vld [vmem:[#allocation83_spill] sm:$0xff]  ;;  %v5242_v38 = vcvt.s32.f32 %v5187_v40 }
 0x922   : > { %v10310_v1 = vunpack.c.l.bf16 %v21030_v39  ;;  %v10426_v14 = vrot.slane %v10309_v36, 2  ;;  %v21036_v39 = vld [vmem:[#allocation84_spill] sm:$0xff] }
 0x923   : > { %v9574_v27 = vpop.f32.mrf.mxu1  ;;  %v10258_v29 = vadd.f32 %v18611_v60, %v10206_v61 }
 0x924   : > { %v10428_v23 = vrot.slane %v10310_v1, 2  ;;  %v10427_v30 = vsel %vm10388_vm9, %v10424_v21, %v10426_v14  ;;  %v9712_v13 = vadd.f32 %v9574_v27, %v9338_v46  ;;  %v10311_v1 = vunpack.c.l.bf16 %v21036_v39 }
 0x925   : > { %v10550_v24 = vadd.f32 %v10423_v22, %v10258_v29 }
 0x926   : > { %9613 = vmatmul.bf16.gmra.mxu1 %v21025_v54  ;;  %v9916_v31 = vpop.f32.mrf.mxu2 }
 0x927   : > { %v10059_v41 = vadd.f32 %v9916_v31, %v9709_v6  ;;  %v21032_v6 = vld [vmem:[#allocation159_spill] sm:$0xff]  ;;  %v5297_v31 = vadd.f32 0.5, %v5242_v38 }
 0x929   : > { %v10207_v52 = vmul.f32 %v18600_v62, %v10059_v41 }
 0x92b   : > { %v10259_v51 = vadd.f32 %v18611_v60, %v10207_v52  ;;  %v9576_v25 = vpop.f32.mrf.mxu1  ;;  %9958 = vmatmul.bf16.gmra.mxu2 %v21026_v15  ;;  %v10429_v52 = vsel %vm10388_vm9, %v10426_v14, %v10428_v23  ;;  %v18771_v15 = vpop.f32.mrf.mxu3 }
 0x92d   : > { %v10551_v12 = vadd.f32 %v10425_v28, %v10259_v51  ;;  %v21033_v28 = vld [vmem:[#allocation138_spill] sm:$0xff]  ;;  %v5352_v51 = vmul.f32 0.041666668, %v5297_v31 }
 0x92e   : > { %v9919_v34 = vpop.f32.mrf.mxu2 }
 0x92f   : > { %v11706_v16 = vpack.c.bf16 %v10551_v12, %v10550_v24  ;;  %v10060_v33 = vadd.f32 %v9919_v34, %v9710_v55  ;;  %v21035_v34 = vld [vmem:[#allocation139_spill] sm:$0xff] }
 0x930   : > { %v9435_v55 = vshll.u32 %v21035_v34, 16 }
 0x931   : > { %11820 = vst [vmem:[%s18623_s30 + $0x40] sm:$0xff] %v11706_v16   ;;  %v10208_v11 = vmul.f32 %v18600_v62, %v10060_v33  ;;  %v18776_v16 = vpop.f32.mrf.mxu0  ;;  %v5407_v33 = vfloor.f32 %v5352_v51 }
 0x932   : > { %v9437_v36 = vrot.slane %v9435_v55, 1  ;;  %v21040_v55 = vld [vmem:[#allocation220_spill] sm:$0xff] }
 0x933   : > { %v18757_v43 = vpop.f32.mrf.mxu1  ;;  %v10260_v41 = vadd.f32 %v18611_v60, %v10208_v11  ;;  %v5462_v14 = vmul.f32 24.0, %v5407_v33  ;;  %v5576_v31 = vadd.f32 -1.0, %v5407_v33  ;;  %vm6016_vm5 = vcmp.lt.f32.partialorder %v5407_v33, 17.5 }
 0x935   : > { %v10552_v24 = vadd.f32 %v10427_v30, %v10260_v41  ;;  %v18788_v41 = vpop.f32.mrf.mxu3  ;;  %vm5631_vm15 = vcmp.ge.f32.partialorder %v5576_v31, 0.0  ;;  %vm5686_vm12 = vcmp.lt.f32.partialorder %v5576_v31, 16.0  ;;  %v21045_v31 = vld [vmem:[#allocation106_spill] sm:$0xff] }
 0x936   : > { %9618 = vmatmul.bf16.gmra.mxu1 %v21032_v6  ;;  %v9921_v61 = vpop.f32.mrf.mxu2  ;;  %vm5741_vm2 = vmand %vm5631_vm15, %vm5686_vm12 }
 0x937   : > { %v10061_v54 = vadd.f32 %v9921_v61, %v9711_v26  ;;  %v21038_v26 = vld [vmem:[#allocation75_spill] sm:$0xff] }
 0x938   : > { %v9339_v48 = vadd.f32 %v21038_v26, %v18486_v63 }
 0x939   : > { %v10209_v29 = vmul.f32 %v18600_v62, %v10061_v54  ;;  %v21039_v54 = vld [vmem:[#allocation158_spill] sm:$0xff]  ;;  %v18790_v51 = vpop.f32.mrf.mxu0 }
 0x93a   : > { %v9713_v6 = vadd.f32 %v9576_v25, %v9339_v48  ;;  %v9438_v27 = vsel %vm1060_vm0, %v21039_v54, %v9437_v36  ;;  %v9439_v48 = vshrl.u32 %v21035_v34, 16  ;;  %v21044_v54 = vld [vmem:[#allocation96_spill] sm:$0xff] }
 0x93b   : > { %v10261_v49 = vadd.f32 %v18611_v60, %v10209_v29  ;;  %v18768_v22 = vpop.f32.mrf.mxu1  ;;  %9963 = vmatmul.bf16.gmra.mxu2 %v21033_v28  ;;  %v10430_v29 = vrot.slane %v10311_v1, 2  ;;  %v5517_v28 = vsub.f32 %v5242_v38, %v5462_v14  ;;  %v21041_v38 = vld [vmem:[#allocation215_spill] sm:$0xff] }
 0x93d   : > { %v10553_v12 = vadd.f32 %v10429_v52, %v10261_v49  ;;  %v10432_v52 = vrot.slane %v10312_v50, 2  ;;  %v10431_v2 = vsel %vm10388_vm9, %v10428_v23, %v10430_v29  ;;  %vm5796_vm3 = vcmp.ge.f32.partialorder %v5517_v28, 0.5  ;;  %v18804_v50 = vpop.f32.mrf.mxu3 }
 0x93e   : > { %v9924_v21 = vpop.f32.mrf.mxu2  ;;  %vm5851_vm13 = vmand %vm5741_vm2, %vm5796_vm3  ;;  %vm5906_vm14 = vcmp.le.f32.partialorder %v5517_v28, 16.5 }
 0x93f   : > { %v11711_v40 = vpack.c.bf16 %v10553_v12, %v10552_v24  ;;  %v10062_v37 = vadd.f32 %v9924_v21, %v9712_v13  ;;  %v10433_v46 = vsel %vm10388_vm9, %v10430_v29, %v10432_v52  ;;  %v9340_v21 = vadd.f32 %v21041_v38, %v18491_v9  ;;  %v11964_v9 = vld [vmem:[%s19076_s2] ss:$0 sm:$0xff]  ;;  %vm5961_vm6 = vmand %vm5851_vm13, %vm5906_vm14 }
 0x940   : > { %vm6071_vm7 = vmand %vm5961_vm6, %vm6016_vm5 }
 0x941   : > { %11821 = vst [vmem:[%s18623_s30 + $0x48] sm:$0xff] %v11711_v40   ;;  %v10210_v61 = vmul.f32 %v18600_v62, %v10062_v37  ;;  %v21042_v37 = vld [vmem:[#allocation182_spill] sm:$0xff]  ;;  %v9714_v23 = vadd.f32 %v18757_v43, %v9340_v21  ;;  %v10314_v43 = vunpack.c.l.bf16 %v21045_v31  ;;  %v18814_v29 = vpop.f32.mrf.mxu0  ;;  %v21049_v31 = vld [vmem:[#allocation165_spill] sm:$0xff] }
 0x942   : > { %v9443_v39 = vshll.u32 %v21042_v37, 16 }
 0x943   : > { %v18783_v11 = vpop.f32.mrf.mxu1  ;;  %v10262_v63 = vadd.f32 %v18611_v60, %v10210_v61  ;;  %v10436_v21 = vrot.slane %v10314_v43, 2 }
 0x944   : > { %v9445_v14 = vrot.slane %v9443_v39, 1 }
 0x945   : > { %v10554_v13 = vadd.f32 %v10431_v2, %v10262_v63  ;;  %v9441_v63 = vor.u32 %v9439_v48, %v9437_v36  ;;  %v21047_v36 = vmov 0  }
 0x946   : > { %9623 = vmatmul.bf16.gmra.mxu1 %v9438_v27  ;;  %v9926_v30 = vpop.f32.mrf.mxu2  ;;  %v10313_v27 = vunpack.c.l.bf16 %v21044_v54 }
 0x947   : > { %v10063_v49 = vadd.f32 %v9926_v30, %v9713_v6  ;;  %v21043_v6 = vld [vmem:[#allocation46_spill] sm:$0xff]  ;;  %v21046_v30 = vld [vmem:[#allocation205_spill] sm:$0xff] }
 0x948   : > { %v5017_v61 = vmul.f32 %v11964_v9, %v21043_v6  ;;  %v10434_v33 = vrot.slane %v10313_v27, 2  ;;  %v21048_v9 = vld [vmem:[#allocation195_spill] sm:$0xff] }
 0x949   : > { %v10211_v25 = vmul.f32 %v18600_v62, %v10063_v49  ;;  %v9341_v49 = vadd.f32 %v21046_v30, %v18495_v42  ;;  %v9805_v42 = vrot.slane %v21035_v34, 1 }
 0x94a   : > { %v10437_v48 = vsel %vm10388_vm9, %v10434_v33, %v10436_v21 }
 0x94b   : > { %v10263_v24 = vadd.f32 %v18611_v60, %v10211_v25  ;;  %v18797_v12 = vpop.f32.mrf.mxu1  ;;  %9968 = vmatmul.bf16.gmra.mxu2 %v21040_v55  ;;  %v9715_v25 = vadd.f32 %v18768_v22, %v9341_v49  ;;  %v8994_v22 = vadd.f32 %v18737_v4, %v18500_v58  ;;  %v9806_v34 = vsel %vm1699_vm1, %v21048_v9, %v9805_v42  ;;  %v18841_v58 = vpop.f32.mrf.mxu0 }
 0x94c   : > { %v8995_v49 = vadd.f32 %v18751_v8, %v18504_v59  ;;  %v9807_v9 = vrot.slane %v21042_v37, 1 }
 0x94d   : > { %v10555_v40 = vadd.f32 %v10433_v46, %v10263_v24  ;;  %v9446_v46 = vsel %vm1060_vm0, %v9441_v63, %v9445_v14  ;;  %v11965_v24 = vld [vmem:[%s19077_s3] ss:$0 sm:$0xff]  ;;  %v9342_v4 = vadd.f32 %v18743_v44, %v8994_v22  ;;  %v21050_v44 = vld [vmem:[#allocation107_spill] sm:$0xff] }
 0x94e   : > { %v9929_v1 = vpop.f32.mrf.mxu2  ;;  %v5076_v55 = vadd.f32 %v11965_v24, %v5017_v61 }
 0x94f   : > { %v11716_v10 = vpack.c.bf16 %v10555_v40, %v10554_v13  ;;  %v10064_v26 = vadd.f32 %v9929_v1, %v9714_v23  ;;  %v6181_v40 = vsel %vm6071_vm7, 1, %v21047_v36  ;;  %v9716_v63 = vadd.f32 %v18783_v11, %v9342_v4 }
 0x950   : > { %v5131_v23 = vmax.f32 %v5076_v55, 0.0  ;;  %vm6236_vm4 = vcmp.eq.s32.totalorder %v6181_v40, 1  ;;  %v9343_v36 = vadd.f32 %v18759_v3, %v8995_v49 }
 0x951   : > { %11822 = vst [vmem:[%s18623_s30 + $0x50] sm:$0xff] %v11716_v10   ;;  %v10212_v2 = vmul.f32 %v18600_v62, %v10064_v26  ;;  %v18832_v10 = vpop.f32.mrf.mxu3  ;;  %v10435_v26 = vsel %vm10388_vm9, %v10432_v52, %v10434_v33  ;;  %v9451_v52 = vshll.u32 %v21049_v31, 16  ;;  %vm6291_vm10 = vmpackc.low %vm6236_vm4, %vm6236_vm4  ;;  %v10315_v33 = vunpack.c.l.bf16 %v21050_v44 }
 0x952   : > { %v6126_v43 = vpack.c.bf16 %v5131_v23, %v5131_v23  ;;  %v9717_v8 = vadd.f32 %v18797_v12, %v9343_v36  ;;  %v9455_v44 = vshrl.u32 %v21049_v31, 16 }
 0x953   : > { %v18818_v28 = vpop.f32.mrf.mxu1  ;;  %v10264_v39 = vadd.f32 %v18611_v60, %v10212_v2  ;;  %v9453_v24 = vrot.slane %v9451_v52, 1  ;;  %v10438_v23 = vrot.slane %v10315_v33, 2  ;;  %v9808_v52 = vsel %vm1699_vm1, %v9805_v42, %v9807_v9  ;;  %v21052_v33 = vld [vmem:[#allocation117_spill] sm:$0xff] }
 0x954   : > { %v6346_v55 = vsel %vm6291_vm10, %v6126_v43, 0 }
 0x955   : > { %v10556_v54 = vadd.f32 %v10435_v26, %v10264_v39  ;;  %v9432_v59 = vunpack.c.l.b16 %v6346_v55 }
 0x956   : > { %9628 = vmatmul.bf16.gmra.mxu1 %v9446_v46  ;;  %v9931_v38 = vpop.f32.mrf.mxu2  ;;  %v9447_v46 = vshrl.u32 %v21042_v37, 16 }
 0x957   : > { %v10065_v13 = vadd.f32 %v9931_v38, %v9715_v25  ;;  %v21051_v38 = vld [vmem:[#allocation116_spill] sm:$0xff] }
 0x958   : > { %v9449_v22 = vor.u32 %v9447_v46, %v9445_v14  ;;  %v8996_v14 = vadd.f32 %v18771_v15, %v18509_v18 }
 0x959   : > { %v10213_v1 = vmul.f32 %v18600_v62, %v10065_v13  ;;  %v10316_v13 = vunpack.c.l.bf16 %v21051_v38  ;;  %v18855_v39 = vpop.f32.mrf.mxu3  ;;  %v10317_v38 = vunpack.c.l.bf16 %v21052_v33 }
 0x95b   : > { %v10265_v6 = vadd.f32 %v18611_v60, %v10213_v1  ;;  %v18839_v61 = vpop.f32.mrf.mxu1  ;;  %9973 = vmatmul.bf16.gmra.mxu2 %v9806_v34  ;;  %v9454_v1 = vsel %vm1060_vm0, %v9449_v22, %v9453_v24  ;;  %v18861_v34 = vpop.f32.mrf.mxu0 }
 0x95d   : > { %v10557_v27 = vadd.f32 %v10437_v48, %v10265_v6  ;;  %v10440_v48 = vrot.slane %v10316_v13, 2  ;;  %v18863_v6 = vpack.c.b16 %v9432_v59, %v9432_v59  ;;  %v21053_v13 = vld [vmem:[#allocation23_spill] sm:$0xff] }
 0x95e   : > { %v9934_v30 = vpop.f32.mrf.mxu2  ;;  %v10318_v36 = vunpack.c.l.bf16 %v21053_v13 }
 0x95f   : > { %v11721_v25 = vpack.c.bf16 %v10557_v27, %v10556_v54  ;;  %v10066_v2 = vadd.f32 %v9934_v30, %v9716_v63  ;;  %v10439_v54 = vsel %vm10388_vm9, %v10436_v21, %v10438_v23  ;;  %v10441_v27 = vsel %vm10388_vm9, %v10438_v23, %v10440_v48 }
 0x960   : > { %v9344_v30 = vadd.f32 %v18776_v16, %v8996_v14  ;;  %v9459_v18 = vshll.u32 %v18863_v6, 16  ;;  %v8997_v21 = vadd.f32 %v18788_v41, %v18513_v56  ;;  %v10444_v23 = vrot.slane %v10318_v36, 2 }
 0x961   : > { %11823 = vst [vmem:[%s18623_s30 + $0x58] sm:$0xff] %v11721_v25   ;;  %v10214_v11 = vmul.f32 %v18600_v62, %v10066_v2  ;;  %v18875_v15 = vpop.f32.mrf.mxu3  ;;  %v9000_v36 = vadd.f32 %v18855_v39, %v18527_v5 }
 0x962   : > { %v9718_v2 = vadd.f32 %v18818_v28, %v9344_v30  ;;  %v9461_v16 = vrot.slane %v9459_v18, 1  ;;  %v9345_v22 = vadd.f32 %v18790_v51, %v8997_v21  ;;  %v8998_v51 = vadd.f32 %v18804_v50, %v18518_v19 }
 0x963   : > { %v18853_v40 = vpop.f32.mrf.mxu1  ;;  %v10266_v12 = vadd.f32 %v18611_v60, %v10214_v11  ;;  %v18880_v42 = vpop.f32.mrf.mxu0  ;;  %v10442_v11 = vrot.slane %v10317_v38, 2 }
 0x964   : > { %v9719_v56 = vadd.f32 %v18839_v61, %v9345_v22 }
 0x965   : > { %v10558_v49 = vadd.f32 %v10439_v54, %v10266_v12  ;;  %v10443_v12 = vsel %vm10388_vm9, %v10440_v48, %v10442_v11 }
 0x966   : > { %9633 = vmatmul.bf16.gmra.mxu1 %v9454_v1  ;;  %v9936_v26 = vpop.f32.mrf.mxu2 }
 0x967   : > { %v10067_v3 = vadd.f32 %v9936_v26, %v9717_v8  ;;  %v9457_v8 = vor.u32 %v9455_v44, %v9453_v24  ;;  %v9809_v26 = vrot.slane %v21049_v31, 1 }
 0x969   : > { %v10215_v4 = vmul.f32 %v18600_v62, %v10067_v3  ;;  %v9462_v28 = vsel %vm1060_vm0, %v9457_v8, %v9461_v16  ;;  %v18891_v14 = vpop.f32.mrf.mxu3  ;;  %v9810_v54 = vsel %vm1699_vm1, %v9807_v9, %v9809_v26 }
 0x96b   : > { %v10267_v37 = vadd.f32 %v18611_v60, %v10215_v4  ;;  %v9596_v43 = vpop.f32.mrf.mxu1  ;;  %9978 = vmatmul.bf16.gmra.mxu2 %v9808_v52  ;;  %v10445_v4 = vsel %vm10388_vm9, %v10442_v11, %v10444_v23  ;;  %v9348_v11 = vadd.f32 %v18861_v34, %v9000_v36 }
 0x96d   : > { %v10559_v63 = vadd.f32 %v10441_v27, %v10267_v37  ;;  %v18900_v27 = vpop.f32.mrf.mxu0  ;;  %v9346_v37 = vadd.f32 %v18814_v29, %v8998_v51  ;;  %v9001_v51 = vadd.f32 %v18875_v15, %v18531_v53  ;;  %v9002_v15 = vadd.f32 %v18891_v14, %v18535_v45 }
 0x96e   : > { %v9939_v25 = vpop.f32.mrf.mxu2 }
 0x96f   : > { %v11726_v46 = vpack.c.bf16 %v10559_v63, %v10558_v49  ;;  %v10068_v55 = vadd.f32 %v9939_v25, %v9718_v2  ;;  %v8999_v49 = vadd.f32 %v18832_v10, %v18522_v17  ;;  %v9720_v48 = vadd.f32 %v18853_v40, %v9346_v37  ;;  %v21054_v25 = vld [vmem:[#allocation24_spill] sm:$0xff]  ;;  %v21055_v2 = vld [vmem:[#allocation26_spill] sm:$0xff] }
 0x970   : > { %v10319_v21 = vunpack.c.l.bf16 %v21054_v25  ;;  %v9811_v10 = vrot.slane %v18863_v6, 1 }
 0x971   : > { %11824 = vst [vmem:[%s18623_s30 + $0x60] sm:$0xff] %v11726_v46   ;;  %v10216_v41 = vmul.f32 %v18600_v62, %v10068_v55  ;;  %v8884_v9 = vpop.f32.mrf.mxu3  ;;  %v10320_v46 = vunpack.c.l.bf16 %v21055_v2  ;;  %v9347_v55 = vadd.f32 %v18841_v58, %v8999_v49  ;;  %v9350_v2 = vadd.f32 %v18900_v27, %v9002_v15  ;;  %v18944_v27 = vld [vmem:[%s19079_s5] ss:$0 sm:$0xff] }
 0x972   : > { %v10446_v38 = vrot.slane %v10319_v21, 2 }
 0x973   : > { %v9599_v59 = vpop.f32.mrf.mxu1  ;;  %v10268_v24 = vadd.f32 %v18611_v60, %v10216_v41  ;;  %v9721_v16 = vadd.f32 %v9596_v43, %v9347_v55  ;;  %v10448_v17 = vrot.slane %v10320_v46, 2 }
 0x974   : > { %v10447_v58 = vsel %vm10388_vm9, %v10444_v23, %v10446_v38 }
 0x975   : > { %v10560_v19 = vadd.f32 %v10443_v12, %v10268_v24  ;;  %v9232_v29 = vpop.f32.mrf.mxu0  ;;  %v10449_v43 = vsel %vm10388_vm9, %v10446_v38, %v10448_v17  ;;  %v9722_v24 = vadd.f32 %v9599_v59, %v9348_v11  ;;  %v21056_v12 = vld [vmem:[#allocation27_spill] sm:$0xff] }
 0x976   : > { %9638 = vmatmul.bf16.gmra.mxu1 %v9462_v28  ;;  %v9941_v1 = vpop.f32.mrf.mxu2 }
 0x977   : > { %v10069_v3 = vadd.f32 %v9941_v1, %v9719_v56  ;;  %v9812_v56 = vsel %vm1699_vm1, %v9809_v26, %v9811_v10  ;;  %v10321_v26 = vunpack.c.l.bf16 %v21056_v12 }
 0x979   : > { %v10217_v61 = vmul.f32 %v18600_v62, %v10069_v3  ;;  %v8887_v6 = vpop.f32.mrf.mxu3 }
 0x97b   : > { %v10269_v31 = vadd.f32 %v18611_v60, %v10217_v61  ;;  %v9601_v52 = vpop.f32.mrf.mxu1  ;;  %9983 = vmatmul.bf16.gmra.mxu2 %v9810_v54 }
 0x97d   : > { %v10561_v50 = vadd.f32 %v10445_v4, %v10269_v31  ;;  %v9235_v3 = vpop.f32.mrf.mxu0  ;;  %v21057_v4 = vld [vmem:[#allocation34_spill] sm:$0xff]  ;;  %v9349_v31 = vadd.f32 %v18880_v42, %v9001_v51 }
 0x97e   : > { %v9944_v30 = vpop.f32.mrf.mxu2  ;;  %v10322_v54 = vunpack.c.l.bf16 %v21057_v4 }
 0x97f   : > { %v11731_v63 = vpack.c.bf16 %v10561_v50, %v10560_v19  ;;  %v10070_v18 = vadd.f32 %v9944_v30, %v9720_v48  ;;  %v9723_v19 = vadd.f32 %v9601_v52, %v9349_v31  ;;  %v10450_v30 = vrot.slane %v10321_v26, 2  ;;  %v21060_v31 = vld [vmem:[#allocation42_spill] sm:$0xff] }
 0x980   : > { %v10452_v48 = vrot.slane %v10322_v54, 2 }
 0x981   : > { %11825 = vst [vmem:[%s18623_s30 + $0x68] sm:$0xff] %v11731_v63   ;;  %v10218_v33 = vmul.f32 %v18600_v62, %v10070_v18  ;;  %v8889_v50 = vpop.f32.mrf.mxu3  ;;  %v10451_v42 = vsel %vm10388_vm9, %v10448_v17, %v10450_v30  ;;  %v21059_v17 = vld [vmem:[#allocation41_spill] sm:$0xff] }
 0x982   : > { %v10453_v52 = vsel %vm10388_vm9, %v10450_v30, %v10452_v48  ;;  %v9005_v12 = vadd.f32 %v8889_v50, %v18547_v20 }
 0x983   : > { %v9604_v44 = vpop.f32.mrf.mxu1  ;;  %v10270_v22 = vadd.f32 %v18611_v60, %v10218_v33  ;;  %v9003_v33 = vadd.f32 %v8884_v9, %v18539_v7 }
 0x984   : > { %v9724_v38 = vadd.f32 %v9604_v44, %v9350_v2 }
 0x985   : > { %v10562_v1 = vadd.f32 %v10447_v58, %v10270_v22  ;;  %v9237_v53 = vpop.f32.mrf.mxu0  ;;  %v9351_v22 = vadd.f32 %v9232_v29, %v9003_v33 }
 0x986   : > { %v9946_v13 = vpop.f32.mrf.mxu2 }
 0x987   : > { %v10071_v40 = vadd.f32 %v9946_v13, %v9721_v16 }
 0x989   : > { %v10219_v8 = vmul.f32 %v18600_v62, %v10071_v40  ;;  %v8892_v14 = vpop.f32.mrf.mxu3  ;;  %v10324_v40 = vunpack.c.l.bf16 %v21059_v17  ;;  %v21062_v17 = vld [vmem:[#allocation50_spill] sm:$0xff] }
 0x98a   : > { %v9006_v20 = vadd.f32 %v8892_v14, %v18551_v32 }
 0x98b   : > { %v10271_v41 = vadd.f32 %v18611_v60, %v10219_v8  ;;  %v9606_v28 = vpop.f32.mrf.mxu1  ;;  %9988 = vmatmul.bf16.gmra.mxu2 %v9812_v56  ;;  %v10456_v58 = vrot.slane %v10324_v40, 2  ;;  %v9004_v56 = vadd.f32 %v8887_v6, %v18543_v0  ;;  %v10327_v40 = vunpack.c.l.bf16 %v21062_v17 }
 0x98c   : > { %v9725_v8 = vadd.f32 %v9606_v28, %v9351_v22  ;;  %v21063_v22 = vld [vmem:[#allocation59_spill] sm:$0xff] }
 0x98d   : > { %v10563_v5 = vadd.f32 %v10449_v43, %v10271_v41  ;;  %v9240_v36 = vpop.f32.mrf.mxu0  ;;  %v18951_v41 = vld [vmem:[%s19080_s6] ss:$0 sm:$0xff] }
 0x98e   : > { %v9949_v39 = vpop.f32.mrf.mxu2 }
 0x98f   : > { %v11736_v23 = vpack.c.bf16 %v10563_v5, %v10562_v1  ;;  %v10072_v61 = vadd.f32 %v9949_v39, %v9722_v24  ;;  %v9352_v24 = vadd.f32 %v9235_v3, %v9004_v56 }
 0x991   : > { %11826 = vst [vmem:[%s18623_s30 + $0x70] sm:$0xff] %v11736_v23   ;;  %v10220_v34 = vmul.f32 %v18600_v62, %v10072_v61  ;;  %v8894_v11 = vpop.f32.mrf.mxu3 }
 0x993   : > { %v9609_v37 = vpop.f32.mrf.mxu1  ;;  %v10272_v59 = vadd.f32 %v18611_v60, %v10220_v34  ;;  %v21061_v34 = vld [vmem:[#allocation49_spill] sm:$0xff] }
 0x994   : > { %v9726_v26 = vadd.f32 %v9609_v37, %v9352_v24  ;;  %v10326_v30 = vunpack.c.l.bf16 %v21061_v34 }
 0x995   : > { %v10564_v46 = vadd.f32 %v10451_v42, %v10272_v59  ;;  %v9242_v51 = vpop.f32.mrf.mxu0 }
 0x996   : > { %v9951_v49 = vpop.f32.mrf.mxu2 }
 0x997   : > { %v10073_v63 = vadd.f32 %v9951_v49, %v9723_v19  ;;  %v10325_v19 = vunpack.c.l.bf16 %v21060_v31  ;;  %v9353_v49 = vadd.f32 %v9237_v53, %v9005_v12 }
 0x999   : > { %v10221_v18 = vmul.f32 %v18600_v62, %v10073_v63  ;;  %v21058_v62 = vld [vmem:[#allocation35_spill] sm:$0xff]  ;;  %v10458_v3 = vrot.slane %v10325_v19, 2  ;;  %v21065_v19 = vld [vmem:[#allocation65_spill] sm:$0xff] }
 0x99a   : > { %v10323_v10 = vunpack.c.l.bf16 %v21058_v62  ;;  %v10330_v34 = vunpack.c.l.bf16 %v21065_v19 }
 0x99b   : > { %v10273_v25 = vadd.f32 %v18611_v60, %v10221_v18  ;;  %v9611_v21 = vpop.f32.mrf.mxu1  ;;  %v10460_v18 = vrot.slane %v10326_v30, 2  ;;  %v10459_v2 = vsel %vm10388_vm9, %v10456_v58, %v10458_v3 }
 0x99c   : > { %v10454_v9 = vrot.slane %v10323_v10, 2  ;;  %v9727_v63 = vadd.f32 %v9611_v21, %v9353_v49 }
 0x99d   : > { %v10565_v55 = vadd.f32 %v10453_v52, %v10273_v25  ;;  %v9245_v42 = vpop.f32.mrf.mxu0  ;;  %v10461_v53 = vsel %vm10388_vm9, %v10458_v3, %v10460_v18 }
 0x99e   : > { %v9954_v16 = vpop.f32.mrf.mxu2  ;;  %v10455_v1 = vsel %vm10388_vm9, %v10452_v48, %v10454_v9  ;;  %v10457_v5 = vsel %vm10388_vm9, %v10454_v9, %v10456_v58  ;;  %v8897_v48 = vpop.f32.mrf.mxu3 }
 0x99f   : > { %v11741_v45 = vpack.c.bf16 %v10565_v55, %v10564_v46  ;;  %v10074_v13 = vadd.f32 %v9954_v16, %v9724_v38  ;;  %v9354_v46 = vadd.f32 %v9240_v36, %v9006_v20 }
 0x9a1   : > { %11827 = vst [vmem:[%s18623_s30 + $0x78] sm:$0xff] %v11741_v45   ;;  %v10222_v7 = vmul.f32 %v18944_v27, %v10074_v13  ;;  %v9007_v45 = vadd.f32 %v8894_v11, %v18555_v47  ;;  %v9008_v47 = vadd.f32 %v8897_v48, %v18559_v57 }
 0x9a3   : > { %v9614_v60 = vpop.f32.mrf.mxu1  ;;  %v10274_v29 = vadd.f32 %v18951_v41, %v10222_v7  ;;  %v9355_v7 = vadd.f32 %v9242_v51, %v9007_v45  ;;  %v9356_v24 = vadd.f32 %v9245_v42, %v9008_v47  ;;  %v21070_v47 = vld [vmem:[#allocation168_spill] sm:$0xff] }
 0x9a4   : > { %v9728_v13 = vadd.f32 %v9614_v60, %v9354_v46 }
 0x9a5   : > { %v10566_v0 = vadd.f32 %v10455_v1, %v10274_v29  ;;  %v9247_v32 = vpop.f32.mrf.mxu0 }
 0x9a6   : > { %v9956_v44 = vpop.f32.mrf.mxu2  ;;  %v8899_v33 = vpop.f32.mrf.mxu3 }
 0x9a7   : > { %v10075_v43 = vadd.f32 %v9956_v44, %v9725_v8  ;;  %v10328_v8 = vunpack.c.l.bf16 %v21063_v22  ;;  %v10462_v44 = vrot.slane %v10327_v40, 2  ;;  %v21069_v40 = vld [vmem:[#allocation79_spill] sm:$0xff] }
 0x9a8   : > { %v10332_v22 = vunpack.c.l.bf16 %v21069_v40 }
 0x9a9   : > { %v10223_v28 = vmul.f32 %v18944_v27, %v10075_v43  ;;  %v10464_v43 = vrot.slane %v10328_v8, 2  ;;  %v10463_v11 = vsel %vm10388_vm9, %v10460_v18, %v10462_v44  ;;  %v10468_v18 = vrot.slane %v10330_v34, 2  ;;  %v21073_v34 = vld [vmem:[#allocation91_spill] sm:$0xff] }
 0x9ab   : > { %v10275_v39 = vadd.f32 %v18951_v41, %v10223_v28  ;;  %v9616_v23 = vpop.f32.mrf.mxu1  ;;  %v10465_v1 = vsel %vm10388_vm9, %v10462_v44, %v10464_v43 }
 0x9ac   : > { %v9729_v9 = vadd.f32 %v9616_v23, %v9355_v7 }
 0x9ad   : > { %v10567_v6 = vadd.f32 %v10457_v5, %v10275_v39  ;;  %v9250_v5 = vpop.f32.mrf.mxu0 }
 0x9ae   : > { %v9959_v61 = vpop.f32.mrf.mxu2  ;;  %v8902_v29 = vpop.f32.mrf.mxu3 }
 0x9af   : > { %v11746_v4 = vpack.c.bf16 %v10567_v6, %v10566_v0  ;;  %v10076_v54 = vadd.f32 %v9959_v61, %v9726_v26  ;;  %v9009_v61 = vadd.f32 %v8899_v33, %v18563_v35  ;;  %v21066_v35 = vld [vmem:[#allocation62_spill] sm:$0xff] }
 0x9b1   : > { %11828 = vst [vmem:[%s18623_s30 + $0x80] sm:$0xff] %v11746_v4   ;;  %v10224_v15 = vmul.f32 %v18944_v27, %v10076_v54  ;;  %v21064_v54 = vld [vmem:[#allocation60_spill] sm:$0xff]  ;;  %v9357_v30 = vadd.f32 %v9247_v32, %v9009_v61  ;;  %v21071_v61 = vld [vmem:[#allocation166_spill] sm:$0xff] }
 0x9b2   : > { %v10329_v31 = vunpack.c.l.bf16 %v21064_v54 }
 0x9b3   : > { %v9619_v25 = vpop.f32.mrf.mxu1  ;;  %v10276_v37 = vadd.f32 %v18951_v41, %v10224_v15 }
 0x9b4   : > { %v9730_v12 = vadd.f32 %v9619_v25, %v9356_v24  ;;  %v10466_v3 = vrot.slane %v10329_v31, 2  ;;  %v21072_v31 = vld [vmem:[#allocation80_spill] sm:$0xff] }
 0x9b5   : > { %v10568_v55 = vadd.f32 %v10459_v2, %v10276_v37  ;;  %v9252_v49 = vpop.f32.mrf.mxu0  ;;  %v10333_v19 = vunpack.c.l.bf16 %v21072_v31 }
 0x9b6   : > { %v9961_v59 = vpop.f32.mrf.mxu2  ;;  %v8904_v4 = vpop.f32.mrf.mxu3  ;;  %v10467_v37 = vsel %vm10388_vm9, %v10464_v43, %v10466_v3  ;;  %v10472_v43 = vrot.slane %v10332_v22, 2  ;;  %v21077_v22 = vld [vmem:[#allocation18_spill] sm:$0xff] }
 0x9b7   : > { %v10077_v52 = vadd.f32 %v9961_v59, %v9727_v63 }
 0x9b9   : > { %v10225_v50 = vmul.f32 %v18944_v27, %v10077_v52  ;;  %v9010_v52 = vadd.f32 %v8902_v29, %v21066_v35 }
 0x9bb   : > { %v10277_v21 = vadd.f32 %v18951_v41, %v10225_v50  ;;  %v9621_v10 = vpop.f32.mrf.mxu1  ;;  %v10469_v50 = vsel %vm10388_vm9, %v10466_v3, %v10468_v18 }
 0x9bc   : > { %v9731_v48 = vadd.f32 %v9621_v10, %v9357_v30  ;;  %v21068_v10 = vld [vmem:[#allocation66_spill] sm:$0xff]  ;;  %v10334_v30 = vunpack.c.l.bf16 %v21073_v34 }
 0x9bd   : > { %v10569_v16 = vadd.f32 %v10461_v53, %v10277_v21  ;;  %v9358_v21 = vadd.f32 %v9250_v5, %v9010_v52  ;;  %v9255_v33 = vpop.f32.mrf.mxu0  ;;  %v10331_v17 = vunpack.c.l.bf16 %v21068_v10  ;;  %v21074_v52 = vld [vmem:[#allocation86_spill] sm:$0xff] }
 0x9be   : > { %v9964_v38 = vpop.f32.mrf.mxu2  ;;  %v8907_v53 = vpop.f32.mrf.mxu3 }
 0x9bf   : > { %v11751_v62 = vpack.c.bf16 %v10569_v16, %v10568_v55  ;;  %v10078_v14 = vadd.f32 %v9964_v38, %v9728_v13  ;;  %v21067_v38 = vld [vmem:[#allocation212_spill] sm:$0xff]  ;;  %v10470_v44 = vrot.slane %v10331_v17, 2 }
 0x9c0   : > { %v9011_v45 = vadd.f32 %v8904_v4, %v21067_v38  ;;  %v21076_v17 = vld [vmem:[#allocation92_spill] sm:$0xff] }
 0x9c1   : > { %11829 = vst [vmem:[%s18623_s30 + $0x88] sm:$0xff] %v11751_v62   ;;  %v10226_v36 = vmul.f32 %v18944_v27, %v10078_v14  ;;  %v10471_v5 = vsel %vm10388_vm9, %v10468_v18, %v10470_v44  ;;  %v10335_v40 = vunpack.c.l.bf16 %v21076_v17 }
 0x9c2   : > { %v9359_v8 = vadd.f32 %v9252_v49, %v9011_v45 }
 0x9c3   : > { %v10278_v60 = vadd.f32 %v18951_v41, %v10226_v36  ;;  %v9624_v51 = vpop.f32.mrf.mxu1 }
 0x9c4   : > { %v9732_v13 = vadd.f32 %v9624_v51, %v9358_v21 }
 0x9c5   : > { %v10570_v0 = vadd.f32 %v10463_v11, %v10278_v60  ;;  %v9257_v29 = vpop.f32.mrf.mxu0  ;;  %v9012_v60 = vadd.f32 %v8907_v53, %v21070_v47 }
 0x9c6   : > { %v9966_v58 = vpop.f32.mrf.mxu2  ;;  %v8909_v36 = vpop.f32.mrf.mxu3 }
 0x9c7   : > { %v10079_v56 = vadd.f32 %v9966_v58, %v9729_v9  ;;  %v9360_v24 = vadd.f32 %v9255_v33, %v9012_v60 }
 0x9c9   : > { %v10227_v28 = vmul.f32 %v18944_v27, %v10079_v56 }
 0x9cb   : > { %v10279_v39 = vadd.f32 %v18951_v41, %v10227_v28  ;;  %v9626_v15 = vpop.f32.mrf.mxu1 }
 0x9cc   : > { %v9733_v7 = vadd.f32 %v9626_v15, %v9359_v8  ;;  %v10336_v8 = vunpack.c.l.bf16 %v21077_v22 }
 0x9cd   : > { %v10571_v6 = vadd.f32 %v10465_v1, %v10279_v39  ;;  %v10473_v39 = vsel %vm10388_vm9, %v10470_v44, %v10472_v43  ;;  %v9260_v49 = vpop.f32.mrf.mxu0 }
 0x9ce   : > { %v9969_v23 = vpop.f32.mrf.mxu2  ;;  %v8912_v4 = vpop.f32.mrf.mxu3 }
 0x9cf   : > { %v11756_v57 = vpack.c.bf16 %v10571_v6, %v10570_v0  ;;  %v10080_v26 = vadd.f32 %v9969_v23, %v9730_v12  ;;  %v9013_v12 = vadd.f32 %v8909_v36, %v21071_v61 }
 0x9d1   : > { %11830 = vst [vmem:[%s18623_s30 + $0x90] sm:$0xff] %v11756_v57   ;;  %v10228_v63 = vmul.f32 %v18944_v27, %v10080_v26 }
 0x9d3   : > { %v10280_v25 = vadd.f32 %v18951_v41, %v10228_v63  ;;  %v9629_v32 = vpop.f32.mrf.mxu1 }
 0x9d4   : > { %v9734_v57 = vadd.f32 %v9629_v32, %v9360_v24 }
 0x9d5   : > { %v10572_v46 = vadd.f32 %v10467_v37, %v10280_v25  ;;  %v9014_v25 = vadd.f32 %v8912_v4, %v21074_v52 }
 0x9d6   : > { %v9971_v59 = vpop.f32.mrf.mxu2 }
 0x9d7   : > { %v10081_v42 = vadd.f32 %v9971_v59, %v9731_v48  ;;  %v9361_v48 = vadd.f32 %v9257_v29, %v9013_v12  ;;  %v10474_v59 = vrot.slane %v10333_v19, 2 }
 0x9d9   : > { %v10229_v20 = vmul.f32 %v18944_v27, %v10081_v42  ;;  %v10476_v42 = vrot.slane %v10334_v30, 2  ;;  %v21080_v30 = vld [vmem:[#allocation19_spill] sm:$0xff] }
 0x9db   : > { %v10281_v2 = vadd.f32 %v18951_v41, %v10229_v20  ;;  %v9631_v1 = vpop.f32.mrf.mxu1  ;;  %v10477_v53 = vsel %vm10388_vm9, %v10474_v59, %v10476_v42 }
 0x9dc   : > { %v9735_v15 = vadd.f32 %v9631_v1, %v9361_v48  ;;  %v21081_v48 = vld [vmem:[#allocation22_spill] sm:$0xff] }
 0x9dd   : > { %v10573_v55 = vadd.f32 %v10469_v50, %v10281_v2  ;;  %v8914_v50 = vpop.f32.mrf.mxu3  ;;  %v10475_v2 = vsel %vm10388_vm9, %v10472_v43, %v10474_v59 }
 0x9de   : > { %v9974_v16 = vpop.f32.mrf.mxu2 }
 0x9df   : > { %v11761_v62 = vpack.c.bf16 %v10573_v55, %v10572_v46  ;;  %v10082_v14 = vadd.f32 %v9974_v16, %v9732_v13  ;;  %v9262_v46 = vpop.f32.mrf.mxu0  ;;  %v9362_v55 = vadd.f32 %v9260_v49, %v9014_v25  ;;  %v21075_v13 = vld [vmem:[#allocation87_spill] sm:$0xff]  ;;  %v10337_v49 = vunpack.c.l.bf16 %v21080_v30 }
 0x9e1   : > { %11831 = vst [vmem:[%s18623_s30 + $0x98] sm:$0xff] %v11761_v62   ;;  %v10230_v9 = vmul.f32 %v18944_v27, %v10082_v14  ;;  %v9015_v62 = vadd.f32 %v8914_v50, %v21075_v13 }
 0x9e3   : > { %v10282_v28 = vadd.f32 %v18951_v41, %v10230_v9  ;;  %v9634_v63 = vpop.f32.mrf.mxu1 }
 0x9e4   : > { %v9736_v32 = vadd.f32 %v9634_v63, %v9362_v55  ;;  %v10338_v63 = vunpack.c.l.bf16 %v21081_v48 }
 0x9e5   : > { %v10574_v0 = vadd.f32 %v10471_v5, %v10282_v28  ;;  %v8917_v9 = vpop.f32.mrf.mxu3  ;;  %v21078_v28 = vld [vmem:[#allocation156_spill] sm:$0xff] }
 0x9e6   : > { %v9976_v58 = vpop.f32.mrf.mxu2 }
 0x9e7   : > { %v10083_v56 = vadd.f32 %v9976_v58, %v9733_v7  ;;  %v9363_v7 = vadd.f32 %v9262_v46, %v9015_v62  ;;  %v10478_v58 = vrot.slane %v10335_v40, 2  ;;  %v9265_v47 = vpop.f32.mrf.mxu0 }
 0x9e9   : > { %v10231_v11 = vmul.f32 %v18944_v27, %v10083_v56  ;;  %v10480_v56 = vrot.slane %v10336_v8, 2 }
 0x9eb   : > { %v10283_v51 = vadd.f32 %v18951_v41, %v10231_v11  ;;  %v9636_v38 = vpop.f32.mrf.mxu1  ;;  %v9016_v11 = vadd.f32 %v8917_v9, %v21078_v28 }
 0x9ec   : > { %v9737_v36 = vadd.f32 %v9636_v38, %v9363_v7 }
 0x9ed   : > { %v10575_v6 = vadd.f32 %v10473_v39, %v10283_v51  ;;  %v10479_v39 = vsel %vm10388_vm9, %v10476_v42, %v10478_v58  ;;  %v10481_v51 = vsel %vm10388_vm9, %v10478_v58, %v10480_v56  ;;  %v8919_v61 = vpop.f32.mrf.mxu3 }
 0x9ee   : > { %v9979_v23 = vpop.f32.mrf.mxu2 }
 0x9ef   : > { %v11766_v26 = vpack.c.bf16 %v10575_v6, %v10574_v0  ;;  %v10084_v54 = vadd.f32 %v9979_v23, %v9734_v57  ;;  %v9364_v0 = vadd.f32 %v9265_v47, %v9016_v11  ;;  %v21079_v57 = vld [vmem:[#allocation188_spill] sm:$0xff]  ;;  %v9267_v19 = vpop.f32.mrf.mxu0 }
 0x9f1   : > { %11832 = vst [vmem:[%s18623_s30 + $0xa0] sm:$0xff] %v11766_v26   ;;  %v10232_v3 = vmul.f32 %v18944_v27, %v10084_v54  ;;  %v9017_v26 = vadd.f32 %v8919_v61, %v21079_v57 }
 0x9f3   : > { %v10284_v20 = vadd.f32 %v18951_v41, %v10232_v3  ;;  %v9639_v60 = vpop.f32.mrf.mxu1 }
 0x9f4   : > { %v9738_v4 = vadd.f32 %v9639_v60, %v9364_v0 }
 0x9f5   : > { %v10576_v16 = vadd.f32 %v10475_v2, %v10284_v20 }
 0x9f6   : > { %v9981_v18 = vpop.f32.mrf.mxu2 }
 0x9f7   : > { %v10085_v35 = vadd.f32 %v9981_v18, %v9735_v15  ;;  %v9365_v15 = vadd.f32 %v9267_v19, %v9017_v26  ;;  %v10482_v18 = vrot.slane %v10337_v49, 2 }
 0x9f9   : > { %v10233_v37 = vmul.f32 %v18944_v27, %v10085_v35  ;;  %v10484_v35 = vrot.slane %v10338_v63, 2 }
 0x9fb   : > { %v10285_v21 = vadd.f32 %v18951_v41, %v10233_v37  ;;  %v9641_v34 = vpop.f32.mrf.mxu1  ;;  %v10483_v37 = vsel %vm10388_vm9, %v10480_v56, %v10482_v18  ;;  %v10485_v50 = vsel %vm10388_vm9, %v10482_v18, %v10484_v35 }
 0x9fc   : > { %v9739_v3 = vadd.f32 %v9641_v34, %v9365_v15 }
 0x9fd   : > { %v10577_v33 = vadd.f32 %v10477_v53, %v10285_v21 }
 0x9fe   : > { %v9984_v45 = vpop.f32.mrf.mxu2 }
 0x9ff   : > { %v11771_v14 = vpack.c.bf16 %v10577_v33, %v10576_v16  ;;  %v10086_v10 = vadd.f32 %v9984_v45, %v9736_v32 }
 0xa01   : > { %11833 = vst [vmem:[%s18623_s30 + $0xa8] sm:$0xff] %v11771_v14   ;;  %v10234_v44 = vmul.f32 %v18944_v27, %v10086_v10 }
 0xa03   : > { %v10286_v1 = vadd.f32 %v18951_v41, %v10234_v44 }
 0xa05   : > { %v10578_v6 = vadd.f32 %v10479_v39, %v10286_v1 }
 0xa06   : > { %v9986_v43 = vpop.f32.mrf.mxu2 }
 0xa07   : > { %v10087_v29 = vadd.f32 %v9986_v43, %v9737_v36 }
 0xa09   : > { %v10235_v5 = vmul.f32 %v18944_v27, %v10087_v29 }
 0xa0b   : > { %v10287_v24 = vadd.f32 %v18951_v41, %v10235_v5 }
 0xa0d   : > { %v10579_v23 = vadd.f32 %v10481_v51, %v10287_v24 }
 0xa0e   : > { %v9989_v12 = vpop.f32.mrf.mxu2 }
 0xa0f   : > { %v11776_v54 = vpack.c.bf16 %v10579_v23, %v10578_v6  ;;  %v10088_v31 = vadd.f32 %v9989_v12, %v9738_v4 }
 0xa11   : > { %11834 = vst [vmem:[%s18623_s30 + $0xb0] sm:$0xff] %v11776_v54   ;;  %v10236_v59 = vmul.f32 %v18944_v27, %v10088_v31 }
 0xa13   : > { %v10288_v25 = vadd.f32 %v18951_v41, %v10236_v59 }
 0xa15   : > { %v10580_v53 = vadd.f32 %v10483_v37, %v10288_v25 }
 0xa16   : > { %v9991_v42 = vpop.f32.mrf.mxu2 }
 0xa17   : > { %v10089_v52 = vadd.f32 %v9991_v42, %v9739_v3 }
 0xa19   : > { %v10237_v20 = vmul.f32 %v18944_v27, %v10089_v52 }
 0xa1b   : > { %v10289_v2 = vadd.f32 %v18951_v41, %v10237_v20 }
 0xa1d   : > { %v10581_v21 = vadd.f32 %v10485_v50, %v10289_v2 }
 0xa1f   : > { %v11781_v46 = vpack.c.bf16 %v10581_v21, %v10580_v53 }
 0xa21   : > { %11835 = vst [vmem:[%s18623_s30 + $0xb8] sm:$0xff] %v11781_v46  }
 0xa22   : > { %12085 = shalt.err (!%p12082_p0)
}
 0xa23   : > { %s12151_s13 = smov 64   ;;  %s12152_s30 = smov 4  }
 0xa24   : > { %11872 = dma.vmem_to_hbm [thread:$0]  (%p12275_p2), %s10694_s27, 3072, %s10696_s21, %s10679_s12, %s12151_s13, %s12151_s13, %s12152_s30  }
 0xa25 PF: > { %s10710_s4 = sand.u32 1, %s12124_s24   ;;  %p11886_p4 = pnand %p10807_p10, %p12240_p5 }
 0xa26   : > { %s10711_s9 = scalar_lea.sflag [#allocation6], %s10710_s4 }
 0xa27   : > { %p11887_p6 = pneg %p11886_p4 }
 0xa29   : > { %12119 = dma.done.wait (%p11887_p6), %s10711_s9, 3072  }
 0xa2a   : > { %12121 = vsyncadd (%p11887_p6), %s10711_s9, 4294964224  ;;  %s24_s29 = sadd.s32 1, %s12144_s29   ;;  %s21083_s14 = sld [smem:[#allocation15_spill]] }
 0xa2b   : > { %p21_p8 = scmp.ge.s32.totalorder %s24_s29, 4   ;;  %s21084_s24 = smov %s12128_s25 }
 0xa2c   : > { %s21085_s25 = smov %s12132_s26  ;;  %s21086_s26 = smov %s12285_s19 }
 0xa2d   : > { %s21087_s27 = smov %s12140_s28  ;;  %23 = sbr.rel (!%p21_p8) target bundleno = 10 (0xa), region = 117 }
 0xa30   : > { %s21088_s28 = smov %s21083_s14 }
 0xa32   :  { %10717 = vsyncpa [#allocation5], 1 }
 0xa33   :  { %10719 = vsyncpa [#allocation5 + $0x1], 1 }
 0xa34   :  { %10720 = vsyncpa [#allocation8], 1 }
 0xa35   :  { %10721 = vsyncpa [#allocation6], 1 }
 0xa36   :  { %10723 = vsyncpa [#allocation6 + $0x1], 1 }

</bundles_post_ra>
